<compile_context>
chip_gen: v5e
topology: v5e:2x2
jax: 0.10.0
libtpu: 0.0.40
codegen_flags: <defaults>
</compile_context>

<pallas_src>
import jax
import jax.numpy as jnp
from jax.experimental import pallas as pl
from jax.experimental.pallas import tpu as pltpu

NEG_SLOPE = 0.01   # nn.LeakyReLU() default negative_slope
LANE = 128

_CompilerParams = getattr(pltpu, "CompilerParams", None) or getattr(
    pltpu, "TPUCompilerParams", None)


def _rup(x, m):
    return ((x + m - 1) // m) * m


def _pick_batch_tile(batch, bytes_per_item, budget=4 * 1024 * 1024):
    """Largest divisor of `batch` whose per-step block bytes stay under budget."""
    cap = max(1, budget // max(1, bytes_per_item))
    tb = 1
    for d in range(1, batch + 1):
        if batch % d == 0 and d <= cap:
            tb = d
    return tb


def _compiler_params():
    if _CompilerParams is None:
        return None
    return _CompilerParams(dimension_semantics=("parallel",),
                           vmem_limit_bytes=64 * 1024 * 1024)


# ---------------------------------------------------------------------------
# Pallas kernel: fused 3x3 / stride-2 conv + bias + LeakyReLU on a batch tile
# ---------------------------------------------------------------------------
def _conv3x3_s2_lrelu_kernel(ee_ref, eo_ref, oe_ref, oo_ref, w_ref, b_ref, o_ref):
    """ee/eo/oe/oo are the 4 stride-2 phases of the (implicitly zero-padded)
    NHWC input.  Each of the 9 taps is a contiguous slice of one phase, so the
    conv is 9 accumulated bf16 MXU matmuls with an f32 accumulator."""
    tb, ho, wo, cp = ee_ref.shape
    coutp = o_ref.shape[-1]
    m = tb * ho * wo
    phase = {(0, 0): ee_ref, (0, 1): eo_ref, (1, 0): oe_ref, (1, 1): oo_ref}

    acc = jnp.zeros((m, coutp), jnp.float32)
    for kh in range(3):
        for kw in range(3):
            rp = (kh + 1) % 2          # 1 -> odd-row phase (top-padded)
            cpar = (kw + 1) % 2        # 1 -> odd-col phase (left-padded)
            r0 = (kh // 2) if rp else 0
            c0 = (kw // 2) if cpar else 0
            src = phase[(rp, cpar)][:, r0:r0 + ho, c0:c0 + wo, :]
            acc = acc + jnp.dot(src.reshape(m, cp), w_ref[kh * 3 + kw],
                                preferred_element_type=jnp.float32)

    acc = acc + b_ref[...]                           # (1, Coutp) broadcast
    acc = jnp.where(acc > 0, acc, NEG_SLOPE * acc)   # LeakyReLU(0.01)
    o_ref[...] = acc.astype(o_ref.dtype)             # lane-dense (M, 128k) store


def conv3x3_s2_lrelu(x_nhwc, w9, bias):
    """x_nhwc: (B, H, W, Cp) bf16, channel-padded; w9: (9, Cp, Coutp) bf16;
    bias: (1, Coutp) f32.  Returns (B, H//2, W//2, Coutp) bf16."""
    b, h, w, cp = x_nhwc.shape
    ho, wo = h // 2, w // 2
    coutp = w9.shape[2]
    assert w9.shape[1] == cp

    # Stride-2 phase decomposition (pure permutation of x; the 9x duplication
    # of im2col never materializes in HBM).  Zero pad only where tap indices
    # would be -1.
    ee = x_nhwc[:, 0::2, 0::2, :]
    eo = jnp.pad(x_nhwc[:, 0::2, 1::2, :], ((0, 0), (0, 0), (1, 0), (0, 0)))
    oe = jnp.pad(x_nhwc[:, 1::2, 0::2, :], ((0, 0), (1, 0), (0, 0), (0, 0)))
    oo = jnp.pad(x_nhwc[:, 1::2, 1::2, :], ((0, 0), (1, 0), (1, 0), (0, 0)))

    bytes_per_item = 2 * cp * (ho * wo + ho * (wo + 1) + (ho + 1) * wo
                               + (ho + 1) * (wo + 1)) + 2 * ho * wo * coutp
    tb = _pick_batch_tile(b, bytes_per_item)
    grid = (b // tb,)

    out = pl.pallas_call(
        _conv3x3_s2_lrelu_kernel,
        out_shape=jax.ShapeDtypeStruct((b * ho * wo, coutp), jnp.bfloat16),
        grid=grid,
        in_specs=[
            pl.BlockSpec((tb, ho, wo, cp), lambda i: (i, 0, 0, 0)),
            pl.BlockSpec((tb, ho, wo + 1, cp), lambda i: (i, 0, 0, 0)),
            pl.BlockSpec((tb, ho + 1, wo, cp), lambda i: (i, 0, 0, 0)),
            pl.BlockSpec((tb, ho + 1, wo + 1, cp), lambda i: (i, 0, 0, 0)),
            pl.BlockSpec((9, cp, coutp), lambda i: (0, 0, 0)),
            pl.BlockSpec((1, coutp), lambda i: (0, 0)),
        ],
        out_specs=pl.BlockSpec((tb * ho * wo, coutp), lambda i: (i, 0)),
        compiler_params=_compiler_params(),
    )(ee, eo, oe, oo, w9, bias)
    # Row order is (batch, h, w), so this reshape is exactly NHWC.
    return out.reshape(b, ho, wo, coutp)


# ---------------------------------------------------------------------------
# Pallas kernel: final Linear (out_features=1) as VPU multiply + lane reduce
# ---------------------------------------------------------------------------
def _linear_kernel(x_ref, w_ref, b_ref, o_ref):
    x = x_ref[...].astype(jnp.float32)
    w = w_ref[...].astype(jnp.float32)
    o_ref[...] = jnp.sum(x * w, axis=-1, keepdims=True) + b_ref[...]


def linear_reduce(x, w_row, bias):
    """x: (B, F), w_row: (1, F), bias: (1, 1) -> (B, 1) f32."""
    b, f = x.shape
    assert w_row.shape == (1, f)
    vmem = pl.BlockSpec(memory_space=pltpu.MemorySpace.VMEM)
    return pl.pallas_call(
        _linear_kernel,
        out_shape=jax.ShapeDtypeStruct((b, 1), jnp.float32),
        in_specs=[vmem, vmem, vmem],
        out_specs=vmem,
    )(x, w_row, bias)


# ---------------------------------------------------------------------------
# Parameters: PyTorch-layout init + one-time conversion to kernel layout
# ---------------------------------------------------------------------------
def init_params(key, image_channels, hidden_dim):
    ks = jax.random.split(key, 8)

    def conv_w(k, cout, cin):
        fan_in = cin * 9
        return jax.random.uniform(k, (cout, cin, 3, 3), jnp.float32, -1.0, 1.0) / jnp.sqrt(
            jnp.float32(fan_in))

    feat = 4 * 4 * 4 * hidden_dim
    return {
        "w1": conv_w(ks[0], hidden_dim, image_channels),
        "b1": jax.random.normal(ks[1], (hidden_dim,), jnp.float32) * 0.01,
        "w2": conv_w(ks[2], 2 * hidden_dim, hidden_dim),
        "b2": jax.random.normal(ks[3], (2 * hidden_dim,), jnp.float32) * 0.01,
        "w3": conv_w(ks[4], 4 * hidden_dim, 2 * hidden_dim),
        "b3": jax.random.normal(ks[5], (4 * hidden_dim,), jnp.float32) * 0.01,
        "wl": jax.random.uniform(ks[6], (1, feat), jnp.float32, -1.0, 1.0)
        / jnp.sqrt(jnp.float32(feat)),
        "bl": jax.random.normal(ks[7], (1,), jnp.float32) * 0.01,
    }


def prepare_params(params, hidden_dim):
    """One-time conversion to the padded, MXU-friendly kernel layout."""

    def prep_conv(w_oihw, bias):
        cout, cin = int(w_oihw.shape[0]), int(w_oihw.shape[1])
        cp, coutp = _rup(cin, LANE), _rup(cout, LANE)
        w_t = jnp.transpose(w_oihw, (2, 3, 1, 0))        # (3, 3, Cin, Cout)
        w_t = jnp.pad(w_t, ((0, 0), (0, 0), (0, cp - cin), (0, coutp - cout)))
        w_t = w_t.reshape(9, cp, coutp).astype(jnp.bfloat16)
        b_p = jnp.pad(bias, (0, coutp - cout)).reshape(1, coutp).astype(jnp.float32)
        return w_t, b_p

    w1, b1 = prep_conv(params["w1"], params["b1"])
    w2, b2 = prep_conv(params["w2"], params["b2"])
    w3, b3 = prep_conv(params["w3"], params["b3"])

    # Permute the linear weight once: PyTorch flattens NCHW (f = c*16 + h*4 + w);
    # we flatten the channel-padded NHWC activation directly, so reorder wl to
    # (h, w, c_padded) and zero the padded channels.
    hd4 = 4 * hidden_dim
    coutp3 = _rup(hd4, LANE)
    wl = params["wl"].reshape(hd4, 4, 4)                 # (C, H, W)
    wl = jnp.transpose(wl, (1, 2, 0))                    # (H, W, C)
    wl = jnp.pad(wl, ((0, 0), (0, 0), (0, coutp3 - hd4)))
    wl = wl.reshape(1, 4 * 4 * coutp3).astype(jnp.float32)
    bl = params["bl"].reshape(1, 1).astype(jnp.float32)

    return {"w1": w1, "b1": b1, "w2": w2, "b2": b2, "w3": w3, "b3": b3,
            "wl": wl, "bl": bl}


# ---------------------------------------------------------------------------
# Full forward pass
# ---------------------------------------------------------------------------
def wgan_discriminator_forward(prep, x_nchw):
    # PyTorch NCHW -> NHWC, bf16, channel-pad to the kernel's padded Cin.
    x = jnp.transpose(x_nchw, (0, 2, 3, 1)).astype(jnp.bfloat16)
    b, _, _, c = x.shape
    cp = prep["w1"].shape[1]
    x = jnp.pad(x, ((0, 0), (0, 0), (0, 0), (0, cp - c)))

    x = conv3x3_s2_lrelu(x, prep["w1"], prep["b1"])      # (B, 16, 16, 128k)
    x = conv3x3_s2_lrelu(x, prep["w2"], prep["b2"])      # (B,  8,  8, 128k)
    x = conv3x3_s2_lrelu(x, prep["w3"], prep["b3"])      # (B,  4,  4, 128k)

    # Flatten directly in NHWC order (wl was pre-permuted); no activation
    # transpose per call.
    xf = x.reshape(b, -1)
    out = linear_reduce(xf, prep["wl"], prep["bl"])      # (B, 1)
    return out[:, 0]                                     # .squeeze(1)


# ---------------------------------------------------------------------------
# Pure-JAX f32 reference (module semantics) for correctness check
# ---------------------------------------------------------------------------
def reference_forward(params, x_nchw):
    def conv(x, w, b):
        y = jax.lax.conv_general_dilated(
            x, w, window_strides=(2, 2), padding=((1, 1), (1, 1)),
            dimension_numbers=("NCHW", "OIHW", "NCHW"),
            precision=jax.lax.Precision.HIGHEST)
        y = y + b[None, :, None, None]
        return jnp.where(y > 0, y, NEG_SLOPE * y)

    x = conv(x_nchw.astype(jnp.float32), params["w1"], params["b1"])
    x = conv(x, params["w2"], params["b2"])
    x = conv(x, params["w3"], params["b3"])
    x = x.reshape(x.shape[0], -1)
    out = jnp.dot(x, params["wl"].T, precision=jax.lax.Precision.HIGHEST) + params["bl"]
    return out[:, 0]


if __name__ == "__main__":
    # CIFAR-10 geometry: spatial must be 32 (32 -> 16 -> 8 -> 4) so the
    # 4*4*4*hidden_dim flatten in the module matches. Keep batch/hidden small.
    image_channels, hidden_dim, batch = 3, 8, 2

    key = jax.random.PRNGKey(0)
    kp, kx = jax.random.split(key)
    params = init_params(kp, image_channels, hidden_dim)
    prep = prepare_params(params, hidden_dim)
    x = jax.random.normal(kx, (batch, image_channels, 32, 32), jnp.float32)

    fwd = jax.jit(wgan_discriminator_forward)
    out = jax.block_until_ready(fwd(prep, x))

    ref = reference_forward(params, x)
    assert out.shape == (batch,), out.shape
    # bf16 MXU inputs (f32 accumulate) vs. a pure-f32 reference -> loose tol.
    assert jnp.allclose(out, ref, rtol=5e-2, atol=5e-2), (out, ref)

    print("KERNEL_OK")
</pallas_src>

<mosaic_0001>
module attributes {stable_mosaic.version = 11 : i64} {
  func.func @_conv3x3_s2_lrelu_kernel(%arg0: i32, %arg1: memref<2x16x16x128xbf16, #tpu.memory_space<vmem>>, %arg2: memref<2x16x17x128xbf16, #tpu.memory_space<vmem>>, %arg3: memref<2x17x16x128xbf16, #tpu.memory_space<vmem>>, %arg4: memref<2x17x17x128xbf16, #tpu.memory_space<vmem>>, %arg5: memref<9x128x128xbf16, #tpu.memory_space<vmem>>, %arg6: memref<1x128xf32, #tpu.memory_space<vmem>>, %arg7: memref<512x128xbf16, #tpu.memory_space<vmem>>) attributes {dimension_semantics = [#tpu.dimension_semantics<parallel>], iteration_bounds = array<i64: 1>, scalar_prefetch = 0 : i64, scratch_operands = 0 : i64, tpu.core_type = #tpu.core_type<tc>, window_params = [{transform_indices = @transform_0, window_bounds = array<i64: 2, 16, 16, 128>}, {transform_indices = @transform_1, window_bounds = array<i64: 2, 16, 17, 128>}, {transform_indices = @transform_2, window_bounds = array<i64: 2, 17, 16, 128>}, {transform_indices = @transform_3, window_bounds = array<i64: 2, 17, 17, 128>}, {pipeline_mode = #tpu.pipeline_mode<synchronous>, transform_indices = @transform_4, window_bounds = array<i64: 9, 128, 128>}, {pipeline_mode = #tpu.pipeline_mode<synchronous>, transform_indices = @transform_5, window_bounds = array<i64: 1, 128>}, {transform_indices = @transform_6, window_bounds = array<i64: 512, 128>}]} {
    %cst = arith.constant 0.000000e+00 : f32
    %0 = vector.broadcast %cst : f32 to vector<512x128xf32>
    %c0 = arith.constant 0 : index
    %c0_0 = arith.constant 0 : index
    %c0_1 = arith.constant 0 : index
    %c0_2 = arith.constant 0 : index
    %1 = vector.load %arg4[%c0, %c0_0, %c0_1, %c0_2] : memref<2x17x17x128xbf16, #tpu.memory_space<vmem>>, vector<2x16x16x128xbf16>
    %2 = vector.shape_cast %1 : vector<2x16x16x128xbf16> to vector<512x128xbf16>
    %c0_3 = arith.constant 0 : index
    %c0_4 = arith.constant 0 : index
    %c0_5 = arith.constant 0 : index
    %3 = vector.load %arg5[%c0_3, %c0_4, %c0_5] : memref<9x128x128xbf16, #tpu.memory_space<vmem>>, vector<1x128x128xbf16>
    %4 = vector.shape_cast %3 : vector<1x128x128xbf16> to vector<128x128xbf16>
    %cst_6 = arith.constant dense<0.000000e+00> : vector<512x128xf32>
    %5 = tpu.matmul %2, %4, %cst_6 {dimension_numbers = #tpu.dot_dimension_numbers<[1], [0], [0], [1], [0, 0, 1, 1], [], []>} : vector<512x128xbf16>, vector<128x128xbf16>, vector<512x128xf32> -> vector<512x128xf32>
    %6 = arith.addf %0, %5 : vector<512x128xf32>
    %c0_7 = arith.constant 0 : index
    %c0_8 = arith.constant 0 : index
    %c0_9 = arith.constant 0 : index
    %c0_10 = arith.constant 0 : index
    %7 = vector.load %arg3[%c0_7, %c0_8, %c0_9, %c0_10] : memref<2x17x16x128xbf16, #tpu.memory_space<vmem>>, vector<2x16x16x128xbf16>
    %8 = vector.shape_cast %7 : vector<2x16x16x128xbf16> to vector<512x128xbf16>
    %c1 = arith.constant 1 : index
    %c0_11 = arith.constant 0 : index
    %c0_12 = arith.constant 0 : index
    %9 = vector.load %arg5[%c1, %c0_11, %c0_12] : memref<9x128x128xbf16, #tpu.memory_space<vmem>>, vector<1x128x128xbf16>
    %10 = vector.shape_cast %9 : vector<1x128x128xbf16> to vector<128x128xbf16>
    %cst_13 = arith.constant dense<0.000000e+00> : vector<512x128xf32>
    %11 = tpu.matmul %8, %10, %cst_13 {dimension_numbers = #tpu.dot_dimension_numbers<[1], [0], [0], [1], [0, 0, 1, 1], [], []>} : vector<512x128xbf16>, vector<128x128xbf16>, vector<512x128xf32> -> vector<512x128xf32>
    %12 = arith.addf %6, %11 : vector<512x128xf32>
    %c0_14 = arith.constant 0 : index
    %c0_15 = arith.constant 0 : index
    %c1_16 = arith.constant 1 : index
    %c0_17 = arith.constant 0 : index
    %13 = vector.load %arg4[%c0_14, %c0_15, %c1_16, %c0_17] : memref<2x17x17x128xbf16, #tpu.memory_space<vmem>>, vector<2x16x16x128xbf16>
    %14 = vector.shape_cast %13 : vector<2x16x16x128xbf16> to vector<512x128xbf16>
    %c2 = arith.constant 2 : index
    %c0_18 = arith.constant 0 : index
    %c0_19 = arith.constant 0 : index
    %15 = vector.load %arg5[%c2, %c0_18, %c0_19] : memref<9x128x128xbf16, #tpu.memory_space<vmem>>, vector<1x128x128xbf16>
    %16 = vector.shape_cast %15 : vector<1x128x128xbf16> to vector<128x128xbf16>
    %cst_20 = arith.constant dense<0.000000e+00> : vector<512x128xf32>
    %17 = tpu.matmul %14, %16, %cst_20 {dimension_numbers = #tpu.dot_dimension_numbers<[1], [0], [0], [1], [0, 0, 1, 1], [], []>} : vector<512x128xbf16>, vector<128x128xbf16>, vector<512x128xf32> -> vector<512x128xf32>
    %18 = arith.addf %12, %17 : vector<512x128xf32>
    %c0_21 = arith.constant 0 : index
    %c0_22 = arith.constant 0 : index
    %c0_23 = arith.constant 0 : index
    %c0_24 = arith.constant 0 : index
    %19 = vector.load %arg2[%c0_21, %c0_22, %c0_23, %c0_24] : memref<2x16x17x128xbf16, #tpu.memory_space<vmem>>, vector<2x16x16x128xbf16>
    %20 = vector.shape_cast %19 : vector<2x16x16x128xbf16> to vector<512x128xbf16>
    %c3 = arith.constant 3 : index
    %c0_25 = arith.constant 0 : index
    %c0_26 = arith.constant 0 : index
    %21 = vector.load %arg5[%c3, %c0_25, %c0_26] : memref<9x128x128xbf16, #tpu.memory_space<vmem>>, vector<1x128x128xbf16>
    %22 = vector.shape_cast %21 : vector<1x128x128xbf16> to vector<128x128xbf16>
    %cst_27 = arith.constant dense<0.000000e+00> : vector<512x128xf32>
    %23 = tpu.matmul %20, %22, %cst_27 {dimension_numbers = #tpu.dot_dimension_numbers<[1], [0], [0], [1], [0, 0, 1, 1], [], []>} : vector<512x128xbf16>, vector<128x128xbf16>, vector<512x128xf32> -> vector<512x128xf32>
    %24 = arith.addf %18, %23 : vector<512x128xf32>
    %c0_28 = arith.constant 0 : index
    %c0_29 = arith.constant 0 : index
    %c0_30 = arith.constant 0 : index
    %c0_31 = arith.constant 0 : index
    %25 = vector.load %arg1[%c0_28, %c0_29, %c0_30, %c0_31] : memref<2x16x16x128xbf16, #tpu.memory_space<vmem>>, vector<2x16x16x128xbf16>
    %26 = vector.shape_cast %25 : vector<2x16x16x128xbf16> to vector<512x128xbf16>
    %c4 = arith.constant 4 : index
    %c0_32 = arith.constant 0 : index
    %c0_33 = arith.constant 0 : index
    %27 = vector.load %arg5[%c4, %c0_32, %c0_33] : memref<9x128x128xbf16, #tpu.memory_space<vmem>>, vector<1x128x128xbf16>
    %28 = vector.shape_cast %27 : vector<1x128x128xbf16> to vector<128x128xbf16>
    %cst_34 = arith.constant dense<0.000000e+00> : vector<512x128xf32>
    %29 = tpu.matmul %26, %28, %cst_34 {dimension_numbers = #tpu.dot_dimension_numbers<[1], [0], [0], [1], [0, 0, 1, 1], [], []>} : vector<512x128xbf16>, vector<128x128xbf16>, vector<512x128xf32> -> vector<512x128xf32>
    %30 = arith.addf %24, %29 : vector<512x128xf32>
    %c0_35 = arith.constant 0 : index
    %c0_36 = arith.constant 0 : index
    %c1_37 = arith.constant 1 : index
    %c0_38 = arith.constant 0 : index
    %31 = vector.load %arg2[%c0_35, %c0_36, %c1_37, %c0_38] : memref<2x16x17x128xbf16, #tpu.memory_space<vmem>>, vector<2x16x16x128xbf16>
    %32 = vector.shape_cast %31 : vector<2x16x16x128xbf16> to vector<512x128xbf16>
    %c5 = arith.constant 5 : index
    %c0_39 = arith.constant 0 : index
    %c0_40 = arith.constant 0 : index
    %33 = vector.load %arg5[%c5, %c0_39, %c0_40] : memref<9x128x128xbf16, #tpu.memory_space<vmem>>, vector<1x128x128xbf16>
    %34 = vector.shape_cast %33 : vector<1x128x128xbf16> to vector<128x128xbf16>
    %cst_41 = arith.constant dense<0.000000e+00> : vector<512x128xf32>
    %35 = tpu.matmul %32, %34, %cst_41 {dimension_numbers = #tpu.dot_dimension_numbers<[1], [0], [0], [1], [0, 0, 1, 1], [], []>} : vector<512x128xbf16>, vector<128x128xbf16>, vector<512x128xf32> -> vector<512x128xf32>
    %36 = arith.addf %30, %35 : vector<512x128xf32>
    %c0_42 = arith.constant 0 : index
    %c1_43 = arith.constant 1 : index
    %c0_44 = arith.constant 0 : index
    %c0_45 = arith.constant 0 : index
    %37 = vector.load %arg4[%c0_42, %c1_43, %c0_44, %c0_45] : memref<2x17x17x128xbf16, #tpu.memory_space<vmem>>, vector<2x16x16x128xbf16>
    %38 = vector.shape_cast %37 : vector<2x16x16x128xbf16> to vector<512x128xbf16>
    %c6 = arith.constant 6 : index
    %c0_46 = arith.constant 0 : index
    %c0_47 = arith.constant 0 : index
    %39 = vector.load %arg5[%c6, %c0_46, %c0_47] : memref<9x128x128xbf16, #tpu.memory_space<vmem>>, vector<1x128x128xbf16>
    %40 = vector.shape_cast %39 : vector<1x128x128xbf16> to vector<128x128xbf16>
    %cst_48 = arith.constant dense<0.000000e+00> : vector<512x128xf32>
    %41 = tpu.matmul %38, %40, %cst_48 {dimension_numbers = #tpu.dot_dimension_numbers<[1], [0], [0], [1], [0, 0, 1, 1], [], []>} : vector<512x128xbf16>, vector<128x128xbf16>, vector<512x128xf32> -> vector<512x128xf32>
    %42 = arith.addf %36, %41 : vector<512x128xf32>
    %c0_49 = arith.constant 0 : index
    %c1_50 = arith.constant 1 : index
    %c0_51 = arith.constant 0 : index
    %c0_52 = arith.constant 0 : index
    %43 = vector.load %arg3[%c0_49, %c1_50, %c0_51, %c0_52] : memref<2x17x16x128xbf16, #tpu.memory_space<vmem>>, vector<2x16x16x128xbf16>
    %44 = vector.shape_cast %43 : vector<2x16x16x128xbf16> to vector<512x128xbf16>
    %c7 = arith.constant 7 : index
    %c0_53 = arith.constant 0 : index
    %c0_54 = arith.constant 0 : index
    %45 = vector.load %arg5[%c7, %c0_53, %c0_54] : memref<9x128x128xbf16, #tpu.memory_space<vmem>>, vector<1x128x128xbf16>
    %46 = vector.shape_cast %45 : vector<1x128x128xbf16> to vector<128x128xbf16>
    %cst_55 = arith.constant dense<0.000000e+00> : vector<512x128xf32>
    %47 = tpu.matmul %44, %46, %cst_55 {dimension_numbers = #tpu.dot_dimension_numbers<[1], [0], [0], [1], [0, 0, 1, 1], [], []>} : vector<512x128xbf16>, vector<128x128xbf16>, vector<512x128xf32> -> vector<512x128xf32>
    %48 = arith.addf %42, %47 : vector<512x128xf32>
    %c0_56 = arith.constant 0 : index
    %c1_57 = arith.constant 1 : index
    %c1_58 = arith.constant 1 : index
    %c0_59 = arith.constant 0 : index
    %49 = vector.load %arg4[%c0_56, %c1_57, %c1_58, %c0_59] : memref<2x17x17x128xbf16, #tpu.memory_space<vmem>>, vector<2x16x16x128xbf16>
    %50 = vector.shape_cast %49 : vector<2x16x16x128xbf16> to vector<512x128xbf16>
    %c8 = arith.constant 8 : index
    %c0_60 = arith.constant 0 : index
    %c0_61 = arith.constant 0 : index
    %51 = vector.load %arg5[%c8, %c0_60, %c0_61] : memref<9x128x128xbf16, #tpu.memory_space<vmem>>, vector<1x128x128xbf16>
    %52 = vector.shape_cast %51 : vector<1x128x128xbf16> to vector<128x128xbf16>
    %cst_62 = arith.constant dense<0.000000e+00> : vector<512x128xf32>
    %53 = tpu.matmul %50, %52, %cst_62 {dimension_numbers = #tpu.dot_dimension_numbers<[1], [0], [0], [1], [0, 0, 1, 1], [], []>} : vector<512x128xbf16>, vector<128x128xbf16>, vector<512x128xf32> -> vector<512x128xf32>
    %54 = arith.addf %48, %53 : vector<512x128xf32>
    %c0_63 = arith.constant 0 : index
    %c0_64 = arith.constant 0 : index
    %55 = vector.load %arg6[%c0_63, %c0_64] : memref<1x128xf32, #tpu.memory_space<vmem>>, vector<1x128xf32>
    %56 = vector.broadcast %55 : vector<1x128xf32> to vector<512x128xf32>
    %57 = arith.addf %54, %56 : vector<512x128xf32>
    %cst_65 = arith.constant 0.000000e+00 : f32
    %58 = vector.broadcast %cst_65 : f32 to vector<512x128xf32>
    %59 = arith.cmpf ogt, %57, %58 : vector<512x128xf32>
    %cst_66 = arith.constant 0.00999999977 : f32
    %60 = vector.broadcast %cst_66 : f32 to vector<512x128xf32>
    %61 = arith.mulf %60, %57 : vector<512x128xf32>
    %62 = arith.select %59, %57, %61 : vector<512x128xi1>, vector<512x128xf32>
    %63 = arith.truncf %62 : vector<512x128xf32> to vector<512x128xbf16>
    %c0_67 = arith.constant 0 : index
    %c0_68 = arith.constant 0 : index
    %64 = vector.load %arg7[%c0_67, %c0_68] : memref<512x128xbf16, #tpu.memory_space<vmem>>, vector<512x128xbf16>
    tpu.vector_store %arg7[%c0_67, %c0_68], %63 {strides = array<i32>} : memref<512x128xbf16, #tpu.memory_space<vmem>>, vector<512x128xbf16>,
    return
  }
  func.func @transform_0(%arg0: i32) -> (i32, i32, i32, i32) {
    %c0_i32 = arith.constant 0 : i32
    %c0_i32_0 = arith.constant 0 : i32
    %c0_i32_1 = arith.constant 0 : i32
    %c0_i32_2 = arith.constant 0 : i32
    return %arg0, %c0_i32, %c0_i32_0, %c0_i32_1 : i32, i32, i32, i32
  }
  func.func @transform_1(%arg0: i32) -> (i32, i32, i32, i32) {
    %c0_i32 = arith.constant 0 : i32
    %c0_i32_0 = arith.constant 0 : i32
    %c0_i32_1 = arith.constant 0 : i32
    %c0_i32_2 = arith.constant 0 : i32
    return %arg0, %c0_i32, %c0_i32_0, %c0_i32_1 : i32, i32, i32, i32
  }
  func.func @transform_2(%arg0: i32) -> (i32, i32, i32, i32) {
    %c0_i32 = arith.constant 0 : i32
    %c0_i32_0 = arith.constant 0 : i32
    %c0_i32_1 = arith.constant 0 : i32
    %c0_i32_2 = arith.constant 0 : i32
    return %arg0, %c0_i32, %c0_i32_0, %c0_i32_1 : i32, i32, i32, i32
  }
  func.func @transform_3(%arg0: i32) -> (i32, i32, i32, i32) {
    %c0_i32 = arith.constant 0 : i32
    %c0_i32_0 = arith.constant 0 : i32
    %c0_i32_1 = arith.constant 0 : i32
    %c0_i32_2 = arith.constant 0 : i32
    return %arg0, %c0_i32, %c0_i32_0, %c0_i32_1 : i32, i32, i32, i32
  }
  func.func @transform_4(%arg0: i32) -> (i32, i32, i32) {
    %c0_i32 = arith.constant 0 : i32
    %c0_i32_0 = arith.constant 0 : i32
    %c0_i32_1 = arith.constant 0 : i32
    %c0_i32_2 = arith.constant 0 : i32
    return %c0_i32, %c0_i32_0, %c0_i32_1 : i32, i32, i32
  }
  func.func @transform_5(%arg0: i32) -> (i32, i32) {
    %c0_i32 = arith.constant 0 : i32
    %c0_i32_0 = arith.constant 0 : i32
    %c0_i32_1 = arith.constant 0 : i32
    return %c0_i32, %c0_i32_0 : i32, i32
  }
  func.func @transform_6(%arg0: i32) -> (i32, i32) {
    %c0_i32 = arith.constant 0 : i32
    %c0_i32_0 = arith.constant 0 : i32
    return %arg0, %c0_i32 : i32, i32
  }
}

module attributes {stable_mosaic.version = 11 : i64} {
  func.func @_conv3x3_s2_lrelu_kernel(%arg0: i32, %arg1: memref<2x8x8x128xbf16, #tpu.memory_space<vmem>>, %arg2: memref<2x8x9x128xbf16, #tpu.memory_space<vmem>>, %arg3: memref<2x9x8x128xbf16, #tpu.memory_space<vmem>>, %arg4: memref<2x9x9x128xbf16, #tpu.memory_space<vmem>>, %arg5: memref<9x128x128xbf16, #tpu.memory_space<vmem>>, %arg6: memref<1x128xf32, #tpu.memory_space<vmem>>, %arg7: memref<128x128xbf16, #tpu.memory_space<vmem>>) attributes {dimension_semantics = [#tpu.dimension_semantics<parallel>], iteration_bounds = array<i64: 1>, scalar_prefetch = 0 : i64, scratch_operands = 0 : i64, tpu.core_type = #tpu.core_type<tc>, window_params = [{transform_indices = @transform_0, window_bounds = array<i64: 2, 8, 8, 128>}, {transform_indices = @transform_1, window_bounds = array<i64: 2, 8, 9, 128>}, {transform_indices = @transform_2, window_bounds = array<i64: 2, 9, 8, 128>}, {transform_indices = @transform_3, window_bounds = array<i64: 2, 9, 9, 128>}, {pipeline_mode = #tpu.pipeline_mode<synchronous>, transform_indices = @transform_4, window_bounds = array<i64: 9, 128, 128>}, {pipeline_mode = #tpu.pipeline_mode<synchronous>, transform_indices = @transform_5, window_bounds = array<i64: 1, 128>}, {transform_indices = @transform_6, window_bounds = array<i64: 128, 128>}]} {
    %cst = arith.constant 0.000000e+00 : f32
    %0 = vector.broadcast %cst : f32 to vector<128x128xf32>
    %c0 = arith.constant 0 : index
    %c0_0 = arith.constant 0 : index
    %c0_1 = arith.constant 0 : index
    %c0_2 = arith.constant 0 : index
    %1 = vector.load %arg4[%c0, %c0_0, %c0_1, %c0_2] : memref<2x9x9x128xbf16, #tpu.memory_space<vmem>>, vector<2x8x8x128xbf16>
    %2 = vector.shape_cast %1 : vector<2x8x8x128xbf16> to vector<128x128xbf16>
    %c0_3 = arith.constant 0 : index
    %c0_4 = arith.constant 0 : index
    %c0_5 = arith.constant 0 : index
    %3 = vector.load %arg5[%c0_3, %c0_4, %c0_5] : memref<9x128x128xbf16, #tpu.memory_space<vmem>>, vector<1x128x128xbf16>
    %4 = vector.shape_cast %3 : vector<1x128x128xbf16> to vector<128x128xbf16>
    %cst_6 = arith.constant dense<0.000000e+00> : vector<128x128xf32>
    %5 = tpu.matmul %2, %4, %cst_6 {dimension_numbers = #tpu.dot_dimension_numbers<[1], [0], [0], [1], [0, 0, 1, 1], [], []>} : vector<128x128xbf16>, vector<128x128xbf16>, vector<128x128xf32> -> vector<128x128xf32>
    %6 = arith.addf %0, %5 : vector<128x128xf32>
    %c0_7 = arith.constant 0 : index
    %c0_8 = arith.constant 0 : index
    %c0_9 = arith.constant 0 : index
    %c0_10 = arith.constant 0 : index
    %7 = vector.load %arg3[%c0_7, %c0_8, %c0_9, %c0_10] : memref<2x9x8x128xbf16, #tpu.memory_space<vmem>>, vector<2x8x8x128xbf16>
    %8 = vector.shape_cast %7 : vector<2x8x8x128xbf16> to vector<128x128xbf16>
    %c1 = arith.constant 1 : index
    %c0_11 = arith.constant 0 : index
    %c0_12 = arith.constant 0 : index
    %9 = vector.load %arg5[%c1, %c0_11, %c0_12] : memref<9x128x128xbf16, #tpu.memory_space<vmem>>, vector<1x128x128xbf16>
    %10 = vector.shape_cast %9 : vector<1x128x128xbf16> to vector<128x128xbf16>
    %cst_13 = arith.constant dense<0.000000e+00> : vector<128x128xf32>
    %11 = tpu.matmul %8, %10, %cst_13 {dimension_numbers = #tpu.dot_dimension_numbers<[1], [0], [0], [1], [0, 0, 1, 1], [], []>} : vector<128x128xbf16>, vector<128x128xbf16>, vector<128x128xf32> -> vector<128x128xf32>
    %12 = arith.addf %6, %11 : vector<128x128xf32>
    %c0_14 = arith.constant 0 : index
    %c0_15 = arith.constant 0 : index
    %c1_16 = arith.constant 1 : index
    %c0_17 = arith.constant 0 : index
    %13 = vector.load %arg4[%c0_14, %c0_15, %c1_16, %c0_17] : memref<2x9x9x128xbf16, #tpu.memory_space<vmem>>, vector<2x8x8x128xbf16>
    %14 = vector.shape_cast %13 : vector<2x8x8x128xbf16> to vector<128x128xbf16>
    %c2 = arith.constant 2 : index
    %c0_18 = arith.constant 0 : index
    %c0_19 = arith.constant 0 : index
    %15 = vector.load %arg5[%c2, %c0_18, %c0_19] : memref<9x128x128xbf16, #tpu.memory_space<vmem>>, vector<1x128x128xbf16>
    %16 = vector.shape_cast %15 : vector<1x128x128xbf16> to vector<128x128xbf16>
    %cst_20 = arith.constant dense<0.000000e+00> : vector<128x128xf32>
    %17 = tpu.matmul %14, %16, %cst_20 {dimension_numbers = #tpu.dot_dimension_numbers<[1], [0], [0], [1], [0, 0, 1, 1], [], []>} : vector<128x128xbf16>, vector<128x128xbf16>, vector<128x128xf32> -> vector<128x128xf32>
    %18 = arith.addf %12, %17 : vector<128x128xf32>
    %c0_21 = arith.constant 0 : index
    %c0_22 = arith.constant 0 : index
    %c0_23 = arith.constant 0 : index
    %c0_24 = arith.constant 0 : index
    %19 = vector.load %arg2[%c0_21, %c0_22, %c0_23, %c0_24] : memref<2x8x9x128xbf16, #tpu.memory_space<vmem>>, vector<2x8x8x128xbf16>
    %20 = vector.shape_cast %19 : vector<2x8x8x128xbf16> to vector<128x128xbf16>
    %c3 = arith.constant 3 : index
    %c0_25 = arith.constant 0 : index
    %c0_26 = arith.constant 0 : index
    %21 = vector.load %arg5[%c3, %c0_25, %c0_26] : memref<9x128x128xbf16, #tpu.memory_space<vmem>>, vector<1x128x128xbf16>
    %22 = vector.shape_cast %21 : vector<1x128x128xbf16> to vector<128x128xbf16>
    %cst_27 = arith.constant dense<0.000000e+00> : vector<128x128xf32>
    %23 = tpu.matmul %20, %22, %cst_27 {dimension_numbers = #tpu.dot_dimension_numbers<[1], [0], [0], [1], [0, 0, 1, 1], [], []>} : vector<128x128xbf16>, vector<128x128xbf16>, vector<128x128xf32> -> vector<128x128xf32>
    %24 = arith.addf %18, %23 : vector<128x128xf32>
    %c0_28 = arith.constant 0 : index
    %c0_29 = arith.constant 0 : index
    %c0_30 = arith.constant 0 : index
    %c0_31 = arith.constant 0 : index
    %25 = vector.load %arg1[%c0_28, %c0_29, %c0_30, %c0_31] : memref<2x8x8x128xbf16, #tpu.memory_space<vmem>>, vector<2x8x8x128xbf16>
    %26 = vector.shape_cast %25 : vector<2x8x8x128xbf16> to vector<128x128xbf16>
    %c4 = arith.constant 4 : index
    %c0_32 = arith.constant 0 : index
    %c0_33 = arith.constant 0 : index
    %27 = vector.load %arg5[%c4, %c0_32, %c0_33] : memref<9x128x128xbf16, #tpu.memory_space<vmem>>, vector<1x128x128xbf16>
    %28 = vector.shape_cast %27 : vector<1x128x128xbf16> to vector<128x128xbf16>
    %cst_34 = arith.constant dense<0.000000e+00> : vector<128x128xf32>
    %29 = tpu.matmul %26, %28, %cst_34 {dimension_numbers = #tpu.dot_dimension_numbers<[1], [0], [0], [1], [0, 0, 1, 1], [], []>} : vector<128x128xbf16>, vector<128x128xbf16>, vector<128x128xf32> -> vector<128x128xf32>
    %30 = arith.addf %24, %29 : vector<128x128xf32>
    %c0_35 = arith.constant 0 : index
    %c0_36 = arith.constant 0 : index
    %c1_37 = arith.constant 1 : index
    %c0_38 = arith.constant 0 : index
    %31 = vector.load %arg2[%c0_35, %c0_36, %c1_37, %c0_38] : memref<2x8x9x128xbf16, #tpu.memory_space<vmem>>, vector<2x8x8x128xbf16>
    %32 = vector.shape_cast %31 : vector<2x8x8x128xbf16> to vector<128x128xbf16>
    %c5 = arith.constant 5 : index
    %c0_39 = arith.constant 0 : index
    %c0_40 = arith.constant 0 : index
    %33 = vector.load %arg5[%c5, %c0_39, %c0_40] : memref<9x128x128xbf16, #tpu.memory_space<vmem>>, vector<1x128x128xbf16>
    %34 = vector.shape_cast %33 : vector<1x128x128xbf16> to vector<128x128xbf16>
    %cst_41 = arith.constant dense<0.000000e+00> : vector<128x128xf32>
    %35 = tpu.matmul %32, %34, %cst_41 {dimension_numbers = #tpu.dot_dimension_numbers<[1], [0], [0], [1], [0, 0, 1, 1], [], []>} : vector<128x128xbf16>, vector<128x128xbf16>, vector<128x128xf32> -> vector<128x128xf32>
    %36 = arith.addf %30, %35 : vector<128x128xf32>
    %c0_42 = arith.constant 0 : index
    %c1_43 = arith.constant 1 : index
    %c0_44 = arith.constant 0 : index
    %c0_45 = arith.constant 0 : index
    %37 = vector.load %arg4[%c0_42, %c1_43, %c0_44, %c0_45] : memref<2x9x9x128xbf16, #tpu.memory_space<vmem>>, vector<2x8x8x128xbf16>
    %38 = vector.shape_cast %37 : vector<2x8x8x128xbf16> to vector<128x128xbf16>
    %c6 = arith.constant 6 : index
    %c0_46 = arith.constant 0 : index
    %c0_47 = arith.constant 0 : index
    %39 = vector.load %arg5[%c6, %c0_46, %c0_47] : memref<9x128x128xbf16, #tpu.memory_space<vmem>>, vector<1x128x128xbf16>
    %40 = vector.shape_cast %39 : vector<1x128x128xbf16> to vector<128x128xbf16>
    %cst_48 = arith.constant dense<0.000000e+00> : vector<128x128xf32>
    %41 = tpu.matmul %38, %40, %cst_48 {dimension_numbers = #tpu.dot_dimension_numbers<[1], [0], [0], [1], [0, 0, 1, 1], [], []>} : vector<128x128xbf16>, vector<128x128xbf16>, vector<128x128xf32> -> vector<128x128xf32>
    %42 = arith.addf %36, %41 : vector<128x128xf32>
    %c0_49 = arith.constant 0 : index
    %c1_50 = arith.constant 1 : index
    %c0_51 = arith.constant 0 : index
    %c0_52 = arith.constant 0 : index
    %43 = vector.load %arg3[%c0_49, %c1_50, %c0_51, %c0_52] : memref<2x9x8x128xbf16, #tpu.memory_space<vmem>>, vector<2x8x8x128xbf16>
    %44 = vector.shape_cast %43 : vector<2x8x8x128xbf16> to vector<128x128xbf16>
    %c7 = arith.constant 7 : index
    %c0_53 = arith.constant 0 : index
    %c0_54 = arith.constant 0 : index
    %45 = vector.load %arg5[%c7, %c0_53, %c0_54] : memref<9x128x128xbf16, #tpu.memory_space<vmem>>, vector<1x128x128xbf16>
    %46 = vector.shape_cast %45 : vector<1x128x128xbf16> to vector<128x128xbf16>
    %cst_55 = arith.constant dense<0.000000e+00> : vector<128x128xf32>
    %47 = tpu.matmul %44, %46, %cst_55 {dimension_numbers = #tpu.dot_dimension_numbers<[1], [0], [0], [1], [0, 0, 1, 1], [], []>} : vector<128x128xbf16>, vector<128x128xbf16>, vector<128x128xf32> -> vector<128x128xf32>
    %48 = arith.addf %42, %47 : vector<128x128xf32>
    %c0_56 = arith.constant 0 : index
    %c1_57 = arith.constant 1 : index
    %c1_58 = arith.constant 1 : index
    %c0_59 = arith.constant 0 : index
    %49 = vector.load %arg4[%c0_56, %c1_57, %c1_58, %c0_59] : memref<2x9x9x128xbf16, #tpu.memory_space<vmem>>, vector<2x8x8x128xbf16>
    %50 = vector.shape_cast %49 : vector<2x8x8x128xbf16> to vector<128x128xbf16>
    %c8 = arith.constant 8 : index
    %c0_60 = arith.constant 0 : index
    %c0_61 = arith.constant 0 : index
    %51 = vector.load %arg5[%c8, %c0_60, %c0_61] : memref<9x128x128xbf16, #tpu.memory_space<vmem>>, vector<1x128x128xbf16>
    %52 = vector.shape_cast %51 : vector<1x128x128xbf16> to vector<128x128xbf16>
    %cst_62 = arith.constant dense<0.000000e+00> : vector<128x128xf32>
    %53 = tpu.matmul %50, %52, %cst_62 {dimension_numbers = #tpu.dot_dimension_numbers<[1], [0], [0], [1], [0, 0, 1, 1], [], []>} : vector<128x128xbf16>, vector<128x128xbf16>, vector<128x128xf32> -> vector<128x128xf32>
    %54 = arith.addf %48, %53 : vector<128x128xf32>
    %c0_63 = arith.constant 0 : index
    %c0_64 = arith.constant 0 : index
    %55 = vector.load %arg6[%c0_63, %c0_64] : memref<1x128xf32, #tpu.memory_space<vmem>>, vector<1x128xf32>
    %56 = vector.broadcast %55 : vector<1x128xf32> to vector<128x128xf32>
    %57 = arith.addf %54, %56 : vector<128x128xf32>
    %cst_65 = arith.constant 0.000000e+00 : f32
    %58 = vector.broadcast %cst_65 : f32 to vector<128x128xf32>
    %59 = arith.cmpf ogt, %57, %58 : vector<128x128xf32>
    %cst_66 = arith.constant 0.00999999977 : f32
    %60 = vector.broadcast %cst_66 : f32 to vector<128x128xf32>
    %61 = arith.mulf %60, %57 : vector<128x128xf32>
    %62 = arith.select %59, %57, %61 : vector<128x128xi1>, vector<128x128xf32>
    %63 = arith.truncf %62 : vector<128x128xf32> to vector<128x128xbf16>
    %c0_67 = arith.constant 0 : index
    %c0_68 = arith.constant 0 : index
    %64 = vector.load %arg7[%c0_67, %c0_68] : memref<128x128xbf16, #tpu.memory_space<vmem>>, vector<128x128xbf16>
    tpu.vector_store %arg7[%c0_67, %c0_68], %63 {strides = array<i32>} : memref<128x128xbf16, #tpu.memory_space<vmem>>, vector<128x128xbf16>,
    return
  }
  func.func @transform_0(%arg0: i32) -> (i32, i32, i32, i32) {
    %c0_i32 = arith.constant 0 : i32
    %c0_i32_0 = arith.constant 0 : i32
    %c0_i32_1 = arith.constant 0 : i32
    %c0_i32_2 = arith.constant 0 : i32
    return %arg0, %c0_i32, %c0_i32_0, %c0_i32_1 : i32, i32, i32, i32
  }
  func.func @transform_1(%arg0: i32) -> (i32, i32, i32, i32) {
    %c0_i32 = arith.constant 0 : i32
    %c0_i32_0 = arith.constant 0 : i32
    %c0_i32_1 = arith.constant 0 : i32
    %c0_i32_2 = arith.constant 0 : i32
    return %arg0, %c0_i32, %c0_i32_0, %c0_i32_1 : i32, i32, i32, i32
  }
  func.func @transform_2(%arg0: i32) -> (i32, i32, i32, i32) {
    %c0_i32 = arith.constant 0 : i32
    %c0_i32_0 = arith.constant 0 : i32
    %c0_i32_1 = arith.constant 0 : i32
    %c0_i32_2 = arith.constant 0 : i32
    return %arg0, %c0_i32, %c0_i32_0, %c0_i32_1 : i32, i32, i32, i32
  }
  func.func @transform_3(%arg0: i32) -> (i32, i32, i32, i32) {
    %c0_i32 = arith.constant 0 : i32
    %c0_i32_0 = arith.constant 0 : i32
    %c0_i32_1 = arith.constant 0 : i32
    %c0_i32_2 = arith.constant 0 : i32
    return %arg0, %c0_i32, %c0_i32_0, %c0_i32_1 : i32, i32, i32, i32
  }
  func.func @transform_4(%arg0: i32) -> (i32, i32, i32) {
    %c0_i32 = arith.constant 0 : i32
    %c0_i32_0 = arith.constant 0 : i32
    %c0_i32_1 = arith.constant 0 : i32
    %c0_i32_2 = arith.constant 0 : i32
    return %c0_i32, %c0_i32_0, %c0_i32_1 : i32, i32, i32
  }
  func.func @transform_5(%arg0: i32) -> (i32, i32) {
    %c0_i32 = arith.constant 0 : i32
    %c0_i32_0 = arith.constant 0 : i32
    %c0_i32_1 = arith.constant 0 : i32
    return %c0_i32, %c0_i32_0 : i32, i32
  }
  func.func @transform_6(%arg0: i32) -> (i32, i32) {
    %c0_i32 = arith.constant 0 : i32
    %c0_i32_0 = arith.constant 0 : i32
    return %arg0, %c0_i32 : i32, i32
  }
}

module attributes {stable_mosaic.version = 11 : i64} {
  func.func @_linear_kernel(%arg0: memref<2x2048xbf16, #tpu.memory_space<vmem>>, %arg1: memref<1x2048xf32, #tpu.memory_space<vmem>>, %arg2: memref<1x1xf32, #tpu.memory_space<vmem>>, %arg3: memref<2x1xf32, #tpu.memory_space<vmem>>) attributes {dimension_semantics = [], scalar_prefetch = 0 : i64, scratch_operands = 0 : i64, tpu.core_type = #tpu.core_type<tc>} {
    %c0 = arith.constant 0 : index
    %c0_0 = arith.constant 0 : index
    %0 = vector.load %arg0[%c0, %c0_0] : memref<2x2048xbf16, #tpu.memory_space<vmem>>, vector<2x2048xbf16>
    %1 = arith.extf %0 : vector<2x2048xbf16> to vector<2x2048xf32>
    %c0_1 = arith.constant 0 : index
    %c0_2 = arith.constant 0 : index
    %2 = vector.load %arg1[%c0_1, %c0_2] : memref<1x2048xf32, #tpu.memory_space<vmem>>, vector<1x2048xf32>
    %3 = vector.broadcast %2 : vector<1x2048xf32> to vector<2x2048xf32>
    %4 = arith.mulf %1, %3 : vector<2x2048xf32>
    %cst = arith.constant dense<0.000000e+00> : vector<2xf32>
    %5 = vector.multi_reduction <add>, %4, %cst [1] : vector<2x2048xf32> to vector<2xf32>
    %6 = vector.shape_cast %5 : vector<2xf32> to vector<2x1xf32>
    %c0_3 = arith.constant 0 : index
    %c0_4 = arith.constant 0 : index
    %7 = vector.load %arg2[%c0_3, %c0_4] : memref<1x1xf32, #tpu.memory_space<vmem>>, vector<1x1xf32>
    %8 = vector.broadcast %7 : vector<1x1xf32> to vector<2x1xf32>
    %9 = arith.addf %6, %8 : vector<2x1xf32>
    %c0_5 = arith.constant 0 : index
    %c0_6 = arith.constant 0 : index
    %10 = vector.load %arg3[%c0_5, %c0_6] : memref<2x1xf32, #tpu.memory_space<vmem>>, vector<2x1xf32>
    tpu.vector_store %arg3[%c0_5, %c0_6], %9 {strides = array<i32>} : memref<2x1xf32, #tpu.memory_space<vmem>>, vector<2x1xf32>,
    return
  }
}

module attributes {stable_mosaic.version = 11 : i64} {
  func.func @_conv3x3_s2_lrelu_kernel(%arg0: i32, %arg1: memref<2x4x4x128xbf16, #tpu.memory_space<vmem>>, %arg2: memref<2x4x5x128xbf16, #tpu.memory_space<vmem>>, %arg3: memref<2x5x4x128xbf16, #tpu.memory_space<vmem>>, %arg4: memref<2x5x5x128xbf16, #tpu.memory_space<vmem>>, %arg5: memref<9x128x128xbf16, #tpu.memory_space<vmem>>, %arg6: memref<1x128xf32, #tpu.memory_space<vmem>>, %arg7: memref<32x128xbf16, #tpu.memory_space<vmem>>) attributes {dimension_semantics = [#tpu.dimension_semantics<parallel>], iteration_bounds = array<i64: 1>, scalar_prefetch = 0 : i64, scratch_operands = 0 : i64, tpu.core_type = #tpu.core_type<tc>, window_params = [{transform_indices = @transform_0, window_bounds = array<i64: 2, 4, 4, 128>}, {transform_indices = @transform_1, window_bounds = array<i64: 2, 4, 5, 128>}, {transform_indices = @transform_2, window_bounds = array<i64: 2, 5, 4, 128>}, {transform_indices = @transform_3, window_bounds = array<i64: 2, 5, 5, 128>}, {pipeline_mode = #tpu.pipeline_mode<synchronous>, transform_indices = @transform_4, window_bounds = array<i64: 9, 128, 128>}, {pipeline_mode = #tpu.pipeline_mode<synchronous>, transform_indices = @transform_5, window_bounds = array<i64: 1, 128>}, {transform_indices = @transform_6, window_bounds = array<i64: 32, 128>}]} {
    %cst = arith.constant 0.000000e+00 : f32
    %0 = vector.broadcast %cst : f32 to vector<32x128xf32>
    %c0 = arith.constant 0 : index
    %c0_0 = arith.constant 0 : index
    %c0_1 = arith.constant 0 : index
    %c0_2 = arith.constant 0 : index
    %1 = vector.load %arg4[%c0, %c0_0, %c0_1, %c0_2] : memref<2x5x5x128xbf16, #tpu.memory_space<vmem>>, vector<2x4x4x128xbf16>
    %2 = vector.shape_cast %1 : vector<2x4x4x128xbf16> to vector<32x128xbf16>
    %c0_3 = arith.constant 0 : index
    %c0_4 = arith.constant 0 : index
    %c0_5 = arith.constant 0 : index
    %3 = vector.load %arg5[%c0_3, %c0_4, %c0_5] : memref<9x128x128xbf16, #tpu.memory_space<vmem>>, vector<1x128x128xbf16>
    %4 = vector.shape_cast %3 : vector<1x128x128xbf16> to vector<128x128xbf16>
    %cst_6 = arith.constant dense<0.000000e+00> : vector<32x128xf32>
    %5 = tpu.matmul %2, %4, %cst_6 {dimension_numbers = #tpu.dot_dimension_numbers<[1], [0], [0], [1], [0, 0, 1, 1], [], []>} : vector<32x128xbf16>, vector<128x128xbf16>, vector<32x128xf32> -> vector<32x128xf32>
    %6 = arith.addf %0, %5 : vector<32x128xf32>
    %c0_7 = arith.constant 0 : index
    %c0_8 = arith.constant 0 : index
    %c0_9 = arith.constant 0 : index
    %c0_10 = arith.constant 0 : index
    %7 = vector.load %arg3[%c0_7, %c0_8, %c0_9, %c0_10] : memref<2x5x4x128xbf16, #tpu.memory_space<vmem>>, vector<2x4x4x128xbf16>
    %8 = vector.shape_cast %7 : vector<2x4x4x128xbf16> to vector<32x128xbf16>
    %c1 = arith.constant 1 : index
    %c0_11 = arith.constant 0 : index
    %c0_12 = arith.constant 0 : index
    %9 = vector.load %arg5[%c1, %c0_11, %c0_12] : memref<9x128x128xbf16, #tpu.memory_space<vmem>>, vector<1x128x128xbf16>
    %10 = vector.shape_cast %9 : vector<1x128x128xbf16> to vector<128x128xbf16>
    %cst_13 = arith.constant dense<0.000000e+00> : vector<32x128xf32>
    %11 = tpu.matmul %8, %10, %cst_13 {dimension_numbers = #tpu.dot_dimension_numbers<[1], [0], [0], [1], [0, 0, 1, 1], [], []>} : vector<32x128xbf16>, vector<128x128xbf16>, vector<32x128xf32> -> vector<32x128xf32>
    %12 = arith.addf %6, %11 : vector<32x128xf32>
    %c0_14 = arith.constant 0 : index
    %c0_15 = arith.constant 0 : index
    %c1_16 = arith.constant 1 : index
    %c0_17 = arith.constant 0 : index
    %13 = vector.load %arg4[%c0_14, %c0_15, %c1_16, %c0_17] : memref<2x5x5x128xbf16, #tpu.memory_space<vmem>>, vector<2x4x4x128xbf16>
    %14 = vector.shape_cast %13 : vector<2x4x4x128xbf16> to vector<32x128xbf16>
    %c2 = arith.constant 2 : index
    %c0_18 = arith.constant 0 : index
    %c0_19 = arith.constant 0 : index
    %15 = vector.load %arg5[%c2, %c0_18, %c0_19] : memref<9x128x128xbf16, #tpu.memory_space<vmem>>, vector<1x128x128xbf16>
    %16 = vector.shape_cast %15 : vector<1x128x128xbf16> to vector<128x128xbf16>
    %cst_20 = arith.constant dense<0.000000e+00> : vector<32x128xf32>
    %17 = tpu.matmul %14, %16, %cst_20 {dimension_numbers = #tpu.dot_dimension_numbers<[1], [0], [0], [1], [0, 0, 1, 1], [], []>} : vector<32x128xbf16>, vector<128x128xbf16>, vector<32x128xf32> -> vector<32x128xf32>
    %18 = arith.addf %12, %17 : vector<32x128xf32>
    %c0_21 = arith.constant 0 : index
    %c0_22 = arith.constant 0 : index
    %c0_23 = arith.constant 0 : index
    %c0_24 = arith.constant 0 : index
    %19 = vector.load %arg2[%c0_21, %c0_22, %c0_23, %c0_24] : memref<2x4x5x128xbf16, #tpu.memory_space<vmem>>, vector<2x4x4x128xbf16>
    %20 = vector.shape_cast %19 : vector<2x4x4x128xbf16> to vector<32x128xbf16>
    %c3 = arith.constant 3 : index
    %c0_25 = arith.constant 0 : index
    %c0_26 = arith.constant 0 : index
    %21 = vector.load %arg5[%c3, %c0_25, %c0_26] : memref<9x128x128xbf16, #tpu.memory_space<vmem>>, vector<1x128x128xbf16>
    %22 = vector.shape_cast %21 : vector<1x128x128xbf16> to vector<128x128xbf16>
    %cst_27 = arith.constant dense<0.000000e+00> : vector<32x128xf32>
    %23 = tpu.matmul %20, %22, %cst_27 {dimension_numbers = #tpu.dot_dimension_numbers<[1], [0], [0], [1], [0, 0, 1, 1], [], []>} : vector<32x128xbf16>, vector<128x128xbf16>, vector<32x128xf32> -> vector<32x128xf32>
    %24 = arith.addf %18, %23 : vector<32x128xf32>
    %c0_28 = arith.constant 0 : index
    %c0_29 = arith.constant 0 : index
    %c0_30 = arith.constant 0 : index
    %c0_31 = arith.constant 0 : index
    %25 = vector.load %arg1[%c0_28, %c0_29, %c0_30, %c0_31] : memref<2x4x4x128xbf16, #tpu.memory_space<vmem>>, vector<2x4x4x128xbf16>
    %26 = vector.shape_cast %25 : vector<2x4x4x128xbf16> to vector<32x128xbf16>
    %c4 = arith.constant 4 : index
    %c0_32 = arith.constant 0 : index
    %c0_33 = arith.constant 0 : index
    %27 = vector.load %arg5[%c4, %c0_32, %c0_33] : memref<9x128x128xbf16, #tpu.memory_space<vmem>>, vector<1x128x128xbf16>
    %28 = vector.shape_cast %27 : vector<1x128x128xbf16> to vector<128x128xbf16>
    %cst_34 = arith.constant dense<0.000000e+00> : vector<32x128xf32>
    %29 = tpu.matmul %26, %28, %cst_34 {dimension_numbers = #tpu.dot_dimension_numbers<[1], [0], [0], [1], [0, 0, 1, 1], [], []>} : vector<32x128xbf16>, vector<128x128xbf16>, vector<32x128xf32> -> vector<32x128xf32>
    %30 = arith.addf %24, %29 : vector<32x128xf32>
    %c0_35 = arith.constant 0 : index
    %c0_36 = arith.constant 0 : index
    %c1_37 = arith.constant 1 : index
    %c0_38 = arith.constant 0 : index
    %31 = vector.load %arg2[%c0_35, %c0_36, %c1_37, %c0_38] : memref<2x4x5x128xbf16, #tpu.memory_space<vmem>>, vector<2x4x4x128xbf16>
    %32 = vector.shape_cast %31 : vector<2x4x4x128xbf16> to vector<32x128xbf16>
    %c5 = arith.constant 5 : index
    %c0_39 = arith.constant 0 : index
    %c0_40 = arith.constant 0 : index
    %33 = vector.load %arg5[%c5, %c0_39, %c0_40] : memref<9x128x128xbf16, #tpu.memory_space<vmem>>, vector<1x128x128xbf16>
    %34 = vector.shape_cast %33 : vector<1x128x128xbf16> to vector<128x128xbf16>
    %cst_41 = arith.constant dense<0.000000e+00> : vector<32x128xf32>
    %35 = tpu.matmul %32, %34, %cst_41 {dimension_numbers = #tpu.dot_dimension_numbers<[1], [0], [0], [1], [0, 0, 1, 1], [], []>} : vector<32x128xbf16>, vector<128x128xbf16>, vector<32x128xf32> -> vector<32x128xf32>
    %36 = arith.addf %30, %35 : vector<32x128xf32>
    %c0_42 = arith.constant 0 : index
    %c1_43 = arith.constant 1 : index
    %c0_44 = arith.constant 0 : index
    %c0_45 = arith.constant 0 : index
    %37 = vector.load %arg4[%c0_42, %c1_43, %c0_44, %c0_45] : memref<2x5x5x128xbf16, #tpu.memory_space<vmem>>, vector<2x4x4x128xbf16>
    %38 = vector.shape_cast %37 : vector<2x4x4x128xbf16> to vector<32x128xbf16>
    %c6 = arith.constant 6 : index
    %c0_46 = arith.constant 0 : index
    %c0_47 = arith.constant 0 : index
    %39 = vector.load %arg5[%c6, %c0_46, %c0_47] : memref<9x128x128xbf16, #tpu.memory_space<vmem>>, vector<1x128x128xbf16>
    %40 = vector.shape_cast %39 : vector<1x128x128xbf16> to vector<128x128xbf16>
    %cst_48 = arith.constant dense<0.000000e+00> : vector<32x128xf32>
    %41 = tpu.matmul %38, %40, %cst_48 {dimension_numbers = #tpu.dot_dimension_numbers<[1], [0], [0], [1], [0, 0, 1, 1], [], []>} : vector<32x128xbf16>, vector<128x128xbf16>, vector<32x128xf32> -> vector<32x128xf32>
    %42 = arith.addf %36, %41 : vector<32x128xf32>
    %c0_49 = arith.constant 0 : index
    %c1_50 = arith.constant 1 : index
    %c0_51 = arith.constant 0 : index
    %c0_52 = arith.constant 0 : index
    %43 = vector.load %arg3[%c0_49, %c1_50, %c0_51, %c0_52] : memref<2x5x4x128xbf16, #tpu.memory_space<vmem>>, vector<2x4x4x128xbf16>
    %44 = vector.shape_cast %43 : vector<2x4x4x128xbf16> to vector<32x128xbf16>
    %c7 = arith.constant 7 : index
    %c0_53 = arith.constant 0 : index
    %c0_54 = arith.constant 0 : index
    %45 = vector.load %arg5[%c7, %c0_53, %c0_54] : memref<9x128x128xbf16, #tpu.memory_space<vmem>>, vector<1x128x128xbf16>
    %46 = vector.shape_cast %45 : vector<1x128x128xbf16> to vector<128x128xbf16>
    %cst_55 = arith.constant dense<0.000000e+00> : vector<32x128xf32>
    %47 = tpu.matmul %44, %46, %cst_55 {dimension_numbers = #tpu.dot_dimension_numbers<[1], [0], [0], [1], [0, 0, 1, 1], [], []>} : vector<32x128xbf16>, vector<128x128xbf16>, vector<32x128xf32> -> vector<32x128xf32>
    %48 = arith.addf %42, %47 : vector<32x128xf32>
    %c0_56 = arith.constant 0 : index
    %c1_57 = arith.constant 1 : index
    %c1_58 = arith.constant 1 : index
    %c0_59 = arith.constant 0 : index
    %49 = vector.load %arg4[%c0_56, %c1_57, %c1_58, %c0_59] : memref<2x5x5x128xbf16, #tpu.memory_space<vmem>>, vector<2x4x4x128xbf16>
    %50 = vector.shape_cast %49 : vector<2x4x4x128xbf16> to vector<32x128xbf16>
    %c8 = arith.constant 8 : index
    %c0_60 = arith.constant 0 : index
    %c0_61 = arith.constant 0 : index
    %51 = vector.load %arg5[%c8, %c0_60, %c0_61] : memref<9x128x128xbf16, #tpu.memory_space<vmem>>, vector<1x128x128xbf16>
    %52 = vector.shape_cast %51 : vector<1x128x128xbf16> to vector<128x128xbf16>
    %cst_62 = arith.constant dense<0.000000e+00> : vector<32x128xf32>
    %53 = tpu.matmul %50, %52, %cst_62 {dimension_numbers = #tpu.dot_dimension_numbers<[1], [0], [0], [1], [0, 0, 1, 1], [], []>} : vector<32x128xbf16>, vector<128x128xbf16>, vector<32x128xf32> -> vector<32x128xf32>
    %54 = arith.addf %48, %53 : vector<32x128xf32>
    %c0_63 = arith.constant 0 : index
    %c0_64 = arith.constant 0 : index
    %55 = vector.load %arg6[%c0_63, %c0_64] : memref<1x128xf32, #tpu.memory_space<vmem>>, vector<1x128xf32>
    %56 = vector.broadcast %55 : vector<1x128xf32> to vector<32x128xf32>
    %57 = arith.addf %54, %56 : vector<32x128xf32>
    %cst_65 = arith.constant 0.000000e+00 : f32
    %58 = vector.broadcast %cst_65 : f32 to vector<32x128xf32>
    %59 = arith.cmpf ogt, %57, %58 : vector<32x128xf32>
    %cst_66 = arith.constant 0.00999999977 : f32
    %60 = vector.broadcast %cst_66 : f32 to vector<32x128xf32>
    %61 = arith.mulf %60, %57 : vector<32x128xf32>
    %62 = arith.select %59, %57, %61 : vector<32x128xi1>, vector<32x128xf32>
    %63 = arith.truncf %62 : vector<32x128xf32> to vector<32x128xbf16>
    %c0_67 = arith.constant 0 : index
    %c0_68 = arith.constant 0 : index
    %64 = vector.load %arg7[%c0_67, %c0_68] : memref<32x128xbf16, #tpu.memory_space<vmem>>, vector<32x128xbf16>
    tpu.vector_store %arg7[%c0_67, %c0_68], %63 {strides = array<i32>} : memref<32x128xbf16, #tpu.memory_space<vmem>>, vector<32x128xbf16>,
    return
  }
  func.func @transform_0(%arg0: i32) -> (i32, i32, i32, i32) {
    %c0_i32 = arith.constant 0 : i32
    %c0_i32_0 = arith.constant 0 : i32
    %c0_i32_1 = arith.constant 0 : i32
    %c0_i32_2 = arith.constant 0 : i32
    return %arg0, %c0_i32, %c0_i32_0, %c0_i32_1 : i32, i32, i32, i32
  }
  func.func @transform_1(%arg0: i32) -> (i32, i32, i32, i32) {
    %c0_i32 = arith.constant 0 : i32
    %c0_i32_0 = arith.constant 0 : i32
    %c0_i32_1 = arith.constant 0 : i32
    %c0_i32_2 = arith.constant 0 : i32
    return %arg0, %c0_i32, %c0_i32_0, %c0_i32_1 : i32, i32, i32, i32
  }
  func.func @transform_2(%arg0: i32) -> (i32, i32, i32, i32) {
    %c0_i32 = arith.constant 0 : i32
    %c0_i32_0 = arith.constant 0 : i32
    %c0_i32_1 = arith.constant 0 : i32
    %c0_i32_2 = arith.constant 0 : i32
    return %arg0, %c0_i32, %c0_i32_0, %c0_i32_1 : i32, i32, i32, i32
  }
  func.func @transform_3(%arg0: i32) -> (i32, i32, i32, i32) {
    %c0_i32 = arith.constant 0 : i32
    %c0_i32_0 = arith.constant 0 : i32
    %c0_i32_1 = arith.constant 0 : i32
    %c0_i32_2 = arith.constant 0 : i32
    return %arg0, %c0_i32, %c0_i32_0, %c0_i32_1 : i32, i32, i32, i32
  }
  func.func @transform_4(%arg0: i32) -> (i32, i32, i32) {
    %c0_i32 = arith.constant 0 : i32
    %c0_i32_0 = arith.constant 0 : i32
    %c0_i32_1 = arith.constant 0 : i32
    %c0_i32_2 = arith.constant 0 : i32
    return %c0_i32, %c0_i32_0, %c0_i32_1 : i32, i32, i32
  }
  func.func @transform_5(%arg0: i32) -> (i32, i32) {
    %c0_i32 = arith.constant 0 : i32
    %c0_i32_0 = arith.constant 0 : i32
    %c0_i32_1 = arith.constant 0 : i32
    return %c0_i32, %c0_i32_0 : i32, i32
  }
  func.func @transform_6(%arg0: i32) -> (i32, i32) {
    %c0_i32 = arith.constant 0 : i32
    %c0_i32_0 = arith.constant 0 : i32
    return %arg0, %c0_i32 : i32, i32
  }
}

</mosaic_0001>

<bundles_post_ra>
// kernel: wgan_discriminator_forward.7
= control target key start
LH: loop header
LB: loop body
LE: loop exit
PB: predicated region body
PF: predicated region fallthrough
CT: control target
= control target key end

     0   :  { %vm54_vm0 = vcmask 1041408   ;;  %vm56_vm1 = vcmask 1045508   ;;  %vm58_vm2 = vcmask 1043456   ;;  %vm156_vm3 = vcmask 1024   ;;  %s229_s0 = inlined_call_operand.vmem [shape: bf16[2,2048], index: 0, kind: input, shape index: {}]   ;;  %s230_s1 = inlined_call_operand.vmem [shape: f32[1,2048], index: 1, kind: input, shape index: {}]   ;;  %s231_s2 = inlined_call_operand.<no memory space> [shape: f32[1,1], index: 2, kind: input, shape index: {}]   ;;  %s232_s3 = inlined_call_operand.vmem [shape: f32[2,1], index: 3, kind: output, shape index: {}]  }
   0x1   :  { %v22_v0 = vld [vmem:[%s230_s1] sm:$0xff]  ;;  %v23_v2 = vld [vmem:[%s230_s1 + $0x8] sm:$0xff]  ;;  %v8_v60 = vstv %s231_s2 }
   0x2   :  { %v16_v1 = vld [vmem:[%s229_s0] sm:$0xff]  ;;  %v27_v3 = vperm.slane %v22_v0, 1  ;;  %v28_v4 = vperm.slane %v22_v0, 2  ;;  %v29_v5 = vperm.slane %v22_v0, 3  ;;  %v31_v6 = vperm.slane %v22_v0, 5  ;;  %v17_v41 = vld [vmem:[%s229_s0 + $0x8] sm:$0xff] }
   0x3   :  { %v32_v7 = vperm.slane %v22_v0, 6  ;;  %v33_v8 = vperm.slane %v22_v0, 7  ;;  %v18_v9 = vunpack.c.l.bf16 %v16_v1  ;;  %v26_v10 = vperm.slane %v22_v0, 0  ;;  %9 = vst [vmem:[#allocation2] sm:$0x1] %v8_v60 }
   0x4   :  { %v35_v11 = vperm.slane %v23_v2, 1  ;;  %v30_v12 = vperm.slane %v22_v0, 4  ;;  %v36_v13 = vperm.slane %v23_v2, 2  ;;  %v37_v14 = vperm.slane %v23_v2, 3 }
   0x5   :  { %v39_v15 = vperm.slane %v23_v2, 5  ;;  %v42_v16 = vrot.slane %v27_v3, 6  ;;  %v43_v17 = vrot.slane %v28_v4, 4  ;;  %v44_v18 = vrot.slane %v29_v5, 2 }
   0x6   :  { %v45_v19 = vrot.slane %v31_v6, 6  ;;  %v40_v20 = vperm.slane %v23_v2, 6  ;;  %v41_v21 = vperm.slane %v23_v2, 7  ;;  %v46_v22 = vrot.slane %v32_v7, 4 }
   0x7   :  { %v47_v23 = vrot.slane %v33_v8, 2  ;;  %v19_v24 = vunpack.c.h.bf16 %v16_v1  ;;  %v34_v25 = vperm.slane %v23_v2, 0  ;;  %v38_v26 = vperm.slane %v23_v2, 4 }
   0x8   :  { %v48_v27 = vrot.slane %v35_v11, 6  ;;  %v55_v28 = vsel %vm54_vm0, %v26_v10, %v42_v16  ;;  %v57_v29 = vsel %vm56_vm1, %v43_v17, %v44_v18  ;;  %v60_v30 = vsel %vm54_vm0, %v30_v12, %v45_v19 }
   0x9   :  { %v61_v31 = vsel %vm56_vm1, %v46_v22, %v47_v23  ;;  %v49_v32 = vrot.slane %v36_v13, 4  ;;  %v50_v33 = vrot.slane %v37_v14, 2  ;;  %v59_v34 = vsel %vm58_vm2, %v55_v28, %v57_v29 }
   0xa   :  { %v62_v35 = vsel %vm58_vm2, %v60_v30, %v61_v31  ;;  %v51_v36 = vrot.slane %v39_v15, 6  ;;  %v52_v37 = vrot.slane %v40_v20, 4  ;;  %v53_v38 = vrot.slane %v41_v21, 2 }
   0xb   :  { %v73_v39 = vmul.f32 %v59_v34, %v18_v9  ;;  %v74_v40 = vmul.f32 %v62_v35, %v19_v24  ;;  %v63_v42 = vsel %vm54_vm0, %v34_v25, %v48_v27  ;;  %v64_v43 = vsel %vm56_vm1, %v49_v32, %v50_v33 }
   0xc   :  { %v66_v44 = vsel %vm54_vm0, %v38_v26, %v51_v36  ;;  %v67_v45 = vsel %vm56_vm1, %v52_v37, %v53_v38  ;;  %v20_v46 = vunpack.c.l.bf16 %v17_v41  ;;  %v21_v47 = vunpack.c.h.bf16 %v17_v41  ;;  %v162_v36 = vld [vmem:[#allocation2] ss:$0 sm:$0xff] }
   0xd   :  { %81 = vst [vmem:[#allocation1] ss:$4 sm:$0xff] %v73_v39  ;;  %v65_v48 = vsel %vm58_vm2, %v63_v42, %v64_v43  ;;  %v68_v49 = vsel %vm58_vm2, %v66_v44, %v67_v45 }
   0xe   :  { %83 = vst [vmem:[#allocation1 + $0x20] ss:$4 sm:$0xff] %v74_v40  ;;  %v75_v50 = vmul.f32 %v65_v48, %v20_v46  ;;  %v76_v53 = vmul.f32 %v68_v49, %v21_v47 }
  0x14   :  { %v84_v51 = vld.sshfl [vmem:[#allocation1] sm:$0xff pattern:$0x73625140]  ;;  %v85_v52 = vld.sshfl [vmem:[#allocation1 + $0x8] sm:$0xff pattern:$0x73625140] }
  0x15   :  { %v86_v54 = vld.sshfl [vmem:[#allocation1 + $0x10] sm:$0xff pattern:$0x73625140]  ;;  %v87_v55 = vld.sshfl [vmem:[#allocation1 + $0x18] sm:$0xff pattern:$0x73625140] }
  0x16   :  { %v88_v56 = vld.sshfl [vmem:[#allocation1 + $0x20] sm:$0xff pattern:$0x73625140]  ;;  %v89_v57 = vld.sshfl [vmem:[#allocation1 + $0x28] sm:$0xff pattern:$0x73625140] }
  0x17   :  { %v90_v58 = vld.sshfl [vmem:[#allocation1 + $0x30] sm:$0xff pattern:$0x73625140]  ;;  %v91_v59 = vld.sshfl [vmem:[#allocation1 + $0x38] sm:$0xff pattern:$0x73625140] }
  0x18   :  { %92 = vst [vmem:[#allocation1] ss:$4 sm:$0xff] %v75_v50  ;;  %v118_v61 = vsel %vm54_vm0, %v84_v51, 0.0  ;;  %v119_v62 = vsel %vm54_vm0, %v85_v52, 0.0  ;;  %v121_v63 = vsel %vm54_vm0, %v86_v54, 0.0  ;;  %v123_v1 = vsel %vm54_vm0, %v87_v55, 0.0 }
  0x19   :  { %93 = vst [vmem:[#allocation1 + $0x20] ss:$4 sm:$0xff] %v76_v53  ;;  %v120_v0 = vadd.f32 %v119_v62, %v118_v61  ;;  %v125_v3 = vsel %vm54_vm0, %v88_v56, 0.0  ;;  %v127_v5 = vsel %vm54_vm0, %v89_v57, 0.0  ;;  %v129_v7 = vsel %vm54_vm0, %v90_v58, 0.0 }
  0x1a   :  { %v131_v10 = vsel %vm54_vm0, %v91_v59, 0.0 }
  0x1b   :  { %v122_v2 = vadd.f32 %v121_v63, %v120_v0 }
  0x1d   :  { %v124_v4 = vadd.f32 %v123_v1, %v122_v2 }
  0x1f   :  { %v126_v6 = vadd.f32 %v125_v3, %v124_v4  ;;  %v94_v8 = vld.sshfl [vmem:[#allocation1] sm:$0xff pattern:$0x73625140]  ;;  %v95_v11 = vld.sshfl [vmem:[#allocation1 + $0x8] sm:$0xff pattern:$0x73625140] }
  0x20   :  { %v133_v13 = vsel %vm54_vm0, %v94_v8, 0.0  ;;  %v96_v14 = vld.sshfl [vmem:[#allocation1 + $0x10] sm:$0xff pattern:$0x73625140]  ;;  %v135_v16 = vsel %vm54_vm0, %v95_v11, 0.0 }
  0x21   :  { %v128_v9 = vadd.f32 %v127_v5, %v126_v6  ;;  %v97_v17 = vld.sshfl [vmem:[#allocation1 + $0x18] sm:$0xff pattern:$0x73625140]  ;;  %v137_v19 = vsel %vm54_vm0, %v96_v14, 0.0 }
  0x22   :  { %v98_v20 = vld.sshfl [vmem:[#allocation1 + $0x20] sm:$0xff pattern:$0x73625140]  ;;  %v139_v22 = vsel %vm54_vm0, %v97_v17, 0.0 }
  0x23   :  { %v130_v12 = vadd.f32 %v129_v7, %v128_v9  ;;  %v99_v23 = vld.sshfl [vmem:[#allocation1 + $0x28] sm:$0xff pattern:$0x73625140]  ;;  %v141_v25 = vsel %vm54_vm0, %v98_v20, 0.0 }
  0x24   :  { %v100_v26 = vld.sshfl [vmem:[#allocation1 + $0x30] sm:$0xff pattern:$0x73625140]  ;;  %v143_v28 = vsel %vm54_vm0, %v99_v23, 0.0 }
  0x25   :  { %v132_v15 = vadd.f32 %v131_v10, %v130_v12  ;;  %v101_v29 = vld.sshfl [vmem:[#allocation1 + $0x38] sm:$0xff pattern:$0x73625140]  ;;  %v145_v31 = vsel %vm54_vm0, %v100_v26, 0.0 }
  0x26   :  { %v147_v33 = vsel %vm54_vm0, %v101_v29, 0.0 }
  0x27   :  { %v134_v18 = vadd.f32 %v133_v13, %v132_v15 }
  0x29   :  { %v136_v21 = vadd.f32 %v135_v16, %v134_v18 }
  0x2b   :  { %v138_v24 = vadd.f32 %v137_v19, %v136_v21 }
  0x2d   :  { %v140_v27 = vadd.f32 %v139_v22, %v138_v24 }
  0x2f   :  { %v142_v30 = vadd.f32 %v141_v25, %v140_v27 }
  0x31   :  { %v144_v32 = vadd.f32 %v143_v28, %v142_v30 }
  0x33   :  { %v146_v34 = vadd.f32 %v145_v31, %v144_v32 }
  0x35   :  { %v148_v35 = vadd.f32 %v147_v33, %v146_v34 }
  0x37   :  { %149 = vadd.xlane.f32.xlu0 %v148_v35 }
  0xaa   :  { %v150_v37 = vpop.xlane.xlu0 %149 }
  0xab   :  { %v155_v38 = vadd.f32 %v162_v36, %v150_v37 }
  0xad   :  { %157 = vst.msk [vmem:[%s232_s3] sm:$0x3] %vm156_vm3, %v155_v38 }

// kernel: wgan_discriminator_forward.6
= control target key start
LH: loop header
LB: loop body
LE: loop exit
PB: predicated region body
PF: predicated region fallthrough
CT: control target
= control target key end

     0   :  { %vm334_vm0 = vsmask.f32 1280  ;;  %vm284_vm1 = vcmask 1041408   ;;  %vm288_vm2 = vcmask 1043458   ;;  %vm335_vm3 = vsmask.f32 3336  ;;  %s2834_s4 = inlined_call_operand.vmem [shape: bf16[9,128,128], index: 4, kind: input, shape index: {}]   ;;  %s2835_s2 = inlined_call_operand.vmem [shape: bf16[2,5,4,128], index: 2, kind: input, shape index: {}]   ;;  %s2836_s3 = inlined_call_operand.vmem [shape: bf16[2,5,5,128], index: 3, kind: input, shape index: {}]   ;;  %s2837_s1 = inlined_call_operand.vmem [shape: bf16[2,4,5,128], index: 1, kind: input, shape index: {}]   ;;  %s2838_s0 = inlined_call_operand.vmem [shape: bf16[2,4,4,128], index: 0, kind: input, shape index: {}]   ;;  %s2839_s5 = inlined_call_operand.vmem [shape: f32[1,128], index: 5, kind: input, shape index: {}]   ;;  %s2840_s6 = inlined_call_operand.vmem [shape: bf16[32,128], index: 6, kind: output, shape index: {}]  }
   0x1   :  { %v2123_v0 = vld [vmem:[%s2834_s4 + $0x78] sm:$0xff]  ;;  %v2122_v4 = vld [vmem:[%s2834_s4 + $0x70] sm:$0xff]  ;;  %v2121_v8 = vld [vmem:[%s2834_s4 + $0x68] sm:$0xff]  ;;  %vm337_vm4 = vsmask.f32 5392 }
   0x2   :  { %v2115_v1 = vld [vmem:[%s2834_s4 + $0x38] sm:$0xff]  ;;  %147 = vmatpush.bf16.msra.mxu0 %v2123_v0  ;;  %v2114_v5 = vld [vmem:[%s2834_s4 + $0x30] sm:$0xff]  ;;  %v2113_v9 = vld [vmem:[%s2834_s4 + $0x28] sm:$0xff]  ;;  %vm339_vm5 = vsmask.f32 7448 }
   0x3   :  { %v2131_v2 = vld [vmem:[%s2834_s4 + $0xb8] sm:$0xff]  ;;  %241 = vmatpush.bf16.msra.mxu1 %v2115_v1  ;;  %v2130_v6 = vld [vmem:[%s2834_s4 + $0xb0] sm:$0xff]  ;;  %v2129_v10 = vld [vmem:[%s2834_s4 + $0xa8] sm:$0xff] }
   0x4   :  { %v2139_v3 = vld [vmem:[%s2834_s4 + $0xf8] sm:$0xff]  ;;  %537 = vmatpush.bf16.msra.mxu2 %v2131_v2  ;;  %v2138_v7 = vld [vmem:[%s2834_s4 + $0xf0] sm:$0xff]  ;;  %v2137_v11 = vld [vmem:[%s2834_s4 + $0xe8] sm:$0xff] }
   0x5   :  { %660 = vmatpush.bf16.msra.mxu3 %v2139_v3  ;;  %v2120_v12 = vld [vmem:[%s2834_s4 + $0x60] sm:$0xff]  ;;  %v2119_v19 = vld [vmem:[%s2834_s4 + $0x58] sm:$0xff]  ;;  %v262_v26 = vld [vmem:[%s2836_s3 + $0x8] sm:$0x7] }
   0x6   :  { %148 = vmatpush.bf16.msra.mxu0 %v2122_v4  ;;  %v2112_v13 = vld [vmem:[%s2834_s4 + $0x20] sm:$0xff]  ;;  %v2111_v21 = vld [vmem:[%s2834_s4 + $0x18] sm:$0xff]  ;;  %v263_v27 = vld [vmem:[%s2836_s3 + $0xc] sm:$0x7]  ;;  %v278_v30 = vrot.slane %v262_v26, 2 }
   0x7   :  { %242 = vmatpush.bf16.msra.mxu1 %v2114_v5  ;;  %v2128_v14 = vld [vmem:[%s2834_s4 + $0xa0] sm:$0xff]  ;;  %v2127_v22 = vld [vmem:[%s2834_s4 + $0x98] sm:$0xff]  ;;  %v2118_v31 = vld [vmem:[%s2834_s4 + $0x50] sm:$0xff]  ;;  %v279_v34 = vrot.slane %v263_v27, 2 }
   0x8   :  { %538 = vmatpush.bf16.msra.mxu2 %v2130_v6  ;;  %v47_v15 = vld [vmem:[%s2835_s2] sm:$0x3]  ;;  %v48_v17 = vld [vmem:[%s2835_s2 + $0x2] sm:$0x3]  ;;  %v49_v18 = vld [vmem:[%s2835_s2 + $0x4] sm:$0x3]  ;;  %v301_v45 = vsel %vm288_vm2, %v262_v26, %v278_v30  ;;  %v300_v50 = vsel %vm284_vm1, %v262_v26, %v278_v30 }
   0x9   :  { %661 = vmatpush.bf16.msra.mxu3 %v2138_v7  ;;  %v2136_v16 = vld [vmem:[%s2834_s4 + $0xe0] sm:$0xff]  ;;  %73 = vst [vmem:[#allocation1] ss:$4 sm:$0xff] %v47_v15  ;;  %v2135_v23 = vld [vmem:[%s2834_s4 + $0xd8] sm:$0xff]  ;;  %v2110_v32 = vld [vmem:[%s2834_s4 + $0x10] sm:$0xff]  ;;  %v307_v51 = vsel %vm288_vm2, %v263_v27, %v279_v34  ;;  %v303_v55 = vrot.slane %v301_v45, 2  ;;  %v306_v59 = vsel %vm284_vm1, %v263_v27, %v279_v34 }
   0xa   :  { %149 = vmatpush.bf16.msra.mxu0 %v2121_v8  ;;  %v50_v20 = vld [vmem:[%s2835_s2 + $0x6] sm:$0x3]  ;;  %76 = vst [vmem:[#allocation1 + $0x1] ss:$4 sm:$0xff] %v48_v17  ;;  %v260_v24 = vld [vmem:[%s2836_s3] sm:$0x7]  ;;  %vm2373_vm6 = vmor %vm334_vm0, %vm335_vm3 }
   0xb   :  { %243 = vmatpush.bf16.msra.mxu1 %v2113_v9  ;;  %79 = vst [vmem:[#allocation1 + $0x2] ss:$4 sm:$0xff] %v49_v18  ;;  %v261_v25 = vld [vmem:[%s2836_s3 + $0x4] sm:$0x7]  ;;  %v276_v28 = vrot.slane %v260_v24, 2  ;;  %v2126_v33 = vld [vmem:[%s2834_s4 + $0x90] sm:$0xff]  ;;  %vm2389_vm7 = vmor %vm2373_vm6, %vm337_vm4 }
   0xc   :  { %539 = vmatpush.bf16.msra.mxu2 %v2129_v10  ;;  %82 = vst [vmem:[#allocation1 + $0x3] ss:$4 sm:$0xff] %v50_v20  ;;  %v277_v29 = vrot.slane %v261_v25, 2  ;;  %v51_v37 = vld [vmem:[%s2835_s2 + $0xa] sm:$0x3]  ;;  %v2134_v39 = vld [vmem:[%s2834_s4 + $0xd0] sm:$0xff]  ;;  %vm2405_vm8 = vmor %vm2389_vm7, %vm339_vm5 }
   0xd   :  { %662 = vmatpush.bf16.msra.mxu3 %v2137_v11  ;;  %v287_v35 = vsel %vm284_vm1, %v260_v24, %v276_v28  ;;  %v289_v36 = vsel %vm288_vm2, %v260_v24, %v276_v28  ;;  %v52_v38 = vld [vmem:[%s2835_s2 + $0xc] sm:$0x3]  ;;  %v23_v40 = vld [vmem:[%s2836_s3] sm:$0x3]  ;;  %v24_v41 = vld [vmem:[%s2836_s3 + $0x4] sm:$0x3] }
   0xe   :  { %150 = vmatpush.bf16.msra.mxu0 %v2120_v12  ;;  %v291_v42 = vrot.slane %v289_v36, 2  ;;  %v294_v43 = vsel %vm284_vm1, %v261_v25, %v277_v29  ;;  %v295_v44 = vsel %vm288_vm2, %v261_v25, %v277_v29  ;;  %v2117_v46 = vld [vmem:[%s2834_s4 + $0x48] sm:$0xff]  ;;  %85 = vst [vmem:[#allocation1 + $0x20] ss:$4 sm:$0xff] %v51_v37  ;;  %v341_v56 = vshrl.u32 %v287_v35, 16  ;;  %v2116_v4 = vld [vmem:[%s2834_s4 + $0x40] sm:$0xff] }
   0xf   :  { %244 = vmatpush.bf16.msra.mxu1 %v2112_v13  ;;  %v2109_v47 = vld [vmem:[%s2834_s4 + $0x8] sm:$0xff]  ;;  %v297_v49 = vrot.slane %v295_v44, 2  ;;  %v344_v57 = vshll.u32 %v287_v35, 16  ;;  %88 = vst [vmem:[#allocation1 + $0x21] ss:$4 sm:$0xff] %v52_v38  ;;  %v309_v60 = vrot.slane %v307_v51, 2 }
  0x10   :  { %540 = vmatpush.bf16.msra.mxu2 %v2128_v14  ;;  %v25_v48 = vld [vmem:[%s2836_s3 + $0x8] sm:$0x3]  ;;  %v26_v54 = vld [vmem:[%s2836_s3 + $0xc] sm:$0x3]  ;;  %v354_v62 = vshrl.u32 %v294_v43, 16  ;;  %v357_v63 = vshll.u32 %v294_v43, 16 }
  0x11   :  { %663 = vmatpush.bf16.msra.mxu3 %v2136_v16  ;;  %v2125_v52 = vld [vmem:[%s2834_s4 + $0x88] sm:$0xff]  ;;  %v343_v0 = vrot.slane %v341_v56, 6  ;;  %v346_v1 = vrot.slane %v344_v57, 7  ;;  %v350_v2 = vshll.u32 %v291_v42, 16  ;;  %v367_v3 = vshrl.u32 %v300_v50, 16  ;;  %v2108_v10 = vld [vmem:[%s2834_s4] sm:$0xff] }
  0x12   :  { %151 = vmatpush.bf16.msra.mxu0 %v2119_v19  ;;  %v2133_v53 = vld [vmem:[%s2834_s4 + $0xc8] sm:$0xff]  ;;  %v356_v5 = vrot.slane %v354_v62, 6  ;;  %v359_v6 = vrot.slane %v357_v63, 7  ;;  %v363_v7 = vshll.u32 %v297_v49, 16  ;;  %v370_v8 = vshll.u32 %v300_v50, 16  ;;  %v2124_v16 = vld [vmem:[%s2834_s4 + $0x80] sm:$0xff] }
  0x13   :  { %245 = vmatpush.bf16.msra.mxu1 %v2111_v21  ;;  %v2368_v58 = vld.sshfl [vmem:[#allocation1] sm:$0xff pattern:$0x73625140]  ;;  %v53_v9 = vld [vmem:[%s2835_s2 + $0xe] sm:$0x3]  ;;  %v347_v12 = vor.u32 %v346_v1, %v343_v0  ;;  %v369_v13 = vrot.slane %v367_v3, 6 }
  0x14   :  { %541 = vmatpush.bf16.msra.mxu2 %v2127_v22  ;;  %167 = vst [vmem:[#allocation1] ss:$4 sm:$0xff] %v23_v40  ;;  %v376_v14 = vshll.u32 %v303_v55, 16  ;;  %v380_v15 = vshrl.u32 %v306_v59, 16  ;;  %v360_v17 = vor.u32 %v359_v6, %v356_v5  ;;  %v372_v18 = vrot.slane %v370_v8, 7  ;;  %v2132_v21 = vld [vmem:[%s2834_s4 + $0xc0] sm:$0xff] }
  0x15   :  { %664 = vmatpush.bf16.msra.mxu3 %v2135_v23  ;;  %170 = vst [vmem:[#allocation1 + $0x1] ss:$4 sm:$0xff] %v24_v41  ;;  %v383_v19 = vshll.u32 %v306_v59, 16  ;;  %v389_v20 = vshll.u32 %v309_v60, 16  ;;  %v348_v22 = vrot.slane %v347_v12, 2  ;;  %v352_v23 = vrot.slane %v350_v2, 7 }
  0x16   :  { %152 = vmatpush.bf16.msra.mxu0 %v2118_v31  ;;  %173 = vst [vmem:[#allocation1 + $0x2] ss:$4 sm:$0xff] %v25_v48  ;;  %v382_v24 = vrot.slane %v380_v15, 6  ;;  %v54_v25 = vld [vmem:[%s2835_s2 + $0x10] sm:$0x3]  ;;  %v361_v27 = vrot.slane %v360_v17, 2  ;;  %v373_v29 = vor.u32 %v372_v18, %v369_v13 }
  0x17   :  { %246 = vmatpush.bf16.msra.mxu1 %v2110_v32  ;;  %176 = vst [vmem:[#allocation1 + $0x3] ss:$4 sm:$0xff] %v26_v54  ;;  %v365_v28 = vrot.slane %v363_v7, 7  ;;  %v385_v30 = vrot.slane %v383_v19, 7  ;;  %v2147_v31 = vld [vmem:[%s2834_s4 + $0x138] sm:$0xff]  ;;  %v391_v37 = vrot.slane %v389_v20, 7 }
  0x18   :  { %542 = vmatpush.bf16.msra.mxu2 %v2126_v33  ;;  %v2155_v32 = vld [vmem:[%s2834_s4 + $0x178] sm:$0xff]  ;;  %v378_v33 = vrot.slane %v376_v14, 7  ;;  %91 = vst [vmem:[#allocation1 + $0x22] ss:$4 sm:$0xff] %v53_v9  ;;  %v374_v35 = vrot.slane %v373_v29, 2  ;;  %v2146_v40 = vld [vmem:[%s2834_s4 + $0x130] sm:$0xff] }
  0x19   :  { %665 = vmatpush.bf16.msra.mxu3 %v2134_v39  ;;  %v2163_v34 = vld [vmem:[%s2834_s4 + $0x1b8] sm:$0xff]  ;;  %v386_v36 = vor.u32 %v385_v30, %v382_v24  ;;  %94 = vst [vmem:[#allocation1 + $0x23] ss:$4 sm:$0xff] %v54_v25  ;;  %v353_v39 = vsel %vm2405_vm8, %v348_v22, %v352_v23  ;;  %v2154_v41 = vld [vmem:[%s2834_s4 + $0x170] sm:$0xff]  ;;  %v366_v42 = vsel %vm2405_vm8, %v361_v27, %v365_v28  ;;  %v2153_v54 = vld [vmem:[%s2834_s4 + $0x168] sm:$0xff] }
  0x1a   :  { %153 = vmatpush.bf16.msra.mxu0 %v2117_v46  ;;  %v2171_v38 = vld [vmem:[%s2834_s4 + $0x1f8] sm:$0xff]  ;;  %v2162_v44 = vld [vmem:[%s2834_s4 + $0x1b0] sm:$0xff]  ;;  %v379_v48 = vsel %vm2405_vm8, %v374_v35, %v378_v33  ;;  %v267_v57 = vld [vmem:[%s2836_s3 + $0x20] sm:$0x7] }
  0x1b   :  { %247 = vmatpush.bf16.msra.mxu1 %v2109_v47  ;;  %v387_v43 = vrot.slane %v386_v36, 2  ;;  %v2170_v45 = vld [vmem:[%s2834_s4 + $0x1f0] sm:$0xff]  ;;  %v265_v50 = vld [vmem:[%s2836_s3 + $0x18] sm:$0x7]  ;;  %v266_v56 = vld [vmem:[%s2836_s3 + $0x1c] sm:$0x7] }
  0x1c   :  { %543 = vmatpush.bf16.msra.mxu2 %v2125_v52  ;;  %v264_v46 = vld [vmem:[%s2836_s3 + $0x14] sm:$0x7]  ;;  %v28_v55 = vld [vmem:[%s2836_s3 + $0x18] sm:$0x3]  ;;  %v281_v59 = vrot.slane %v265_v50, 2  ;;  %v282_v60 = vrot.slane %v266_v56, 2 }
  0x1d   :  { %666 = vmatpush.bf16.msra.mxu3 %v2133_v53  ;;  %v27_v49 = vld [vmem:[%s2836_s3 + $0x14] sm:$0x3]  ;;  %v280_v51 = vrot.slane %v264_v46, 2  ;;  %v392_v52 = vsel %vm2405_vm8, %v387_v43, %v391_v37  ;;  %v2145_v53 = vld [vmem:[%s2834_s4 + $0x128] sm:$0xff]  ;;  %v283_v61 = vrot.slane %v267_v57, 2  ;;  %v2144_v9 = vld [vmem:[%s2834_s4 + $0x120] sm:$0xff] }
  0x1e   :  { %154 = vmatpush.bf16.msra.mxu0 %v2116_v4  ;;  %v189_v47 = vld.sshfl [vmem:[#allocation1] sm:$0xff pattern:$0x73625140]  ;;  %v2169_v63 = vld [vmem:[%s2834_s4 + $0x1e8] sm:$0xff]  ;;  %v29_v0 = vld [vmem:[%s2836_s3 + $0x1c] sm:$0x3]  ;;  %v318_v6 = vsel %vm284_vm1, %v265_v50, %v281_v59  ;;  %v319_v7 = vsel %vm288_vm2, %v265_v50, %v281_v59  ;;  %v324_v8 = vsel %vm284_vm1, %v266_v56, %v282_v60  ;;  %v325_v13 = vsel %vm288_vm2, %v266_v56, %v282_v60 }
  0x1f   :  { %248 = vmatpush.bf16.msra.mxu1 %v2108_v10  ;;  %463 = vst [vmem:[#allocation1] ss:$4 sm:$0xff] %v353_v39  ;;  %v312_v62 = vsel %vm284_vm1, %v264_v46, %v280_v51  ;;  %v313_v1 = vsel %vm288_vm2, %v264_v46, %v280_v51  ;;  %v2152_v10 = vld [vmem:[%s2834_s4 + $0x160] sm:$0xff]  ;;  %v321_v12 = vrot.slane %v319_v7, 2  ;;  %v330_v14 = vsel %vm284_vm1, %v267_v57, %v283_v61  ;;  %v2151_v50 = vld [vmem:[%s2834_s4 + $0x158] sm:$0xff]  ;;  %v2142_v59 = vld [vmem:[%s2834_s4 + $0x110] sm:$0xff] }
  0x20   :  { %544 = vmatpush.bf16.msra.mxu2 %v2124_v16  ;;  %466 = vst [vmem:[#allocation1 + $0x1] ss:$4 sm:$0xff] %v366_v42  ;;  %v393_v2 = vshrl.u32 %v312_v62, 16  ;;  %v396_v3 = vshll.u32 %v312_v62, 16  ;;  %v315_v5 = vrot.slane %v313_v1, 2  ;;  %v331_v15 = vsel %vm288_vm2, %v267_v57, %v283_v61  ;;  %v2168_v33 = vld [vmem:[%s2834_s4 + $0x1e0] sm:$0xff] }
  0x21   :  { %667 = vmatpush.bf16.msra.mxu3 %v2132_v21  ;;  %155 = vmatmul.bf16.vlgmr.msra.gmra.mxu0 %v2368_v58  ;;  %v2161_v58 = vld [vmem:[%s2834_s4 + $0x1a8] sm:$0xff]  ;;  %469 = vst [vmem:[#allocation1 + $0x2] ss:$4 sm:$0xff] %v379_v48  ;;  %v2477_v4 = vld.sshfl [vmem:[#allocation1 + $0x20] sm:$0xff pattern:$0x73625140] }
  0x22   :  { %783 = vmatpush.bf16.msrb.mxu0 %v2147_v31  ;;  %249 = vmatmul.bf16.vlgmr.msra.gmra.mxu1 %v189_v47  ;;  %472 = vst [vmem:[#allocation1 + $0x3] ss:$4 sm:$0xff] %v392_v52  ;;  %v30_v11 = vld [vmem:[%s2836_s3 + $0x20] sm:$0x3]  ;;  %v327_v16 = vrot.slane %v325_v13, 2  ;;  %v333_v17 = vrot.slane %v331_v15, 2 }
  0x23   :  { %1074 = vmatpush.bf16.msrb.mxu1 %v2155_v32  ;;  %179 = vst [vmem:[#allocation1 + $0x20] ss:$4 sm:$0xff] %v27_v49  ;;  %v395_v18 = vrot.slane %v393_v2, 6  ;;  %v398_v19 = vrot.slane %v396_v3, 7  ;;  %v560_v20 = vld [vmem:[%s2837_s1] sm:$0x3] }
  0x24   :  { %1198 = vmatpush.bf16.msrb.mxu2 %v2163_v34  ;;  %182 = vst [vmem:[#allocation1 + $0x21] ss:$4 sm:$0xff] %v28_v55  ;;  %v402_v21 = vshll.u32 %v315_v5, 16  ;;  %v406_v22 = vshrl.u32 %v318_v6, 16  ;;  %v409_v23 = vshll.u32 %v318_v6, 16  ;;  %v415_v24 = vshll.u32 %v321_v12, 16 }
  0x25   :  { %1322 = vmatpush.bf16.msrb.mxu3 %v2171_v38  ;;  %185 = vst [vmem:[#allocation1 + $0x22] ss:$4 sm:$0xff] %v29_v0  ;;  %v561_v25 = vld [vmem:[%s2837_s1 + $0x4] sm:$0x3]  ;;  %v399_v27 = vor.u32 %v398_v19, %v395_v18  ;;  %v419_v28 = vshrl.u32 %v324_v8, 16  ;;  %v422_v29 = vshll.u32 %v324_v8, 16 }
  0x26   :  { %784 = vmatpush.bf16.msrb.mxu0 %v2146_v40  ;;  %188 = vst [vmem:[#allocation1 + $0x23] ss:$4 sm:$0xff] %v30_v11  ;;  %v428_v30 = vshll.u32 %v327_v16, 16  ;;  %v562_v31 = vld [vmem:[%s2837_s1 + $0x8] sm:$0x3]  ;;  %v2160_v32 = vld [vmem:[%s2834_s4 + $0x1a0] sm:$0xff] }
  0x27   :  { %1075 = vmatpush.bf16.msrb.mxu1 %v2154_v41  ;;  %v404_v34 = vrot.slane %v402_v21, 7  ;;  %v408_v35 = vrot.slane %v406_v22, 6  ;;  %v411_v36 = vrot.slane %v409_v23, 7  ;;  %v400_v37 = vrot.slane %v399_v27, 2  ;;  %v2143_v41 = vld [vmem:[%s2834_s4 + $0x118] sm:$0xff]  ;;  %v2158_v2 = vld [vmem:[%s2834_s4 + $0x190] sm:$0xff] }
  0x28   :  { %1199 = vmatpush.bf16.msrb.mxu2 %v2162_v44  ;;  %v417_v38 = vrot.slane %v415_v24, 7  ;;  %v421_v39 = vrot.slane %v419_v28, 6  ;;  %v424_v40 = vrot.slane %v422_v29, 7  ;;  %v432_v44 = vshrl.u32 %v330_v14, 16  ;;  %v563_v47 = vld [vmem:[%s2837_s1 + $0xc] sm:$0x3] }
  0x29   :  { %1323 = vmatpush.bf16.msrb.mxu3 %v2170_v45  ;;  %v485_v42 = vld.sshfl [vmem:[#allocation1] sm:$0xff pattern:$0x73625140]  ;;  %v412_v43 = vor.u32 %v411_v36, %v408_v35  ;;  %v435_v45 = vshll.u32 %v330_v14, 16  ;;  %v441_v46 = vshll.u32 %v333_v17, 16  ;;  %v430_v49 = vrot.slane %v428_v30, 7 }
  0x2a   :  { %785 = vmatpush.bf16.msrb.mxu0 %v2145_v53  ;;  %545 = vmatmul.bf16.vlgmr.msra.gmra.mxu2 %v485_v42  ;;  %586 = vst [vmem:[#allocation1] ss:$4 sm:$0xff] %v560_v20  ;;  %v425_v48 = vor.u32 %v424_v40, %v421_v39  ;;  %v405_v51 = vsel %vm2405_vm8, %v400_v37, %v404_v34  ;;  %v434_v53 = vrot.slane %v432_v44, 6  ;;  %v2159_v55 = vld [vmem:[%s2834_s4 + $0x198] sm:$0xff]  ;;  %v2166_v3 = vld [vmem:[%s2834_s4 + $0x1d0] sm:$0xff]  ;;  %v2149_v5 = vld [vmem:[%s2834_s4 + $0x148] sm:$0xff] }
  0x2b   :  { %1076 = vmatpush.bf16.msrb.mxu1 %v2153_v54  ;;  %589 = vst [vmem:[#allocation1 + $0x1] ss:$4 sm:$0xff] %v561_v25  ;;  %v413_v52 = vrot.slane %v412_v43, 2  ;;  %v437_v54 = vrot.slane %v435_v45, 7  ;;  %v443_v57 = vrot.slane %v441_v46, 7  ;;  %v2157_v7 = vld [vmem:[%s2834_s4 + $0x188] sm:$0xff] }
  0x2c   :  { %1200 = vmatpush.bf16.msrb.mxu2 %v2161_v58  ;;  %592 = vst [vmem:[#allocation1 + $0x2] ss:$4 sm:$0xff] %v562_v31  ;;  %v426_v56 = vrot.slane %v425_v48, 2  ;;  %v2167_v58 = vld [vmem:[%s2834_s4 + $0x1d8] sm:$0xff]  ;;  %v683_v8 = vld [vmem:[%s2838_s0] sm:$0x3] }
  0x2d   :  { %1324 = vmatpush.bf16.msrb.mxu3 %v2169_v63  ;;  %595 = vst [vmem:[#allocation1 + $0x3] ss:$4 sm:$0xff] %v563_v47  ;;  %v190_v60 = vld.sshfl [vmem:[#allocation1 + $0x20] sm:$0xff pattern:$0x73625140]  ;;  %v418_v61 = vsel %vm2405_vm8, %v413_v52, %v417_v38  ;;  %v438_v62 = vor.u32 %v437_v54, %v434_v53  ;;  %v2150_v63 = vld [vmem:[%s2834_s4 + $0x150] sm:$0xff] }
  0x2e   :  { %786 = vmatpush.bf16.msrb.mxu0 %v2144_v9  ;;  %v431_v0 = vsel %vm2405_vm8, %v426_v56, %v430_v49  ;;  %475 = vst [vmem:[#allocation1 + $0x20] ss:$4 sm:$0xff] %v405_v51  ;;  %v684_v9 = vld [vmem:[%s2838_s0 + $0x2] sm:$0x3]  ;;  %v807_v12 = vld [vmem:[%s2837_s1 + $0x4] sm:$0x7] }
  0x2f   :  { %1077 = vmatpush.bf16.msrb.mxu1 %v2152_v10  ;;  %v439_v1 = vrot.slane %v438_v62, 2  ;;  %478 = vst [vmem:[#allocation1 + $0x21] ss:$4 sm:$0xff] %v418_v61  ;;  %v2165_v10 = vld [vmem:[%s2834_s4 + $0x1c8] sm:$0xff]  ;;  %v806_v11 = vld [vmem:[%s2837_s1] sm:$0x7] }
  0x30   :  { %1201 = vmatpush.bf16.msrb.mxu2 %v2160_v32  ;;  %481 = vst [vmem:[#allocation1 + $0x22] ss:$4 sm:$0xff] %v431_v0  ;;  %v808_v13 = vld [vmem:[%s2837_s1 + $0x8] sm:$0x7]  ;;  %v809_v14 = vld [vmem:[%s2837_s1 + $0xc] sm:$0x7] }
  0x31   :  { %1325 = vmatpush.bf16.msrb.mxu3 %v2168_v33  ;;  %160 = vmatmul.bf16.gmra.mxu0 %v2477_v4  ;;  %v2141_v4 = vld [vmem:[%s2834_s4 + $0x108] sm:$0xff]  ;;  %v444_v6 = vsel %vm2405_vm8, %v439_v1, %v443_v57  ;;  %v822_v15 = vrot.slane %v806_v11, 2  ;;  %v823_v16 = vrot.slane %v807_v12, 2  ;;  %v685_v18 = vld [vmem:[%s2838_s0 + $0x4] sm:$0x3]  ;;  %v824_v19 = vrot.slane %v808_v13, 2 }
  0x32   :  { %787 = vmatpush.bf16.msrb.mxu0 %v2143_v41  ;;  %254 = vmatmul.bf16.gmra.mxu1 %v190_v60  ;;  %484 = vst [vmem:[#allocation1 + $0x23] ss:$4 sm:$0xff] %v444_v6  ;;  %v564_v20 = vld [vmem:[%s2837_s1 + $0x10] sm:$0x3]  ;;  %v2140_v21 = vld [vmem:[%s2834_s4 + $0x100] sm:$0xff]  ;;  %v825_v23 = vrot.slane %v809_v14, 2 }
  0x33   :  { %1078 = vmatpush.bf16.msrb.mxu1 %v2151_v50  ;;  %v686_v22 = vld [vmem:[%s2838_s0 + $0x6] sm:$0x3]  ;;  %v832_v24 = vsel %vm284_vm1, %v806_v11, %v822_v15  ;;  %v833_v25 = vsel %vm288_vm2, %v806_v11, %v822_v15  ;;  %v565_v27 = vld [vmem:[%s2837_s1 + $0x14] sm:$0x3]  ;;  %v838_v30 = vsel %vm284_vm1, %v807_v12, %v823_v16  ;;  %v839_v31 = vsel %vm288_vm2, %v807_v12, %v823_v16  ;;  %v566_v33 = vld [vmem:[%s2837_s1 + $0x18] sm:$0x3] }
  0x34   :  { %1202 = vmatpush.bf16.msrb.mxu2 %v2159_v55  ;;  %v608_v17 = vld.sshfl [vmem:[#allocation1] sm:$0xff pattern:$0x73625140]  ;;  %v835_v29 = vrot.slane %v833_v25, 2  ;;  %v845_v32 = vsel %vm288_vm2, %v808_v13, %v824_v19  ;;  %v841_v36 = vrot.slane %v839_v31, 2  ;;  %v844_v37 = vsel %vm284_vm1, %v808_v13, %v824_v19  ;;  %v2179_v16 = vld [vmem:[%s2834_s4 + $0x238] sm:$0xff] }
  0x35   :  { %1326 = vmatpush.bf16.msrb.mxu3 %v2167_v58  ;;  %709 = vst [vmem:[#allocation1] ss:$4 sm:$0xff] %v683_v8  ;;  %v2148_v28 = vld [vmem:[%s2834_s4 + $0x140] sm:$0xff]  ;;  %v847_v38 = vrot.slane %v845_v32, 2  ;;  %v851_v39 = vsel %vm288_vm2, %v809_v14, %v825_v23  ;;  %v567_v40 = vld [vmem:[%s2837_s1 + $0x1c] sm:$0x3]  ;;  %v850_v46 = vsel %vm284_vm1, %v809_v14, %v825_v23 }
  0x36   :  { %788 = vmatpush.bf16.msrb.mxu0 %v2142_v59  ;;  %668 = vmatmul.bf16.vlgmr.msra.gmra.mxu3 %v608_v17  ;;  %712 = vst [vmem:[#allocation1 + $0x1] ss:$4 sm:$0xff] %v684_v9  ;;  %v2156_v34 = vld [vmem:[%s2834_s4 + $0x180] sm:$0xff]  ;;  %v853_v41 = vrot.slane %v851_v39, 2  ;;  %v878_v42 = vshrl.u32 %v832_v24, 16  ;;  %v881_v43 = vshll.u32 %v832_v24, 16 }
  0x37   :  { %1079 = vmatpush.bf16.msrb.mxu1 %v2150_v63  ;;  %v2164_v35 = vld [vmem:[%s2834_s4 + $0x1c0] sm:$0xff]  ;;  %715 = vst [vmem:[#allocation1 + $0x2] ss:$4 sm:$0xff] %v685_v18  ;;  %v887_v44 = vshll.u32 %v835_v29, 16  ;;  %v891_v47 = vshrl.u32 %v838_v30, 16  ;;  %v894_v48 = vshll.u32 %v838_v30, 16 }
  0x38   :  { %1203 = vmatpush.bf16.msrb.mxu2 %v2158_v2  ;;  %718 = vst [vmem:[#allocation1 + $0x3] ss:$4 sm:$0xff] %v686_v22  ;;  %v900_v49 = vshll.u32 %v841_v36, 16  ;;  %v880_v50 = vrot.slane %v878_v42, 6  ;;  %v883_v51 = vrot.slane %v881_v43, 7  ;;  %v904_v53 = vshrl.u32 %v844_v37, 16 }
  0x39   :  { %1327 = vmatpush.bf16.msrb.mxu3 %v2166_v3  ;;  %v486_v45 = vld.sshfl [vmem:[#allocation1 + $0x20] sm:$0xff pattern:$0x73625140]  ;;  %v889_v52 = vrot.slane %v887_v44, 7  ;;  %v893_v54 = vrot.slane %v891_v47, 6  ;;  %v896_v55 = vrot.slane %v894_v48, 7 }
  0x3a   :  { %789 = vmatpush.bf16.msrb.mxu0 %v2141_v4  ;;  %550 = vmatmul.bf16.gmra.mxu2 %v486_v45  ;;  %598 = vst [vmem:[#allocation1 + $0x20] ss:$4 sm:$0xff] %v564_v20  ;;  %v902_v56 = vrot.slane %v900_v49, 7  ;;  %v907_v57 = vshll.u32 %v844_v37, 16  ;;  %v884_v58 = vor.u32 %v883_v51, %v880_v50  ;;  %v906_v59 = vrot.slane %v904_v53, 6  ;;  %v2178_v30 = vld [vmem:[%s2834_s4 + $0x230] sm:$0xff] }
  0x3b   :  { %1080 = vmatpush.bf16.msrb.mxu1 %v2149_v5  ;;  %601 = vst [vmem:[#allocation1 + $0x21] ss:$4 sm:$0xff] %v565_v27  ;;  %v913_v60 = vshll.u32 %v847_v38, 16  ;;  %v917_v61 = vshrl.u32 %v850_v46, 16  ;;  %v897_v62 = vor.u32 %v896_v55, %v893_v54  ;;  %v920_v0 = vshll.u32 %v850_v46, 16  ;;  %v2176_v54 = vld [vmem:[%s2834_s4 + $0x220] sm:$0xff] }
  0x3c   :  { %1204 = vmatpush.bf16.msrb.mxu2 %v2157_v7  ;;  %604 = vst [vmem:[#allocation1 + $0x22] ss:$4 sm:$0xff] %v566_v33  ;;  %v909_v63 = vrot.slane %v907_v57, 7  ;;  %v926_v1 = vshll.u32 %v853_v41, 16  ;;  %v885_v2 = vrot.slane %v884_v58, 2 }
  0x3d   :  { %1328 = vmatpush.bf16.msrb.mxu3 %v2165_v10  ;;  %607 = vst [vmem:[#allocation1 + $0x23] ss:$4 sm:$0xff] %v567_v40  ;;  %v919_v3 = vrot.slane %v917_v61, 6  ;;  %v898_v5 = vrot.slane %v897_v62, 2  ;;  %v915_v7 = vrot.slane %v913_v60, 7  ;;  %v922_v8 = vrot.slane %v920_v0, 7 }
  0x3e   :  { %790 = vmatpush.bf16.msrb.mxu0 %v2140_v21  ;;  %v910_v6 = vor.u32 %v909_v63, %v906_v59  ;;  %v890_v9 = vsel %vm2405_vm8, %v885_v2, %v889_v52  ;;  %v928_v13 = vrot.slane %v926_v1, 7  ;;  %v687_v17 = vld [vmem:[%s2838_s0 + $0x8] sm:$0x3]  ;;  %v688_v19 = vld [vmem:[%s2838_s0 + $0xa] sm:$0x3] }
  0x3f   :  { %1081 = vmatpush.bf16.msrb.mxu1 %v2148_v28  ;;  %v731_v4 = vld.sshfl [vmem:[#allocation1] sm:$0xff pattern:$0x73625140]  ;;  %v903_v10 = vsel %vm2405_vm8, %v898_v5, %v902_v56  ;;  %v923_v12 = vor.u32 %v922_v8, %v919_v3  ;;  %v2631_v20 = vld [vmem:[%s2837_s1 + $0x10] sm:$0x7]  ;;  %v2177_v40 = vld [vmem:[%s2834_s4 + $0x228] sm:$0xff] }
  0x40   :  { %1205 = vmatpush.bf16.msrb.mxu2 %v2156_v34  ;;  %v911_v11 = vrot.slane %v910_v6, 2  ;;  %1000 = vst [vmem:[#allocation1] ss:$4 sm:$0xff] %v890_v9  ;;  %v2052_v22 = vld [vmem:[%s2836_s3 + $0x4] sm:$0x7]  ;;  %v826_v41 = vrot.slane %v2631_v20, 2 }
  0x41   :  { %1329 = vmatpush.bf16.msrb.mxu3 %v2164_v35  ;;  %791 = vmatmul.bf16.vlgmr.msrb.gmra.mxu0 %v731_v4  ;;  %1003 = vst [vmem:[#allocation1 + $0x1] ss:$4 sm:$0xff] %v903_v10  ;;  %v924_v15 = vrot.slane %v923_v12, 2  ;;  %v2053_v23 = vld [vmem:[%s2836_s3 + $0x8] sm:$0x7]  ;;  %v1361_v27 = vrot.slane %v2052_v22, 2 }
  0x42   :  { %v916_v14 = vsel %vm2405_vm8, %v911_v11, %v915_v7  ;;  %v2054_v24 = vld [vmem:[%s2836_s3 + $0xc] sm:$0x7]  ;;  %1613 = vmatpush.bf16.msra.mxu0 %v2179_v16  ;;  %v2055_v25 = vld [vmem:[%s2836_s3 + $0x10] sm:$0x7]  ;;  %v1362_v28 = vrot.slane %v2053_v23, 2  ;;  %v2676_v48 = vsel %vm288_vm2, %v2631_v20, %v826_v41 }
  0x43   :  { %1006 = vst [vmem:[#allocation1 + $0x2] ss:$4 sm:$0xff] %v916_v14  ;;  %v929_v21 = vsel %vm2405_vm8, %v924_v15, %v928_v13  ;;  %2191 = vmatpush.bf16.msra.mxu1 %v2179_v16  ;;  %v1363_v29 = vrot.slane %v2054_v24, 2  ;;  %v689_v31 = vld [vmem:[%s2838_s0 + $0xc] sm:$0x3]  ;;  %v1364_v32 = vrot.slane %v2055_v25, 2  ;;  %v1371_v33 = vsel %vm284_vm1, %v2052_v22, %v1361_v27 }
  0x44   :  { %v609_v18 = vld.sshfl [vmem:[#allocation1 + $0x20] sm:$0xff pattern:$0x73625140]  ;;  %1009 = vst [vmem:[#allocation1 + $0x3] ss:$4 sm:$0xff] %v929_v21  ;;  %v1372_v34 = vsel %vm288_vm2, %v2052_v22, %v1361_v27  ;;  %v1378_v35 = vsel %vm288_vm2, %v2053_v23, %v1362_v28  ;;  %v1377_v39 = vsel %vm284_vm1, %v2053_v23, %v1362_v28  ;;  %v1417_v44 = vshrl.u32 %v1371_v33, 16 }
  0x45   :  { %v690_v36 = vld [vmem:[%s2838_s0 + $0xe] sm:$0x3]  ;;  %721 = vst [vmem:[#allocation1 + $0x20] ss:$4 sm:$0xff] %v687_v17  ;;  %v1940_v37 = vld [vmem:[%s2836_s3 + $0x4] sm:$0x3]  ;;  %v1383_v46 = vsel %vm284_vm1, %v2054_v24, %v1363_v29  ;;  %v1384_v50 = vsel %vm288_vm2, %v2054_v24, %v1363_v29  ;;  %v1389_v51 = vsel %vm284_vm1, %v2055_v25, %v1364_v32  ;;  %v1390_v57 = vsel %vm288_vm2, %v2055_v25, %v1364_v32 }
  0x46   :  { %673 = vmatmul.bf16.gmra.mxu3 %v609_v18  ;;  %v1374_v38 = vrot.slane %v1372_v34, 2  ;;  %1614 = vmatpush.bf16.msra.mxu0 %v2178_v30  ;;  %724 = vst [vmem:[#allocation1 + $0x21] ss:$4 sm:$0xff] %v688_v19  ;;  %v1941_v42 = vld [vmem:[%s2836_s3 + $0x8] sm:$0x3]  ;;  %v1380_v43 = vrot.slane %v1378_v35, 2  ;;  %v856_v16 = vsel %vm284_vm1, %v2631_v20, %v826_v41 }
  0x47   :  { %2192 = vmatpush.bf16.msra.mxu1 %v2178_v30  ;;  %727 = vst [vmem:[#allocation1 + $0x22] ss:$4 sm:$0xff] %v689_v31  ;;  %v1942_v45 = vld [vmem:[%s2836_s3 + $0xc] sm:$0x3]  ;;  %v1420_v47 = vshll.u32 %v1371_v33, 16  ;;  %v1430_v52 = vshrl.u32 %v1377_v39, 16 }
  0x48   :  { %730 = vst [vmem:[#allocation1 + $0x23] ss:$4 sm:$0xff] %v690_v36  ;;  %v1943_v49 = vld [vmem:[%s2836_s3 + $0x10] sm:$0x3]  ;;  %v1433_v53 = vshll.u32 %v1377_v39, 16  ;;  %v1419_v58 = vrot.slane %v1417_v44, 6 }
  0x49   :  { %v811_v55 = vld [vmem:[%s2837_s1 + $0x14] sm:$0x7]  ;;  %v1422_v59 = vrot.slane %v1420_v47, 7  ;;  %v2690_v60 = vshll.u32 %v1374_v38, 16  ;;  %v2692_v61 = vshll.u32 %v1380_v43, 16  ;;  %v1443_v62 = vshrl.u32 %v1383_v46, 16 }
  0x4a   :  { %1615 = vmatpush.bf16.msra.mxu0 %v2177_v40  ;;  %v812_v63 = vld [vmem:[%s2837_s1 + $0x18] sm:$0x7]  ;;  %v1386_v0 = vrot.slane %v1384_v50, 2  ;;  %v1446_v1 = vshll.u32 %v1383_v46, 16  ;;  %v1456_v2 = vshrl.u32 %v1389_v51, 16  ;;  %v1459_v3 = vshll.u32 %v1389_v51, 16 }
  0x4b   :  { %v1022_v56 = vld.sshfl [vmem:[#allocation1] sm:$0xff pattern:$0x73625140]  ;;  %2193 = vmatpush.bf16.msra.mxu1 %v2177_v40  ;;  %v1392_v4 = vrot.slane %v1390_v57, 2  ;;  %v2697_v5 = vrot.slane %v1430_v52, 6  ;;  %v2699_v6 = vrot.slane %v1433_v53, 7  ;;  %v1423_v8 = vor.u32 %v1422_v59, %v1419_v58 }
  0x4c   :  { %1082 = vmatmul.bf16.vlgmr.msrb.gmra.mxu1 %v1022_v56  ;;  %1124 = vst [vmem:[#allocation1] ss:$4 sm:$0xff] %v1940_v37  ;;  %v859_v7 = vrot.slane %v2676_v48, 2  ;;  %v1428_v9 = vrot.slane %v2690_v60, 7  ;;  %v813_v10 = vld [vmem:[%s2837_s1 + $0x1c] sm:$0x7] }
  0x4d   :  { %1127 = vst [vmem:[#allocation1 + $0x1] ss:$4 sm:$0xff] %v1941_v42  ;;  %v827_v11 = vrot.slane %v811_v55, 2  ;;  %v1441_v12 = vrot.slane %v2692_v61, 7  ;;  %v2707_v13 = vrot.slane %v1443_v62, 6  ;;  %v828_v15 = vrot.slane %v812_v63, 2 }
  0x4e   :  { %1130 = vst [vmem:[#allocation1 + $0x2] ss:$4 sm:$0xff] %v1942_v45  ;;  %1616 = vmatpush.bf16.msra.mxu0 %v2176_v54  ;;  %v1448_v17 = vrot.slane %v1446_v1, 7  ;;  %v2711_v18 = vshll.u32 %v1386_v0, 16  ;;  %v2713_v19 = vrot.slane %v1456_v2, 6  ;;  %v1461_v21 = vrot.slane %v1459_v3, 7 }
  0x4f   :  { %1133 = vst [vmem:[#allocation1 + $0x3] ss:$4 sm:$0xff] %v1943_v49  ;;  %v732_v14 = vld.sshfl [vmem:[#allocation1 + $0x20] sm:$0xff pattern:$0x73625140]  ;;  %2194 = vmatpush.bf16.msra.mxu1 %v2176_v54  ;;  %v1436_v22 = vor.u32 %v2699_v6, %v2697_v5  ;;  %v2717_v23 = vshll.u32 %v1392_v4, 16  ;;  %v863_v25 = vsel %vm288_vm2, %v811_v55, %v827_v11  ;;  %v862_v28 = vsel %vm284_vm1, %v811_v55, %v827_v11 }
  0x50   :  { %v829_v24 = vrot.slane %v813_v10, 2  ;;  %v1424_v27 = vrot.slane %v1423_v8, 2  ;;  %v865_v20 = vrot.slane %v863_v25, 2  ;;  %v869_v29 = vsel %vm288_vm2, %v812_v63, %v828_v15  ;;  %v1996_v30 = vld [vmem:[%s2835_s2 + $0x2] sm:$0x3] }
  0x51   :  { %796 = vmatmul.bf16.gmra.mxu0 %v732_v14  ;;  %v1997_v31 = vld [vmem:[%s2835_s2 + $0x4] sm:$0x3]  ;;  %v868_v32 = vsel %vm284_vm1, %v812_v63, %v828_v15  ;;  %v871_v33 = vrot.slane %v869_v29, 2  ;;  %v930_v35 = vshrl.u32 %v856_v16, 16  ;;  %v1998_v36 = vld [vmem:[%s2835_s2 + $0x6] sm:$0x3]  ;;  %v1449_v38 = vor.u32 %v1448_v17, %v2707_v13 }
  0x52   :  { %v875_v34 = vsel %vm288_vm2, %v813_v10, %v829_v24  ;;  %v1999_v37 = vld [vmem:[%s2835_s2 + $0x8] sm:$0x3]  ;;  %v1462_v39 = vor.u32 %v1461_v21, %v2713_v19  ;;  %v933_v40 = vshll.u32 %v856_v16, 16  ;;  %v939_v41 = vshll.u32 %v859_v7, 16  ;;  %v2058_v29 = vld [vmem:[%s2836_s3 + $0x20] sm:$0x7] }
  0x53   :  { %v874_v43 = vsel %vm284_vm1, %v813_v10, %v829_v24  ;;  %v932_v44 = vrot.slane %v930_v35, 6  ;;  %v943_v45 = vshrl.u32 %v862_v28, 16  ;;  %v946_v46 = vshll.u32 %v862_v28, 16  ;;  %v1945_v35 = vld [vmem:[%s2836_s3 + $0x1c] sm:$0x3] }
  0x54   :  { %v877_v47 = vrot.slane %v875_v34, 2  ;;  %v935_v48 = vrot.slane %v933_v40, 7  ;;  %v952_v49 = vshll.u32 %v865_v20, 16  ;;  %v956_v50 = vshrl.u32 %v868_v32, 16  ;;  %v2057_v20 = vld [vmem:[%s2836_s3 + $0x1c] sm:$0x7] }
  0x55   :  { %v945_v51 = vrot.slane %v943_v45, 6  ;;  %v948_v52 = vrot.slane %v946_v46, 7  ;;  %v959_v53 = vshll.u32 %v868_v32, 16  ;;  %v965_v54 = vshll.u32 %v871_v33, 16  ;;  %v2059_v32 = vld [vmem:[%s2836_s3 + $0x24] sm:$0x7] }
  0x56   :  { %v1146_v42 = vld.sshfl [vmem:[#allocation1] sm:$0xff pattern:$0x73625140]  ;;  %v936_v55 = vor.u32 %v935_v48, %v932_v44  ;;  %v941_v56 = vrot.slane %v939_v41, 7  ;;  %v958_v57 = vrot.slane %v956_v50, 6  ;;  %v969_v58 = vshrl.u32 %v874_v43, 16 }
  0x57   :  { %1206 = vmatmul.bf16.vlgmr.msrb.gmra.mxu2 %v1146_v42  ;;  %1248 = vst [vmem:[#allocation1] ss:$4 sm:$0xff] %v1996_v30  ;;  %v949_v59 = vor.u32 %v948_v52, %v945_v51  ;;  %v954_v62 = vrot.slane %v952_v49, 7  ;;  %v961_v63 = vrot.slane %v959_v53, 7  ;;  %v972_v0 = vshll.u32 %v874_v43, 16  ;;  %v2172_v41 = vld [vmem:[%s2834_s4 + $0x200] sm:$0xff] }
  0x58   :  { %1251 = vst [vmem:[#allocation1 + $0x1] ss:$4 sm:$0xff] %v1997_v31  ;;  %v1437_v1 = vrot.slane %v1436_v22, 2  ;;  %v937_v2 = vrot.slane %v936_v55, 2  ;;  %v971_v3 = vrot.slane %v969_v58, 6  ;;  %v978_v4 = vshll.u32 %v877_v47, 16 }
  0x59   :  { %1254 = vst [vmem:[#allocation1 + $0x2] ss:$4 sm:$0xff] %v1998_v36  ;;  %v950_v5 = vrot.slane %v949_v59, 2  ;;  %v962_v6 = vor.u32 %v961_v63, %v958_v57  ;;  %v967_v7 = vrot.slane %v965_v54, 7  ;;  %v974_v8 = vrot.slane %v972_v0, 7  ;;  %v2173_v31 = vld [vmem:[%s2834_s4 + $0x208] sm:$0xff] }
  0x5a   :  { %1257 = vst [vmem:[#allocation1 + $0x3] ss:$4 sm:$0xff] %v1999_v37  ;;  %v1450_v10 = vrot.slane %v1449_v38, 2  ;;  %v1454_v11 = vrot.slane %v2711_v18, 7  ;;  %v1467_v13 = vrot.slane %v2717_v23, 7  ;;  %v942_v14 = vsel %vm2405_vm8, %v937_v2, %v941_v56 }
  0x5b   :  { %v1463_v15 = vrot.slane %v1462_v39, 2  ;;  %v955_v16 = vsel %vm2405_vm8, %v950_v5, %v954_v62  ;;  %v963_v17 = vrot.slane %v962_v6, 2  ;;  %v975_v19 = vor.u32 %v974_v8, %v971_v3  ;;  %1012 = vst [vmem:[#allocation1 + $0x20] ss:$4 sm:$0xff] %v942_v14  ;;  %v1944_v33 = vld [vmem:[%s2836_s3 + $0x18] sm:$0x3] }
  0x5c   :  { %v1429_v21 = vsel %vm2405_vm8, %v1424_v27, %v1428_v9  ;;  %v980_v22 = vrot.slane %v978_v4, 7  ;;  %1015 = vst [vmem:[#allocation1 + $0x21] ss:$4 sm:$0xff] %v955_v16  ;;  %v1442_v18 = vsel %vm2405_vm8, %v1437_v1, %v1441_v12  ;;  %v1455_v28 = vsel %vm2405_vm8, %v1450_v10, %v1454_v11  ;;  %v2175_v9 = vld [vmem:[%s2834_s4 + $0x218] sm:$0xff]  ;;  %v2174_v27 = vld [vmem:[%s2834_s4 + $0x210] sm:$0xff] }
  0x5d   :  { %v968_v23 = vsel %vm2405_vm8, %v963_v17, %v967_v7  ;;  %v976_v24 = vrot.slane %v975_v19, 2  ;;  %v1468_v60 = vsel %vm2405_vm8, %v1463_v15, %v1467_v13  ;;  %1617 = vmatpush.bf16.msra.mxu0 %v2175_v9  ;;  %2195 = vmatpush.bf16.msra.mxu1 %v2175_v9  ;;  %v2056_v12 = vld [vmem:[%s2836_s3 + $0x18] sm:$0x7]  ;;  %v1366_v34 = vrot.slane %v2057_v20, 2  ;;  %v1946_v36 = vld [vmem:[%s2836_s3 + $0x20] sm:$0x3] }
  0x5e   :  { %1018 = vst [vmem:[#allocation1 + $0x22] ss:$4 sm:$0xff] %v968_v23  ;;  %v1365_v30 = vrot.slane %v2056_v12, 2  ;;  %v1367_v37 = vrot.slane %v2058_v29, 2  ;;  %v1368_v39 = vrot.slane %v2059_v32, 2 }
  0x5f   :  { %v981_v61 = vsel %vm2405_vm8, %v976_v24, %v980_v22  ;;  %v1947_v42 = vld [vmem:[%s2836_s3 + $0x24] sm:$0x3]  ;;  %v1401_v43 = vsel %vm284_vm1, %v2057_v20, %v1366_v34  ;;  %v1402_v52 = vsel %vm288_vm2, %v2057_v20, %v1366_v34  ;;  %v2000_v58 = vld [vmem:[%s2835_s2 + $0xc] sm:$0x3]  ;;  %v2001_v1 = vld [vmem:[%s2835_s2 + $0xe] sm:$0x3] }
  0x60   :  { %1021 = vst [vmem:[#allocation1 + $0x23] ss:$4 sm:$0xff] %v981_v61  ;;  %v1395_v40 = vsel %vm284_vm1, %v2056_v12, %v1365_v30  ;;  %v1407_v44 = vsel %vm284_vm1, %v2058_v29, %v1367_v37  ;;  %v1413_v46 = vsel %vm284_vm1, %v2059_v32, %v1368_v39  ;;  %v1396_v49 = vsel %vm288_vm2, %v2056_v12, %v1365_v30  ;;  %v2002_v5 = vld [vmem:[%s2835_s2 + $0x10] sm:$0x3]  ;;  %v2003_v15 = vld [vmem:[%s2835_s2 + $0x12] sm:$0x3] }
  0x61   :  { %v1270_v25 = vld.sshfl [vmem:[#allocation1] sm:$0xff pattern:$0x73625140]  ;;  %1618 = vmatpush.bf16.msra.mxu0 %v2174_v27  ;;  %2196 = vmatpush.bf16.msra.mxu1 %v2174_v27  ;;  %v1469_v45 = vshrl.u32 %v1395_v40, 16  ;;  %v1472_v47 = vshll.u32 %v1395_v40, 16  ;;  %v1482_v50 = vshrl.u32 %v1401_v43, 16  ;;  %v1408_v55 = vsel %vm288_vm2, %v2058_v29, %v1367_v37 }
  0x62   :  { %1330 = vmatmul.bf16.vlgmr.msrb.gmra.mxu3 %v1270_v25  ;;  %1539 = vst [vmem:[#allocation1] ss:$4 sm:$0xff] %v1429_v21  ;;  %v1485_v51 = vshll.u32 %v1401_v43, 16  ;;  %v1495_v53 = vshrl.u32 %v1407_v44, 16  ;;  %v1498_v54 = vshll.u32 %v1407_v44, 16  ;;  %v1508_v56 = vshrl.u32 %v1413_v46, 16 }
  0x63   :  { %1542 = vst [vmem:[#allocation1 + $0x1] ss:$4 sm:$0xff] %v1442_v18  ;;  %v1511_v57 = vshll.u32 %v1413_v46, 16  ;;  %v1398_v59 = vrot.slane %v1396_v49, 2  ;;  %v1414_v62 = vsel %vm288_vm2, %v2059_v32, %v1368_v39  ;;  %v1471_v63 = vrot.slane %v1469_v45, 6 }
  0x64   :  { %1545 = vst [vmem:[#allocation1 + $0x2] ss:$4 sm:$0xff] %v1455_v28  ;;  %v1474_v0 = vrot.slane %v1472_v47, 7  ;;  %v1404_v2 = vrot.slane %v1402_v52, 2  ;;  %v1484_v3 = vrot.slane %v1482_v50, 6  ;;  %v1487_v4 = vrot.slane %v1485_v51, 7 }
  0x65   :  { %1548 = vst [vmem:[#allocation1 + $0x3] ss:$4 sm:$0xff] %v1468_v60  ;;  %1619 = vmatpush.bf16.msra.mxu0 %v2173_v31  ;;  %2197 = vmatpush.bf16.msra.mxu1 %v2173_v31  ;;  %v1410_v6 = vrot.slane %v1408_v55, 2  ;;  %v1497_v7 = vrot.slane %v1495_v53, 6  ;;  %v1500_v8 = vrot.slane %v1498_v54, 7  ;;  %v1416_v11 = vrot.slane %v1414_v62, 2 }
  0x66   :  { %v1510_v13 = vrot.slane %v1508_v56, 6  ;;  %v1513_v14 = vrot.slane %v1511_v57, 7  ;;  %v1475_v16 = vor.u32 %v1474_v0, %v1471_v63  ;;  %v1478_v17 = vshll.u32 %v1398_v59, 16 }
  0x67   :  { %v1023_v38 = vld.sshfl [vmem:[#allocation1 + $0x20] sm:$0xff pattern:$0x73625140]  ;;  %v1488_v19 = vor.u32 %v1487_v4, %v1484_v3  ;;  %v1491_v21 = vshll.u32 %v1404_v2, 16  ;;  %v1501_v22 = vor.u32 %v1500_v8, %v1497_v7  ;;  %v1504_v18 = vshll.u32 %v1410_v6, 16 }
  0x68   :  { %1087 = vmatmul.bf16.gmra.mxu1 %v1023_v38  ;;  %1136 = vst [vmem:[#allocation1 + $0x20] ss:$4 sm:$0xff] %v1944_v33  ;;  %v1514_v23 = vor.u32 %v1513_v14, %v1510_v13  ;;  %v1517_v24 = vshll.u32 %v1416_v11, 16  ;;  %v1476_v25 = vrot.slane %v1475_v16, 2  ;;  %v1480_v28 = vrot.slane %v1478_v17, 7 }
  0x69   :  { %1139 = vst [vmem:[#allocation1 + $0x21] ss:$4 sm:$0xff] %v1945_v35  ;;  %1620 = vmatpush.bf16.msra.mxu0 %v2172_v41  ;;  %2198 = vmatpush.bf16.msra.mxu1 %v2172_v41  ;;  %v1489_v60 = vrot.slane %v1488_v19, 2  ;;  %v1493_v61 = vrot.slane %v1491_v21, 7  ;;  %v1502_v9 = vrot.slane %v1501_v22, 2  ;;  %v1506_v12 = vrot.slane %v1504_v18, 7 }
  0x6a   :  { %1142 = vst [vmem:[#allocation1 + $0x22] ss:$4 sm:$0xff] %v1946_v36  ;;  %v1515_v27 = vrot.slane %v1514_v23, 2  ;;  %v1519_v20 = vrot.slane %v1517_v24, 7  ;;  %v1481_v29 = vsel %vm2405_vm8, %v1476_v25, %v1480_v28  ;;  %v2199_v14 = vld [vmem:[%s2839_s5] ss:$0 sm:$0xff] }
  0x6b   :  { %1145 = vst [vmem:[#allocation1 + $0x23] ss:$4 sm:$0xff] %v1947_v42  ;;  %v1494_v30 = vsel %vm2405_vm8, %v1489_v60, %v1493_v61  ;;  %v1507_v32 = vsel %vm2405_vm8, %v1502_v9, %v1506_v12 }
  0x6c   :  { %v1561_v48 = vld.sshfl [vmem:[#allocation1] sm:$0xff pattern:$0x73625140]  ;;  %v1520_v33 = vsel %vm2405_vm8, %v1515_v27, %v1519_v20 }
  0x6d   :  { %1621 = vmatmul.bf16.vlgmr.msra.gmra.mxu0 %v1561_v48 }
  0x72   :  { %v1147_v10 = vld.sshfl [vmem:[#allocation1 + $0x20] sm:$0xff pattern:$0x73625140] }
  0x73   :  { %1211 = vmatmul.bf16.gmra.mxu2 %v1147_v10  ;;  %1260 = vst [vmem:[#allocation1 + $0x20] ss:$4 sm:$0xff] %v2000_v58 }
  0x74   :  { %1263 = vst [vmem:[#allocation1 + $0x21] ss:$4 sm:$0xff] %v2001_v1 }
  0x75   :  { %1266 = vst [vmem:[#allocation1 + $0x22] ss:$4 sm:$0xff] %v2002_v5 }
  0x76   :  { %1269 = vst [vmem:[#allocation1 + $0x23] ss:$4 sm:$0xff] %v2003_v15 }
  0x7d   :  { %v1271_v31 = vld.sshfl [vmem:[#allocation1 + $0x20] sm:$0xff pattern:$0x73625140] }
  0x7e   :  { %1335 = vmatmul.bf16.gmra.mxu3 %v1271_v31  ;;  %1551 = vst [vmem:[#allocation1 + $0x20] ss:$4 sm:$0xff] %v1481_v29 }
  0x7f   :  { %1554 = vst [vmem:[#allocation1 + $0x21] ss:$4 sm:$0xff] %v1494_v30 }
  0x80   :  { %1557 = vst [vmem:[#allocation1 + $0x22] ss:$4 sm:$0xff] %v1507_v32 }
  0x81   :  { %1560 = vst [vmem:[#allocation1 + $0x23] ss:$4 sm:$0xff] %v1520_v33 }
  0x88   :  { %v1562_v34 = vld.sshfl [vmem:[#allocation1 + $0x20] sm:$0xff pattern:$0x73625140] }
  0x89   :  { %1626 = vmatmul.bf16.vlgmr.msra.gmra.mxu1 %v1562_v34 }
  0x9e   :  { %v156_v35 = vpop.f32.mrf.mxu0 }
  0x9f   :  { %v250_v38 = vpop.f32.mrf.mxu1 }
  0xa0   :  { %v251_v52 = vadd.f32 %v250_v38, %v156_v35 }
  0xa6   :  { %v158_v36 = vpop.f32.mrf.mxu0 }
  0xa7   :  { %v252_v42 = vpop.f32.mrf.mxu1 }
  0xa8   :  { %v253_v57 = vadd.f32 %v252_v42, %v158_v36 }
  0xad   :  { %v546_v39 = vpop.f32.mrf.mxu2 }
  0xae   :  { %v161_v37 = vpop.f32.mrf.mxu0  ;;  %v556_v53 = vadd.f32 %v546_v39, %v251_v52 }
  0xaf   :  { %v255_v46 = vpop.f32.mrf.mxu1 }
  0xb0   :  { %v256_v18 = vadd.f32 %v255_v46, %v161_v37 }
  0xb5   :  { %v548_v43 = vpop.f32.mrf.mxu2 }
  0xb6   :  { %v163_v40 = vpop.f32.mrf.mxu0  ;;  %v557_v59 = vadd.f32 %v548_v43, %v253_v57 }
  0xb7   :  { %v257_v49 = vpop.f32.mrf.mxu1 }
  0xb8   :  { %v258_v12 = vadd.f32 %v257_v49, %v163_v40 }
  0xb9   :  { %v669_v41 = vpop.f32.mrf.mxu3 }
  0xba   :  { %v679_v56 = vadd.f32 %v669_v41, %v556_v53 }
  0xbd   :  { %v551_v26 = vpop.f32.mrf.mxu2 }
  0xbe   :  { %v792_v44 = vpop.f32.mrf.mxu0  ;;  %v558_v25 = vadd.f32 %v551_v26, %v256_v18 }
  0xbf   :  { %v802_v62 = vadd.f32 %v792_v44, %v679_v56 }
  0xc1   :  { %v671_v45 = vpop.f32.mrf.mxu3 }
  0xc2   :  { %v680_v0 = vadd.f32 %v671_v45, %v557_v59 }
  0xc5   :  { %v553_v50 = vpop.f32.mrf.mxu2 }
  0xc6   :  { %v794_v47 = vpop.f32.mrf.mxu0  ;;  %v559_v30 = vadd.f32 %v553_v50, %v258_v12 }
  0xc7   :  { %v803_v4 = vadd.f32 %v794_v47, %v680_v0 }
  0xc9   :  { %v674_v48 = vpop.f32.mrf.mxu3  ;;  %v1083_v55 = vpop.f32.mrf.mxu1 }
  0xca   :  { %v1093_v1 = vadd.f32 %v1083_v55, %v802_v62  ;;  %v681_v9 = vadd.f32 %v674_v48, %v558_v25 }
  0xce   :  { %v797_v51 = vpop.f32.mrf.mxu0 }
  0xcf   :  { %v804_v31 = vadd.f32 %v797_v51, %v681_v9 }
  0xd1   :  { %v676_v54 = vpop.f32.mrf.mxu3  ;;  %v1085_v5 = vpop.f32.mrf.mxu1 }
  0xd2   :  { %v1094_v10 = vadd.f32 %v1085_v5, %v803_v4  ;;  %v682_v32 = vadd.f32 %v676_v54, %v559_v30 }
  0xd6   :  { %v799_v63 = vpop.f32.mrf.mxu0 }
  0xd7   :  { %v805_v36 = vadd.f32 %v799_v63, %v682_v32 }
  0xda   :  { %v1207_v58 = vpop.f32.mrf.mxu2 }
  0xdb   :  { %v1217_v3 = vadd.f32 %v1207_v58, %v1093_v1 }
  0xe2   :  { %v1209_v6 = vpop.f32.mrf.mxu2 }
  0xe3   :  { %v1218_v11 = vadd.f32 %v1209_v6, %v1094_v10 }
  0xe5   :  { %v1331_v2 = vpop.f32.mrf.mxu3  ;;  %v1088_v17 = vpop.f32.mrf.mxu1 }
  0xe6   :  { %v1341_v8 = vadd.f32 %v1331_v2, %v1217_v3  ;;  %v1095_v33 = vadd.f32 %v1088_v17, %v804_v31 }
  0xea   :  { %v1622_v7 = vpop.f32.mrf.mxu0 }
  0xeb   :  { %v1632_v13 = vadd.f32 %v1622_v7, %v1341_v8 }
  0xed   :  { %v1333_v15 = vpop.f32.mrf.mxu3  ;;  %v1640_v19 = vadd.f32 %v2199_v14, %v1632_v13  ;;  %v1090_v29 = vpop.f32.mrf.mxu1 }
  0xee   :  { %v1342_v16 = vadd.f32 %v1333_v15, %v1218_v11  ;;  %v1096_v41 = vadd.f32 %v1090_v29, %v805_v36 }
  0xef   :  { %v1648_v23 = vmul.f32 0.01, %v1640_v19  ;;  %vm1644_vm9 = vcmp.gt.f32.partialorder %v1640_v19, 0.0 }
  0xf1   :  { %v1652_v60 = vsel %vm1644_vm9, %v1640_v19, %v1648_v23 }
  0xf2   :  { %v1624_v21 = vpop.f32.mrf.mxu0 }
  0xf3   :  { %v1633_v22 = vadd.f32 %v1624_v21, %v1342_v16 }
  0xf5   :  { %v1641_v24 = vadd.f32 %v2199_v14, %v1633_v22 }
  0xf6   :  { %v1212_v20 = vpop.f32.mrf.mxu2 }
  0xf7   :  { %vm1645_vm10 = vcmp.gt.f32.partialorder %v1641_v24, 0.0  ;;  %v1649_v28 = vmul.f32 0.01, %v1641_v24  ;;  %v1219_v35 = vadd.f32 %v1212_v20, %v1095_v33 }
  0xf9   :  { %v1653_v61 = vsel %vm1645_vm10, %v1641_v24, %v1649_v28 }
  0xfa   :  { %v2183_v27 = vpack.c.bf16 %v1653_v61, %v1652_v60 }
  0xfc   :  { %2184 = vst [vmem:[%s2840_s6] sm:$0xff] %v2183_v27  }
  0xfe   :  { %v1214_v37 = vpop.f32.mrf.mxu2 }
  0xff   :  { %v1220_v42 = vadd.f32 %v1214_v37, %v1096_v41 }
 0x101   :  { %v1336_v34 = vpop.f32.mrf.mxu3 }
 0x102   :  { %v1343_v39 = vadd.f32 %v1336_v34, %v1219_v35 }
 0x106   :  { %v1627_v38 = vpop.f32.mrf.mxu1 }
 0x107   :  { %v1634_v40 = vadd.f32 %v1627_v38, %v1343_v39 }
 0x109   :  { %v1338_v43 = vpop.f32.mrf.mxu3  ;;  %v1642_v45 = vadd.f32 %v2199_v14, %v1634_v40 }
 0x10a   :  { %v1344_v44 = vadd.f32 %v1338_v43, %v1220_v42 }
 0x10b   :  { %v1650_v47 = vmul.f32 0.01, %v1642_v45  ;;  %vm1646_vm11 = vcmp.gt.f32.partialorder %v1642_v45, 0.0 }
 0x10d   :  { %v1654_v50 = vsel %vm1646_vm11, %v1642_v45, %v1650_v47 }
 0x10e   :  { %v1629_v46 = vpop.f32.mrf.mxu1 }
 0x10f   :  { %v1635_v26 = vadd.f32 %v1629_v46, %v1344_v44 }
 0x111   :  { %v1643_v48 = vadd.f32 %v2199_v14, %v1635_v26 }
 0x113   :  { %vm1647_vm12 = vcmp.gt.f32.partialorder %v1643_v48, 0.0  ;;  %v1651_v49 = vmul.f32 0.01, %v1643_v48 }
 0x115   :  { %v1655_v51 = vsel %vm1647_vm12, %v1643_v48, %v1651_v49 }
 0x116   :  { %v2188_v52 = vpack.c.bf16 %v1655_v51, %v1654_v50 }
 0x118   :  { %2190 = vst [vmem:[%s2840_s6 + $0x8] sm:$0xff] %v2188_v52  }

// kernel: wgan_discriminator_forward.5
= control target key start
LH: loop header
LB: loop body
LE: loop exit
PB: predicated region body
PF: predicated region fallthrough
CT: control target
= control target key end

     0   :  { %vm410_vm0 = vsmask.f32 3328  ;;  %vm411_vm1 = vsmask.f32 7440  ;;  %s4379_s4 = inlined_call_operand.vmem [shape: bf16[9,128,128], index: 4, kind: input, shape index: {}]   ;;  %s4380_s2 = inlined_call_operand.vmem [shape: bf16[2,9,8,128], index: 2, kind: input, shape index: {}]   ;;  %s4381_s3 = inlined_call_operand.vmem [shape: bf16[2,9,9,128], index: 3, kind: input, shape index: {}]   ;;  %s4382_s1 = inlined_call_operand.vmem [shape: bf16[2,8,9,128], index: 1, kind: input, shape index: {}]   ;;  %s4383_s0 = inlined_call_operand.vmem [shape: bf16[2,8,8,128], index: 0, kind: input, shape index: {}]   ;;  %s4384_s5 = inlined_call_operand.vmem [shape: f32[1,128], index: 5, kind: input, shape index: {}]   ;;  %s4385_s6 = inlined_call_operand.vmem [shape: bf16[128,128], index: 6, kind: output, shape index: {}]  }
   0x1   :  { %v3220_v0 = vld [vmem:[%s4379_s4 + $0x78] sm:$0xff]  ;;  %v3219_v1 = vld [vmem:[%s4379_s4 + $0x70] sm:$0xff]  ;;  %v3218_v2 = vld [vmem:[%s4379_s4 + $0x68] sm:$0xff] }
   0x2   :  { %3356 = vmatpush.bf16.msra.mxu1 %v3220_v0  ;;  %3357 = vmatpush.bf16.msra.mxu2 %v3220_v0  ;;  %v3217_v3 = vld [vmem:[%s4379_s4 + $0x60] sm:$0xff]  ;;  %v3216_v4 = vld [vmem:[%s4379_s4 + $0x58] sm:$0xff]  ;;  %v3215_v5 = vld [vmem:[%s4379_s4 + $0x50] sm:$0xff] }
   0x3   :  { %3358 = vmatpush.bf16.msra.mxu3 %v3220_v0  ;;  %184 = vmatpush.bf16.msra.mxu0 %v3220_v0  ;;  %v3214_v6 = vld [vmem:[%s4379_s4 + $0x48] sm:$0xff]  ;;  %v3213_v7 = vld [vmem:[%s4379_s4 + $0x40] sm:$0xff]  ;;  %v3228_v8 = vld [vmem:[%s4379_s4 + $0xb8] sm:$0xff] }
   0x4   :  { %v3204_v9 = vld [vmem:[%s4379_s4 + $0x38] sm:$0xff]  ;;  %v3207_v10 = vld [vmem:[%s4380_s2 + $0x10] sm:$0xff]  ;;  %v3209_v11 = vld [vmem:[%s4380_s2 + $0x24] sm:$0xff] }
   0x5   :  { %v3211_v12 = vld [vmem:[%s4380_s2 + $0x34] sm:$0xff]  ;;  %v3205_v13 = vld [vmem:[%s4380_s2] sm:$0xff]  ;;  %v380_v19 = vld [vmem:[%s4381_s3 + $0x8] sm:$0xf] }
   0x6   :  { %3359 = vmatpush.bf16.msra.mxu1 %v3219_v1  ;;  %3360 = vmatpush.bf16.msra.mxu2 %v3219_v1  ;;  %v3244_v14 = vld [vmem:[%s4379_s4 + $0xf8] sm:$0xff]  ;;  %v3227_v16 = vld [vmem:[%s4379_s4 + $0xb0] sm:$0xff]  ;;  %v378_v18 = vld [vmem:[%s4381_s3] sm:$0xf]  ;;  %v428_v26 = vshrl.u32 %v380_v19, 16  ;;  %v431_v27 = vshll.u32 %v380_v19, 16 }
   0x7   :  { %3361 = vmatpush.bf16.msra.mxu3 %v3219_v1  ;;  %185 = vmatpush.bf16.msra.mxu0 %v3219_v1  ;;  %v3260_v15 = vld [vmem:[%s4379_s4 + $0x138] sm:$0xff]  ;;  %v3203_v17 = vld [vmem:[%s4379_s4 + $0x30] sm:$0xff]  ;;  %v3226_v22 = vld [vmem:[%s4379_s4 + $0xa8] sm:$0xff]  ;;  %v414_v24 = vshrl.u32 %v378_v18, 16  ;;  %v417_v25 = vshll.u32 %v378_v18, 16 }
   0x8   :  { %v3243_v20 = vld [vmem:[%s4379_s4 + $0xf0] sm:$0xff]  ;;  %v3202_v23 = vld [vmem:[%s4379_s4 + $0x28] sm:$0xff]  ;;  %v3225_v30 = vld [vmem:[%s4379_s4 + $0xa0] sm:$0xff]  ;;  %v430_v34 = vrot.slane %v428_v26, 4  ;;  %v433_v35 = vrot.slane %v431_v27, 5 }
   0x9   :  { %v3259_v21 = vld [vmem:[%s4379_s4 + $0x130] sm:$0xff]  ;;  %v3242_v28 = vld [vmem:[%s4379_s4 + $0xe8] sm:$0xff]  ;;  %v3201_v31 = vld [vmem:[%s4379_s4 + $0x20] sm:$0xff]  ;;  %v416_v32 = vrot.slane %v414_v24, 4  ;;  %v419_v33 = vrot.slane %v417_v25, 5 }
   0xa   :  { %3362 = vmatpush.bf16.msra.mxu1 %v3218_v2  ;;  %3363 = vmatpush.bf16.msra.mxu2 %v3218_v2  ;;  %v3258_v29 = vld [vmem:[%s4379_s4 + $0x128] sm:$0xff]  ;;  %v379_v36 = vld [vmem:[%s4381_s3 + $0x4] sm:$0x1]  ;;  %v3224_v40 = vld [vmem:[%s4379_s4 + $0x98] sm:$0xff]  ;;  %v434_v44 = vor.u32 %v433_v35, %v430_v34 }
   0xb   :  { %3364 = vmatpush.bf16.msra.mxu3 %v3218_v2  ;;  %186 = vmatpush.bf16.msra.mxu0 %v3218_v2  ;;  %v381_v37 = vld [vmem:[%s4381_s3 + $0xc] sm:$0x1]  ;;  %v3241_v38 = vld [vmem:[%s4379_s4 + $0xe0] sm:$0xff]  ;;  %v3200_v41 = vld [vmem:[%s4379_s4 + $0x18] sm:$0xff]  ;;  %v420_v42 = vor.u32 %v419_v33, %v416_v32  ;;  %v423_v43 = vshll.u32 %v379_v36, 16 }
   0xc   :  { %v3257_v39 = vld [vmem:[%s4379_s4 + $0x120] sm:$0xff]  ;;  %v437_v45 = vshll.u32 %v381_v37, 16  ;;  %v3208_v46 = vld [vmem:[%s4380_s2 + $0x18] sm:$0xff]  ;;  %v3210_v47 = vld [vmem:[%s4380_s2 + $0x2c] sm:$0xff]  ;;  %v435_v56 = vrot.slane %v434_v44, 4 }
   0xd   :  { %v3212_v48 = vld [vmem:[%s4380_s2 + $0x3c] sm:$0xff]  ;;  %v3206_v49 = vld [vmem:[%s4380_s2 + $0x8] sm:$0xff]  ;;  %v3223_v52 = vld [vmem:[%s4379_s4 + $0x90] sm:$0xff]  ;;  %v421_v54 = vrot.slane %v420_v42, 4  ;;  %v425_v55 = vrot.slane %v423_v43, 5 }
   0xe   :  { %3365 = vmatpush.bf16.msra.mxu1 %v3217_v3  ;;  %3366 = vmatpush.bf16.msra.mxu2 %v3217_v3  ;;  %v3240_v50 = vld [vmem:[%s4379_s4 + $0xd8] sm:$0xff]  ;;  %v3199_v53 = vld [vmem:[%s4379_s4 + $0x10] sm:$0xff]  ;;  %v439_v57 = vrot.slane %v437_v45, 5  ;;  %vm3544_vm2 = vmor %vm410_vm0, %vm411_vm1 }
   0xf   :  { %3367 = vmatpush.bf16.msra.mxu3 %v3217_v3  ;;  %187 = vmatpush.bf16.msra.mxu0 %v3217_v3  ;;  %v3256_v51 = vld [vmem:[%s4379_s4 + $0x118] sm:$0xff]  ;;  %v382_v59 = vld [vmem:[%s4381_s3 + $0x10] sm:$0xf]  ;;  %v3222_v63 = vld [vmem:[%s4379_s4 + $0x88] sm:$0xff]  ;;  %v426_v1 = vsel %vm3544_vm2, %v421_v54, %v425_v55 }
  0x10   :  { %v384_v60 = vld [vmem:[%s4381_s3 + $0x18] sm:$0xf]  ;;  %v3239_v61 = vld [vmem:[%s4379_s4 + $0xd0] sm:$0xff]  ;;  %v3198_v0 = vld [vmem:[%s4379_s4 + $0x8] sm:$0xff]  ;;  %v440_v2 = vsel %vm3544_vm2, %v435_v56, %v439_v57  ;;  %v442_v3 = vshrl.u32 %v382_v59, 16 }
  0x11   :  { %v3255_v62 = vld [vmem:[%s4379_s4 + $0x110] sm:$0xff]  ;;  %v3253_v24 = vld [vmem:[%s4379_s4 + $0x100] sm:$0xff]  ;;  %v3229_v26 = vld [vmem:[%s4382_s1 + $0x4] sm:$0xf0] }
  0x12   :  { %3368 = vmatpush.bf16.msra.mxu1 %v3216_v4  ;;  %3369 = vmatpush.bf16.msra.mxu2 %v3216_v4  ;;  %v2727_v25 = vld [vmem:[%s4382_s1] sm:$0xf]  ;;  %v3283_v37 = vld [vmem:[%s4379_s4 + $0x1b0] sm:$0xff] }
  0x13   :  { %3370 = vmatpush.bf16.msra.mxu3 %v3216_v4  ;;  %188 = vmatpush.bf16.msra.mxu0 %v3216_v4  ;;  %v445_v4 = vshll.u32 %v382_v59, 16  ;;  %v2728_v35 = vor.u32 %v3229_v26, %v2727_v25  ;;  %v3245_v36 = vld [vmem:[%s4383_s0] sm:$0xff]  ;;  %v2603_v57 = vld [vmem:[%s4381_s3 + $0x10] sm:$0xf]  ;;  %v3190_v59 = vld [vmem:[%s4381_s3 + $0x14] sm:$0xf0] }
  0x14   :  { %v386_v45 = vld [vmem:[%s4381_s3 + $0x20] sm:$0xf] }
  0x15   :  { %v447_v18 = vrot.slane %v445_v4, 5  ;;  %v473_v54 = vshll.u32 %v386_v45, 16  ;;  %v387_v4 = vld [vmem:[%s4381_s3 + $0x24] sm:$0x1] }
  0x16   :  { %3371 = vmatpush.bf16.msra.mxu1 %v3215_v5  ;;  %3372 = vmatpush.bf16.msra.mxu2 %v3215_v5 }
  0x17   :  { %3373 = vmatpush.bf16.msra.mxu3 %v3215_v5  ;;  %189 = vmatpush.bf16.msra.mxu0 %v3215_v5  ;;  %v456_v5 = vshrl.u32 %v384_v60, 16 }
  0x19   :  { %v458_v19 = vrot.slane %v456_v5, 4  ;;  %v389_v5 = vld [vmem:[%s4381_s3 + $0x2c] sm:$0x1] }
  0x1a   :  { %3374 = vmatpush.bf16.msra.mxu1 %v3214_v6  ;;  %3375 = vmatpush.bf16.msra.mxu2 %v3214_v6 }
  0x1b   :  { %3376 = vmatpush.bf16.msra.mxu3 %v3214_v6  ;;  %190 = vmatpush.bf16.msra.mxu0 %v3214_v6  ;;  %v459_v6 = vshll.u32 %v384_v60, 16 }
  0x1e   :  { %3377 = vmatpush.bf16.msra.mxu1 %v3213_v7  ;;  %3378 = vmatpush.bf16.msra.mxu2 %v3213_v7 }
  0x1f   :  { %3379 = vmatpush.bf16.msra.mxu3 %v3213_v7  ;;  %191 = vmatpush.bf16.msra.mxu0 %v3213_v7  ;;  %v3238_v7 = vld [vmem:[%s4379_s4 + $0xc8] sm:$0xff] }
  0x21   :  { %202 = vmatmul.bf16.vlgmr.msra.gmra.mxu1 %v3207_v10  ;;  %212 = vmatmul.bf16.vlgmr.msra.gmra.mxu2 %v3209_v11  ;;  %v3197_v10 = vld [vmem:[%s4379_s4] sm:$0xff] }
  0x22   :  { %734 = vmatpush.bf16.msrb.mxu2 %v3228_v8  ;;  %329 = vmatpush.bf16.msrb.mxu1 %v3204_v9  ;;  %v3254_v8 = vld [vmem:[%s4379_s4 + $0x108] sm:$0xff]  ;;  %v3221_v9 = vld [vmem:[%s4379_s4 + $0x80] sm:$0xff] }
  0x23   :  { %222 = vmatmul.bf16.vlgmr.msra.gmra.mxu3 %v3211_v12  ;;  %192 = vmatmul.bf16.vlgmr.msra.gmra.mxu0 %v3205_v13  ;;  %v2599_v11 = vld [vmem:[%s4381_s3] sm:$0xf]  ;;  %v3189_v12 = vld [vmem:[%s4381_s3 + $0x4] sm:$0xf0]  ;;  %v654_v13 = vunpack.c.l.b16 %v426_v1  ;;  %v475_v1 = vrot.slane %v473_v54, 5 }
  0x24   :  { %928 = vmatpush.bf16.msrb.mxu3 %v3244_v14  ;;  %1122 = vmatpush.bf16.msrb.mxu0 %v3260_v15  ;;  %v655_v14 = vunpack.c.l.b16 %v440_v2  ;;  %v3284_v15 = vld [vmem:[%s4379_s4 + $0x1b8] sm:$0xff]  ;;  %v2600_v27 = vor.u32 %v3189_v12, %v2599_v11  ;;  %v479_v11 = vshll.u32 %v387_v4, 16  ;;  %v394_v54 = vld [vmem:[%s4381_s3 + $0x48] sm:$0xf] }
  0x26   :  { %735 = vmatpush.bf16.msrb.mxu2 %v3227_v16  ;;  %330 = vmatpush.bf16.msrb.mxu1 %v3203_v17  ;;  %v3268_v16 = vld [vmem:[%s4379_s4 + $0x178] sm:$0xff]  ;;  %v444_v17 = vrot.slane %v442_v3, 4 }
  0x28   :  { %929 = vmatpush.bf16.msrb.mxu3 %v3243_v20  ;;  %1123 = vmatpush.bf16.msrb.mxu0 %v3259_v21  ;;  %v461_v20 = vrot.slane %v459_v6, 5  ;;  %v3237_v21 = vld [vmem:[%s4379_s4 + $0xc0] sm:$0xff]  ;;  %v2604_v6 = vor.u32 %v3190_v59, %v2603_v57  ;;  %v3296_v57 = vld [vmem:[%s4379_s4 + $0x1d8] sm:$0xff] }
  0x29   :  { %v3264_v59 = vld [vmem:[%s4379_s4 + $0x158] sm:$0xff] }
  0x2a   :  { %736 = vmatpush.bf16.msrb.mxu2 %v3226_v22  ;;  %331 = vmatpush.bf16.msrb.mxu1 %v3202_v23  ;;  %v383_v22 = vld [vmem:[%s4381_s3 + $0x14] sm:$0x1]  ;;  %v385_v23 = vld [vmem:[%s4381_s3 + $0x1c] sm:$0x1]  ;;  %v462_v33 = vor.u32 %v461_v20, %v458_v19  ;;  %v3281_v20 = vld [vmem:[%s4379_s4 + $0x1a0] sm:$0xff] }
  0x2b   :  { %v451_v32 = vshll.u32 %v383_v22, 16  ;;  %v465_v34 = vshll.u32 %v385_v23, 16  ;;  %v3265_v22 = vld [vmem:[%s4379_s4 + $0x160] sm:$0xff] }
  0x2c   :  { %930 = vmatpush.bf16.msrb.mxu3 %v3242_v28  ;;  %1124 = vmatpush.bf16.msrb.mxu0 %v3258_v29  ;;  %v670_v28 = vpack.c.b16 %v655_v14, %v654_v13  ;;  %v3300_v29 = vld [vmem:[%s4379_s4 + $0x1f8] sm:$0xff]  ;;  %v463_v43 = vrot.slane %v462_v33, 4  ;;  %v493_v13 = vshll.u32 %v389_v5, 16  ;;  %v390_v14 = vld [vmem:[%s4381_s3 + $0x30] sm:$0xf]  ;;  %v3305_v23 = vld [vmem:[%s4379_s4 + $0x220] sm:$0xff] }
  0x2d   :  { %v453_v42 = vrot.slane %v451_v32, 5  ;;  %v467_v44 = vrot.slane %v465_v34, 5  ;;  %v501_v25 = vshll.u32 %v390_v14, 16 }
  0x2e   :  { %737 = vmatpush.bf16.msrb.mxu2 %v3225_v30  ;;  %332 = vmatpush.bf16.msrb.mxu1 %v3201_v31  ;;  %v3308_v30 = vld [vmem:[%s4379_s4 + $0x238] sm:$0xff]  ;;  %v448_v31 = vor.u32 %v447_v18, %v444_v17  ;;  %v481_v17 = vrot.slane %v479_v11, 5  ;;  %v495_v19 = vrot.slane %v493_v13, 5  ;;  %v395_v11 = vld [vmem:[%s4381_s3 + $0x4c] sm:$0x1] }
  0x2f   :  { %v2739_v13 = vld [vmem:[%s4382_s1 + $0x30] sm:$0xf] }
  0x30   :  { %931 = vmatpush.bf16.msrb.mxu3 %v3241_v38  ;;  %1125 = vmatpush.bf16.msrb.mxu0 %v3257_v39  ;;  %v3267_v38 = vld [vmem:[%s4379_s4 + $0x170] sm:$0xff] }
  0x31   :  { %207 = vmatmul.bf16.gmra.mxu1 %v3208_v46  ;;  %217 = vmatmul.bf16.gmra.mxu2 %v3210_v47  ;;  %v3299_v39 = vld [vmem:[%s4379_s4 + $0x1f0] sm:$0xff]  ;;  %v388_v46 = vld [vmem:[%s4381_s3 + $0x28] sm:$0xf] }
  0x32   :  { %738 = vmatpush.bf16.msrb.mxu2 %v3224_v40  ;;  %333 = vmatpush.bf16.msrb.mxu1 %v3200_v41  ;;  %v3307_v40 = vld [vmem:[%s4379_s4 + $0x230] sm:$0xff]  ;;  %v449_v41 = vrot.slane %v448_v31, 4  ;;  %v3282_v47 = vld [vmem:[%s4379_s4 + $0x1a8] sm:$0xff]  ;;  %v484_v55 = vshrl.u32 %v388_v46, 16  ;;  %v487_v56 = vshll.u32 %v388_v46, 16  ;;  %v503_v31 = vrot.slane %v501_v25, 5 }
  0x33   :  { %227 = vmatmul.bf16.gmra.mxu3 %v3212_v48  ;;  %197 = vmatmul.bf16.gmra.mxu0 %v3206_v49  ;;  %v3266_v48 = vld [vmem:[%s4379_s4 + $0x168] sm:$0xff] }
  0x34   :  { %932 = vmatpush.bf16.msrb.mxu3 %v3240_v50  ;;  %1126 = vmatpush.bf16.msrb.mxu0 %v3256_v51  ;;  %v3298_v49 = vld [vmem:[%s4379_s4 + $0x1e8] sm:$0xff]  ;;  %v454_v51 = vsel %vm3544_vm2, %v449_v41, %v453_v42  ;;  %v486_v2 = vrot.slane %v484_v55, 4  ;;  %v489_v3 = vrot.slane %v487_v56, 5  ;;  %v396_v55 = vld [vmem:[%s4381_s3 + $0x50] sm:$0xf]  ;;  %v3280_v56 = vld [vmem:[%s4379_s4 + $0x198] sm:$0xff] }
  0x35   :  { %v3306_v50 = vld [vmem:[%s4379_s4 + $0x228] sm:$0xff]  ;;  %v656_v60 = vunpack.c.l.b16 %v454_v51 }
  0x36   :  { %739 = vmatpush.bf16.msrb.mxu2 %v3223_v52  ;;  %334 = vmatpush.bf16.msrb.mxu1 %v3199_v53  ;;  %v468_v52 = vsel %vm3544_vm2, %v463_v43, %v467_v44  ;;  %v470_v53 = vshrl.u32 %v386_v45, 16  ;;  %v490_v12 = vor.u32 %v489_v3, %v486_v2  ;;  %v3231_v41 = vld [vmem:[%s4382_s1 + $0x24] sm:$0xf0]  ;;  %v543_v2 = vshll.u32 %v396_v55, 16  ;;  %v2611_v3 = vld [vmem:[%s4381_s3 + $0x30] sm:$0xf] }
  0x38   :  { %933 = vmatpush.bf16.msrb.mxu3 %v3239_v61  ;;  %1127 = vmatpush.bf16.msrb.mxu0 %v3255_v62  ;;  %v657_v61 = vunpack.c.l.b16 %v468_v52  ;;  %v2731_v62 = vld [vmem:[%s4382_s1 + $0x10] sm:$0xf]  ;;  %v491_v18 = vrot.slane %v490_v12, 4  ;;  %v397_v12 = vld [vmem:[%s4381_s3 + $0x54] sm:$0x1] }
  0x3a   :  { %740 = vmatpush.bf16.msrb.mxu2 %v3222_v63  ;;  %335 = vmatpush.bf16.msrb.mxu1 %v3198_v0  ;;  %v3230_v63 = vld [vmem:[%s4382_s1 + $0x14] sm:$0xf0]  ;;  %v472_v0 = vrot.slane %v470_v53, 4 }
  0x3c   :  { %934 = vmatpush.bf16.msrb.mxu3 %v3238_v7  ;;  %1128 = vmatpush.bf16.msrb.mxu0 %v3254_v8  ;;  %v671_v7 = vpack.c.b16 %v657_v61, %v656_v60  ;;  %v2732_v8 = vor.u32 %v3230_v63, %v2731_v62  ;;  %v3304_v60 = vld [vmem:[%s4379_s4 + $0x218] sm:$0xff]  ;;  %v526_v63 = vshrl.u32 %v394_v54, 16 }
  0x3e   :  { %741 = vmatpush.bf16.msrb.mxu2 %v3221_v9  ;;  %336 = vmatpush.bf16.msrb.mxu1 %v3197_v10  ;;  %v3246_v9 = vld [vmem:[%s4383_s0 + $0x8] sm:$0xff]  ;;  %v476_v10 = vor.u32 %v475_v1, %v472_v0  ;;  %v529_v0 = vshll.u32 %v394_v54, 16  ;;  %v540_v1 = vshrl.u32 %v396_v55, 16  ;;  %v3249_v54 = vld [vmem:[%s4383_s0 + $0x20] sm:$0xff] }
  0x40   :  { %935 = vmatpush.bf16.msrb.mxu3 %v3237_v21  ;;  %1129 = vmatpush.bf16.msrb.mxu0 %v3253_v24  ;;  %v3297_v21 = vld [vmem:[%s4379_s4 + $0x1e0] sm:$0xff]  ;;  %v498_v24 = vshrl.u32 %v390_v14, 16  ;;  %v3232_v14 = vld [vmem:[%s4382_s1 + $0x34] sm:$0xf0] }
  0x41   :  { %337 = vmatmul.bf16.vlgmr.msrb.gmra.mxu1 %v2600_v27  ;;  %742 = vmatmul.bf16.vlgmr.msrb.gmra.mxu2 %v670_v28 }
  0x42   :  { %1735 = vmatpush.bf16.msra.mxu2 %v3284_v15  ;;  %1540 = vmatpush.bf16.msra.mxu1 %v3268_v16  ;;  %v392_v15 = vld [vmem:[%s4381_s3 + $0x38] sm:$0xf]  ;;  %v477_v16 = vrot.slane %v476_v10, 4  ;;  %v545_v10 = vrot.slane %v543_v2, 5  ;;  %v3278_v2 = vld [vmem:[%s4379_s4 + $0x188] sm:$0xff] }
  0x43   :  { %936 = vmatmul.bf16.vlgmr.msrb.gmra.mxu3 %v2728_v35  ;;  %1130 = vmatmul.bf16.vlgmr.msrb.gmra.mxu0 %v3245_v36  ;;  %v512_v26 = vshrl.u32 %v392_v15, 16  ;;  %v515_v27 = vshll.u32 %v392_v15, 16  ;;  %v391_v36 = vld [vmem:[%s4381_s3 + $0x34] sm:$0x1] }
  0x44   :  { %1930 = vmatpush.bf16.msra.mxu3 %v3300_v29  ;;  %2348 = vmatpush.bf16.msra.mxu0 %v3308_v30  ;;  %v482_v28 = vsel %vm3544_vm2, %v477_v16, %v481_v17  ;;  %v496_v29 = vsel %vm3544_vm2, %v491_v18, %v495_v19  ;;  %v500_v30 = vrot.slane %v498_v24, 4  ;;  %v507_v43 = vshll.u32 %v391_v36, 16 }
  0x45   :  { %v514_v32 = vrot.slane %v512_v26, 4  ;;  %v517_v33 = vrot.slane %v515_v27, 5  ;;  %v658_v34 = vunpack.c.l.b16 %v482_v28  ;;  %v659_v35 = vunpack.c.l.b16 %v496_v29  ;;  %v398_v27 = vld [vmem:[%s4381_s3 + $0x58] sm:$0xf]  ;;  %v3279_v28 = vld [vmem:[%s4379_s4 + $0x190] sm:$0xff] }
  0x46   :  { %1736 = vmatpush.bf16.msra.mxu2 %v3283_v37  ;;  %1541 = vmatpush.bf16.msra.mxu1 %v3267_v38  ;;  %v393_v37 = vld [vmem:[%s4381_s3 + $0x3c] sm:$0x1]  ;;  %v2607_v38 = vld [vmem:[%s4381_s3 + $0x20] sm:$0xf]  ;;  %v504_v42 = vor.u32 %v503_v31, %v500_v30  ;;  %v509_v51 = vrot.slane %v507_v43, 5  ;;  %v535_v18 = vshll.u32 %v395_v11, 16 }
  0x47   :  { %v518_v44 = vor.u32 %v517_v33, %v514_v32  ;;  %v521_v45 = vshll.u32 %v393_v37, 16  ;;  %v3295_v29 = vld [vmem:[%s4379_s4 + $0x1d0] sm:$0xff]  ;;  %v400_v30 = vld [vmem:[%s4381_s3 + $0x60] sm:$0xf]  ;;  %v557_v36 = vshll.u32 %v398_v27, 16  ;;  %v3302_v11 = vld [vmem:[%s4379_s4 + $0x208] sm:$0xff] }
  0x48   :  { %1931 = vmatpush.bf16.msra.mxu3 %v3299_v39  ;;  %2349 = vmatpush.bf16.msra.mxu0 %v3307_v40  ;;  %v3191_v39 = vld [vmem:[%s4381_s3 + $0x24] sm:$0xf0]  ;;  %v2735_v40 = vld [vmem:[%s4382_s1 + $0x20] sm:$0xf]  ;;  %v537_v24 = vrot.slane %v535_v18, 5  ;;  %v3263_v31 = vld [vmem:[%s4379_s4 + $0x150] sm:$0xff] }
  0x49   :  { %v2608_v46 = vor.u32 %v3191_v39, %v2607_v38  ;;  %v519_v52 = vrot.slane %v518_v44, 4  ;;  %v523_v53 = vrot.slane %v521_v45, 5  ;;  %v3303_v32 = vld [vmem:[%s4379_s4 + $0x210] sm:$0xff]  ;;  %v568_v37 = vshrl.u32 %v400_v30, 16  ;;  %v2615_v39 = vld [vmem:[%s4381_s3 + $0x48] sm:$0xf] }
  0x4a   :  { %1737 = vmatpush.bf16.msra.mxu2 %v3282_v47  ;;  %1542 = vmatpush.bf16.msra.mxu1 %v3266_v48  ;;  %v672_v47 = vpack.c.b16 %v659_v35, %v658_v34  ;;  %v2736_v48 = vor.u32 %v3231_v41, %v2735_v40  ;;  %v554_v35 = vshrl.u32 %v398_v27, 16  ;;  %v571_v38 = vshll.u32 %v400_v30, 16  ;;  %v3193_v40 = vld [vmem:[%s4381_s3 + $0x4c] sm:$0xf0]  ;;  %v2743_v43 = vld [vmem:[%s4382_s1 + $0x40] sm:$0xf] }
  0x4b   :  { %v524_v62 = vsel %vm3544_vm2, %v519_v52, %v523_v53  ;;  %v3233_v44 = vld [vmem:[%s4382_s1 + $0x44] sm:$0xf0]  ;;  %v403_v18 = vld [vmem:[%s4381_s3 + $0x6c] sm:$0x1] }
  0x4c   :  { %1932 = vmatpush.bf16.msra.mxu3 %v3298_v49  ;;  %2350 = vmatpush.bf16.msra.mxu0 %v3306_v50  ;;  %v3247_v49 = vld [vmem:[%s4383_s0 + $0x10] sm:$0xff]  ;;  %v505_v50 = vrot.slane %v504_v42, 4  ;;  %v661_v5 = vunpack.c.l.b16 %v524_v62  ;;  %v556_v45 = vrot.slane %v554_v35, 4  ;;  %v2744_v53 = vor.u32 %v3233_v44, %v2743_v43 }
  0x4e   :  { %1738 = vmatpush.bf16.msra.mxu2 %v3281_v20  ;;  %1543 = vmatpush.bf16.msra.mxu1 %v3265_v22  ;;  %v510_v61 = vsel %vm3544_vm2, %v505_v50, %v509_v51  ;;  %v549_v20 = vshll.u32 %v397_v12, 16  ;;  %v3248_v22 = vld [vmem:[%s4383_s0 + $0x18] sm:$0xff]  ;;  %v401_v50 = vld [vmem:[%s4381_s3 + $0x64] sm:$0x1]  ;;  %v2616_v51 = vor.u32 %v3193_v40, %v2615_v39 }
  0x4f   :  { %v660_v4 = vunpack.c.l.b16 %v510_v61  ;;  %v404_v61 = vld [vmem:[%s4381_s3 + $0x70] sm:$0xf]  ;;  %v3293_v39 = vld [vmem:[%s4379_s4 + $0x1c0] sm:$0xff] }
  0x50   :  { %1933 = vmatpush.bf16.msra.mxu3 %v3297_v21  ;;  %2351 = vmatpush.bf16.msra.mxu0 %v3305_v23  ;;  %v2740_v21 = vor.u32 %v3232_v14, %v2739_v13  ;;  %v551_v26 = vrot.slane %v549_v20, 5  ;;  %v2619_v20 = vld [vmem:[%s4381_s3 + $0x58] sm:$0xf] }
  0x51   :  { %342 = vmatmul.bf16.gmra.mxu1 %v2604_v6  ;;  %747 = vmatmul.bf16.gmra.mxu2 %v671_v7  ;;  %v3192_v6 = vld [vmem:[%s4381_s3 + $0x34] sm:$0xf0]  ;;  %v528_v7 = vrot.slane %v526_v63, 4  ;;  %v673_v16 = vpack.c.b16 %v661_v5, %v660_v4 }
  0x52   :  { %1739 = vmatpush.bf16.msra.mxu2 %v3280_v56  ;;  %1544 = vmatpush.bf16.msra.mxu1 %v3264_v59  ;;  %v2612_v15 = vor.u32 %v3192_v6, %v2611_v3  ;;  %v577_v59 = vshll.u32 %v401_v50, 16  ;;  %v3294_v3 = vld [vmem:[%s4379_s4 + $0x1c8] sm:$0xff]  ;;  %v596_v6 = vshrl.u32 %v404_v61, 16 }
  0x53   :  { %941 = vmatmul.bf16.gmra.mxu3 %v2732_v8  ;;  %1135 = vmatmul.bf16.gmra.mxu0 %v3246_v9  ;;  %v531_v8 = vrot.slane %v529_v0, 5  ;;  %v542_v9 = vrot.slane %v540_v1, 4 }
  0x54   :  { %1934 = vmatpush.bf16.msra.mxu3 %v3296_v57  ;;  %2352 = vmatpush.bf16.msra.mxu0 %v3304_v60  ;;  %v402_v60 = vld [vmem:[%s4381_s3 + $0x68] sm:$0xf]  ;;  %v579_v1 = vrot.slane %v577_v59, 5  ;;  %v598_v14 = vrot.slane %v596_v6, 4  ;;  %v2751_v59 = vld [vmem:[%s4382_s1 + $0x60] sm:$0xf] }
  0x55   :  { %v532_v17 = vor.u32 %v531_v8, %v528_v7  ;;  %v546_v19 = vor.u32 %v545_v10, %v542_v9  ;;  %v582_v4 = vshrl.u32 %v402_v60, 16  ;;  %v585_v5 = vshll.u32 %v402_v60, 16  ;;  %v3262_v8 = vld [vmem:[%s4379_s4 + $0x148] sm:$0xff] }
  0x56   :  { %1740 = vmatpush.bf16.msra.mxu2 %v3279_v28  ;;  %1545 = vmatpush.bf16.msra.mxu1 %v3263_v31  ;;  %v599_v7 = vshll.u32 %v404_v61, 16  ;;  %v3250_v31 = vld [vmem:[%s4383_s0 + $0x28] sm:$0xff] }
  0x57   :  { %v533_v23 = vrot.slane %v532_v17, 4  ;;  %v547_v25 = vrot.slane %v546_v19, 4  ;;  %v584_v12 = vrot.slane %v582_v4, 4  ;;  %v587_v13 = vrot.slane %v585_v5, 5  ;;  %v405_v19 = vld [vmem:[%s4381_s3 + $0x74] sm:$0x1] }
  0x58   :  { %1935 = vmatpush.bf16.msra.mxu3 %v3295_v29  ;;  %2353 = vmatpush.bf16.msra.mxu0 %v3303_v32  ;;  %v605_v27 = vshll.u32 %v405_v19, 16  ;;  %v3235_v60 = vld [vmem:[%s4382_s1 + $0x64] sm:$0xf0]  ;;  %v3251_v5 = vld [vmem:[%s4383_s0 + $0x30] sm:$0xff] }
  0x59   :  { %v538_v33 = vsel %vm3544_vm2, %v533_v23, %v537_v24  ;;  %v552_v34 = vsel %vm3544_vm2, %v547_v25, %v551_v26  ;;  %v3234_v23 = vld [vmem:[%s4382_s1 + $0x54] sm:$0xf0]  ;;  %v588_v24 = vor.u32 %v587_v13, %v584_v12  ;;  %v591_v25 = vshll.u32 %v403_v18, 16  ;;  %v1189_v12 = vld [vmem:[%s4382_s1 + $0x8] sm:$0xf] }
  0x5a   :  { %v662_v41 = vunpack.c.l.b16 %v538_v33  ;;  %v663_v42 = vunpack.c.l.b16 %v552_v34  ;;  %1741 = vmatpush.bf16.msra.mxu2 %v3278_v2  ;;  %1546 = vmatpush.bf16.msra.mxu1 %v3262_v8  ;;  %v607_v35 = vrot.slane %v605_v27, 5  ;;  %v2752_v4 = vor.u32 %v3235_v60, %v2751_v59 }
  0x5b   :  { %v589_v32 = vrot.slane %v588_v24, 4  ;;  %v593_v33 = vrot.slane %v591_v25, 5 }
  0x5c   :  { %v674_v52 = vpack.c.b16 %v663_v42, %v662_v41  ;;  %1936 = vmatpush.bf16.msra.mxu3 %v3294_v3  ;;  %2354 = vmatpush.bf16.msra.mxu0 %v3302_v11  ;;  %v1187_v11 = vld [vmem:[%s4382_s1] sm:$0xf] }
  0x5d   :  { %v594_v40 = vsel %vm3544_vm2, %v589_v32, %v593_v33  ;;  %v2755_v33 = vld [vmem:[%s4382_s1 + $0x70] sm:$0xf] }
  0x60   :  { %1937 = vmatpush.bf16.msra.mxu3 %v3293_v39 }
  0x61   :  { %347 = vmatmul.bf16.gmra.mxu1 %v2608_v46  ;;  %752 = vmatmul.bf16.gmra.mxu2 %v672_v47  ;;  %v559_v46 = vrot.slane %v557_v36, 5  ;;  %v570_v47 = vrot.slane %v568_v37, 4  ;;  %v406_v36 = vld [vmem:[%s4381_s3 + $0x78] sm:$0xf]  ;;  %v408_v37 = vld [vmem:[%s4381_s3 + $0x80] sm:$0xf] }
  0x62   :  { %v610_v42 = vshrl.u32 %v406_v36, 16  ;;  %v613_v43 = vshll.u32 %v406_v36, 16  ;;  %v624_v44 = vshrl.u32 %v408_v37, 16 }
  0x63   :  { %946 = vmatmul.bf16.gmra.mxu3 %v2736_v48  ;;  %1140 = vmatmul.bf16.gmra.mxu0 %v3247_v49  ;;  %v573_v48 = vrot.slane %v571_v38, 5  ;;  %v399_v49 = vld [vmem:[%s4381_s3 + $0x5c] sm:$0x1]  ;;  %v560_v55 = vor.u32 %v559_v46, %v556_v45  ;;  %v3277_v38 = vld [vmem:[%s4379_s4 + $0x180] sm:$0xff]  ;;  %v627_v45 = vshll.u32 %v408_v37, 16 }
  0x64   :  { %v563_v56 = vshll.u32 %v399_v49, 16  ;;  %1742 = vmatpush.bf16.msra.mxu2 %v3277_v38  ;;  %v3261_v46 = vld [vmem:[%s4379_s4 + $0x140] sm:$0xff]  ;;  %v666_v49 = vunpack.c.l.b16 %v594_v40  ;;  %v1190_v40 = vld [vmem:[%s4382_s1 + $0xc] sm:$0x1] }
  0x65   :  { %v574_v57 = vor.u32 %v573_v48, %v570_v47  ;;  %v561_v62 = vrot.slane %v560_v55, 4  ;;  %1547 = vmatpush.bf16.msra.mxu1 %v3261_v46  ;;  %v3301_v47 = vld [vmem:[%s4379_s4 + $0x200] sm:$0xff]  ;;  %v2623_v48 = vld [vmem:[%s4381_s3 + $0x68] sm:$0xf]  ;;  %v629_v55 = vrot.slane %v627_v45, 5 }
  0x66   :  { %v565_v63 = vrot.slane %v563_v56, 5  ;;  %2355 = vmatpush.bf16.msra.mxu0 %v3301_v47  ;;  %v407_v56 = vld [vmem:[%s4381_s3 + $0x7c] sm:$0x1]  ;;  %v3110_v46 = vld [vmem:[%s4381_s3 + $0xc] sm:$0x1] }
  0x67   :  { %v575_v0 = vrot.slane %v574_v57, 4  ;;  %v409_v57 = vld [vmem:[%s4381_s3 + $0x84] sm:$0x1]  ;;  %v3112_v47 = vld [vmem:[%s4381_s3 + $0x14] sm:$0x1] }
  0x68   :  { %v566_v9 = vsel %vm3544_vm2, %v561_v62, %v565_v63  ;;  %v633_v2 = vshll.u32 %v409_v57, 16  ;;  %v1243_v57 = vshll.u32 %v1190_v40, 16 }
  0x69   :  { %v580_v10 = vsel %vm3544_vm2, %v575_v0, %v579_v1  ;;  %v619_v0 = vshll.u32 %v407_v56, 16 }
  0x6a   :  { %v665_v17 = vunpack.c.l.b16 %v580_v10  ;;  %v635_v10 = vrot.slane %v633_v2, 5 }
  0x6b   :  { %v621_v8 = vrot.slane %v619_v0, 5  ;;  %v1191_v0 = vld [vmem:[%s4382_s1 + $0x10] sm:$0xf] }
  0x71   :  { %352 = vmatmul.bf16.gmra.mxu1 %v2612_v15  ;;  %757 = vmatmul.bf16.gmra.mxu2 %v673_v16  ;;  %v601_v15 = vrot.slane %v599_v7, 5  ;;  %v664_v16 = vunpack.c.l.b16 %v566_v9 }
  0x73   :  { %951 = vmatmul.bf16.gmra.mxu3 %v2740_v21  ;;  %1145 = vmatmul.bf16.gmra.mxu0 %v3248_v22  ;;  %v3194_v21 = vld [vmem:[%s4381_s3 + $0x5c] sm:$0xf0]  ;;  %v2747_v22 = vld [vmem:[%s4382_s1 + $0x50] sm:$0xf]  ;;  %v602_v26 = vor.u32 %v601_v15, %v598_v14  ;;  %v675_v29 = vpack.c.b16 %v665_v17, %v664_v16  ;;  %v3109_v14 = vld [vmem:[%s4381_s3 + $0x8] sm:$0xf] }
  0x74   :  { %v2620_v28 = vor.u32 %v3194_v21, %v2619_v20  ;;  %v2748_v30 = vor.u32 %v3234_v23, %v2747_v22  ;;  %v3111_v15 = vld [vmem:[%s4381_s3 + $0x10] sm:$0xf]  ;;  %v1220_v20 = vshrl.u32 %v1187_v11, 16  ;;  %v1223_v21 = vshll.u32 %v1187_v11, 16 }
  0x75   :  { %v603_v34 = vrot.slane %v602_v26, 4  ;;  %v1234_v22 = vshrl.u32 %v1189_v12, 16  ;;  %v1237_v23 = vshll.u32 %v1189_v12, 16  ;;  %v2028_v25 = vshrl.u32 %v3109_v14, 16 }
  0x76   :  { %v2031_v26 = vshll.u32 %v3109_v14, 16  ;;  %v2042_v27 = vshrl.u32 %v3111_v15, 16  ;;  %v1222_v36 = vrot.slane %v1220_v20, 4  ;;  %v1225_v37 = vrot.slane %v1223_v21, 5  ;;  %v3115_v14 = vld [vmem:[%s4381_s3 + $0x20] sm:$0xf] }
  0x77   :  { %v608_v41 = vsel %vm3544_vm2, %v603_v34, %v607_v35  ;;  %v3236_v34 = vld [vmem:[%s4382_s1 + $0x74] sm:$0xf0]  ;;  %v1188_v35 = vld [vmem:[%s4382_s1 + $0x4] sm:$0x1]  ;;  %v1236_v38 = vrot.slane %v1234_v22, 4  ;;  %v1239_v39 = vrot.slane %v1237_v23, 5 }
  0x78   :  { %v667_v50 = vunpack.c.l.b16 %v608_v41  ;;  %v2030_v41 = vrot.slane %v2028_v25, 4 }
  0x79   :  { %v1240_v56 = vor.u32 %v1239_v39, %v1236_v38 }
  0x7a   :  { %v676_v62 = vpack.c.b16 %v667_v50, %v666_v49 }
  0x81   :  { %357 = vmatmul.bf16.gmra.mxu1 %v2616_v51  ;;  %762 = vmatmul.bf16.gmra.mxu2 %v674_v52  ;;  %v3195_v51 = vld [vmem:[%s4381_s3 + $0x6c] sm:$0xf0]  ;;  %v612_v52 = vrot.slane %v610_v42, 4  ;;  %v2033_v42 = vrot.slane %v2031_v26, 5 }
  0x82   :  { %v2624_v61 = vor.u32 %v3195_v51, %v2623_v48  ;;  %v2756_v51 = vor.u32 %v3236_v34, %v2755_v33  ;;  %v2951_v34 = vld [vmem:[%s4381_s3 + $0x8] sm:$0xf] }
  0x83   :  { %956 = vmatmul.bf16.gmra.mxu3 %v2744_v53  ;;  %1150 = vmatmul.bf16.gmra.mxu0 %v3249_v54  ;;  %v615_v53 = vrot.slane %v613_v43, 5  ;;  %v626_v54 = vrot.slane %v624_v44, 4  ;;  %v2044_v43 = vrot.slane %v2042_v27, 4  ;;  %v2034_v60 = vor.u32 %v2033_v42, %v2030_v41  ;;  %v1192_v41 = vld [vmem:[%s4382_s1 + $0x14] sm:$0x1] }
  0x84   :  { %v1194_v42 = vld [vmem:[%s4382_s1 + $0x1c] sm:$0x1] }
  0x85   :  { %v616_v63 = vor.u32 %v615_v53, %v612_v52  ;;  %v630_v1 = vor.u32 %v629_v55, %v626_v54  ;;  %v3252_v53 = vld [vmem:[%s4383_s0 + $0x38] sm:$0xff]  ;;  %v1226_v54 = vor.u32 %v1225_v37, %v1222_v36  ;;  %v1229_v55 = vshll.u32 %v1188_v35, 16 }
  0x87   :  { %v617_v7 = vrot.slane %v616_v63, 4  ;;  %v631_v9 = vrot.slane %v630_v1, 4  ;;  %v2051_v63 = vshll.u32 %v3112_v47, 16  ;;  %v1193_v1 = vld [vmem:[%s4382_s1 + $0x18] sm:$0xf]  ;;  %v1227_v2 = vrot.slane %v1226_v54, 4 }
  0x88   :  { %v1262_v20 = vshrl.u32 %v1193_v1, 16  ;;  %v1265_v21 = vshll.u32 %v1193_v1, 16  ;;  %v3116_v54 = vld [vmem:[%s4381_s3 + $0x24] sm:$0x1] }
  0x89   :  { %v622_v17 = vsel %vm3544_vm2, %v617_v7, %v621_v8  ;;  %v636_v18 = vsel %vm3544_vm2, %v631_v9, %v635_v10  ;;  %v1245_v7 = vrot.slane %v1243_v57, 5  ;;  %v3113_v8 = vld [vmem:[%s4381_s3 + $0x18] sm:$0xf]  ;;  %v2035_v9 = vrot.slane %v2034_v60, 4 }
  0x8a   :  { %v669_v32 = vunpack.c.l.b16 %v636_v18  ;;  %v2053_v12 = vrot.slane %v2051_v63, 5  ;;  %v1251_v18 = vshll.u32 %v1191_v0, 16  ;;  %v2056_v23 = vshrl.u32 %v3113_v8, 16 }
  0x8b   :  { %v2059_v25 = vshll.u32 %v3113_v8, 16  ;;  %v1264_v37 = vrot.slane %v1262_v20, 4  ;;  %v1267_v38 = vrot.slane %v1265_v21, 5  ;;  %v1257_v57 = vshll.u32 %v1192_v41, 16  ;;  %v1197_v21 = vld [vmem:[%s4382_s1 + $0x28] sm:$0xf] }
  0x8c   :  { %v1253_v36 = vrot.slane %v1251_v18, 5 }
  0x8d   :  { %v1268_v60 = vor.u32 %v1267_v38, %v1264_v37 }
  0x8f   :  { %v1269_v18 = vrot.slane %v1268_v60, 4 }
  0x91   :  { %362 = vmatmul.bf16.gmra.mxu1 %v2620_v28  ;;  %767 = vmatmul.bf16.gmra.mxu2 %v675_v29  ;;  %v2045_v28 = vshll.u32 %v3111_v15, 16  ;;  %v2627_v29 = vld [vmem:[%s4381_s3 + $0x78] sm:$0xf] }
  0x93   :  { %961 = vmatmul.bf16.gmra.mxu3 %v2748_v30  ;;  %1155 = vmatmul.bf16.gmra.mxu0 %v3250_v31  ;;  %v3196_v30 = vld [vmem:[%s4381_s3 + $0x7c] sm:$0xf0]  ;;  %v668_v31 = vunpack.c.l.b16 %v622_v17  ;;  %v2047_v44 = vrot.slane %v2045_v28, 5  ;;  %v1248_v17 = vshrl.u32 %v1191_v0, 16 }
  0x94   :  { %v2628_v49 = vor.u32 %v3196_v30, %v2627_v29  ;;  %v2070_v29 = vshrl.u32 %v3115_v14, 16  ;;  %v2073_v30 = vshll.u32 %v3115_v14, 16 }
  0x95   :  { %v677_v50 = vpack.c.b16 %v669_v32, %v668_v31  ;;  %v1250_v35 = vrot.slane %v1248_v17, 4  ;;  %v1259_v17 = vrot.slane %v1257_v57, 5 }
  0x9e   :  { %v3888_v3 = vpop.f32.mrf.mxu1 }
  0xa0   :  { %v3893_v6 = vpop.f32.mrf.mxu0 }
  0xa1   :  { %367 = vmatmul.bf16.gmra.mxu1 %v2624_v61  ;;  %772 = vmatmul.bf16.gmra.mxu2 %v676_v62  ;;  %v2037_v61 = vshll.u32 %v3110_v46, 16  ;;  %v2048_v62 = vor.u32 %v2047_v44, %v2044_v43  ;;  %v2058_v43 = vrot.slane %v2056_v23, 4  ;;  %v2061_v44 = vrot.slane %v2059_v25, 5  ;;  %v3269_v46 = vld [vmem:[%s4381_s3 + $0xc] sm:$0xf0] }
  0xa2   :  { %v2952_v0 = vor.u32 %v3269_v46, %v2951_v34  ;;  %v1293_v34 = vshll.u32 %v1197_v21, 16 }
  0xa3   :  { %966 = vmatmul.bf16.gmra.mxu3 %v2752_v4  ;;  %1160 = vmatmul.bf16.gmra.mxu0 %v3251_v5  ;;  %v1231_v4 = vrot.slane %v1229_v55, 5  ;;  %v1241_v5 = vrot.slane %v1240_v56, 4  ;;  %v2039_v10 = vrot.slane %v2037_v61, 5  ;;  %v2049_v11 = vrot.slane %v2048_v62, 4 }
  0xa4   :  { %v3901_v13 = vpop.f32.mrf.mxu2  ;;  %v1254_v56 = vor.u32 %v1253_v36, %v1250_v35  ;;  %v1271_v61 = vshll.u32 %v1194_v42, 16  ;;  %v2062_v1 = vor.u32 %v2061_v44, %v2058_v43  ;;  %v1295_v60 = vrot.slane %v1293_v34, 5 }
  0xa5   :  { %v1232_v27 = vsel %vm3544_vm2, %v1227_v2, %v1231_v4  ;;  %v1246_v28 = vsel %vm3544_vm2, %v1241_v5, %v1245_v7  ;;  %v2040_v32 = vsel %vm3544_vm2, %v2035_v9, %v2039_v10  ;;  %v2054_v33 = vsel %vm3544_vm2, %v2049_v11, %v2053_v12  ;;  %v3285_v5 = vld [vmem:[%s4380_s2 + $0x4] sm:$0xff]  ;;  %v1195_v12 = vld [vmem:[%s4382_s1 + $0x20] sm:$0xf] }
  0xa6   :  { %v3909_v16 = vpop.f32.mrf.mxu3  ;;  %v3915_v19 = vpop.f32.mrf.mxu1  ;;  %v1460_v39 = vunpack.c.l.b16 %v1232_v27  ;;  %v1461_v40 = vunpack.c.l.b16 %v1246_v28  ;;  %v2268_v47 = vunpack.c.l.b16 %v2040_v32  ;;  %v2079_v9 = vshll.u32 %v3116_v54, 16  ;;  %v3119_v27 = vld [vmem:[%s4381_s3 + $0x30] sm:$0xf] }
  0xa7   :  { %v1255_v14 = vrot.slane %v1254_v56, 4  ;;  %v1273_v20 = vrot.slane %v1271_v61, 5  ;;  %v2063_v23 = vrot.slane %v2062_v1, 4  ;;  %v1279_v32 = vshll.u32 %v1195_v12, 16  ;;  %v1196_v56 = vld [vmem:[%s4382_s1 + $0x24] sm:$0x1] }
  0xa8   :  { %v3917_v24 = vpop.f32.mrf.mxu0  ;;  %v1476_v63 = vpack.c.b16 %v1461_v40, %v1460_v39  ;;  %v2098_v38 = vshrl.u32 %v3119_v27, 16  ;;  %v2101_v39 = vshll.u32 %v3119_v27, 16  ;;  %v1198_v61 = vld [vmem:[%s4382_s1 + $0x2c] sm:$0x1] }
  0xa9   :  { %v1260_v42 = vsel %vm3544_vm2, %v1255_v14, %v1259_v17  ;;  %v1274_v43 = vsel %vm3544_vm2, %v1269_v18, %v1273_v20  ;;  %v1285_v17 = vshll.u32 %v1196_v56, 16 }
  0xaa   :  { %v2100_v1 = vrot.slane %v2098_v38, 4 }
  0xac   :  { %v3937_v45 = vpop.f32.mrf.mxu2 }
  0xae   :  { %v3945_v48 = vpop.f32.mrf.mxu3  ;;  %v3947_v52 = vpop.f32.mrf.mxu1 }
  0xb0   :  { %v3952_v59 = vpop.f32.mrf.mxu0 }
  0xb1   :  { %372 = vmatmul.bf16.gmra.mxu1 %v2628_v49  ;;  %777 = vmatmul.bf16.gmra.mxu2 %v677_v50  ;;  %v2269_v49 = vunpack.c.l.b16 %v2054_v33  ;;  %v3114_v50 = vld [vmem:[%s4381_s3 + $0x1c] sm:$0x1]  ;;  %v1290_v33 = vshrl.u32 %v1197_v21, 16  ;;  %v1299_v21 = vshll.u32 %v1198_v61, 16 }
  0xb2   :  { %v2065_v2 = vshll.u32 %v3114_v50, 16  ;;  %v1281_v50 = vrot.slane %v1279_v32, 5 }
  0xb3   :  { %971 = vmatmul.bf16.gmra.mxu3 %v2756_v51  ;;  %1165 = vmatmul.bf16.gmra.mxu0 %v3252_v53  ;;  %v2072_v51 = vrot.slane %v2070_v29, 4  ;;  %v2075_v53 = vrot.slane %v2073_v30, 5  ;;  %v2284_v7 = vpack.c.b16 %v2269_v49, %v2268_v47  ;;  %v2081_v29 = vrot.slane %v2079_v9, 5  ;;  %v2955_v9 = vld [vmem:[%s4381_s3 + $0x18] sm:$0xf] }
  0xb4   :  { %v3966_v15 = vpop.f32.mrf.mxu2  ;;  %v2067_v25 = vrot.slane %v2065_v2, 5  ;;  %v1276_v30 = vshrl.u32 %v1195_v12, 16  ;;  %v1292_v57 = vrot.slane %v1290_v33, 4  ;;  %v2103_v2 = vrot.slane %v2101_v39, 5 }
  0xb5   :  { %v2076_v8 = vor.u32 %v2075_v53, %v2072_v51 }
  0xb6   :  { %v3968_v22 = vpop.f32.mrf.mxu3  ;;  %v3970_v26 = vpop.f32.mrf.mxu1  ;;  %v2068_v46 = vsel %vm3544_vm2, %v2063_v23, %v2067_v25  ;;  %v1278_v49 = vrot.slane %v1276_v30, 4  ;;  %v1296_v20 = vor.u32 %v1295_v60, %v1292_v57  ;;  %v2104_v27 = vor.u32 %v2103_v2, %v2100_v1 }
  0xb7   :  { %v2077_v28 = vrot.slane %v2076_v8, 4  ;;  %v3120_v8 = vld [vmem:[%s4381_s3 + $0x34] sm:$0x1] }
  0xb8   :  { %v3976_v31 = vpop.f32.mrf.mxu0  ;;  %v1282_v14 = vor.u32 %v1281_v50, %v1278_v49  ;;  %v1199_v49 = vld [vmem:[%s4382_s1 + $0x30] sm:$0xf] }
  0xb9   :  { %v2082_v47 = vsel %vm3544_vm2, %v2077_v28, %v2081_v29  ;;  %v2107_v28 = vshll.u32 %v3120_v8, 16 }
  0xba   :  { %v2271_v12 = vunpack.c.l.b16 %v2082_v47 }
  0xbb   :  { %v2109_v47 = vrot.slane %v2107_v28, 5  ;;  %v1200_v28 = vld [vmem:[%s4382_s1 + $0x34] sm:$0x1] }
  0xbc   :  { %v4000_v55 = vpop.f32.mrf.mxu2 }
  0xbe   :  { %v4002_v62 = vpop.f32.mrf.mxu3  ;;  %v338_v4 = vpop.f32.mrf.mxu1 }
  0xbf   :  { %v339_v10 = vadd.f32 %v338_v4, %v3893_v6  ;;  %v3117_v6 = vld [vmem:[%s4381_s3 + $0x28] sm:$0xf]  ;;  %v1462_v4 = vunpack.c.l.b16 %v1260_v42  ;;  %v1301_v42 = vrot.slane %v1299_v21, 5 }
  0xc0   :  { %v1131_v11 = vpop.f32.mrf.mxu0  ;;  %v2084_v36 = vshrl.u32 %v3117_v6, 16  ;;  %v2087_v37 = vshll.u32 %v3117_v6, 16  ;;  %v2959_v21 = vld [vmem:[%s4381_s3 + $0x28] sm:$0xf] }
  0xc1   :  { %1548 = vmatmul.bf16.vlgmr.msra.gmra.mxu1 %v1476_v63  ;;  %1743 = vmatmul.bf16.vlgmr.msra.gmra.mxu2 %v2952_v0 }
  0xc2   :  { %v2086_v63 = vrot.slane %v2084_v36, 4  ;;  %v2089_v0 = vrot.slane %v2087_v37, 5  ;;  %v1283_v37 = vrot.slane %v1282_v14, 4 }
  0xc3   :  { %1938 = vmatmul.bf16.vlgmr.msra.gmra.mxu3 %v3285_v5  ;;  %2356 = vmatmul.bf16.vlgmr.msra.gmra.mxu0 %v2284_v7  ;;  %v1463_v5 = vunpack.c.l.b16 %v1274_v43  ;;  %v2270_v7 = vunpack.c.l.b16 %v2068_v46  ;;  %v2105_v46 = vrot.slane %v2104_v27, 4 }
  0xc4   :  { %v743_v35 = vpop.f32.mrf.mxu2  ;;  %v2090_v25 = vor.u32 %v2089_v0, %v2086_v63  ;;  %v1304_v63 = vshrl.u32 %v1199_v49, 16  ;;  %v1307_v0 = vshll.u32 %v1199_v49, 16 }
  0xc5   :  { %v783_v40 = vadd.f32 %v743_v35, %v339_v10  ;;  %v3270_v10 = vld [vmem:[%s4381_s3 + $0x1c] sm:$0xf0]  ;;  %v1477_v32 = vpack.c.b16 %v1463_v5, %v1462_v4  ;;  %v3286_v35 = vld [vmem:[%s4380_s2 + $0xc] sm:$0xff]  ;;  %v2285_v36 = vpack.c.b16 %v2271_v12, %v2270_v7  ;;  %v2110_v61 = vsel %vm3544_vm2, %v2105_v46, %v2109_v47 }
  0xc6   :  { %v937_v41 = vpop.f32.mrf.mxu3  ;;  %v340_v44 = vpop.f32.mrf.mxu1  ;;  %v2956_v33 = vor.u32 %v3270_v10, %v2955_v9  ;;  %v2091_v43 = vrot.slane %v2090_v25, 4  ;;  %v3271_v25 = vld [vmem:[%s4381_s3 + $0x2c] sm:$0xf0]  ;;  %v2273_v27 = vunpack.c.l.b16 %v2110_v61 }
  0xc7   :  { %v977_v51 = vadd.f32 %v937_v41, %v783_v40  ;;  %v341_v53 = vadd.f32 %v340_v44, %v3917_v24  ;;  %v3118_v24 = vld [vmem:[%s4381_s3 + $0x2c] sm:$0x1]  ;;  %v1297_v41 = vrot.slane %v1296_v20, 4 }
  0xc8   :  { %v1133_v54 = vpop.f32.mrf.mxu0  ;;  %v2093_v6 = vshll.u32 %v3118_v24, 16 }
  0xc9   :  { %v4047_v18 = vadd.f32 %v1131_v11, %v977_v51  ;;  %v1287_v11 = vrot.slane %v1285_v17, 5  ;;  %v3121_v51 = vld [vmem:[%s4381_s3 + $0x38] sm:$0xf]  ;;  %v1302_v56 = vsel %vm3544_vm2, %v1297_v41, %v1301_v42 }
  0xca   :  { %v2095_v44 = vrot.slane %v2093_v6, 5  ;;  %v2112_v7 = vshrl.u32 %v3121_v51, 16  ;;  %v2115_v8 = vshll.u32 %v3121_v51, 16 }
  0xcc   :  { %v745_v23 = vpop.f32.mrf.mxu2  ;;  %v2096_v60 = vsel %vm3544_vm2, %v2091_v43, %v2095_v44  ;;  %v2960_v43 = vor.u32 %v3271_v25, %v2959_v21  ;;  %v1313_v44 = vshll.u32 %v1200_v28, 16  ;;  %v3127_v21 = vld [vmem:[%s4381_s3 + $0x58] sm:$0xf] }
  0xcd   :  { %v784_v29 = vadd.f32 %v745_v23, %v341_v53  ;;  %v1288_v53 = vsel %vm3544_vm2, %v1283_v37, %v1287_v11  ;;  %v1465_v23 = vunpack.c.l.b16 %v1302_v56  ;;  %v2272_v6 = vunpack.c.l.b16 %v2096_v60  ;;  %v3287_v56 = vld [vmem:[%s4380_s2 + $0x14] sm:$0xff] }
  0xce   :  { %v939_v30 = vpop.f32.mrf.mxu3  ;;  %v343_v34 = vpop.f32.mrf.mxu1  ;;  %v1464_v20 = vunpack.c.l.b16 %v1288_v53 }
  0xcf   :  { %v978_v38 = vadd.f32 %v939_v30, %v784_v29  ;;  %v344_v39 = vadd.f32 %v343_v34, %v3952_v59  ;;  %v1201_v59 = vld [vmem:[%s4382_s1 + $0x38] sm:$0xf]  ;;  %v1306_v29 = vrot.slane %v1304_v63, 4  ;;  %v1309_v30 = vrot.slane %v1307_v0, 5 }
  0xd0   :  { %v1136_v40 = vpop.f32.mrf.mxu0  ;;  %v1318_v4 = vshrl.u32 %v1201_v59, 16  ;;  %v1321_v5 = vshll.u32 %v1201_v59, 16  ;;  %v2114_v34 = vrot.slane %v2112_v7, 4  ;;  %v1478_v42 = vpack.c.b16 %v1465_v23, %v1464_v20 }
  0xd1   :  { %1553 = vmatmul.bf16.gmra.mxu1 %v1477_v32  ;;  %1748 = vmatmul.bf16.gmra.mxu2 %v2956_v33  ;;  %v4056_v50 = vadd.f32 %v1133_v54, %v978_v38  ;;  %v3123_v54 = vld [vmem:[%s4381_s3 + $0x40] sm:$0xf]  ;;  %v3122_v38 = vld [vmem:[%s4381_s3 + $0x3c] sm:$0x1]  ;;  %v2286_v59 = vpack.c.b16 %v2273_v27, %v2272_v6  ;;  %v1310_v51 = vor.u32 %v1309_v30, %v1306_v29 }
  0xd2   :  { %v2126_v9 = vshrl.u32 %v3123_v54, 16  ;;  %v2129_v10 = vshll.u32 %v3123_v54, 16  ;;  %v1320_v32 = vrot.slane %v1318_v4, 4  ;;  %v1323_v33 = vrot.slane %v1321_v5, 5  ;;  %v1203_v5 = vld [vmem:[%s4382_s1 + $0x40] sm:$0xf] }
  0xd3   :  { %1943 = vmatmul.bf16.gmra.mxu3 %v3286_v35  ;;  %2361 = vmatmul.bf16.gmra.mxu0 %v2285_v36  ;;  %v2117_v35 = vrot.slane %v2115_v8, 5  ;;  %v1311_v7 = vrot.slane %v1310_v51, 4  ;;  %v1205_v8 = vld [vmem:[%s4382_s1 + $0x48] sm:$0xf]  ;;  %v1332_v23 = vshrl.u32 %v1203_v5, 16  ;;  %v1335_v25 = vshll.u32 %v1203_v5, 16 }
  0xd4   :  { %v748_v57 = vpop.f32.mrf.mxu2  ;;  %v2128_v36 = vrot.slane %v2126_v9, 4  ;;  %v2131_v37 = vrot.slane %v2129_v10, 5  ;;  %v1324_v53 = vor.u32 %v1323_v33, %v1320_v32  ;;  %v3125_v9 = vld [vmem:[%s4381_s3 + $0x50] sm:$0xf]  ;;  %v1346_v27 = vshrl.u32 %v1205_v8, 16 }
  0xd5   :  { %v785_v1 = vadd.f32 %v748_v57, %v344_v39  ;;  %v3124_v39 = vld [vmem:[%s4381_s3 + $0x44] sm:$0x1]  ;;  %v2118_v54 = vor.u32 %v2117_v35, %v2114_v34  ;;  %v2121_v57 = vshll.u32 %v3122_v38, 16  ;;  %v1349_v28 = vshll.u32 %v1205_v8, 16 }
  0xd6   :  { %v942_v2 = vpop.f32.mrf.mxu3  ;;  %v345_v24 = vpop.f32.mrf.mxu1  ;;  %v2132_v60 = vor.u32 %v2131_v37, %v2128_v36  ;;  %v2135_v61 = vshll.u32 %v3124_v39, 16  ;;  %v2140_v29 = vshrl.u32 %v3125_v9, 16  ;;  %v2154_v32 = vshrl.u32 %v3127_v21, 16  ;;  %v2963_v37 = vld [vmem:[%s4381_s3 + $0x38] sm:$0xf] }
  0xd7   :  { %v979_v12 = vadd.f32 %v942_v2, %v785_v1  ;;  %v346_v14 = vadd.f32 %v345_v24, %v3976_v31  ;;  %v1202_v31 = vld [vmem:[%s4382_s1 + $0x3c] sm:$0x1]  ;;  %v1315_v2 = vrot.slane %v1313_v44, 5  ;;  %v1325_v24 = vrot.slane %v1324_v53, 4  ;;  %v3272_v44 = vld [vmem:[%s4381_s3 + $0x3c] sm:$0xf0] }
  0xd8   :  { %v1138_v17 = vpop.f32.mrf.mxu0  ;;  %v1327_v46 = vshll.u32 %v1202_v31, 16  ;;  %v2119_v10 = vrot.slane %v2118_v54, 4  ;;  %v2137_v20 = vrot.slane %v2135_v61, 5  ;;  %v2143_v31 = vshll.u32 %v3125_v9, 16 }
  0xd9   :  { %v4088_v11 = vadd.f32 %v1136_v40, %v979_v12  ;;  %v2123_v12 = vrot.slane %v2121_v57, 5  ;;  %v2157_v33 = vshll.u32 %v3127_v21, 16  ;;  %v1316_v35 = vsel %vm3544_vm2, %v1311_v7, %v1315_v2  ;;  %v3126_v57 = vld [vmem:[%s4381_s3 + $0x54] sm:$0x1]  ;;  %v3128_v2 = vld [vmem:[%s4381_s3 + $0x5c] sm:$0x1] }
  0xda   :  { %v1329_v4 = vrot.slane %v1327_v46, 5  ;;  %v1204_v46 = vld [vmem:[%s4382_s1 + $0x44] sm:$0x1]  ;;  %v1348_v51 = vrot.slane %v1346_v27, 4  ;;  %v1351_v53 = vrot.slane %v1349_v28, 5  ;;  %v2964_v5 = vor.u32 %v3272_v44, %v2963_v37  ;;  %v3288_v28 = vld [vmem:[%s4380_s2 + $0x1c] sm:$0xff] }
  0xdb   :  { %v2124_v38 = vsel %vm3544_vm2, %v2119_v10, %v2123_v12  ;;  %v2159_v61 = vrot.slane %v2157_v33, 5  ;;  %v1341_v7 = vshll.u32 %v1204_v46, 16  ;;  %v1207_v33 = vld [vmem:[%s4382_s1 + $0x50] sm:$0xf]  ;;  %v3129_v46 = vld [vmem:[%s4381_s3 + $0x60] sm:$0xf] }
  0xdc   :  { %v750_v41 = vpop.f32.mrf.mxu2  ;;  %v1330_v36 = vsel %vm3544_vm2, %v1325_v24, %v1329_v4  ;;  %v1352_v10 = vor.u32 %v1351_v53, %v1348_v51  ;;  %v1363_v44 = vshll.u32 %v1207_v33, 16  ;;  %v3131_v51 = vld [vmem:[%s4381_s3 + $0x68] sm:$0xf] }
  0xdd   :  { %v786_v47 = vadd.f32 %v750_v41, %v346_v14  ;;  %v2133_v14 = vrot.slane %v2132_v60, 4  ;;  %v1467_v54 = vunpack.c.l.b16 %v1330_v36  ;;  %v2156_v60 = vrot.slane %v2154_v32, 4 }
  0xde   :  { %v944_v49 = vpop.f32.mrf.mxu3  ;;  %v348_v40 = vpop.f32.mrf.mxu1 }
  0xdf   :  { %v980_v63 = vadd.f32 %v944_v49, %v786_v47  ;;  %v349_v0 = vadd.f32 %v348_v40, %v3888_v3  ;;  %v2138_v39 = vsel %vm3544_vm2, %v2133_v14, %v2137_v20  ;;  %v1334_v47 = vrot.slane %v1332_v23, 4 }
  0xe0   :  { %v1141_v1 = vpop.f32.mrf.mxu0  ;;  %v1337_v49 = vrot.slane %v1335_v25, 5  ;;  %v2142_v40 = vrot.slane %v2140_v29, 4  ;;  %v2149_v14 = vshll.u32 %v3126_v57, 16  ;;  %v2160_v25 = vor.u32 %v2159_v61, %v2156_v60  ;;  %v1208_v60 = vld [vmem:[%s4382_s1 + $0x54] sm:$0x1] }
  0xe1   :  { %1558 = vmatmul.bf16.gmra.mxu1 %v1478_v42  ;;  %1753 = vmatmul.bf16.gmra.mxu2 %v2960_v43  ;;  %v4109_v3 = vadd.f32 %v1138_v17, %v980_v63  ;;  %v2274_v63 = vunpack.c.l.b16 %v2124_v38 }
  0xe2   :  { %v1338_v9 = vor.u32 %v1337_v49, %v1334_v47  ;;  %v2151_v37 = vrot.slane %v2149_v14, 5  ;;  %v2161_v38 = vrot.slane %v2160_v25, 4  ;;  %v2967_v14 = vld [vmem:[%s4381_s3 + $0x50] sm:$0xf]  ;;  %v1369_v25 = vshll.u32 %v1208_v60, 16 }
  0xe3   :  { %1948 = vmatmul.bf16.gmra.mxu3 %v3287_v56  ;;  %2366 = vmatmul.bf16.gmra.mxu0 %v2286_v59  ;;  %v1206_v59 = vld [vmem:[%s4382_s1 + $0x4c] sm:$0x1]  ;;  %v2145_v56 = vrot.slane %v2143_v31, 5 }
  0xe4   :  { %v753_v6 = vpop.f32.mrf.mxu2  ;;  %v1355_v24 = vshll.u32 %v1206_v59, 16 }
  0xe5   :  { %v787_v30 = vadd.f32 %v753_v6, %v349_v0  ;;  %v2275_v0 = vunpack.c.l.b16 %v2138_v39  ;;  %v2146_v12 = vor.u32 %v2145_v56, %v2142_v40  ;;  %v2163_v6 = vshll.u32 %v3128_v2, 16 }
  0xe6   :  { %v947_v17 = vpop.f32.mrf.mxu3  ;;  %v350_v34 = vpop.f32.mrf.mxu1  ;;  %v1357_v32 = vrot.slane %v1355_v24, 5  ;;  %v2171_v2 = vshll.u32 %v3129_v46, 16 }
  0xe7   :  { %v981_v41 = vadd.f32 %v947_v17, %v787_v30  ;;  %v351_v42 = vadd.f32 %v350_v34, %v3915_v19  ;;  %v1466_v19 = vunpack.c.l.b16 %v1316_v35  ;;  %v1343_v17 = vrot.slane %v1341_v7, 5 }
  0xe8   :  { %v1143_v43 = vpop.f32.mrf.mxu0  ;;  %v1339_v34 = vrot.slane %v1338_v9, 4  ;;  %v1353_v35 = vrot.slane %v1352_v10, 4  ;;  %v2147_v36 = vrot.slane %v2146_v12, 4  ;;  %v2165_v39 = vrot.slane %v2163_v6, 5 }
  0xe9   :  { %v4141_v4 = vadd.f32 %v1141_v1, %v981_v41  ;;  %v1479_v23 = vpack.c.b16 %v1467_v54, %v1466_v19  ;;  %v2287_v1 = vpack.c.b16 %v2275_v0, %v2274_v63  ;;  %v1365_v63 = vrot.slane %v1363_v44, 5  ;;  %v3289_v44 = vld [vmem:[%s4380_s2 + $0x28] sm:$0xff] }
  0xea   :  { %v1344_v49 = vsel %vm3544_vm2, %v1339_v34, %v1343_v17  ;;  %v2152_v59 = vsel %vm3544_vm2, %v2147_v36, %v2151_v37  ;;  %v2166_v56 = vsel %vm3544_vm2, %v2161_v38, %v2165_v39  ;;  %v2168_v0 = vshrl.u32 %v3129_v46, 16  ;;  %v3130_v17 = vld [vmem:[%s4381_s3 + $0x64] sm:$0x1]  ;;  %v3132_v36 = vld [vmem:[%s4381_s3 + $0x6c] sm:$0x1] }
  0xeb   :  { %v2185_v9 = vshll.u32 %v3131_v51, 16  ;;  %v1468_v10 = vunpack.c.l.b16 %v1344_v49  ;;  %v1371_v46 = vrot.slane %v1369_v25, 5 }
  0xec   :  { %v755_v8 = vpop.f32.mrf.mxu2 }
  0xed   :  { %v788_v20 = vadd.f32 %v755_v8, %v351_v42  ;;  %v1360_v42 = vshrl.u32 %v1207_v33, 16  ;;  %v2182_v8 = vshrl.u32 %v3131_v51, 16  ;;  %v2187_v33 = vrot.slane %v2185_v9, 5 }
  0xee   :  { %v949_v21 = vpop.f32.mrf.mxu3  ;;  %v353_v27 = vpop.f32.mrf.mxu1 }
  0xef   :  { %v982_v29 = vadd.f32 %v949_v21, %v788_v20  ;;  %v354_v31 = vadd.f32 %v353_v27, %v3947_v52  ;;  %v1209_v52 = vld [vmem:[%s4382_s1 + $0x58] sm:$0xf]  ;;  %v1362_v61 = vrot.slane %v1360_v42, 4  ;;  %v2276_v21 = vunpack.c.l.b16 %v2152_v59 }
  0xf0   :  { %v1146_v30 = vpop.f32.mrf.mxu0  ;;  %v1374_v19 = vshrl.u32 %v1209_v52, 16  ;;  %v1377_v54 = vshll.u32 %v1209_v52, 16  ;;  %v3273_v20 = vld [vmem:[%s4381_s3 + $0x54] sm:$0xf0] }
  0xf1   :  { %1563 = vmatmul.bf16.gmra.mxu1 %v1479_v23  ;;  %1758 = vmatmul.bf16.gmra.mxu2 %v2964_v5  ;;  %v4150_v41 = vadd.f32 %v1143_v43, %v982_v29  ;;  %v1358_v43 = vsel %vm3544_vm2, %v1353_v35, %v1357_v32  ;;  %v2277_v23 = vunpack.c.l.b16 %v2166_v56  ;;  %v2184_v32 = vrot.slane %v2182_v8, 4 }
  0xf2   :  { %v1469_v12 = vunpack.c.l.b16 %v1358_v43  ;;  %v1376_v6 = vrot.slane %v1374_v19, 4  ;;  %v1379_v27 = vrot.slane %v1377_v54, 5  ;;  %v2968_v35 = vor.u32 %v3273_v20, %v2967_v14  ;;  %v1211_v19 = vld [vmem:[%s4382_s1 + $0x60] sm:$0xf]  ;;  %v1213_v54 = vld [vmem:[%s4382_s1 + $0x68] sm:$0xf] }
  0xf3   :  { %1953 = vmatmul.bf16.gmra.mxu3 %v3288_v28  ;;  %2371 = vmatmul.bf16.gmra.mxu0 %v2287_v1  ;;  %v2170_v28 = vrot.slane %v2168_v0, 4  ;;  %v2173_v1 = vrot.slane %v2171_v2, 5  ;;  %v2288_v52 = vpack.c.b16 %v2277_v23, %v2276_v21  ;;  %v2177_v43 = vshll.u32 %v3130_v17, 16  ;;  %v3133_v2 = vld [vmem:[%s4381_s3 + $0x70] sm:$0xf] }
  0xf4   :  { %v758_v47 = vpop.f32.mrf.mxu2  ;;  %v1480_v39 = vpack.c.b16 %v1469_v12, %v1468_v10  ;;  %v2191_v56 = vshll.u32 %v3132_v36, 16  ;;  %v1388_v12 = vshrl.u32 %v1211_v19, 16  ;;  %v1391_v14 = vshll.u32 %v1211_v19, 16  ;;  %v3274_v36 = vld [vmem:[%s4381_s3 + $0x64] sm:$0xf0] }
  0xf5   :  { %v789_v53 = vadd.f32 %v758_v47, %v354_v31  ;;  %v1366_v31 = vor.u32 %v1365_v63, %v1362_v61  ;;  %v1380_v47 = vor.u32 %v1379_v27, %v1376_v6  ;;  %v2174_v49 = vor.u32 %v2173_v1, %v2170_v28 }
  0xf6   :  { %v952_v40 = vpop.f32.mrf.mxu3  ;;  %v355_v57 = vpop.f32.mrf.mxu1  ;;  %v2179_v0 = vrot.slane %v2177_v43, 5  ;;  %v2193_v9 = vrot.slane %v2191_v56, 5  ;;  %v1402_v20 = vshrl.u32 %v1213_v54, 16  ;;  %v1405_v21 = vshll.u32 %v1213_v54, 16 }
  0xf7   :  { %v983_v5 = vadd.f32 %v952_v40, %v789_v53  ;;  %v356_v7 = vadd.f32 %v355_v57, %v3970_v26  ;;  %v1210_v26 = vld [vmem:[%s4382_s1 + $0x5c] sm:$0x1]  ;;  %v1367_v53 = vrot.slane %v1366_v31, 4  ;;  %v2188_v40 = vor.u32 %v2187_v33, %v2184_v32 }
  0xf8   :  { %v1148_v24 = vpop.f32.mrf.mxu0  ;;  %v1383_v42 = vshll.u32 %v1210_v26, 16  ;;  %v1381_v60 = vrot.slane %v1380_v47, 4  ;;  %v2175_v63 = vrot.slane %v2174_v49, 4  ;;  %v2196_v6 = vshrl.u32 %v3133_v2, 16 }
  0xf9   :  { %v4182_v29 = vadd.f32 %v1146_v30, %v983_v5  ;;  %v2189_v8 = vrot.slane %v2188_v40, 4  ;;  %v2199_v26 = vshll.u32 %v3133_v2, 16 }
  0xfa   :  { %v1385_v61 = vrot.slane %v1383_v42, 5  ;;  %v2180_v28 = vsel %vm3544_vm2, %v2175_v63, %v2179_v0  ;;  %v2198_v47 = vrot.slane %v2196_v6, 4 }
  0xfb   :  { %v2201_v49 = vrot.slane %v2199_v26, 5 }
  0xfc   :  { %v760_v34 = vpop.f32.mrf.mxu2 }
  0xfd   :  { %v790_v37 = vadd.f32 %v760_v34, %v356_v7  ;;  %v1372_v7 = vsel %vm3544_vm2, %v1367_v53, %v1371_v46  ;;  %v2971_v34 = vld [vmem:[%s4381_s3 + $0x60] sm:$0xf]  ;;  %v1214_v46 = vld [vmem:[%s4382_s1 + $0x6c] sm:$0x1] }
  0xfe   :  { %v954_v38 = vpop.f32.mrf.mxu3  ;;  %v358_v30 = vpop.f32.mrf.mxu1  ;;  %v1470_v33 = vunpack.c.l.b16 %v1372_v7  ;;  %v2972_v54 = vor.u32 %v3274_v36, %v2971_v34  ;;  %v3137_v36 = vld [vmem:[%s4381_s3 + $0x80] sm:$0xf] }
  0xff   :  { %v984_v59 = vadd.f32 %v954_v38, %v790_v37  ;;  %v359_v5 = vadd.f32 %v358_v30, %v3901_v13  ;;  %v1386_v13 = vsel %vm3544_vm2, %v1381_v60, %v1385_v61  ;;  %v1390_v37 = vrot.slane %v1388_v12, 4  ;;  %v3136_v60 = vld [vmem:[%s4381_s3 + $0x7c] sm:$0x1] }
 0x100   :  { %v1151_v51 = vpop.f32.mrf.mxu0  ;;  %v1393_v38 = vrot.slane %v1391_v14, 5  ;;  %v1471_v42 = vunpack.c.l.b16 %v1386_v13  ;;  %v2278_v30 = vunpack.c.l.b16 %v2180_v28 }
 0x101   :  { %1568 = vmatmul.bf16.gmra.mxu1 %v1480_v39  ;;  %1763 = vmatmul.bf16.gmra.mxu2 %v2968_v35  ;;  %v4199_v57 = vadd.f32 %v1148_v24, %v984_v59  ;;  %v3135_v24 = vld [vmem:[%s4381_s3 + $0x78] sm:$0xf]  ;;  %v2194_v35 = vsel %vm3544_vm2, %v2189_v8, %v2193_v9  ;;  %v1404_v39 = vrot.slane %v1402_v20, 4  ;;  %v3134_v59 = vld [vmem:[%s4381_s3 + $0x74] sm:$0x1]  ;;  %v2219_v20 = vshll.u32 %v3136_v60, 16 }
 0x102   :  { %v2210_v1 = vshrl.u32 %v3135_v24, 16  ;;  %v2213_v31 = vshll.u32 %v3135_v24, 16  ;;  %v2279_v43 = vunpack.c.l.b16 %v2194_v35  ;;  %v1394_v63 = vor.u32 %v1393_v38, %v1390_v37  ;;  %v1217_v35 = vld [vmem:[%s4382_s1 + $0x78] sm:$0xf] }
 0x103   :  { %1958 = vmatmul.bf16.gmra.mxu3 %v3289_v44  ;;  %2376 = vmatmul.bf16.gmra.mxu0 %v2288_v52  ;;  %v1407_v52 = vrot.slane %v1405_v21, 5  ;;  %v1212_v44 = vld [vmem:[%s4382_s1 + $0x64] sm:$0x1]  ;;  %v1481_v9 = vpack.c.b16 %v1471_v42, %v1470_v33  ;;  %v2202_v24 = vor.u32 %v2201_v49, %v2198_v47  ;;  %v1215_v33 = vld [vmem:[%s4382_s1 + $0x70] sm:$0xf]  ;;  %v1430_v49 = vshrl.u32 %v1217_v35, 16 }
 0x104   :  { %v763_v10 = vpop.f32.mrf.mxu2  ;;  %v2212_v53 = vrot.slane %v2210_v1, 4  ;;  %v2215_v40 = vrot.slane %v2213_v31, 5  ;;  %v1397_v0 = vshll.u32 %v1212_v44, 16  ;;  %v1419_v44 = vshll.u32 %v1215_v33, 16 }
 0x105   :  { %v791_v23 = vadd.f32 %v763_v10, %v359_v5  ;;  %v1408_v2 = vor.u32 %v1407_v52, %v1404_v39  ;;  %v1411_v5 = vshll.u32 %v1214_v46, 16  ;;  %v2205_v10 = vshll.u32 %v3134_v59, 16  ;;  %v3139_v39 = vld [vmem:[%s4381_s3 + $0x88] sm:$0xf] }
 0x106   :  { %v957_v25 = vpop.f32.mrf.mxu3  ;;  %v360_v27 = vpop.f32.mrf.mxu1  ;;  %v2216_v14 = vor.u32 %v2215_v40, %v2212_v53  ;;  %v1399_v6 = vrot.slane %v1397_v0, 5  ;;  %v2203_v13 = vrot.slane %v2202_v24, 4  ;;  %v2224_v59 = vshrl.u32 %v3137_v36, 16  ;;  %v2975_v0 = vld [vmem:[%s4381_s3 + $0x70] sm:$0xf] }
 0x107   :  { %v985_v17 = vadd.f32 %v957_v25, %v791_v23  ;;  %v361_v19 = vadd.f32 %v360_v27, %v3937_v45  ;;  %v3290_v45 = vld [vmem:[%s4380_s2 + $0x30] sm:$0xff]  ;;  %v1395_v25 = vrot.slane %v1394_v63, 4  ;;  %v1409_v26 = vrot.slane %v1408_v2, 4  ;;  %v3275_v2 = vld [vmem:[%s4381_s3 + $0x74] sm:$0xf0] }
 0x108   :  { %v1153_v32 = vpop.f32.mrf.mxu0  ;;  %v1413_v27 = vrot.slane %v1411_v5, 5  ;;  %v2207_v28 = vrot.slane %v2205_v10, 5  ;;  %v2217_v31 = vrot.slane %v2216_v14, 4  ;;  %v2241_v60 = vshll.u32 %v3139_v39, 16  ;;  %v1218_v10 = vld [vmem:[%s4382_s1 + $0x7c] sm:$0x1] }
 0x109   :  { %v4231_v56 = vadd.f32 %v1151_v51, %v985_v17  ;;  %v2289_v51 = vpack.c.b16 %v2279_v43, %v2278_v30  ;;  %v2221_v17 = vrot.slane %v2219_v20, 5  ;;  %v1400_v37 = vsel %vm3544_vm2, %v1395_v25, %v1399_v6 }
 0x10a   :  { %v1414_v38 = vsel %vm3544_vm2, %v1409_v26, %v1413_v27  ;;  %v2208_v42 = vsel %vm3544_vm2, %v2203_v13, %v2207_v28  ;;  %v1416_v30 = vshrl.u32 %v1215_v33, 16  ;;  %v1433_v43 = vshll.u32 %v1217_v35, 16  ;;  %v3140_v13 = vld [vmem:[%s4381_s3 + $0x8c] sm:$0x1] }
 0x10b   :  { %v2222_v47 = vsel %vm3544_vm2, %v2217_v31, %v2221_v17  ;;  %v1473_v63 = vunpack.c.l.b16 %v1414_v38  ;;  %v2280_v5 = vunpack.c.l.b16 %v2208_v42  ;;  %v2226_v14 = vrot.slane %v2224_v59, 4 }
 0x10c   :  { %v765_v61 = vpop.f32.mrf.mxu2  ;;  %v2243_v26 = vrot.slane %v2241_v60, 5 }
 0x10d   :  { %v792_v7 = vadd.f32 %v765_v61, %v361_v19  ;;  %v2227_v19 = vshll.u32 %v3137_v36, 16  ;;  %v1472_v61 = vunpack.c.l.b16 %v1400_v37  ;;  %v1439_v37 = vshll.u32 %v1218_v10, 16 }
 0x10e   :  { %v959_v8 = vpop.f32.mrf.mxu3  ;;  %v363_v12 = vpop.f32.mrf.mxu1 }
 0x10f   :  { %v986_v21 = vadd.f32 %v959_v8, %v792_v7  ;;  %v364_v34 = vadd.f32 %v363_v12, %v3966_v15  ;;  %v2281_v7 = vunpack.c.l.b16 %v2222_v47  ;;  %v1216_v8 = vld [vmem:[%s4382_s1 + $0x74] sm:$0x1]  ;;  %v1421_v12 = vrot.slane %v1419_v44, 5 }
 0x110   :  { %v1156_v23 = vpop.f32.mrf.mxu0  ;;  %v2229_v25 = vrot.slane %v2227_v19, 5  ;;  %v1482_v17 = vpack.c.b16 %v1473_v63, %v1472_v61 }
 0x111   :  { %1573 = vmatmul.bf16.gmra.mxu1 %v1481_v9  ;;  %1768 = vmatmul.bf16.gmra.mxu2 %v2972_v54  ;;  %v4240_v1 = vadd.f32 %v1153_v32, %v986_v21  ;;  %v2238_v54 = vshrl.u32 %v3139_v39, 16  ;;  %v1418_v9 = vrot.slane %v1416_v30, 4  ;;  %v3138_v21 = vld [vmem:[%s4381_s3 + $0x84] sm:$0x1]  ;;  %v2290_v33 = vpack.c.b16 %v2281_v7, %v2280_v5 }
 0x112   :  { %v2233_v38 = vshll.u32 %v3138_v21, 16  ;;  %v2247_v30 = vshll.u32 %v3140_v13, 16 }
 0x113   :  { %1963 = vmatmul.bf16.gmra.mxu3 %v3290_v45  ;;  %2381 = vmatmul.bf16.gmra.mxu0 %v2289_v51  ;;  %v1432_v45 = vrot.slane %v1430_v49, 4  ;;  %v1435_v51 = vrot.slane %v1433_v43, 5  ;;  %v2240_v6 = vrot.slane %v2238_v54, 4  ;;  %v1422_v36 = vor.u32 %v1421_v12, %v1418_v9 }
 0x114   :  { %v768_v32 = vpop.f32.mrf.mxu2  ;;  %v1441_v43 = vrot.slane %v1439_v37, 5  ;;  %v2235_v59 = vrot.slane %v2233_v38, 5  ;;  %v2249_v60 = vrot.slane %v2247_v30, 5 }
 0x115   :  { %v793_v15 = vadd.f32 %v768_v32, %v364_v34  ;;  %v1425_v34 = vshll.u32 %v1216_v8, 16  ;;  %v1436_v32 = vor.u32 %v1435_v51, %v1432_v45  ;;  %v2244_v42 = vor.u32 %v2243_v26, %v2240_v6  ;;  %v2979_v51 = vld [vmem:[%s4381_s3 + $0x80] sm:$0xf] }
 0x116   :  { %v962_v52 = vpop.f32.mrf.mxu3  ;;  %v365_v46 = vpop.f32.mrf.mxu1  ;;  %v1423_v47 = vrot.slane %v1422_v36, 4 }
 0x117   :  { %v987_v53 = vadd.f32 %v962_v52, %v793_v15  ;;  %v366_v20 = vadd.f32 %v365_v46, %v4000_v55  ;;  %v3291_v55 = vld [vmem:[%s4380_s2 + $0x38] sm:$0xff]  ;;  %v2230_v52 = vor.u32 %v2229_v25, %v2226_v14  ;;  %v1427_v44 = vrot.slane %v1425_v34, 5  ;;  %v3276_v14 = vld [vmem:[%s4381_s3 + $0x84] sm:$0xf0] }
 0x118   :  { %v1158_v40 = vpop.f32.mrf.mxu0  ;;  %v1437_v49 = vrot.slane %v1436_v32, 4  ;;  %v2245_v54 = vrot.slane %v2244_v42, 4 }
 0x119   :  { %v4272_v24 = vadd.f32 %v1156_v23, %v987_v53  ;;  %v2976_v23 = vor.u32 %v3275_v2, %v2975_v0  ;;  %v2231_v19 = vrot.slane %v2230_v52, 4  ;;  %v1428_v5 = vsel %vm3544_vm2, %v1423_v47, %v1427_v44 }
 0x11a   :  { %v1474_v10 = vunpack.c.l.b16 %v1428_v5 }
 0x11b   :  { %v2236_v9 = vsel %vm3544_vm2, %v2231_v19, %v2235_v59 }
 0x11c   :  { %v770_v27 = vpop.f32.mrf.mxu2 }
 0x11d   :  { %v794_v28 = vadd.f32 %v770_v27, %v366_v20  ;;  %v2282_v20 = vunpack.c.l.b16 %v2236_v9 }
 0x11e   :  { %v964_v31 = vpop.f32.mrf.mxu3  ;;  %v368_v35 = vpop.f32.mrf.mxu1 }
 0x11f   :  { %v988_v39 = vadd.f32 %v964_v31, %v794_v28  ;;  %v369_v53 = vadd.f32 %v368_v35, %v3909_v16  ;;  %v2250_v16 = vsel %vm3544_vm2, %v2245_v54, %v2249_v60  ;;  %v3292_v28 = vld [vmem:[%s4380_s2 + $0x40] sm:$0xff] }
 0x120   :  { %v1161_v15 = vpop.f32.mrf.mxu0  ;;  %v2283_v21 = vunpack.c.l.b16 %v2250_v16 }
 0x121   :  { %1578 = vmatmul.bf16.gmra.mxu1 %v1482_v17  ;;  %1773 = vmatmul.bf16.gmra.mxu2 %v2976_v23  ;;  %v4287_v46 = vadd.f32 %v1158_v40, %v988_v39  ;;  %v1442_v40 = vsel %vm3544_vm2, %v1437_v49, %v1441_v43  ;;  %v2980_v23 = vor.u32 %v3276_v14, %v2979_v51 }
 0x122   :  { %v1475_v12 = vunpack.c.l.b16 %v1442_v40  ;;  %v2291_v31 = vpack.c.b16 %v2283_v21, %v2282_v20 }
 0x123   :  { %1968 = vmatmul.bf16.gmra.mxu3 %v3291_v55  ;;  %2386 = vmatmul.bf16.gmra.mxu0 %v2290_v33 }
 0x124   :  { %v773_v61 = vpop.f32.mrf.mxu2  ;;  %v1483_v27 = vpack.c.b16 %v1475_v12, %v1474_v10 }
 0x125   :  { %v795_v63 = vadd.f32 %v773_v61, %v369_v53 }
 0x126   :  { %v967_v0 = vpop.f32.mrf.mxu3  ;;  %v370_v2 = vpop.f32.mrf.mxu1 }
 0x127   :  { %v989_v7 = vadd.f32 %v967_v0, %v795_v63  ;;  %v371_v25 = vadd.f32 %v370_v2, %v3945_v48 }
 0x128   :  { %v1163_v8 = vpop.f32.mrf.mxu0 }
 0x129   :  { %v4298_v45 = vadd.f32 %v1161_v15, %v989_v7 }
 0x12c   :  { %v775_v6 = vpop.f32.mrf.mxu2 }
 0x12d   :  { %v796_v26 = vadd.f32 %v775_v6, %v371_v25 }
 0x12e   :  { %v969_v58 = vpop.f32.mrf.mxu3  ;;  %v373_v13 = vpop.f32.mrf.mxu1 }
 0x12f   :  { %v990_v17 = vadd.f32 %v969_v58, %v796_v26  ;;  %v374_v48 = vadd.f32 %v373_v13, %v3968_v22 }
 0x130   :  { %v1166_v33 = vpop.f32.mrf.mxu0 }
 0x131   :  { %1583 = vmatmul.bf16.gmra.mxu1 %v1483_v27  ;;  %1778 = vmatmul.bf16.gmra.mxu2 %v2980_v23  ;;  %v4310_v34 = vadd.f32 %v1163_v8, %v990_v17 }
 0x133   :  { %1973 = vmatmul.bf16.gmra.mxu3 %v3292_v28  ;;  %2391 = vmatmul.bf16.gmra.mxu0 %v2291_v31 }
 0x134   :  { %v778_v35 = vpop.f32.mrf.mxu2 }
 0x135   :  { %v797_v55 = vadd.f32 %v778_v35, %v374_v48 }
 0x136   :  { %v972_v36 = vpop.f32.mrf.mxu3  ;;  %v375_v32 = vpop.f32.mrf.mxu1 }
 0x137   :  { %v991_v37 = vadd.f32 %v972_v36, %v797_v55  ;;  %v376_v15 = vadd.f32 %v375_v32, %v4002_v62  ;;  %v4322_v62 = vld [vmem:[%s4384_s5] ss:$0 sm:$0xff] }
 0x138   :  { %v1168_v38 = vpop.f32.mrf.mxu0 }
 0x139   :  { %v4313_v39 = vadd.f32 %v1166_v33, %v991_v37 }
 0x13c   :  { %v780_v52 = vpop.f32.mrf.mxu2 }
 0x13d   :  { %v798_v42 = vadd.f32 %v780_v52, %v376_v15 }
 0x13e   :  { %v974_v30 = vpop.f32.mrf.mxu3  ;;  %v1549_v44 = vpop.f32.mrf.mxu1 }
 0x13f   :  { %v992_v47 = vadd.f32 %v974_v30, %v798_v42  ;;  %v1589_v22 = vadd.f32 %v1549_v44, %v4047_v18 }
 0x140   :  { %v2357_v49 = vpop.f32.mrf.mxu0 }
 0x141   :  { %v4316_v43 = vadd.f32 %v1168_v38, %v992_v47 }
 0x144   :  { %v1744_v59 = vpop.f32.mrf.mxu2 }
 0x145   :  { %v1784_v53 = vadd.f32 %v1744_v59, %v1589_v22 }
 0x146   :  { %v1939_v19 = vpop.f32.mrf.mxu3  ;;  %v1551_v54 = vpop.f32.mrf.mxu1 }
 0x147   :  { %v1979_v60 = vadd.f32 %v1939_v19, %v1784_v53  ;;  %v1590_v0 = vadd.f32 %v1551_v54, %v4056_v50 }
 0x148   :  { %v2359_v61 = vpop.f32.mrf.mxu0 }
 0x149   :  { %v2397_v63 = vadd.f32 %v2357_v49, %v1979_v60 }
 0x14b   :  { %v2417_v18 = vadd.f32 %v4322_v62, %v2397_v63 }
 0x14c   :  { %v1746_v2 = vpop.f32.mrf.mxu2 }
 0x14d   :  { %v1785_v5 = vadd.f32 %v1746_v2, %v1590_v0  ;;  %v2449_v10 = vmul.f32 0.01, %v2417_v18  ;;  %vm2433_vm3 = vcmp.gt.f32.partialorder %v2417_v18, 0.0 }
 0x14e   :  { %v1941_v40 = vpop.f32.mrf.mxu3  ;;  %v1554_v7 = vpop.f32.mrf.mxu1 }
 0x14f   :  { %v1980_v8 = vadd.f32 %v1941_v40, %v1785_v5  ;;  %v1591_v51 = vadd.f32 %v1554_v7, %v4088_v11  ;;  %v2465_v6 = vsel %vm2433_vm3, %v2417_v18, %v2449_v10 }
 0x150   :  { %v2362_v9 = vpop.f32.mrf.mxu0 }
 0x151   :  { %v2398_v16 = vadd.f32 %v2359_v61, %v1980_v8 }
 0x153   :  { %v2418_v12 = vadd.f32 %v4322_v62, %v2398_v16 }
 0x154   :  { %v1749_v14 = vpop.f32.mrf.mxu2 }
 0x155   :  { %vm2434_vm4 = vcmp.gt.f32.partialorder %v2418_v12, 0.0  ;;  %v2450_v20 = vmul.f32 0.01, %v2418_v12  ;;  %v1786_v21 = vadd.f32 %v1749_v14, %v1591_v51 }
 0x156   :  { %v1944_v50 = vpop.f32.mrf.mxu3  ;;  %v1556_v25 = vpop.f32.mrf.mxu1 }
 0x157   :  { %v2466_v26 = vsel %vm2434_vm4, %v2418_v12, %v2450_v20  ;;  %v1981_v58 = vadd.f32 %v1944_v50, %v1786_v21  ;;  %v1592_v28 = vadd.f32 %v1556_v25, %v4109_v3 }
 0x158   :  { %v2364_v27 = vpop.f32.mrf.mxu0  ;;  %v3312_v23 = vpack.c.bf16 %v2466_v26, %v2465_v6 }
 0x159   :  { %v2399_v13 = vadd.f32 %v2362_v9, %v1981_v58 }
 0x15a   :  { %3313 = vst [vmem:[%s4385_s6] sm:$0xff] %v3312_v23  }
 0x15b   :  { %v2419_v48 = vadd.f32 %v4322_v62, %v2399_v13 }
 0x15c   :  { %v1751_v11 = vpop.f32.mrf.mxu2 }
 0x15d   :  { %v1787_v31 = vadd.f32 %v1751_v11, %v1592_v28  ;;  %v2451_v32 = vmul.f32 0.01, %v2419_v48  ;;  %vm2435_vm5 = vcmp.gt.f32.partialorder %v2419_v48, 0.0 }
 0x15e   :  { %v1946_v17 = vpop.f32.mrf.mxu3  ;;  %v1559_v33 = vpop.f32.mrf.mxu1 }
 0x15f   :  { %v1982_v35 = vadd.f32 %v1946_v17, %v1787_v31  ;;  %v1593_v38 = vadd.f32 %v1559_v33, %v4141_v4  ;;  %v2467_v44 = vsel %vm2435_vm5, %v2419_v48, %v2451_v32 }
 0x160   :  { %v2367_v55 = vpop.f32.mrf.mxu0 }
 0x161   :  { %v2400_v36 = vadd.f32 %v2364_v27, %v1982_v35 }
 0x163   :  { %v2420_v37 = vadd.f32 %v4322_v62, %v2400_v36 }
 0x164   :  { %v1754_v15 = vpop.f32.mrf.mxu2 }
 0x165   :  { %vm2436_vm6 = vcmp.gt.f32.partialorder %v2420_v37, 0.0  ;;  %v2452_v52 = vmul.f32 0.01, %v2420_v37  ;;  %v1788_v42 = vadd.f32 %v1754_v15, %v1593_v38 }
 0x166   :  { %v1949_v3 = vpop.f32.mrf.mxu3  ;;  %v1561_v30 = vpop.f32.mrf.mxu1 }
 0x167   :  { %v2468_v47 = vsel %vm2436_vm6, %v2420_v37, %v2452_v52  ;;  %v1983_v49 = vadd.f32 %v1949_v3, %v1788_v42  ;;  %v1594_v19 = vadd.f32 %v1561_v30, %v4150_v41 }
 0x168   :  { %v2369_v22 = vpop.f32.mrf.mxu0  ;;  %v3317_v59 = vpack.c.bf16 %v2468_v47, %v2467_v44 }
 0x169   :  { %v2401_v53 = vadd.f32 %v2367_v55, %v1983_v49 }
 0x16a   :  { %3349 = vst [vmem:[%s4385_s6 + $0x8] sm:$0xff] %v3317_v59  }
 0x16b   :  { %v2421_v63 = vadd.f32 %v4322_v62, %v2401_v53 }
 0x16c   :  { %v1756_v4 = vpop.f32.mrf.mxu2 }
 0x16d   :  { %v1789_v54 = vadd.f32 %v1756_v4, %v1594_v19  ;;  %v2453_v40 = vmul.f32 0.01, %v2421_v63  ;;  %vm2437_vm7 = vcmp.gt.f32.partialorder %v2421_v63, 0.0 }
 0x16e   :  { %v1951_v60 = vpop.f32.mrf.mxu3  ;;  %v1564_v61 = vpop.f32.mrf.mxu1 }
 0x16f   :  { %v1984_v0 = vadd.f32 %v1951_v60, %v1789_v54  ;;  %v1595_v18 = vadd.f32 %v1564_v61, %v4182_v29  ;;  %v2469_v12 = vsel %vm2437_vm7, %v2421_v63, %v2453_v40 }
 0x170   :  { %v2372_v2 = vpop.f32.mrf.mxu0 }
 0x171   :  { %v2402_v5 = vadd.f32 %v2369_v22, %v1984_v0 }
 0x173   :  { %v2422_v7 = vadd.f32 %v4322_v62, %v2402_v5 }
 0x174   :  { %v1759_v8 = vpop.f32.mrf.mxu2 }
 0x175   :  { %vm2438_vm8 = vcmp.gt.f32.partialorder %v2422_v7, 0.0  ;;  %v2454_v9 = vmul.f32 0.01, %v2422_v7  ;;  %v1790_v16 = vadd.f32 %v1759_v8, %v1595_v18 }
 0x176   :  { %v1954_v41 = vpop.f32.mrf.mxu3  ;;  %v1566_v10 = vpop.f32.mrf.mxu1 }
 0x177   :  { %v2470_v51 = vsel %vm2438_vm8, %v2422_v7, %v2454_v9  ;;  %v1985_v14 = vadd.f32 %v1954_v41, %v1790_v16  ;;  %v1596_v25 = vadd.f32 %v1566_v10, %v4199_v57 }
 0x178   :  { %v2374_v20 = vpop.f32.mrf.mxu0  ;;  %v3322_v21 = vpack.c.bf16 %v2470_v51, %v2469_v12 }
 0x179   :  { %v2403_v50 = vadd.f32 %v2372_v2, %v1985_v14 }
 0x17a   :  { %3350 = vst [vmem:[%s4385_s6 + $0x10] sm:$0xff] %v3322_v21  }
 0x17b   :  { %v2423_v27 = vadd.f32 %v4322_v62, %v2403_v50 }
 0x17c   :  { %v1761_v29 = vpop.f32.mrf.mxu2 }
 0x17d   :  { %v1791_v6 = vadd.f32 %v1761_v29, %v1596_v25  ;;  %v2455_v11 = vmul.f32 0.01, %v2423_v27  ;;  %vm2439_vm9 = vcmp.gt.f32.partialorder %v2423_v27, 0.0 }
 0x17e   :  { %v1956_v26 = vpop.f32.mrf.mxu3  ;;  %v1569_v58 = vpop.f32.mrf.mxu1 }
 0x17f   :  { %v1986_v23 = vadd.f32 %v1956_v26, %v1791_v6  ;;  %v1597_v17 = vadd.f32 %v1569_v58, %v4231_v56  ;;  %v2471_v36 = vsel %vm2439_vm9, %v2423_v27, %v2455_v11 }
 0x180   :  { %v2377_v13 = vpop.f32.mrf.mxu0 }
 0x181   :  { %v2404_v28 = vadd.f32 %v2374_v20, %v1986_v23 }
 0x183   :  { %v2424_v31 = vadd.f32 %v4322_v62, %v2404_v28 }
 0x184   :  { %v1764_v33 = vpop.f32.mrf.mxu2 }
 0x185   :  { %vm2440_vm10 = vcmp.gt.f32.partialorder %v2424_v31, 0.0  ;;  %v2456_v48 = vmul.f32 0.01, %v2424_v31  ;;  %v1792_v35 = vadd.f32 %v1764_v33, %v1597_v17 }
 0x186   :  { %v1959_v57 = vpop.f32.mrf.mxu3  ;;  %v1571_v55 = vpop.f32.mrf.mxu1 }
 0x187   :  { %v2472_v32 = vsel %vm2440_vm10, %v2424_v31, %v2456_v48  ;;  %v1987_v37 = vadd.f32 %v1959_v57, %v1792_v35  ;;  %v1598_v42 = vadd.f32 %v1571_v55, %v4240_v1 }
 0x188   :  { %v2379_v38 = vpop.f32.mrf.mxu0  ;;  %v3327_v15 = vpack.c.bf16 %v2472_v32, %v2471_v36 }
 0x189   :  { %v2405_v52 = vadd.f32 %v2377_v13, %v1987_v37 }
 0x18a   :  { %3351 = vst [vmem:[%s4385_s6 + $0x18] sm:$0xff] %v3327_v15  }
 0x18b   :  { %v2425_v47 = vadd.f32 %v4322_v62, %v2405_v52 }
 0x18c   :  { %v1766_v56 = vpop.f32.mrf.mxu2 }
 0x18d   :  { %v1793_v3 = vadd.f32 %v1766_v56, %v1598_v42  ;;  %v2457_v53 = vmul.f32 0.01, %v2425_v47  ;;  %vm2441_vm11 = vcmp.gt.f32.partialorder %v2425_v47, 0.0 }
 0x18e   :  { %v1961_v30 = vpop.f32.mrf.mxu3  ;;  %v1574_v44 = vpop.f32.mrf.mxu1 }
 0x18f   :  { %v1988_v49 = vadd.f32 %v1961_v30, %v1793_v3  ;;  %v1599_v4 = vadd.f32 %v1574_v44, %v4272_v24  ;;  %v2473_v0 = vsel %vm2441_vm11, %v2425_v47, %v2457_v53 }
 0x190   :  { %v2382_v22 = vpop.f32.mrf.mxu0 }
 0x191   :  { %v2406_v59 = vadd.f32 %v2379_v38, %v1988_v49 }
 0x193   :  { %v2426_v19 = vadd.f32 %v4322_v62, %v2406_v59 }
 0x194   :  { %v1769_v54 = vpop.f32.mrf.mxu2 }
 0x195   :  { %vm2442_vm12 = vcmp.gt.f32.partialorder %v2426_v19, 0.0  ;;  %v2458_v60 = vmul.f32 0.01, %v2426_v19  ;;  %v1794_v61 = vadd.f32 %v1769_v54, %v1599_v4 }
 0x196   :  { %v1964_v1 = vpop.f32.mrf.mxu3  ;;  %v1576_v63 = vpop.f32.mrf.mxu1 }
 0x197   :  { %v2474_v2 = vsel %vm2442_vm12, %v2426_v19, %v2458_v60  ;;  %v1989_v5 = vadd.f32 %v1964_v1, %v1794_v61  ;;  %v1600_v8 = vadd.f32 %v1576_v63, %v4287_v46 }
 0x198   :  { %v3332_v40 = vpack.c.bf16 %v2474_v2, %v2473_v0  ;;  %v2384_v7 = vpop.f32.mrf.mxu0 }
 0x199   :  { %v2407_v18 = vadd.f32 %v2382_v22, %v1989_v5 }
 0x19a   :  { %3352 = vst [vmem:[%s4385_s6 + $0x20] sm:$0xff] %v3332_v40  }
 0x19b   :  { %v2427_v10 = vadd.f32 %v4322_v62, %v2407_v18 }
 0x19c   :  { %v1771_v24 = vpop.f32.mrf.mxu2 }
 0x19d   :  { %v1795_v9 = vadd.f32 %v1771_v24, %v1600_v8  ;;  %v2459_v20 = vmul.f32 0.01, %v2427_v10  ;;  %vm2443_vm13 = vcmp.gt.f32.partialorder %v2427_v10, 0.0 }
 0x19e   :  { %v1966_v16 = vpop.f32.mrf.mxu3  ;;  %v1579_v41 = vpop.f32.mrf.mxu1 }
 0x19f   :  { %v1990_v12 = vadd.f32 %v1966_v16, %v1795_v9  ;;  %v1601_v50 = vadd.f32 %v1579_v41, %v4298_v45  ;;  %v2475_v58 = vsel %vm2443_vm13, %v2427_v10, %v2459_v20 }
 0x1a0   :  { %v2387_v14 = vpop.f32.mrf.mxu0 }
 0x1a1   :  { %v2408_v51 = vadd.f32 %v2384_v7, %v1990_v12 }
 0x1a3   :  { %v2428_v21 = vadd.f32 %v4322_v62, %v2408_v51 }
 0x1a4   :  { %v1774_v25 = vpop.f32.mrf.mxu2 }
 0x1a5   :  { %vm2444_vm14 = vcmp.gt.f32.partialorder %v2428_v21, 0.0  ;;  %v2460_v29 = vmul.f32 0.01, %v2428_v21  ;;  %v1796_v6 = vadd.f32 %v1774_v25, %v1601_v50 }
 0x1a6   :  { %v1969_v46 = vpop.f32.mrf.mxu3  ;;  %v1581_v26 = vpop.f32.mrf.mxu1 }
 0x1a7   :  { %v2476_v27 = vsel %vm2444_vm14, %v2428_v21, %v2460_v29  ;;  %v1991_v23 = vadd.f32 %v1969_v46, %v1796_v6  ;;  %v1602_v11 = vadd.f32 %v1581_v26, %v4310_v34 }
 0x1a8   :  { %v3337_v13 = vpack.c.bf16 %v2476_v27, %v2475_v58  ;;  %v2389_v31 = vpop.f32.mrf.mxu0 }
 0x1a9   :  { %v2409_v28 = vadd.f32 %v2387_v14, %v1991_v23 }
 0x1aa   :  { %3353 = vst [vmem:[%s4385_s6 + $0x28] sm:$0xff] %v3337_v13  }
 0x1ab   :  { %v2429_v35 = vadd.f32 %v4322_v62, %v2409_v28 }
 0x1ac   :  { %v1776_v45 = vpop.f32.mrf.mxu2 }
 0x1ad   :  { %v1797_v17 = vadd.f32 %v1776_v45, %v1602_v11  ;;  %v2461_v36 = vmul.f32 0.01, %v2429_v35  ;;  %vm2445_vm15 = vcmp.gt.f32.partialorder %v2429_v35, 0.0 }
 0x1ae   :  { %v1971_v33 = vpop.f32.mrf.mxu3  ;;  %v1584_v48 = vpop.f32.mrf.mxu1 }
 0x1af   :  { %v1992_v57 = vadd.f32 %v1971_v33, %v1797_v17  ;;  %v1603_v37 = vadd.f32 %v1584_v48, %v4313_v39  ;;  %v2477_v56 = vsel %vm2445_vm15, %v2429_v35, %v2461_v36 }
 0x1b0   :  { %v2392_v42 = vpop.f32.mrf.mxu0 }
 0x1b1   :  { %v2410_v55 = vadd.f32 %v2389_v31, %v1992_v57 }
 0x1b3   :  { %v2430_v32 = vadd.f32 %v4322_v62, %v2410_v55 }
 0x1b4   :  { %v1779_v38 = vpop.f32.mrf.mxu2 }
 0x1b5   :  { %vm2446_vm0 = vcmp.gt.f32.partialorder %v2430_v32, 0.0  ;;  %v2462_v15 = vmul.f32 0.01, %v2430_v32  ;;  %v1798_v52 = vadd.f32 %v1779_v38, %v1603_v37 }
 0x1b6   :  { %v1974_v34 = vpop.f32.mrf.mxu3  ;;  %v1586_v47 = vpop.f32.mrf.mxu1 }
 0x1b7   :  { %v2478_v3 = vsel %vm2446_vm0, %v2430_v32, %v2462_v15  ;;  %v1993_v30 = vadd.f32 %v1974_v34, %v1798_v52  ;;  %v1604_v22 = vadd.f32 %v1586_v47, %v4316_v43 }
 0x1b8   :  { %v3342_v44 = vpack.c.bf16 %v2478_v3, %v2477_v56  ;;  %v2394_v54 = vpop.f32.mrf.mxu0 }
 0x1b9   :  { %v2411_v49 = vadd.f32 %v2392_v42, %v1993_v30 }
 0x1ba   :  { %3354 = vst [vmem:[%s4385_s6 + $0x30] sm:$0xff] %v3342_v44  }
 0x1bb   :  { %v2431_v19 = vadd.f32 %v4322_v62, %v2411_v49 }
 0x1bc   :  { %v1781_v39 = vpop.f32.mrf.mxu2 }
 0x1bd   :  { %v1799_v59 = vadd.f32 %v1781_v39, %v1604_v22  ;;  %v2463_v61 = vmul.f32 0.01, %v2431_v19  ;;  %vm2447_vm1 = vcmp.gt.f32.partialorder %v2431_v19, 0.0 }
 0x1be   :  { %v1976_v53 = vpop.f32.mrf.mxu3 }
 0x1bf   :  { %v1994_v4 = vadd.f32 %v1976_v53, %v1799_v59  ;;  %v2479_v0 = vsel %vm2447_vm1, %v2431_v19, %v2463_v61 }
 0x1c1   :  { %v2412_v60 = vadd.f32 %v2394_v54, %v1994_v4 }
 0x1c3   :  { %v2432_v1 = vadd.f32 %v4322_v62, %v2412_v60 }
 0x1c5   :  { %vm2448_vm2 = vcmp.gt.f32.partialorder %v2432_v1, 0.0  ;;  %v2464_v63 = vmul.f32 0.01, %v2432_v1 }
 0x1c7   :  { %v2480_v2 = vsel %vm2448_vm2, %v2432_v1, %v2464_v63 }
 0x1c8   :  { %v3347_v5 = vpack.c.bf16 %v2480_v2, %v2479_v0 }
 0x1ca   :  { %3355 = vst [vmem:[%s4385_s6 + $0x38] sm:$0xff] %v3347_v5  }

// kernel: wgan_discriminator_forward.4
= control target key start
LH: loop header
LB: loop body
LE: loop exit
PB: predicated region body
PF: predicated region fallthrough
CT: control target
= control target key end

     0   :  { %vm1098_vm0 = vsmask.f32 3328  ;;  %vm1099_vm1 = vsmask.f32 7440  ;;  %s12270_s4 = inlined_call_operand.vmem [shape: bf16[9,128,128], index: 4, kind: input, shape index: {}]   ;;  %s12271_s2 = inlined_call_operand.vmem [shape: bf16[2,17,16,128], index: 2, kind: input, shape index: {}]   ;;  %s12272_s3 = inlined_call_operand.vmem [shape: bf16[2,17,17,128], index: 3, kind: input, shape index: {}]   ;;  %s12273_s1 = inlined_call_operand.vmem [shape: bf16[2,16,17,128], index: 1, kind: input, shape index: {}]   ;;  %s12274_s0 = inlined_call_operand.vmem [shape: bf16[2,16,16,128], index: 0, kind: input, shape index: {}]   ;;  %s12275_s5 = inlined_call_operand.vmem [shape: f32[1,128], index: 5, kind: input, shape index: {}]   ;;  %s12276_s6 = inlined_call_operand.vmem [shape: bf16[512,128], index: 6, kind: output, shape index: {}]  }
   0x1   :  { %v8972_v0 = vld [vmem:[%s12270_s4 + $0x78] sm:$0xff]  ;;  %v8971_v1 = vld [vmem:[%s12270_s4 + $0x70] sm:$0xff]  ;;  %v8970_v2 = vld [vmem:[%s12270_s4 + $0x68] sm:$0xff] }
   0x2   :  { %9348 = vmatpush.bf16.msra.mxu1 %v8972_v0  ;;  %9349 = vmatpush.bf16.msra.mxu2 %v8972_v0  ;;  %v8969_v3 = vld [vmem:[%s12270_s4 + $0x60] sm:$0xff]  ;;  %v8968_v4 = vld [vmem:[%s12270_s4 + $0x58] sm:$0xff]  ;;  %v8967_v5 = vld [vmem:[%s12270_s4 + $0x50] sm:$0xff] }
   0x3   :  { %9350 = vmatpush.bf16.msra.mxu3 %v8972_v0  ;;  %424 = vmatpush.bf16.msra.mxu0 %v8972_v0  ;;  %v8966_v6 = vld [vmem:[%s12270_s4 + $0x48] sm:$0xff]  ;;  %v8965_v7 = vld [vmem:[%s12270_s4 + $0x40] sm:$0xff]  ;;  %v8980_v8 = vld [vmem:[%s12270_s4 + $0xb8] sm:$0xff] }
   0x4   :  { %v9020_v9 = vld [vmem:[%s12270_s4 + $0xf8] sm:$0xff]  ;;  %v8941_v10 = vld [vmem:[%s12271_s2 + $0x40] sm:$0xff]  ;;  %v8949_v11 = vld [vmem:[%s12271_s2 + $0x88] sm:$0xff] }
   0x5   :  { %v8957_v12 = vld [vmem:[%s12271_s2 + $0xc8] sm:$0xff]  ;;  %v8933_v13 = vld [vmem:[%s12271_s2] sm:$0xff]  ;;  %v8932_v14 = vld [vmem:[%s12270_s4 + $0x38] sm:$0xff] }
   0x6   :  { %9351 = vmatpush.bf16.msra.mxu1 %v8971_v1  ;;  %9352 = vmatpush.bf16.msra.mxu2 %v8971_v1  ;;  %v9060_v15 = vld [vmem:[%s12270_s4 + $0x138] sm:$0xff]  ;;  %v8979_v16 = vld [vmem:[%s12270_s4 + $0xb0] sm:$0xff]  ;;  %v8978_v20 = vld [vmem:[%s12270_s4 + $0xa8] sm:$0xff] }
   0x7   :  { %9353 = vmatpush.bf16.msra.mxu3 %v8971_v1  ;;  %425 = vmatpush.bf16.msra.mxu0 %v8971_v1  ;;  %v9019_v17 = vld [vmem:[%s12270_s4 + $0xf0] sm:$0xff]  ;;  %v9018_v21 = vld [vmem:[%s12270_s4 + $0xe8] sm:$0xff]  ;;  %v8977_v28 = vld [vmem:[%s12270_s4 + $0xa0] sm:$0xff] }
   0x8   :  { %v8931_v18 = vld [vmem:[%s12270_s4 + $0x30] sm:$0xff]  ;;  %v8930_v22 = vld [vmem:[%s12270_s4 + $0x28] sm:$0xff]  ;;  %v9017_v29 = vld [vmem:[%s12270_s4 + $0xe0] sm:$0xff] }
   0x9   :  { %v9059_v19 = vld [vmem:[%s12270_s4 + $0x130] sm:$0xff]  ;;  %v9058_v23 = vld [vmem:[%s12270_s4 + $0x128] sm:$0xff]  ;;  %v8929_v30 = vld [vmem:[%s12270_s4 + $0x20] sm:$0xff] }
   0xa   :  { %9354 = vmatpush.bf16.msra.mxu1 %v8970_v2  ;;  %9355 = vmatpush.bf16.msra.mxu2 %v8970_v2  ;;  %v8942_v24 = vld [vmem:[%s12271_s2 + $0x48] sm:$0xff]  ;;  %v8950_v25 = vld [vmem:[%s12271_s2 + $0x90] sm:$0xff]  ;;  %v9057_v31 = vld [vmem:[%s12270_s4 + $0x120] sm:$0xff] }
   0xb   :  { %9356 = vmatpush.bf16.msra.mxu3 %v8970_v2  ;;  %426 = vmatpush.bf16.msra.mxu0 %v8970_v2  ;;  %v8958_v26 = vld [vmem:[%s12271_s2 + $0xd0] sm:$0xff]  ;;  %v8934_v27 = vld [vmem:[%s12271_s2 + $0x8] sm:$0xff]  ;;  %v8951_v33 = vld [vmem:[%s12271_s2 + $0x98] sm:$0xff] }
   0xc   :  { %v8943_v32 = vld [vmem:[%s12271_s2 + $0x50] sm:$0xff]  ;;  %v8959_v34 = vld [vmem:[%s12271_s2 + $0xd8] sm:$0xff]  ;;  %v8952_v41 = vld [vmem:[%s12271_s2 + $0xa0] sm:$0xff] }
   0xd   :  { %v8935_v35 = vld [vmem:[%s12271_s2 + $0x10] sm:$0xff]  ;;  %v8976_v36 = vld [vmem:[%s12270_s4 + $0x98] sm:$0xff]  ;;  %v8960_v42 = vld [vmem:[%s12271_s2 + $0xe0] sm:$0xff] }
   0xe   :  { %9357 = vmatpush.bf16.msra.mxu1 %v8969_v3  ;;  %9358 = vmatpush.bf16.msra.mxu2 %v8969_v3  ;;  %v9016_v37 = vld [vmem:[%s12270_s4 + $0xd8] sm:$0xff]  ;;  %v8975_v44 = vld [vmem:[%s12270_s4 + $0x90] sm:$0xff]  ;;  %v8945_v48 = vld [vmem:[%s12271_s2 + $0x60] sm:$0xff] }
   0xf   :  { %9359 = vmatpush.bf16.msra.mxu3 %v8969_v3  ;;  %427 = vmatpush.bf16.msra.mxu0 %v8969_v3  ;;  %v8928_v38 = vld [vmem:[%s12270_s4 + $0x18] sm:$0xff]  ;;  %v9015_v45 = vld [vmem:[%s12270_s4 + $0xd0] sm:$0xff]  ;;  %v8953_v49 = vld [vmem:[%s12271_s2 + $0xa8] sm:$0xff] }
  0x10   :  { %v9056_v39 = vld [vmem:[%s12270_s4 + $0x118] sm:$0xff]  ;;  %v8927_v46 = vld [vmem:[%s12270_s4 + $0x10] sm:$0xff]  ;;  %v8961_v50 = vld [vmem:[%s12271_s2 + $0xe8] sm:$0xff] }
  0x11   :  { %v8944_v40 = vld [vmem:[%s12271_s2 + $0x58] sm:$0xff]  ;;  %v9055_v47 = vld [vmem:[%s12270_s4 + $0x110] sm:$0xff]  ;;  %v8937_v51 = vld [vmem:[%s12271_s2 + $0x20] sm:$0xff] }
  0x12   :  { %9360 = vmatpush.bf16.msra.mxu1 %v8968_v4  ;;  %9361 = vmatpush.bf16.msra.mxu2 %v8968_v4  ;;  %v8936_v43 = vld [vmem:[%s12271_s2 + $0x18] sm:$0xff]  ;;  %v8974_v52 = vld [vmem:[%s12270_s4 + $0x88] sm:$0xff]  ;;  %v8954_v57 = vld [vmem:[%s12271_s2 + $0xb0] sm:$0xff] }
  0x13   :  { %9362 = vmatpush.bf16.msra.mxu3 %v8968_v4  ;;  %428 = vmatpush.bf16.msra.mxu0 %v8968_v4  ;;  %v9014_v53 = vld [vmem:[%s12270_s4 + $0xc8] sm:$0xff]  ;;  %v8962_v58 = vld [vmem:[%s12271_s2 + $0xf0] sm:$0xff]  ;;  %v8973_v60 = vld [vmem:[%s12270_s4 + $0x80] sm:$0xff] }
  0x14   :  { %v8926_v54 = vld [vmem:[%s12270_s4 + $0x8] sm:$0xff]  ;;  %v9013_v61 = vld [vmem:[%s12270_s4 + $0xc0] sm:$0xff]  ;;  %v8947_v0 = vld [vmem:[%s12271_s2 + $0x70] sm:$0xff] }
  0x15   :  { %v9054_v55 = vld [vmem:[%s12270_s4 + $0x108] sm:$0xff]  ;;  %v8925_v62 = vld [vmem:[%s12270_s4] sm:$0xff]  ;;  %v8955_v1 = vld [vmem:[%s12271_s2 + $0xb8] sm:$0xff] }
  0x16   :  { %9363 = vmatpush.bf16.msra.mxu1 %v8967_v5  ;;  %9364 = vmatpush.bf16.msra.mxu2 %v8967_v5  ;;  %v8946_v56 = vld [vmem:[%s12271_s2 + $0x68] sm:$0xff]  ;;  %v9053_v63 = vld [vmem:[%s12270_s4 + $0x100] sm:$0xff]  ;;  %v8963_v2 = vld [vmem:[%s12271_s2 + $0xf8] sm:$0xff] }
  0x17   :  { %9365 = vmatpush.bf16.msra.mxu3 %v8967_v5  ;;  %429 = vmatpush.bf16.msra.mxu0 %v8967_v5  ;;  %v8938_v59 = vld [vmem:[%s12271_s2 + $0x28] sm:$0xff]  ;;  %v8939_v3 = vld [vmem:[%s12271_s2 + $0x30] sm:$0xff]  ;;  %v9108_v4 = vld [vmem:[%s12270_s4 + $0x1b8] sm:$0xff] }
  0x18   :  { %v9148_v5 = vld [vmem:[%s12270_s4 + $0x1f8] sm:$0xff]  ;;  %vm9654_vm2 = vmor %vm1098_vm0, %vm1099_vm1 }
  0x1a   :  { %9366 = vmatpush.bf16.msra.mxu1 %v8966_v6  ;;  %9367 = vmatpush.bf16.msra.mxu2 %v8966_v6 }
  0x1b   :  { %9368 = vmatpush.bf16.msra.mxu3 %v8966_v6  ;;  %430 = vmatpush.bf16.msra.mxu0 %v8966_v6  ;;  %v1002_v6 = vld [vmem:[%s12272_s3] sm:$0xf] }
  0x1e   :  { %9369 = vmatpush.bf16.msra.mxu1 %v8965_v7  ;;  %9370 = vmatpush.bf16.msra.mxu2 %v8965_v7 }
  0x1f   :  { %9371 = vmatpush.bf16.msra.mxu3 %v8965_v7  ;;  %431 = vmatpush.bf16.msra.mxu0 %v8965_v7  ;;  %v1003_v7 = vld [vmem:[%s12272_s3 + $0x4] sm:$0xf] }
  0x21   :  { %472 = vmatmul.bf16.vlgmr.msra.gmra.mxu1 %v8941_v10  ;;  %512 = vmatmul.bf16.vlgmr.msra.gmra.mxu2 %v8949_v11  ;;  %v1105_v10 = vshll.u32 %v1002_v6, 16  ;;  %v1111_v11 = vshll.u32 %v1003_v7, 16 }
  0x22   :  { %2062 = vmatpush.bf16.msrb.mxu2 %v8980_v8  ;;  %552 = vmatmul.bf16.vlgmr.msra.gmra.mxu3 %v8957_v12  ;;  %v9068_v8 = vld [vmem:[%s12270_s4 + $0x178] sm:$0xff]  ;;  %v1115_v12 = vshrl.u32 %v1003_v7, 16 }
  0x23   :  { %2616 = vmatpush.bf16.msrb.mxu3 %v9020_v9  ;;  %432 = vmatmul.bf16.vlgmr.msra.gmra.mxu0 %v8933_v13  ;;  %v1102_v9 = vshrl.u32 %v1002_v6, 16  ;;  %v9156_v13 = vld [vmem:[%s12270_s4 + $0x238] sm:$0xff] }
  0x24   :  { %833 = vmatpush.bf16.msrb.mxu1 %v8932_v14  ;;  %3170 = vmatpush.bf16.msrb.mxu0 %v9060_v15  ;;  %v1107_v15 = vrot.slane %v1105_v10, 5 }
  0x25   :  { %v1104_v14 = vrot.slane %v1102_v9, 4 }
  0x26   :  { %2063 = vmatpush.bf16.msrb.mxu2 %v8979_v16  ;;  %v1113_v16 = vrot.slane %v1111_v11, 5  ;;  %v1010_v11 = vld [vmem:[%s12272_s3 + $0x20] sm:$0x1] }
  0x27   :  { %2617 = vmatpush.bf16.msrb.mxu3 %v9019_v17  ;;  %v1117_v17 = vrot.slane %v1115_v12, 4 }
  0x28   :  { %834 = vmatpush.bf16.msrb.mxu1 %v8931_v18  ;;  %3171 = vmatpush.bf16.msrb.mxu0 %v9059_v19  ;;  %v1004_v18 = vld [vmem:[%s12272_s3 + $0x8] sm:$0x1]  ;;  %v8948_v19 = vld [vmem:[%s12271_s2 + $0x78] sm:$0xff] }
  0x2a   :  { %2064 = vmatpush.bf16.msrb.mxu2 %v8978_v20  ;;  %v8956_v20 = vld [vmem:[%s12271_s2 + $0xc0] sm:$0xff] }
  0x2b   :  { %2618 = vmatpush.bf16.msrb.mxu3 %v9018_v21  ;;  %v8964_v21 = vld [vmem:[%s12271_s2 + $0x100] sm:$0xff] }
  0x2c   :  { %835 = vmatpush.bf16.msrb.mxu1 %v8930_v22  ;;  %3172 = vmatpush.bf16.msrb.mxu0 %v9058_v23  ;;  %v8940_v22 = vld [vmem:[%s12271_s2 + $0x38] sm:$0xff]  ;;  %v1108_v23 = vor.u32 %v1107_v15, %v1104_v14  ;;  %v8894_v14 = vld [vmem:[%s12272_s3 + $0xc] sm:$0xff] }
  0x2e   :  { %2065 = vmatpush.bf16.msrb.mxu2 %v8977_v28  ;;  %v1109_v28 = vrot.slane %v1108_v23, 4 }
  0x2f   :  { %2619 = vmatpush.bf16.msrb.mxu3 %v9017_v29 }
  0x30   :  { %836 = vmatpush.bf16.msrb.mxu1 %v8929_v30  ;;  %3173 = vmatpush.bf16.msrb.mxu0 %v9057_v31  ;;  %v9100_v31 = vld [vmem:[%s12272_s3 + $0x18c] sm:$0xff] }
  0x31   :  { %477 = vmatmul.bf16.gmra.mxu1 %v8942_v24  ;;  %517 = vmatmul.bf16.gmra.mxu2 %v8950_v25  ;;  %v1118_v24 = vor.u32 %v1117_v17, %v1113_v16  ;;  %v1121_v25 = vshll.u32 %v1004_v18, 16  ;;  %v1169_v18 = vshll.u32 %v1010_v11, 16 }
  0x32   :  { %557 = vmatmul.bf16.gmra.mxu3 %v8958_v26  ;;  %2066 = vmatpush.bf16.msrb.mxu2 %v8976_v36  ;;  %v1005_v26 = vld [vmem:[%s12272_s3 + $0xc] sm:$0xf]  ;;  %v1114_v36 = vsel %vm9654_vm2, %v1109_v28, %v1113_v16 }
  0x33   :  { %437 = vmatmul.bf16.gmra.mxu0 %v8934_v27  ;;  %2620 = vmatpush.bf16.msrb.mxu3 %v9016_v37  ;;  %v1006_v27 = vld [vmem:[%s12272_s3 + $0x10] sm:$0xf]  ;;  %v1119_v29 = vrot.slane %v1118_v24, 4  ;;  %v1123_v30 = vrot.slane %v1121_v25, 5  ;;  %v1171_v25 = vrot.slane %v1169_v18, 5 }
  0x34   :  { %837 = vmatpush.bf16.msrb.mxu1 %v8928_v38  ;;  %3174 = vmatpush.bf16.msrb.mxu0 %v9056_v39 }
  0x35   :  { %v1124_v37 = vsel %vm9654_vm2, %v1119_v29, %v1123_v30 }
  0x36   :  { %2067 = vmatpush.bf16.msrb.mxu2 %v8975_v44  ;;  %v1007_v44 = vld [vmem:[%s12272_s3 + $0x14] sm:$0x1] }
  0x37   :  { %2621 = vmatpush.bf16.msrb.mxu3 %v9015_v45 }
  0x38   :  { %838 = vmatpush.bf16.msrb.mxu1 %v8927_v46  ;;  %3175 = vmatpush.bf16.msrb.mxu0 %v9055_v47  ;;  %v1145_v47 = vshll.u32 %v1007_v44, 16 }
  0x3a   :  { %2068 = vmatpush.bf16.msrb.mxu2 %v8974_v52  ;;  %v9021_v52 = vld [vmem:[%s12274_s0] sm:$0xff] }
  0x3b   :  { %2622 = vmatpush.bf16.msrb.mxu3 %v9014_v53 }
  0x3c   :  { %839 = vmatpush.bf16.msrb.mxu1 %v8926_v54  ;;  %3176 = vmatpush.bf16.msrb.mxu0 %v9054_v55 }
  0x3e   :  { %2069 = vmatpush.bf16.msrb.mxu2 %v8973_v60 }
  0x3f   :  { %2623 = vmatpush.bf16.msrb.mxu3 %v9013_v61 }
  0x40   :  { %840 = vmatpush.bf16.msrb.mxu1 %v8925_v62  ;;  %3177 = vmatpush.bf16.msrb.mxu0 %v9053_v63 }
  0x41   :  { %482 = vmatmul.bf16.gmra.mxu1 %v8943_v32  ;;  %522 = vmatmul.bf16.gmra.mxu2 %v8951_v33  ;;  %v1126_v32 = vshrl.u32 %v1005_v26, 16  ;;  %v1129_v33 = vshll.u32 %v1005_v26, 16  ;;  %v1011_v26 = vld [vmem:[%s12272_s3 + $0x24] sm:$0xf] }
  0x42   :  { %562 = vmatmul.bf16.gmra.mxu3 %v8959_v34  ;;  %5015 = vmatpush.bf16.msra.mxu2 %v9108_v4  ;;  %v1135_v34 = vshll.u32 %v1006_v27, 16 }
  0x43   :  { %442 = vmatmul.bf16.gmra.mxu0 %v8935_v35  ;;  %5570 = vmatpush.bf16.msra.mxu3 %v9148_v5  ;;  %v1139_v35 = vshrl.u32 %v1006_v27, 16  ;;  %v1128_v38 = vrot.slane %v1126_v32, 4  ;;  %v1131_v39 = vrot.slane %v1129_v33, 5  ;;  %v1012_v27 = vld [vmem:[%s12272_s3 + $0x28] sm:$0xf] }
  0x44   :  { %4460 = vmatpush.bf16.msra.mxu1 %v9068_v8  ;;  %6860 = vmatpush.bf16.msra.mxu0 %v9156_v13 }
  0x45   :  { %v1132_v45 = vor.u32 %v1131_v39, %v1128_v38 }
  0x47   :  { %v1133_v54 = vrot.slane %v1132_v45, 4  ;;  %v1013_v45 = vld [vmem:[%s12272_s3 + $0x2c] sm:$0x1] }
  0x51   :  { %487 = vmatmul.bf16.gmra.mxu1 %v8944_v40  ;;  %527 = vmatmul.bf16.gmra.mxu2 %v8952_v41  ;;  %v1137_v40 = vrot.slane %v1135_v34, 5  ;;  %v1141_v41 = vrot.slane %v1139_v35, 4  ;;  %v1174_v34 = vshrl.u32 %v1011_v26, 16  ;;  %v1177_v35 = vshll.u32 %v1011_v26, 16 }
  0x52   :  { %567 = vmatmul.bf16.gmra.mxu3 %v8960_v42  ;;  %v1886_v42 = vunpack.c.l.b16 %v1114_v36  ;;  %v1183_v36 = vshll.u32 %v1012_v27, 16 }
  0x53   :  { %447 = vmatmul.bf16.gmra.mxu0 %v8936_v43  ;;  %v1887_v43 = vunpack.c.l.b16 %v1124_v37  ;;  %v1142_v46 = vor.u32 %v1141_v41, %v1137_v40  ;;  %v1138_v60 = vsel %vm9654_vm2, %v1133_v54, %v1137_v40  ;;  %v1187_v37 = vshrl.u32 %v1012_v27, 16  ;;  %v9023_v54 = vld [vmem:[%s12274_s0 + $0x10] sm:$0xff] }
  0x54   :  { %v1888_v5 = vunpack.c.l.b16 %v1138_v60  ;;  %v1176_v41 = vrot.slane %v1174_v34, 4  ;;  %v1014_v60 = vld [vmem:[%s12272_s3 + $0x30] sm:$0xf] }
  0x55   :  { %v1143_v55 = vrot.slane %v1142_v46, 4  ;;  %v1189_v44 = vrot.slane %v1187_v37, 4 }
  0x61   :  { %492 = vmatmul.bf16.gmra.mxu1 %v8945_v48  ;;  %532 = vmatmul.bf16.gmra.mxu2 %v8953_v49  ;;  %v8893_v48 = vld [vmem:[%s12272_s3] sm:$0xff]  ;;  %v1950_v49 = vpack.c.b16 %v1887_v43, %v1886_v42  ;;  %v1179_v42 = vrot.slane %v1177_v35, 5  ;;  %v1185_v43 = vrot.slane %v1183_v36, 5 }
  0x62   :  { %572 = vmatmul.bf16.gmra.mxu3 %v8961_v50 }
  0x63   :  { %452 = vmatmul.bf16.gmra.mxu0 %v8937_v51  ;;  %v8981_v51 = vld [vmem:[%s12273_s1] sm:$0xff] }
  0x71   :  { %497 = vmatmul.bf16.gmra.mxu1 %v8946_v56  ;;  %537 = vmatmul.bf16.gmra.mxu2 %v8954_v57  ;;  %v1147_v56 = vrot.slane %v1145_v47, 5  ;;  %v1008_v57 = vld [vmem:[%s12272_s3 + $0x18] sm:$0xf] }
  0x72   :  { %577 = vmatmul.bf16.gmra.mxu3 %v8962_v58  ;;  %v1009_v58 = vld [vmem:[%s12272_s3 + $0x1c] sm:$0xf]  ;;  %v1150_v63 = vshrl.u32 %v1008_v57, 16 }
  0x73   :  { %457 = vmatmul.bf16.gmra.mxu0 %v8938_v59  ;;  %v1148_v61 = vsel %vm9654_vm2, %v1143_v55, %v1147_v56  ;;  %v1180_v55 = vor.u32 %v1179_v42, %v1176_v41  ;;  %v1190_v56 = vor.u32 %v1189_v44, %v1185_v43  ;;  %v8984_v42 = vld [vmem:[%s12273_s1 + $0x24] sm:$0xff] }
  0x74   :  { %v1889_v6 = vunpack.c.l.b16 %v1148_v61  ;;  %v1152_v7 = vrot.slane %v1150_v63, 4  ;;  %v1015_v61 = vld [vmem:[%s12272_s3 + $0x34] sm:$0xf] }
  0x75   :  { %v1181_v63 = vrot.slane %v1180_v55, 4 }
  0x76   :  { %v1951_v15 = vpack.c.b16 %v1889_v6, %v1888_v5  ;;  %v9147_v5 = vld [vmem:[%s12270_s4 + $0x1f0] sm:$0xff] }
  0x77   :  { %5571 = vmatpush.bf16.msra.mxu3 %v9147_v5 }
  0x81   :  { %502 = vmatmul.bf16.gmra.mxu1 %v8947_v0  ;;  %542 = vmatmul.bf16.gmra.mxu2 %v8955_v1  ;;  %v1153_v0 = vshll.u32 %v1008_v57, 16  ;;  %v1159_v1 = vshll.u32 %v1009_v58, 16  ;;  %v1193_v57 = vshll.u32 %v1013_v45, 16 }
  0x82   :  { %582 = vmatmul.bf16.gmra.mxu3 %v8963_v2  ;;  %v1163_v2 = vshrl.u32 %v1009_v58, 16 }
  0x83   :  { %462 = vmatmul.bf16.gmra.mxu0 %v8939_v3  ;;  %v1155_v8 = vrot.slane %v1153_v0, 5  ;;  %v1161_v9 = vrot.slane %v1159_v1, 5  ;;  %v1191_v0 = vrot.slane %v1190_v56, 4  ;;  %v1195_v1 = vrot.slane %v1193_v57, 5 }
  0x84   :  { %v1165_v10 = vrot.slane %v1163_v2, 4  ;;  %v9107_v2 = vld [vmem:[%s12270_s4 + $0x1b0] sm:$0xff] }
  0x85   :  { %v1156_v16 = vor.u32 %v1155_v8, %v1152_v7  ;;  %v1198_v7 = vshrl.u32 %v1014_v60, 16  ;;  %v1201_v8 = vshll.u32 %v1014_v60, 16  ;;  %5016 = vmatpush.bf16.msra.mxu2 %v9107_v2 }
  0x86   :  { %v1166_v17 = vor.u32 %v1165_v10, %v1161_v9  ;;  %v1211_v10 = vshrl.u32 %v1015_v61, 16 }
  0x87   :  { %v1157_v23 = vrot.slane %v1156_v16, 4  ;;  %v1186_v16 = vsel %vm9654_vm2, %v1181_v63, %v1185_v43  ;;  %v9024_v43 = vld [vmem:[%s12274_s0 + $0x18] sm:$0xff] }
  0x88   :  { %v1167_v24 = vrot.slane %v1166_v17, 4  ;;  %v1196_v17 = vsel %vm9654_vm2, %v1191_v0, %v1195_v1  ;;  %v1892_v26 = vunpack.c.l.b16 %v1186_v16 }
  0x89   :  { %v1162_v30 = vsel %vm9654_vm2, %v1157_v23, %v1161_v9  ;;  %v1207_v9 = vshll.u32 %v1015_v61, 16  ;;  %v1203_v23 = vrot.slane %v1201_v8, 5  ;;  %v1893_v27 = vunpack.c.l.b16 %v1196_v17  ;;  %v1019_v17 = vld [vmem:[%s12272_s3 + $0x44] sm:$0x1] }
  0x8a   :  { %v1172_v32 = vsel %vm9654_vm2, %v1167_v24, %v1171_v25  ;;  %v1890_v39 = vunpack.c.l.b16 %v1162_v30  ;;  %v1213_v25 = vrot.slane %v1211_v10, 4  ;;  %v1016_v30 = vld [vmem:[%s12272_s3 + $0x38] sm:$0x1] }
  0x8b   :  { %v1891_v40 = vunpack.c.l.b16 %v1172_v32  ;;  %v1209_v24 = vrot.slane %v1207_v9, 5  ;;  %v1217_v36 = vshll.u32 %v1016_v30, 16 }
  0x8d   :  { %v1214_v35 = vor.u32 %v1213_v25, %v1209_v24 }
  0x91   :  { %507 = vmatmul.bf16.gmra.mxu1 %v8948_v19  ;;  %547 = vmatmul.bf16.gmra.mxu2 %v8956_v20  ;;  %v8982_v20 = vld [vmem:[%s12273_s1 + $0xc] sm:$0xff] }
  0x92   :  { %587 = vmatmul.bf16.gmra.mxu3 %v8964_v21  ;;  %v9022_v21 = vld [vmem:[%s12274_s0 + $0x8] sm:$0xff] }
  0x93   :  { %467 = vmatmul.bf16.gmra.mxu0 %v8940_v22 }
  0x9e   :  { %v9668_v50 = vpop.f32.mrf.mxu1 }
  0xa0   :  { %v9676_v53 = vpop.f32.mrf.mxu0 }
  0xa1   :  { %841 = vmatmul.bf16.vlgmr.msrb.gmra.mxu1 %v8893_v48  ;;  %2070 = vmatmul.bf16.vlgmr.msrb.gmra.mxu2 %v1950_v49  ;;  %v8895_v48 = vld [vmem:[%s12272_s3 + $0x18] sm:$0xff]  ;;  %v1952_v49 = vpack.c.b16 %v1891_v40, %v1890_v39  ;;  %v8896_v39 = vld [vmem:[%s12272_s3 + $0x24] sm:$0xff]  ;;  %v1953_v40 = vpack.c.b16 %v1893_v27, %v1892_v26  ;;  %v1241_v27 = vshll.u32 %v1019_v17, 16 }
  0xa2   :  { %2624 = vmatmul.bf16.vlgmr.msrb.gmra.mxu3 %v8981_v51 }
  0xa3   :  { %3178 = vmatmul.bf16.vlgmr.msrb.gmra.mxu0 %v9021_v52  ;;  %v8983_v52 = vld [vmem:[%s12273_s1 + $0x18] sm:$0xff] }
  0xa4   :  { %v9684_v59 = vpop.f32.mrf.mxu2 }
  0xa5   :  { %v9690_v62 = vpop.f32.mrf.mxu3 }
  0xa6   :  { %12279 = vst [vmem:[#allocation2_spill] sm:$0xff] %v9690_v62  ;;  %v9692_v3 = vpop.f32.mrf.mxu1 }
  0xa8   :  { %v9694_v4 = vpop.f32.mrf.mxu0 }
  0xac   :  { %v9699_v12 = vpop.f32.mrf.mxu2 }
  0xad   :  { %v9701_v13 = vpop.f32.mrf.mxu3 }
  0xae   :  { %12280 = vst [vmem:[#allocation3_spill] sm:$0xff] %v9701_v13  ;;  %v9706_v19 = vpop.f32.mrf.mxu1 }
  0xb0   :  { %v9714_v22 = vpop.f32.mrf.mxu0 }
  0xb1   :  { %846 = vmatmul.bf16.gmra.mxu1 %v8894_v14  ;;  %2075 = vmatmul.bf16.gmra.mxu2 %v1951_v15  ;;  %v9067_v14 = vld [vmem:[%s12270_s4 + $0x170] sm:$0xff] }
  0xb2   :  { %2629 = vmatmul.bf16.gmra.mxu3 %v8982_v20  ;;  %4461 = vmatpush.bf16.msra.mxu1 %v9067_v14  ;;  %v9155_v20 = vld [vmem:[%s12270_s4 + $0x230] sm:$0xff] }
  0xb3   :  { %3183 = vmatmul.bf16.gmra.mxu0 %v9022_v21  ;;  %v1200_v21 = vrot.slane %v1198_v7, 4 }
  0xb4   :  { %v9722_v28 = vpop.f32.mrf.mxu2  ;;  %6861 = vmatpush.bf16.msra.mxu0 %v9155_v20 }
  0xb5   :  { %v9724_v29 = vpop.f32.mrf.mxu3  ;;  %v1204_v34 = vor.u32 %v1203_v23, %v1200_v21  ;;  %v8897_v23 = vld [vmem:[%s12272_s3 + $0x30] sm:$0xff] }
  0xb6   :  { %12281 = vst [vmem:[#allocation4_spill] sm:$0xff] %v9724_v29  ;;  %v9730_v33 = vpop.f32.mrf.mxu1 }
  0xb7   :  { %v1205_v45 = vrot.slane %v1204_v34, 4  ;;  %v8985_v34 = vld [vmem:[%s12273_s1 + $0x30] sm:$0xff] }
  0xb8   :  { %v9732_v38 = vpop.f32.mrf.mxu0 }
  0xb9   :  { %v1210_v56 = vsel %vm9654_vm2, %v1205_v45, %v1209_v24  ;;  %v1021_v45 = vld [vmem:[%s12272_s3 + $0x4c] sm:$0xf] }
  0xba   :  { %v1894_v7 = vunpack.c.l.b16 %v1210_v56 }
  0xbc   :  { %v9737_v46 = vpop.f32.mrf.mxu2 }
  0xbd   :  { %v9739_v47 = vpop.f32.mrf.mxu3 }
  0xbe   :  { %12282 = vst [vmem:[#allocation5_spill] sm:$0xff] %v9739_v47  ;;  %v9744_v51 = vpop.f32.mrf.mxu1 }
  0xc0   :  { %v9752_v58 = vpop.f32.mrf.mxu0 }
  0xc1   :  { %851 = vmatmul.bf16.gmra.mxu1 %v8895_v48  ;;  %2080 = vmatmul.bf16.gmra.mxu2 %v1952_v49  ;;  %v1215_v48 = vrot.slane %v1214_v35, 4  ;;  %v1219_v49 = vrot.slane %v1217_v36, 5  ;;  %v9025_v35 = vld [vmem:[%s12274_s0 + $0x20] sm:$0xff] }
  0xc2   :  { %2634 = vmatmul.bf16.gmra.mxu3 %v8983_v52  ;;  %v1017_v52 = vld [vmem:[%s12272_s3 + $0x3c] sm:$0xf] }
  0xc3   :  { %3188 = vmatmul.bf16.gmra.mxu0 %v9023_v54  ;;  %v1018_v54 = vld [vmem:[%s12272_s3 + $0x40] sm:$0xf]  ;;  %v1220_v57 = vsel %vm9654_vm2, %v1215_v48, %v1219_v49  ;;  %v1222_v61 = vshrl.u32 %v1017_v52, 16  ;;  %v1225_v63 = vshll.u32 %v1017_v52, 16 }
  0xc4   :  { %v9766_v6 = vpop.f32.mrf.mxu2  ;;  %v1231_v0 = vshll.u32 %v1018_v54, 16  ;;  %v1235_v1 = vshrl.u32 %v1018_v54, 16  ;;  %v1895_v8 = vunpack.c.l.b16 %v1220_v57 }
  0xc5   :  { %v9768_v11 = vpop.f32.mrf.mxu3  ;;  %v1224_v9 = vrot.slane %v1222_v61, 4  ;;  %v1227_v10 = vrot.slane %v1225_v63, 5  ;;  %v1255_v63 = vshll.u32 %v1021_v45, 16 }
  0xc6   :  { %12283 = vst [vmem:[#allocation6_spill] sm:$0xff] %v9768_v11  ;;  %v9773_v15 = vpop.f32.mrf.mxu1  ;;  %v1233_v14 = vrot.slane %v1231_v0, 5  ;;  %v1237_v16 = vrot.slane %v1235_v1, 4  ;;  %v1954_v24 = vpack.c.b16 %v1895_v8, %v1894_v7  ;;  %v1259_v0 = vshrl.u32 %v1021_v45, 16  ;;  %v1023_v45 = vld [vmem:[%s12272_s3 + $0x54] sm:$0xf] }
  0xc7   :  { %v1228_v25 = vor.u32 %v1227_v10, %v1224_v9  ;;  %v8900_v11 = vld [vmem:[%s12272_s3 + $0x54] sm:$0xff] }
  0xc8   :  { %v9779_v18 = vpop.f32.mrf.mxu0  ;;  %v1238_v26 = vor.u32 %v1237_v16, %v1233_v14  ;;  %v1257_v16 = vrot.slane %v1255_v63, 5  ;;  %v1261_v17 = vrot.slane %v1259_v0, 4  ;;  %v1270_v0 = vshrl.u32 %v1023_v45, 16 }
  0xcc   :  { %v9787_v32 = vpop.f32.mrf.mxu2 }
  0xcd   :  { %v9789_v37 = vpop.f32.mrf.mxu3 }
  0xce   :  { %12284 = vst [vmem:[#allocation7_spill] sm:$0xff] %v9789_v37  ;;  %v9794_v41 = vpop.f32.mrf.mxu1 }
  0xd0   :  { %v9802_v44 = vpop.f32.mrf.mxu0 }
  0xd1   :  { %856 = vmatmul.bf16.gmra.mxu1 %v8896_v39  ;;  %2085 = vmatmul.bf16.gmra.mxu2 %v1953_v40  ;;  %v1229_v39 = vrot.slane %v1228_v25, 4  ;;  %v1239_v40 = vrot.slane %v1238_v26, 4  ;;  %v8898_v25 = vld [vmem:[%s12272_s3 + $0x3c] sm:$0xff] }
  0xd2   :  { %2639 = vmatmul.bf16.gmra.mxu3 %v8984_v42  ;;  %v1243_v42 = vrot.slane %v1241_v27, 5 }
  0xd3   :  { %3193 = vmatmul.bf16.gmra.mxu0 %v9024_v43  ;;  %v1020_v43 = vld [vmem:[%s12272_s3 + $0x48] sm:$0xf]  ;;  %v1234_v52 = vsel %vm9654_vm2, %v1229_v39, %v1233_v14  ;;  %v1022_v14 = vld [vmem:[%s12272_s3 + $0x50] sm:$0x1] }
  0xd4   :  { %v9810_v55 = vpop.f32.mrf.mxu2  ;;  %v1244_v54 = vsel %vm9654_vm2, %v1239_v40, %v1243_v42  ;;  %v1246_v57 = vshrl.u32 %v1020_v43, 16  ;;  %v1249_v61 = vshll.u32 %v1020_v43, 16  ;;  %v1896_v7 = vunpack.c.l.b16 %v1234_v52  ;;  %v1024_v52 = vld [vmem:[%s12272_s3 + $0x58] sm:$0xf] }
  0xd5   :  { %12285 = vst [vmem:[#allocation8_spill] sm:$0xff] %v9810_v55  ;;  %v9816_v60 = vpop.f32.mrf.mxu3  ;;  %v1897_v8 = vunpack.c.l.b16 %v1244_v54  ;;  %v1262_v40 = vor.u32 %v1261_v17, %v1257_v16  ;;  %v1265_v42 = vshll.u32 %v1022_v14, 16 }
  0xd6   :  { %12286 = vst [vmem:[#allocation9_spill] sm:$0xff] %v9816_v60  ;;  %v9818_v2 = vpop.f32.mrf.mxu1  ;;  %v1248_v9 = vrot.slane %v1246_v57, 4  ;;  %v1251_v10 = vrot.slane %v1249_v61, 5  ;;  %v9066_v60 = vld [vmem:[%s12270_s4 + $0x168] sm:$0xff] }
  0xd7   :  { %v1955_v26 = vpack.c.b16 %v1897_v8, %v1896_v7  ;;  %v1263_v57 = vrot.slane %v1262_v40, 4  ;;  %v1267_v61 = vrot.slane %v1265_v42, 5  ;;  %v1273_v7 = vshll.u32 %v1023_v45, 16  ;;  %4462 = vmatpush.bf16.msra.mxu1 %v9066_v60  ;;  %v8988_v60 = vld [vmem:[%s12273_s1 + $0x54] sm:$0xff] }
  0xd8   :  { %v9820_v5 = vpop.f32.mrf.mxu0  ;;  %v1252_v39 = vor.u32 %v1251_v10, %v1248_v9  ;;  %v1279_v8 = vshll.u32 %v1024_v52, 16  ;;  %v1283_v9 = vshrl.u32 %v1024_v52, 16  ;;  %v1025_v52 = vld [vmem:[%s12272_s3 + $0x5c] sm:$0x1] }
  0xda   :  { %v1253_v54 = vrot.slane %v1252_v39, 4  ;;  %v1281_v39 = vrot.slane %v1279_v8, 5  ;;  %v1285_v40 = vrot.slane %v1283_v9, 4  ;;  %v9027_v8 = vld [vmem:[%s12274_s0 + $0x30] sm:$0xff] }
  0xdc   :  { %v9825_v20 = vpop.f32.mrf.mxu2  ;;  %v1258_v14 = vsel %vm9654_vm2, %v1253_v54, %v1257_v16  ;;  %v1289_v16 = vshll.u32 %v1025_v52, 16 }
  0xdd   :  { %12287 = vst [vmem:[#allocation10_spill] sm:$0xff] %v9825_v20  ;;  %v9827_v21 = vpop.f32.mrf.mxu3  ;;  %v1898_v42 = vunpack.c.l.b16 %v1258_v14 }
  0xde   :  { %12288 = vst [vmem:[#allocation11_spill] sm:$0xff] %v9827_v21  ;;  %v9832_v30 = vpop.f32.mrf.mxu1 }
  0xe0   :  { %v9840_v36 = vpop.f32.mrf.mxu0 }
  0xe1   :  { %861 = vmatmul.bf16.gmra.mxu1 %v8897_v23  ;;  %2090 = vmatmul.bf16.gmra.mxu2 %v1954_v24 }
  0xe2   :  { %2644 = vmatmul.bf16.gmra.mxu3 %v8985_v34  ;;  %v8986_v34 = vld [vmem:[%s12273_s1 + $0x3c] sm:$0xff] }
  0xe3   :  { %3198 = vmatmul.bf16.gmra.mxu0 %v9025_v35  ;;  %v9026_v35 = vld [vmem:[%s12274_s0 + $0x28] sm:$0xff] }
  0xe4   :  { %v9848_v48 = vpop.f32.mrf.mxu2 }
  0xe5   :  { %12289 = vst [vmem:[#allocation12_spill] sm:$0xff] %v9848_v48  ;;  %v9850_v49 = vpop.f32.mrf.mxu3 }
  0xe6   :  { %12290 = vst [vmem:[#allocation13_spill] sm:$0xff] %v9850_v49  ;;  %v9856_v56 = vpop.f32.mrf.mxu1  ;;  %v1286_v49 = vor.u32 %v1285_v40, %v1281_v39  ;;  %v1027_v40 = vld [vmem:[%s12272_s3 + $0x64] sm:$0xf] }
  0xe8   :  { %v9858_v1 = vpop.f32.mrf.mxu0 }
  0xec   :  { %v9863_v23 = vpop.f32.mrf.mxu2 }
  0xed   :  { %12291 = vst [vmem:[#allocation14_spill] sm:$0xff] %v9863_v23  ;;  %v9865_v24 = vpop.f32.mrf.mxu3 }
  0xee   :  { %12292 = vst [vmem:[#allocation15_spill] sm:$0xff] %v9865_v24  ;;  %v9870_v27 = vpop.f32.mrf.mxu1 }
  0xf0   :  { %v9878_v43 = vpop.f32.mrf.mxu0 }
  0xf1   :  { %866 = vmatmul.bf16.gmra.mxu1 %v8898_v25  ;;  %2095 = vmatmul.bf16.gmra.mxu2 %v1955_v26  ;;  %v1268_v25 = vsel %vm9654_vm2, %v1263_v57, %v1267_v61  ;;  %v8899_v57 = vld [vmem:[%s12272_s3 + $0x48] sm:$0xff] }
  0xf2   :  { %2649 = vmatmul.bf16.gmra.mxu3 %v8986_v34  ;;  %v1272_v34 = vrot.slane %v1270_v0, 4  ;;  %v1899_v45 = vunpack.c.l.b16 %v1268_v25  ;;  %v1287_v25 = vrot.slane %v1286_v49, 4  ;;  %v9146_v49 = vld [vmem:[%s12270_s4 + $0x1e8] sm:$0xff] }
  0xf3   :  { %3203 = vmatmul.bf16.gmra.mxu0 %v9026_v35  ;;  %v1275_v35 = vrot.slane %v1273_v7, 5  ;;  %v8987_v7 = vld [vmem:[%s12273_s1 + $0x48] sm:$0xff]  ;;  %5572 = vmatpush.bf16.msra.mxu3 %v9146_v49 }
  0xf4   :  { %v9886_v63 = vpop.f32.mrf.mxu2  ;;  %v1956_v61 = vpack.c.b16 %v1899_v45, %v1898_v42  ;;  %v9106_v42 = vld [vmem:[%s12270_s4 + $0x1a8] sm:$0xff] }
  0xf5   :  { %12293 = vst [vmem:[#allocation16_spill] sm:$0xff] %v9886_v63  ;;  %v9888_v10 = vpop.f32.mrf.mxu3  ;;  %v1276_v24 = vor.u32 %v1275_v35, %v1272_v34  ;;  %v1291_v34 = vrot.slane %v1289_v16, 5  ;;  %v1026_v35 = vld [vmem:[%s12272_s3 + $0x60] sm:$0xf]  ;;  %5017 = vmatpush.bf16.msra.mxu2 %v9106_v42 }
  0xf6   :  { %12294 = vst [vmem:[#allocation17_spill] sm:$0xff] %v9888_v10  ;;  %v9890_v17 = vpop.f32.mrf.mxu1 }
  0xf7   :  { %v1277_v14 = vrot.slane %v1276_v24, 4  ;;  %v1292_v52 = vsel %vm9654_vm2, %v1287_v25, %v1291_v34 }
  0xf8   :  { %v9896_v26 = vpop.f32.mrf.mxu0  ;;  %v1901_v25 = vunpack.c.l.b16 %v1292_v52 }
  0xf9   :  { %v1282_v45 = vsel %vm9654_vm2, %v1277_v14, %v1281_v39  ;;  %v9154_v39 = vld [vmem:[%s12270_s4 + $0x228] sm:$0xff] }
  0xfa   :  { %v1900_v14 = vunpack.c.l.b16 %v1282_v45  ;;  %6862 = vmatpush.bf16.msra.mxu0 %v9154_v39 }
  0xfc   :  { %v9901_v10 = vpop.f32.mrf.mxu2  ;;  %v1957_v45 = vpack.c.b16 %v1901_v25, %v1900_v14  ;;  %v1029_v25 = vld [vmem:[%s12272_s3 + $0x6c] sm:$0xf] }
  0xfd   :  { %12295 = vst [vmem:[#allocation18_spill] sm:$0xff] %v9901_v10  ;;  %v9903_v54 = vpop.f32.mrf.mxu3 }
  0xfe   :  { %12296 = vst [vmem:[#allocation19_spill] sm:$0xff] %v9903_v54  ;;  %v9908_v0 = vpop.f32.mrf.mxu1 }
 0x100   :  { %v9916_v9 = vpop.f32.mrf.mxu0 }
 0x101   :  { %871 = vmatmul.bf16.gmra.mxu1 %v8899_v57  ;;  %2100 = vmatmul.bf16.gmra.mxu2 %v1956_v61  ;;  %v1294_v57 = vshrl.u32 %v1026_v35, 16  ;;  %v1297_v61 = vshll.u32 %v1026_v35, 16 }
 0x102   :  { %2654 = vmatmul.bf16.gmra.mxu3 %v8987_v7  ;;  %v1303_v7 = vshll.u32 %v1027_v40, 16 }
 0x103   :  { %3208 = vmatmul.bf16.gmra.mxu0 %v9027_v8  ;;  %v1307_v8 = vshrl.u32 %v1027_v40, 16  ;;  %v1296_v34 = vrot.slane %v1294_v57, 4  ;;  %v1299_v42 = vrot.slane %v1297_v61, 5  ;;  %v1028_v40 = vld [vmem:[%s12272_s3 + $0x68] sm:$0x1] }
 0x104   :  { %v9930_v24 = vpop.f32.mrf.mxu2  ;;  %v1305_v49 = vrot.slane %v1303_v7, 5  ;;  %v1313_v61 = vshll.u32 %v1028_v40, 16 }
 0x105   :  { %12297 = vst [vmem:[#allocation20_spill] sm:$0xff] %v9930_v24  ;;  %v9936_v16 = vpop.f32.mrf.mxu3  ;;  %v1309_v35 = vrot.slane %v1307_v8, 4  ;;  %v1300_v52 = vor.u32 %v1299_v42, %v1296_v34  ;;  %v9028_v8 = vld [vmem:[%s12274_s0 + $0x38] sm:$0xff]  ;;  %v1030_v34 = vld [vmem:[%s12272_s3 + $0x70] sm:$0xf] }
 0x106   :  { %12298 = vst [vmem:[#allocation21_spill] sm:$0xff] %v9936_v16  ;;  %v9938_v54 = vpop.f32.mrf.mxu1  ;;  %v1315_v14 = vrot.slane %v1313_v61, 5  ;;  %v1327_v61 = vshll.u32 %v1030_v34, 16 }
 0x107   :  { %v1310_v57 = vor.u32 %v1309_v35, %v1305_v49 }
 0x108   :  { %v9940_v21 = vpop.f32.mrf.mxu0 }
 0x109   :  { %v1311_v47 = vrot.slane %v1310_v57, 4  ;;  %v1321_v57 = vshll.u32 %v1029_v25, 16 }
 0x10b   :  { %v1316_v40 = vsel %vm9654_vm2, %v1311_v47, %v1315_v14  ;;  %v8901_v14 = vld [vmem:[%s12272_s3 + $0x60] sm:$0xff] }
 0x10c   :  { %v9951_v16 = vpop.f32.mrf.mxu2  ;;  %v1903_v13 = vunpack.c.l.b16 %v1316_v40  ;;  %v9029_v40 = vld [vmem:[%s12274_s0 + $0x40] sm:$0xff] }
 0x10d   :  { %12299 = vst [vmem:[#allocation22_spill] sm:$0xff] %v9951_v16  ;;  %v9953_v37 = vpop.f32.mrf.mxu3  ;;  %v1329_v16 = vrot.slane %v1327_v61, 5 }
 0x10e   :  { %12300 = vst [vmem:[#allocation23_spill] sm:$0xff] %v9953_v37  ;;  %v9958_v7 = vpop.f32.mrf.mxu1  ;;  %v1301_v37 = vrot.slane %v1300_v52, 4  ;;  %v1318_v52 = vshrl.u32 %v1029_v25, 16 }
 0x110   :  { %v9966_v39 = vpop.f32.mrf.mxu0  ;;  %v1320_v62 = vrot.slane %v1318_v52, 4 }
 0x111   :  { %876 = vmatmul.bf16.gmra.mxu1 %v8900_v11  ;;  %2105 = vmatmul.bf16.gmra.mxu2 %v1957_v45  ;;  %v1306_v11 = vsel %vm9654_vm2, %v1301_v37, %v1305_v49  ;;  %v1031_v37 = vld [vmem:[%s12272_s3 + $0x74] sm:$0x1] }
 0x112   :  { %2659 = vmatmul.bf16.gmra.mxu3 %v8988_v60  ;;  %v1331_v60 = vshrl.u32 %v1030_v34, 16  ;;  %v1902_v29 = vunpack.c.l.b16 %v1306_v11  ;;  %v8989_v11 = vld [vmem:[%s12273_s1 + $0x60] sm:$0xff]  ;;  %v1337_v61 = vshll.u32 %v1031_v37, 16 }
 0x113   :  { %3213 = vmatmul.bf16.gmra.mxu0 %v9028_v8 }
 0x114   :  { %v9974_v42 = vpop.f32.mrf.mxu2  ;;  %v1958_v25 = vpack.c.b16 %v1903_v13, %v1902_v29  ;;  %v1033_v13 = vld [vmem:[%s12272_s3 + $0x7c] sm:$0xf]  ;;  %v1339_v24 = vrot.slane %v1337_v61, 5 }
 0x115   :  { %12301 = vst [vmem:[#allocation24_spill] sm:$0xff] %v9974_v42  ;;  %v9976_v35 = vpop.f32.mrf.mxu3  ;;  %v1323_v42 = vrot.slane %v1321_v57, 5 }
 0x116   :  { %12302 = vst [vmem:[#allocation25_spill] sm:$0xff] %v9976_v35  ;;  %v9982_v45 = vpop.f32.mrf.mxu1  ;;  %v1333_v35 = vrot.slane %v1331_v60, 4 }
 0x117   :  { %v1324_v52 = vor.u32 %v1323_v42, %v1320_v62 }
 0x118   :  { %v9984_v8 = vpop.f32.mrf.mxu0  ;;  %v1334_v57 = vor.u32 %v1333_v35, %v1329_v16 }
 0x119   :  { %v1325_v29 = vrot.slane %v1324_v52, 4 }
 0x11b   :  { %v1330_v48 = vsel %vm9654_vm2, %v1325_v29, %v1329_v16 }
 0x11c   :  { %v9989_v49 = vpop.f32.mrf.mxu2 }
 0x11d   :  { %12303 = vst [vmem:[#allocation26_spill] sm:$0xff] %v9989_v49  ;;  %v9991_v47 = vpop.f32.mrf.mxu3  ;;  %v1335_v49 = vrot.slane %v1334_v57, 4 }
 0x11e   :  { %12304 = vst [vmem:[#allocation27_spill] sm:$0xff] %v9991_v47  ;;  %v842_v34 = vpop.f32.mrf.mxu1  ;;  %v1032_v47 = vld [vmem:[%s12272_s3 + $0x78] sm:$0xf] }
 0x11f   :  { %v843_v62 = vadd.f32 %v842_v34, %v9676_v53  ;;  %v1342_v35 = vshrl.u32 %v1032_v47, 16  ;;  %v1345_v37 = vshll.u32 %v1032_v47, 16  ;;  %v1904_v34 = vunpack.c.l.b16 %v1330_v48  ;;  %v1034_v47 = vld [vmem:[%s12272_s3 + $0x80] sm:$0x1] }
 0x120   :  { %v3179_v60 = vpop.f32.mrf.mxu0 }
 0x121   :  { %881 = vmatmul.bf16.gmra.mxu1 %v8901_v14  ;;  %2110 = vmatmul.bf16.gmra.mxu2 %v1958_v25  ;;  %v1351_v14 = vshll.u32 %v1033_v13, 16  ;;  %v1355_v25 = vshrl.u32 %v1033_v13, 16  ;;  %v1344_v57 = vrot.slane %v1342_v35, 4  ;;  %v1347_v61 = vrot.slane %v1345_v37, 5  ;;  %v8990_v37 = vld [vmem:[%s12273_s1 + $0x6c] sm:$0xff] }
 0x122   :  { %2664 = vmatmul.bf16.gmra.mxu3 %v8989_v11  ;;  %v1340_v11 = vsel %vm9654_vm2, %v1335_v49, %v1339_v24  ;;  %v1361_v24 = vshll.u32 %v1034_v47, 16  ;;  %v8902_v49 = vld [vmem:[%s12272_s3 + $0x6c] sm:$0xff] }
 0x123   :  { %3218 = vmatmul.bf16.gmra.mxu0 %v9029_v40  ;;  %v1353_v20 = vrot.slane %v1351_v14, 5  ;;  %v1357_v53 = vrot.slane %v1355_v25, 4  ;;  %v1905_v55 = vunpack.c.l.b16 %v1340_v11  ;;  %v1348_v29 = vor.u32 %v1347_v61, %v1344_v57  ;;  %v1036_v57 = vld [vmem:[%s12272_s3 + $0x88] sm:$0xf] }
 0x124   :  { %v2071_v42 = vpop.f32.mrf.mxu2  ;;  %v1363_v11 = vrot.slane %v1361_v24, 5  ;;  %v1379_v24 = vshrl.u32 %v1036_v57, 16 }
 0x125   :  { %v2231_v10 = vadd.f32 %v2071_v42, %v843_v62  ;;  %v2625_v63 = vpop.f32.mrf.mxu3  ;;  %v1358_v42 = vor.u32 %v1357_v53, %v1353_v20  ;;  %v1959_v48 = vpack.c.b16 %v1905_v55, %v1904_v34  ;;  %v1349_v14 = vrot.slane %v1348_v29, 4  ;;  %v1035_v55 = vld [vmem:[%s12272_s3 + $0x84] sm:$0xf] }
 0x126   :  { %v844_v23 = vpop.f32.mrf.mxu1 }
 0x127   :  { %v2785_v40 = vadd.f32 %v2625_v63, %v2231_v10  ;;  %v845_v62 = vadd.f32 %v844_v23, %v9694_v4  ;;  %v9030_v4 = vld [vmem:[%s12274_s0 + $0x48] sm:$0xff]  ;;  %v1359_v25 = vrot.slane %v1358_v42, 4  ;;  %v1354_v34 = vsel %vm9654_vm2, %v1349_v14, %v1353_v20 }
 0x128   :  { %v3181_v52 = vpop.f32.mrf.mxu0  ;;  %v1375_v42 = vshll.u32 %v1036_v57, 16  ;;  %v1037_v20 = vld [vmem:[%s12272_s3 + $0x8c] sm:$0x1] }
 0x129   :  { %v10016_v13 = vadd.f32 %v3179_v60, %v2785_v40  ;;  %v1364_v47 = vsel %vm9654_vm2, %v1359_v25, %v1363_v11 }
 0x12c   :  { %v2073_v16 = vpop.f32.mrf.mxu2 }
 0x12d   :  { %v2232_v63 = vadd.f32 %v2073_v16, %v845_v62  ;;  %v2627_v10 = vpop.f32.mrf.mxu3  ;;  %v1366_v62 = vshrl.u32 %v1035_v55, 16 }
 0x12e   :  { %v847_v35 = vpop.f32.mrf.mxu1 }
 0x12f   :  { %v2786_v23 = vadd.f32 %v2627_v10, %v2232_v63  ;;  %v848_v61 = vadd.f32 %v847_v35, %v9714_v22  ;;  %v1377_v35 = vrot.slane %v1375_v42, 5 }
 0x130   :  { %v3184_v60 = vpop.f32.mrf.mxu0 }
 0x131   :  { %886 = vmatmul.bf16.gmra.mxu1 %v8902_v49  ;;  %2115 = vmatmul.bf16.gmra.mxu2 %v1959_v48  ;;  %v10031_v40 = vadd.f32 %v3181_v52, %v2786_v23  ;;  %v1369_v52 = vshll.u32 %v1035_v55, 16  ;;  %v1906_v48 = vunpack.c.l.b16 %v1354_v34  ;;  %v1381_v23 = vrot.slane %v1379_v24, 4 }
 0x132   :  { %2669 = vmatmul.bf16.gmra.mxu3 %v8990_v37  ;;  %v1907_v37 = vunpack.c.l.b16 %v1364_v47  ;;  %v1385_v47 = vshll.u32 %v1037_v20, 16 }
 0x133   :  { %12305 = vst [vmem:[#allocation28_spill] sm:$0xff] %v10031_v40  ;;  %3223 = vmatmul.bf16.gmra.mxu0 %v9030_v4  ;;  %v1368_v4 = vrot.slane %v1366_v62, 4  ;;  %v1371_v22 = vrot.slane %v1369_v52, 5  ;;  %v1382_v34 = vor.u32 %v1381_v23, %v1377_v35 }
 0x134   :  { %v2076_v53 = vpop.f32.mrf.mxu2  ;;  %v1960_v11 = vpack.c.b16 %v1907_v37, %v1906_v48  ;;  %v1387_v24 = vrot.slane %v1385_v47, 5  ;;  %v9145_v48 = vld [vmem:[%s12270_s4 + $0x1e0] sm:$0xff] }
 0x135   :  { %v2233_v16 = vadd.f32 %v2076_v53, %v848_v61  ;;  %v2630_v29 = vpop.f32.mrf.mxu3  ;;  %v8903_v61 = vld [vmem:[%s12272_s3 + $0x78] sm:$0xff]  ;;  %v1372_v53 = vor.u32 %v1371_v22, %v1368_v4  ;;  %v1383_v42 = vrot.slane %v1382_v34, 4  ;;  %v1038_v4 = vld [vmem:[%s12272_s3 + $0x90] sm:$0xf]  ;;  %5573 = vmatpush.bf16.msra.mxu3 %v9145_v48  ;;  %v9065_v47 = vld [vmem:[%s12270_s4 + $0x160] sm:$0xff] }
 0x136   :  { %v849_v63 = vpop.f32.mrf.mxu1  ;;  %4463 = vmatpush.bf16.msra.mxu1 %v9065_v47  ;;  %v1040_v48 = vld [vmem:[%s12272_s3 + $0x98] sm:$0x1] }
 0x137   :  { %v2787_v10 = vadd.f32 %v2630_v29, %v2233_v16  ;;  %v850_v14 = vadd.f32 %v849_v63, %v9732_v38  ;;  %v9031_v38 = vld [vmem:[%s12274_s0 + $0x50] sm:$0xff]  ;;  %v1373_v52 = vrot.slane %v1372_v53, 4 }
 0x138   :  { %v3186_v49 = vpop.f32.mrf.mxu0 }
 0x139   :  { %v10041_v40 = vadd.f32 %v3184_v60, %v2787_v10  ;;  %v8991_v60 = vld [vmem:[%s12273_s1 + $0x78] sm:$0xff]  ;;  %v9105_v10 = vld [vmem:[%s12270_s4 + $0x1a0] sm:$0xff] }
 0x13a   :  { %5018 = vmatpush.bf16.msra.mxu2 %v9105_v10 }
 0x13c   :  { %v2078_v25 = vpop.f32.mrf.mxu2 }
 0x13d   :  { %v2234_v55 = vadd.f32 %v2078_v25, %v850_v14  ;;  %v2632_v57 = vpop.f32.mrf.mxu3  ;;  %v1378_v14 = vsel %vm9654_vm2, %v1373_v52, %v1377_v35  ;;  %v1388_v25 = vsel %vm9654_vm2, %v1383_v42, %v1387_v24 }
 0x13e   :  { %v852_v62 = vpop.f32.mrf.mxu1  ;;  %v1909_v35 = vunpack.c.l.b16 %v1388_v25 }
 0x13f   :  { %v2788_v16 = vadd.f32 %v2632_v57, %v2234_v55  ;;  %v853_v37 = vadd.f32 %v852_v62, %v9752_v58  ;;  %v1393_v55 = vshll.u32 %v1038_v4, 16  ;;  %v9153_v62 = vld [vmem:[%s12270_s4 + $0x220] sm:$0xff] }
 0x140   :  { %v3189_v29 = vpop.f32.mrf.mxu0  ;;  %6863 = vmatpush.bf16.msra.mxu0 %v9153_v62 }
 0x141   :  { %891 = vmatmul.bf16.gmra.mxu1 %v8903_v61  ;;  %2120 = vmatmul.bf16.gmra.mxu2 %v1960_v11  ;;  %v10056_v63 = vadd.f32 %v3186_v49, %v2788_v16  ;;  %v1039_v49 = vld [vmem:[%s12272_s3 + $0x94] sm:$0xf]  ;;  %v1390_v11 = vshrl.u32 %v1038_v4, 16  ;;  %v1395_v52 = vrot.slane %v1393_v55, 5 }
 0x142   :  { %2674 = vmatmul.bf16.gmra.mxu3 %v8991_v60  ;;  %v1399_v57 = vshll.u32 %v1039_v49, 16  ;;  %v1403_v61 = vshrl.u32 %v1039_v49, 16  ;;  %v1908_v60 = vunpack.c.l.b16 %v1378_v14 }
 0x143   :  { %3228 = vmatmul.bf16.gmra.mxu0 %v9031_v38  ;;  %v1392_v16 = vrot.slane %v1390_v11, 4 }
 0x144   :  { %v2081_v22 = vpop.f32.mrf.mxu2  ;;  %v1401_v42 = vrot.slane %v1399_v57, 5  ;;  %v1405_v24 = vrot.slane %v1403_v61, 4  ;;  %v1041_v57 = vld [vmem:[%s12272_s3 + $0x9c] sm:$0xf]  ;;  %v1042_v61 = vld [vmem:[%s12272_s3 + $0xa0] sm:$0xf] }
 0x145   :  { %v2235_v23 = vadd.f32 %v2081_v22, %v853_v37  ;;  %v2635_v20 = vpop.f32.mrf.mxu3  ;;  %v8904_v22 = vld [vmem:[%s12272_s3 + $0x84] sm:$0xff]  ;;  %v1396_v14 = vor.u32 %v1395_v52, %v1392_v16  ;;  %v1414_v52 = vshrl.u32 %v1041_v57, 16 }
 0x146   :  { %v854_v58 = vpop.f32.mrf.mxu1  ;;  %v1406_v25 = vor.u32 %v1405_v24, %v1401_v42  ;;  %v1417_v24 = vshll.u32 %v1041_v57, 16 }
 0x147   :  { %v2789_v53 = vadd.f32 %v2635_v20, %v2235_v23  ;;  %v855_v10 = vadd.f32 %v854_v58, %v9779_v18  ;;  %v1961_v23 = vpack.c.b16 %v1909_v35, %v1908_v60  ;;  %v8992_v20 = vld [vmem:[%s12273_s1 + $0x84] sm:$0xff]  ;;  %v9032_v18 = vld [vmem:[%s12274_s0 + $0x58] sm:$0xff]  ;;  %v1409_v58 = vshll.u32 %v1040_v48, 16 }
 0x148   :  { %v3191_v34 = vpop.f32.mrf.mxu0  ;;  %v1397_v47 = vrot.slane %v1396_v14, 4  ;;  %v1407_v62 = vrot.slane %v1406_v25, 4  ;;  %v1427_v48 = vshrl.u32 %v1042_v61, 16  ;;  %v1419_v14 = vrot.slane %v1417_v24, 5 }
 0x149   :  { %v10081_v38 = vadd.f32 %v3189_v29, %v2789_v53  ;;  %v1411_v60 = vrot.slane %v1409_v58, 5 }
 0x14c   :  { %v2083_v37 = vpop.f32.mrf.mxu2 }
 0x14d   :  { %v2236_v4 = vadd.f32 %v2083_v37, %v855_v10  ;;  %v2637_v49 = vpop.f32.mrf.mxu3  ;;  %v1423_v10 = vshll.u32 %v1042_v61, 16 }
 0x14e   :  { %v857_v29 = vpop.f32.mrf.mxu1 }
 0x14f   :  { %v2790_v11 = vadd.f32 %v2637_v49, %v2236_v4  ;;  %v858_v35 = vadd.f32 %v857_v29, %v9802_v44  ;;  %v1425_v25 = vrot.slane %v1423_v10, 5  ;;  %v1429_v44 = vrot.slane %v1427_v48, 4  ;;  %v8993_v48 = vld [vmem:[%s12273_s1 + $0x90] sm:$0xff] }
 0x150   :  { %v3194_v55 = vpop.f32.mrf.mxu0 }
 0x151   :  { %896 = vmatmul.bf16.gmra.mxu1 %v8904_v22  ;;  %2125 = vmatmul.bf16.gmra.mxu2 %v1961_v23  ;;  %v10102_v53 = vadd.f32 %v3191_v34, %v2790_v11  ;;  %v1402_v22 = vsel %vm9654_vm2, %v1397_v47, %v1401_v42  ;;  %v1412_v34 = vsel %vm9654_vm2, %v1407_v62, %v1411_v60  ;;  %v1043_v11 = vld [vmem:[%s12272_s3 + $0xa4] sm:$0x1] }
 0x152   :  { %2679 = vmatmul.bf16.gmra.mxu3 %v8992_v20  ;;  %v1910_v29 = vunpack.c.l.b16 %v1402_v22  ;;  %v1911_v58 = vunpack.c.l.b16 %v1412_v34  ;;  %v1433_v62 = vshll.u32 %v1043_v11, 16  ;;  %v1044_v34 = vld [vmem:[%s12272_s3 + $0xa8] sm:$0xf] }
 0x153   :  { %3233 = vmatmul.bf16.gmra.mxu0 %v9032_v18  ;;  %v1416_v18 = vrot.slane %v1414_v52, 4  ;;  %v8905_v52 = vld [vmem:[%s12272_s3 + $0x90] sm:$0xff]  ;;  %v1438_v11 = vshrl.u32 %v1044_v34, 16 }
 0x154   :  { %v2086_v16 = vpop.f32.mrf.mxu2  ;;  %v1962_v24 = vpack.c.b16 %v1911_v58, %v1910_v29  ;;  %v1435_v22 = vrot.slane %v1433_v62, 5 }
 0x155   :  { %v2237_v37 = vadd.f32 %v2086_v16, %v858_v35  ;;  %v2640_v4 = vpop.f32.mrf.mxu3  ;;  %v1420_v47 = vor.u32 %v1419_v14, %v1416_v18  ;;  %v1430_v35 = vor.u32 %v1429_v44, %v1425_v25  ;;  %v1045_v18 = vld [vmem:[%s12272_s3 + $0xac] sm:$0xf] }
 0x156   :  { %v859_v49 = vpop.f32.mrf.mxu1 }
 0x157   :  { %v2791_v23 = vadd.f32 %v2640_v4, %v2237_v37  ;;  %v860_v61 = vadd.f32 %v859_v49, %v9820_v5  ;;  %v9033_v5 = vld [vmem:[%s12274_s0 + $0x60] sm:$0xff]  ;;  %v1421_v4 = vrot.slane %v1420_v47, 4  ;;  %v1431_v49 = vrot.slane %v1430_v35, 4 }
 0x158   :  { %v3196_v20 = vpop.f32.mrf.mxu0  ;;  %v1447_v47 = vshll.u32 %v1045_v18, 16  ;;  %v1451_v35 = vshrl.u32 %v1045_v18, 16 }
 0x159   :  { %v10112_v57 = vadd.f32 %v3194_v55, %v2791_v23  ;;  %v1426_v29 = vsel %vm9654_vm2, %v1421_v4, %v1425_v25  ;;  %v1436_v58 = vsel %vm9654_vm2, %v1431_v49, %v1435_v22  ;;  %v1046_v25 = vld [vmem:[%s12272_s3 + $0xb0] sm:$0x1] }
 0x15c   :  { %v2088_v42 = vpop.f32.mrf.mxu2 }
 0x15d   :  { %v2238_v60 = vadd.f32 %v2088_v42, %v860_v61  ;;  %v2642_v16 = vpop.f32.mrf.mxu3 }
 0x15e   :  { %v862_v10 = vpop.f32.mrf.mxu1 }
 0x15f   :  { %v2792_v55 = vadd.f32 %v2642_v16, %v2238_v60  ;;  %v863_v14 = vadd.f32 %v862_v10, %v9840_v36  ;;  %v1449_v10 = vrot.slane %v1447_v47, 5 }
 0x160   :  { %v3199_v37 = vpop.f32.mrf.mxu0 }
 0x161   :  { %901 = vmatmul.bf16.gmra.mxu1 %v8905_v52  ;;  %2130 = vmatmul.bf16.gmra.mxu2 %v1962_v24  ;;  %v10127_v23 = vadd.f32 %v3196_v20, %v2792_v55  ;;  %v1441_v20 = vshll.u32 %v1044_v34, 16  ;;  %v1912_v52 = vunpack.c.l.b16 %v1426_v29  ;;  %v1913_v24 = vunpack.c.l.b16 %v1436_v58 }
 0x162   :  { %2684 = vmatmul.bf16.gmra.mxu3 %v8993_v48  ;;  %v1440_v48 = vrot.slane %v1438_v11, 4  ;;  %v1457_v58 = vshll.u32 %v1046_v25, 16 }
 0x163   :  { %3238 = vmatmul.bf16.gmra.mxu0 %v9033_v5  ;;  %v1443_v36 = vrot.slane %v1441_v20, 5  ;;  %v1453_v5 = vrot.slane %v1451_v35, 4  ;;  %v1963_v22 = vpack.c.b16 %v1913_v24, %v1912_v52  ;;  %v1047_v52 = vld [vmem:[%s12272_s3 + $0xb4] sm:$0xf]  ;;  %v1048_v24 = vld [vmem:[%s12272_s3 + $0xb8] sm:$0xf] }
 0x164   :  { %v2091_v44 = vpop.f32.mrf.mxu2  ;;  %v1459_v35 = vrot.slane %v1457_v58, 5 }
 0x165   :  { %v2239_v61 = vadd.f32 %v2091_v44, %v863_v14  ;;  %v2645_v42 = vpop.f32.mrf.mxu3  ;;  %v8906_v14 = vld [vmem:[%s12272_s3 + $0x9c] sm:$0xff]  ;;  %v1444_v44 = vor.u32 %v1443_v36, %v1440_v48  ;;  %v1454_v29 = vor.u32 %v1453_v5, %v1449_v10 }
 0x166   :  { %v864_v62 = vpop.f32.mrf.mxu1 }
 0x167   :  { %v2793_v60 = vadd.f32 %v2645_v42, %v2239_v61  ;;  %v865_v4 = vadd.f32 %v864_v62, %v9858_v1  ;;  %v9034_v1 = vld [vmem:[%s12274_s0 + $0x68] sm:$0xff]  ;;  %v1445_v20 = vrot.slane %v1444_v44, 4  ;;  %v1455_v47 = vrot.slane %v1454_v29, 4 }
 0x168   :  { %v3201_v16 = vpop.f32.mrf.mxu0 }
 0x169   :  { %v10137_v55 = vadd.f32 %v3199_v37, %v2793_v60  ;;  %v8994_v37 = vld [vmem:[%s12273_s1 + $0x9c] sm:$0xff]  ;;  %v1450_v25 = vsel %vm9654_vm2, %v1445_v20, %v1449_v10 }
 0x16a   :  { %v1914_v44 = vunpack.c.l.b16 %v1450_v25  ;;  %v1049_v20 = vld [vmem:[%s12272_s3 + $0xbc] sm:$0x1] }
 0x16b   :  { %v1481_v25 = vshll.u32 %v1049_v20, 16 }
 0x16c   :  { %v2093_v49 = vpop.f32.mrf.mxu2 }
 0x16d   :  { %v2240_v34 = vadd.f32 %v2093_v49, %v865_v4  ;;  %v2647_v18 = vpop.f32.mrf.mxu3  ;;  %v1462_v49 = vshrl.u32 %v1047_v52, 16 }
 0x16e   :  { %v867_v11 = vpop.f32.mrf.mxu1 }
 0x16f   :  { %v2794_v61 = vadd.f32 %v2647_v18, %v2240_v34  ;;  %v868_v60 = vadd.f32 %v867_v11, %v9878_v43  ;;  %v1465_v43 = vshll.u32 %v1047_v52, 16  ;;  %v1475_v34 = vshrl.u32 %v1048_v24, 16  ;;  %v8907_v52 = vld [vmem:[%s12272_s3 + $0xa8] sm:$0xff] }
 0x170   :  { %v3204_v42 = vpop.f32.mrf.mxu0  ;;  %v1464_v11 = vrot.slane %v1462_v49, 4  ;;  %v1050_v49 = vld [vmem:[%s12272_s3 + $0xcc] sm:$0xf] }
 0x171   :  { %906 = vmatmul.bf16.gmra.mxu1 %v8906_v14  ;;  %2135 = vmatmul.bf16.gmra.mxu2 %v1963_v22  ;;  %v10152_v62 = vadd.f32 %v3201_v16, %v2794_v61  ;;  %v1460_v16 = vsel %vm9654_vm2, %v1455_v47, %v1459_v35  ;;  %v1471_v22 = vshll.u32 %v1048_v24, 16  ;;  %v1477_v61 = vrot.slane %v1475_v34, 4 }
 0x172   :  { %2689 = vmatmul.bf16.gmra.mxu3 %v8994_v37  ;;  %v1915_v29 = vunpack.c.l.b16 %v1460_v16  ;;  %v1467_v37 = vrot.slane %v1465_v43, 5  ;;  %v1051_v43 = vld [vmem:[%s12272_s3 + $0xd0] sm:$0xf]  ;;  %v1489_v20 = vshll.u32 %v1050_v49, 16 }
 0x173   :  { %3243 = vmatmul.bf16.gmra.mxu0 %v9034_v1  ;;  %v1473_v1 = vrot.slane %v1471_v22, 5 }
 0x174   :  { %v2096_v48 = vpop.f32.mrf.mxu2  ;;  %v1964_v24 = vpack.c.b16 %v1915_v29, %v1914_v44  ;;  %v1483_v44 = vrot.slane %v1481_v25, 5  ;;  %v9104_v29 = vld [vmem:[%s12270_s4 + $0x198] sm:$0xff]  ;;  %v1491_v25 = vrot.slane %v1489_v20, 5 }
 0x175   :  { %v2241_v36 = vadd.f32 %v2096_v48, %v868_v60  ;;  %v2650_v5 = vpop.f32.mrf.mxu3  ;;  %v8995_v48 = vld [vmem:[%s12273_s1 + $0xa8] sm:$0xff]  ;;  %5019 = vmatpush.bf16.msra.mxu2 %v9104_v29 }
 0x176   :  { %v869_v4 = vpop.f32.mrf.mxu1 }
 0x177   :  { %v2795_v18 = vadd.f32 %v2650_v5, %v2241_v36  ;;  %v870_v10 = vadd.f32 %v869_v4, %v9896_v26  ;;  %v9035_v26 = vld [vmem:[%s12274_s0 + $0x70] sm:$0xff]  ;;  %v1468_v36 = vor.u32 %v1467_v37, %v1464_v11  ;;  %v1478_v5 = vor.u32 %v1477_v61, %v1473_v1  ;;  %v9144_v11 = vld [vmem:[%s12270_s4 + $0x1d8] sm:$0xff] }
 0x178   :  { %v3206_v14 = vpop.f32.mrf.mxu0  ;;  %5574 = vmatpush.bf16.msra.mxu3 %v9144_v11 }
 0x179   :  { %v10165_v58 = vadd.f32 %v3204_v42, %v2795_v18  ;;  %v1469_v34 = vrot.slane %v1468_v36, 4  ;;  %v1479_v18 = vrot.slane %v1478_v5, 4 }
 0x17c   :  { %v2098_v47 = vpop.f32.mrf.mxu2 }
 0x17d   :  { %v2242_v35 = vadd.f32 %v2098_v47, %v870_v10  ;;  %v2652_v60 = vpop.f32.mrf.mxu3  ;;  %v1486_v10 = vshrl.u32 %v1050_v49, 16  ;;  %v1499_v47 = vshrl.u32 %v1051_v43, 16 }
 0x17e   :  { %v872_v42 = vpop.f32.mrf.mxu1 }
 0x17f   :  { %v2796_v16 = vadd.f32 %v2652_v60, %v2242_v35  ;;  %v873_v37 = vadd.f32 %v872_v42, %v9916_v9  ;;  %v9064_v9 = vld [vmem:[%s12270_s4 + $0x158] sm:$0xff]  ;;  %v1488_v5 = vrot.slane %v1486_v10, 4  ;;  %v1501_v49 = vrot.slane %v1499_v47, 4 }
 0x180   :  { %v3209_v4 = vpop.f32.mrf.mxu0  ;;  %v9152_v42 = vld [vmem:[%s12270_s4 + $0x218] sm:$0xff]  ;;  %4464 = vmatpush.bf16.msra.mxu1 %v9064_v9 }
 0x181   :  { %911 = vmatmul.bf16.gmra.mxu1 %v8907_v52  ;;  %2140 = vmatmul.bf16.gmra.mxu2 %v1964_v24  ;;  %v10186_v22 = vadd.f32 %v3206_v14, %v2796_v16  ;;  %v1495_v14 = vshll.u32 %v1051_v43, 16  ;;  %v1474_v24 = vsel %vm9654_vm2, %v1469_v34, %v1473_v1  ;;  %v1052_v1 = vld [vmem:[%s12272_s3 + $0xd4] sm:$0x1]  ;;  %v1492_v11 = vor.u32 %v1491_v25, %v1488_v5  ;;  %v1053_v9 = vld [vmem:[%s12272_s3 + $0xd8] sm:$0xf] }
 0x182   :  { %2694 = vmatmul.bf16.gmra.mxu3 %v8995_v48  ;;  %v1484_v48 = vsel %vm9654_vm2, %v1479_v18, %v1483_v44  ;;  %v1916_v43 = vunpack.c.l.b16 %v1474_v24  ;;  %6864 = vmatpush.bf16.msra.mxu0 %v9152_v42  ;;  %v1054_v5 = vld [vmem:[%s12272_s3 + $0xdc] sm:$0xf] }
 0x183   :  { %3248 = vmatmul.bf16.gmra.mxu0 %v9035_v26  ;;  %v1497_v16 = vrot.slane %v1495_v14, 5  ;;  %v1917_v29 = vunpack.c.l.b16 %v1484_v48  ;;  %v8908_v14 = vld [vmem:[%s12272_s3 + $0xb4] sm:$0xff]  ;;  %v1493_v24 = vrot.slane %v1492_v11, 4  ;;  %v1519_v11 = vshll.u32 %v1054_v5, 16 }
 0x184   :  { %v2101_v61 = vpop.f32.mrf.mxu2 }
 0x185   :  { %v2243_v35 = vadd.f32 %v2101_v61, %v873_v37  ;;  %v2655_v60 = vpop.f32.mrf.mxu3  ;;  %v1502_v37 = vor.u32 %v1501_v49, %v1497_v16  ;;  %v1505_v61 = vshll.u32 %v1052_v1, 16  ;;  %v1965_v47 = vpack.c.b16 %v1917_v29, %v1916_v43 }
 0x186   :  { %v874_v52 = vpop.f32.mrf.mxu1  ;;  %v1498_v43 = vsel %vm9654_vm2, %v1493_v24, %v1497_v16  ;;  %v1510_v1 = vshrl.u32 %v1053_v9, 16  ;;  %v1055_v16 = vld [vmem:[%s12272_s3 + $0xe0] sm:$0x1] }
 0x187   :  { %v2797_v26 = vadd.f32 %v2655_v60, %v2243_v35  ;;  %v875_v18 = vadd.f32 %v874_v52, %v9940_v21  ;;  %v8996_v60 = vld [vmem:[%s12273_s1 + $0xb4] sm:$0xff]  ;;  %v1503_v48 = vrot.slane %v1502_v37, 4  ;;  %v1523_v37 = vshrl.u32 %v1054_v5, 16 }
 0x188   :  { %v3211_v36 = vpop.f32.mrf.mxu0  ;;  %v9036_v21 = vld [vmem:[%s12274_s0 + $0x78] sm:$0xff] }
 0x189   :  { %v10208_v34 = vadd.f32 %v3209_v4, %v2797_v26  ;;  %v1507_v26 = vrot.slane %v1505_v61, 5 }
 0x18b   :  { %v1508_v29 = vsel %vm9654_vm2, %v1503_v48, %v1507_v26 }
 0x18c   :  { %v2103_v44 = vpop.f32.mrf.mxu2 }
 0x18d   :  { %v2244_v10 = vadd.f32 %v2103_v44, %v875_v18  ;;  %v2657_v20 = vpop.f32.mrf.mxu3 }
 0x18e   :  { %v877_v35 = vpop.f32.mrf.mxu1 }
 0x18f   :  { %v2798_v4 = vadd.f32 %v2657_v20, %v2244_v10  ;;  %v878_v25 = vadd.f32 %v877_v35, %v9966_v39  ;;  %v1521_v35 = vrot.slane %v1519_v11, 5 }
 0x190   :  { %v3214_v52 = vpop.f32.mrf.mxu0 }
 0x191   :  { %916 = vmatmul.bf16.gmra.mxu1 %v8908_v14  ;;  %2145 = vmatmul.bf16.gmra.mxu2 %v1965_v47  ;;  %v10223_v42 = vadd.f32 %v3211_v36, %v2798_v4  ;;  %v1513_v36 = vshll.u32 %v1053_v9, 16  ;;  %v1918_v14 = vunpack.c.l.b16 %v1498_v43  ;;  %v1919_v47 = vunpack.c.l.b16 %v1508_v29 }
 0x192   :  { %2699 = vmatmul.bf16.gmra.mxu3 %v8996_v60  ;;  %v1512_v60 = vrot.slane %v1510_v1, 4  ;;  %v1529_v29 = vshll.u32 %v1055_v16, 16 }
 0x193   :  { %3253 = vmatmul.bf16.gmra.mxu0 %v9036_v21  ;;  %v1515_v39 = vrot.slane %v1513_v36, 5  ;;  %v1525_v21 = vrot.slane %v1523_v37, 4  ;;  %v1966_v26 = vpack.c.b16 %v1919_v47, %v1918_v14  ;;  %v1056_v14 = vld [vmem:[%s12272_s3 + $0xe4] sm:$0xf]  ;;  %v1057_v47 = vld [vmem:[%s12272_s3 + $0xe8] sm:$0xf] }
 0x194   :  { %v2106_v49 = vpop.f32.mrf.mxu2  ;;  %v1531_v37 = vrot.slane %v1529_v29, 5 }
 0x195   :  { %v2245_v18 = vadd.f32 %v2106_v49, %v878_v25  ;;  %v2660_v44 = vpop.f32.mrf.mxu3  ;;  %v8909_v25 = vld [vmem:[%s12272_s3 + $0xcc] sm:$0xff]  ;;  %v1516_v49 = vor.u32 %v1515_v39, %v1512_v60  ;;  %v1526_v43 = vor.u32 %v1525_v21, %v1521_v35 }
 0x196   :  { %v879_v61 = vpop.f32.mrf.mxu1 }
 0x197   :  { %v2799_v10 = vadd.f32 %v2660_v44, %v2245_v18  ;;  %v880_v24 = vadd.f32 %v879_v61, %v9984_v8  ;;  %v9037_v8 = vld [vmem:[%s12274_s0 + $0x80] sm:$0xff]  ;;  %v1517_v36 = vrot.slane %v1516_v49, 4  ;;  %v1527_v11 = vrot.slane %v1526_v43, 4 }
 0x198   :  { %v3216_v20 = vpop.f32.mrf.mxu0 }
 0x199   :  { %v10233_v4 = vadd.f32 %v3214_v52, %v2799_v10  ;;  %v8997_v52 = vld [vmem:[%s12273_s1 + $0xc0] sm:$0xff]  ;;  %v1522_v16 = vsel %vm9654_vm2, %v1517_v36, %v1521_v35  ;;  %v1058_v36 = vld [vmem:[%s12272_s3 + $0xec] sm:$0x1] }
 0x19a   :  { %v1920_v49 = vunpack.c.l.b16 %v1522_v16  ;;  %v1553_v16 = vshll.u32 %v1058_v36, 16 }
 0x19c   :  { %v2108_v48 = vpop.f32.mrf.mxu2 }
 0x19d   :  { %v2246_v9 = vadd.f32 %v2108_v48, %v880_v24  ;;  %v2662_v5 = vpop.f32.mrf.mxu3  ;;  %v1534_v48 = vshrl.u32 %v1056_v14, 16 }
 0x19e   :  { %v882_v1 = vpop.f32.mrf.mxu1 }
 0x19f   :  { %v2800_v18 = vadd.f32 %v2662_v5, %v2246_v9  ;;  %v883_v10 = vadd.f32 %v882_v1, %v9668_v50  ;;  %v1537_v50 = vshll.u32 %v1056_v14, 16  ;;  %v1547_v9 = vshrl.u32 %v1057_v47, 16  ;;  %v8910_v14 = vld [vmem:[%s12272_s3 + $0xd8] sm:$0xff] }
 0x1a0   :  { %v3219_v44 = vpop.f32.mrf.mxu0  ;;  %v1536_v1 = vrot.slane %v1534_v48, 4  ;;  %v1059_v48 = vld [vmem:[%s12272_s3 + $0xf0] sm:$0xf] }
 0x1a1   :  { %921 = vmatmul.bf16.gmra.mxu1 %v8909_v25  ;;  %2150 = vmatmul.bf16.gmra.mxu2 %v1966_v26  ;;  %v10248_v61 = vadd.f32 %v3216_v20, %v2800_v18  ;;  %v1532_v20 = vsel %vm9654_vm2, %v1527_v11, %v1531_v37  ;;  %v1543_v26 = vshll.u32 %v1057_v47, 16  ;;  %v1549_v18 = vrot.slane %v1547_v9, 4 }
 0x1a2   :  { %2704 = vmatmul.bf16.gmra.mxu3 %v8997_v52  ;;  %v1921_v43 = vunpack.c.l.b16 %v1532_v20  ;;  %v1539_v52 = vrot.slane %v1537_v50, 5  ;;  %v1060_v50 = vld [vmem:[%s12272_s3 + $0xf4] sm:$0xf] }
 0x1a3   :  { %3258 = vmatmul.bf16.gmra.mxu0 %v9037_v8  ;;  %v1545_v8 = vrot.slane %v1543_v26, 5  ;;  %v1571_v36 = vshrl.u32 %v1060_v50, 16 }
 0x1a4   :  { %v2111_v60 = vpop.f32.mrf.mxu2  ;;  %v1967_v47 = vpack.c.b16 %v1921_v43, %v1920_v49  ;;  %v1555_v49 = vrot.slane %v1553_v16, 5 }
 0x1a5   :  { %v2247_v39 = vadd.f32 %v2111_v60, %v883_v10  ;;  %v2665_v21 = vpop.f32.mrf.mxu3  ;;  %v8998_v60 = vld [vmem:[%s12273_s1 + $0xcc] sm:$0xff] }
 0x1a6   :  { %v884_v24 = vpop.f32.mrf.mxu1 }
 0x1a7   :  { %v2801_v5 = vadd.f32 %v2665_v21, %v2247_v39  ;;  %v885_v35 = vadd.f32 %v884_v24, %v9692_v3  ;;  %v9038_v3 = vld [vmem:[%s12274_s0 + $0x88] sm:$0xff]  ;;  %v1540_v39 = vor.u32 %v1539_v52, %v1536_v1  ;;  %v1550_v21 = vor.u32 %v1549_v18, %v1545_v8 }
 0x1a8   :  { %v3221_v25 = vpop.f32.mrf.mxu0  ;;  %v1558_v52 = vshrl.u32 %v1059_v48, 16  ;;  %v1561_v18 = vshll.u32 %v1059_v48, 16 }
 0x1a9   :  { %v10261_v29 = vadd.f32 %v3219_v44, %v2801_v5  ;;  %v1541_v9 = vrot.slane %v1540_v39, 4  ;;  %v1551_v5 = vrot.slane %v1550_v21, 4 }
 0x1aa   :  { %v1563_v39 = vrot.slane %v1561_v18, 5 }
 0x1ac   :  { %v2113_v11 = vpop.f32.mrf.mxu2 }
 0x1ad   :  { %v2248_v37 = vadd.f32 %v2113_v11, %v885_v35  ;;  %v2667_v10 = vpop.f32.mrf.mxu3  ;;  %v1567_v35 = vshll.u32 %v1060_v50, 16 }
 0x1ae   :  { %v887_v44 = vpop.f32.mrf.mxu1 }
 0x1af   :  { %v2802_v20 = vadd.f32 %v2667_v10, %v2248_v37  ;;  %v888_v43 = vadd.f32 %v887_v44, %v9706_v19  ;;  %v1569_v21 = vrot.slane %v1567_v35, 5  ;;  %v1573_v19 = vrot.slane %v1571_v36, 4  ;;  %v8999_v36 = vld [vmem:[%s12273_s1 + $0xd8] sm:$0xff] }
 0x1b0   :  { %v3224_v24 = vpop.f32.mrf.mxu0 }
 0x1b1   :  { %926 = vmatmul.bf16.gmra.mxu1 %v8910_v14  ;;  %2155 = vmatmul.bf16.gmra.mxu2 %v1967_v47  ;;  %v10282_v26 = vadd.f32 %v3221_v25, %v2802_v20  ;;  %v1546_v14 = vsel %vm9654_vm2, %v1541_v9, %v1545_v8  ;;  %v1556_v25 = vsel %vm9654_vm2, %v1551_v5, %v1555_v49  ;;  %v1061_v20 = vld [vmem:[%s12272_s3 + $0xf8] sm:$0x1] }
 0x1b2   :  { %2709 = vmatmul.bf16.gmra.mxu3 %v8998_v60  ;;  %v1922_v44 = vunpack.c.l.b16 %v1546_v14  ;;  %v1923_v16 = vunpack.c.l.b16 %v1556_v25  ;;  %v1577_v5 = vshll.u32 %v1061_v20, 16  ;;  %v1062_v25 = vld [vmem:[%s12272_s3 + $0xfc] sm:$0xf] }
 0x1b3   :  { %3263 = vmatmul.bf16.gmra.mxu0 %v9038_v3  ;;  %v1560_v3 = vrot.slane %v1558_v52, 4  ;;  %v8911_v52 = vld [vmem:[%s12272_s3 + $0xe4] sm:$0xff] }
 0x1b4   :  { %v2116_v1 = vpop.f32.mrf.mxu2  ;;  %v1968_v18 = vpack.c.b16 %v1923_v16, %v1922_v44  ;;  %v1579_v14 = vrot.slane %v1577_v5, 5 }
 0x1b5   :  { %v2249_v11 = vadd.f32 %v2116_v1, %v888_v43  ;;  %v2670_v37 = vpop.f32.mrf.mxu3  ;;  %v1564_v9 = vor.u32 %v1563_v39, %v1560_v3  ;;  %v1574_v43 = vor.u32 %v1573_v19, %v1569_v21  ;;  %v1063_v3 = vld [vmem:[%s12272_s3 + $0x100] sm:$0xf]  ;;  %v9103_v39 = vld [vmem:[%s12270_s4 + $0x190] sm:$0xff] }
 0x1b6   :  { %v889_v10 = vpop.f32.mrf.mxu1  ;;  %v9143_v19 = vld [vmem:[%s12270_s4 + $0x1d0] sm:$0xff]  ;;  %5020 = vmatpush.bf16.msra.mxu2 %v9103_v39  ;;  %v1591_v5 = vshll.u32 %v1063_v3, 16 }
 0x1b7   :  { %v2803_v47 = vadd.f32 %v2670_v37, %v2249_v11  ;;  %v890_v50 = vadd.f32 %v889_v10, %v9730_v33  ;;  %v9039_v33 = vld [vmem:[%s12274_s0 + $0x90] sm:$0xff]  ;;  %v1565_v37 = vrot.slane %v1564_v9, 4  ;;  %v1575_v10 = vrot.slane %v1574_v43, 4  ;;  %5575 = vmatpush.bf16.msra.mxu3 %v9143_v19 }
 0x1b8   :  { %v3226_v60 = vpop.f32.mrf.mxu0  ;;  %v1585_v43 = vshll.u32 %v1062_v25, 16 }
 0x1b9   :  { %v10292_v48 = vadd.f32 %v3224_v24, %v2803_v47  ;;  %v1580_v20 = vsel %vm9654_vm2, %v1575_v10, %v1579_v14 }
 0x1bc   :  { %v2118_v8 = vpop.f32.mrf.mxu2 }
 0x1bd   :  { %v2250_v49 = vadd.f32 %v2118_v8, %v890_v50  ;;  %v2672_v1 = vpop.f32.mrf.mxu3  ;;  %v1582_v50 = vshrl.u32 %v1062_v25, 16  ;;  %v1064_v25 = vld [vmem:[%s12272_s3 + $0x104] sm:$0x1] }
 0x1be   :  { %v892_v35 = vpop.f32.mrf.mxu1 }
 0x1bf   :  { %v2804_v24 = vadd.f32 %v2672_v1, %v2250_v49  ;;  %v893_v44 = vadd.f32 %v892_v35, %v9744_v51  ;;  %v1595_v49 = vshrl.u32 %v1063_v3, 16  ;;  %v9063_v51 = vld [vmem:[%s12270_s4 + $0x150] sm:$0xff] }
 0x1c0   :  { %v3229_v11 = vpop.f32.mrf.mxu0  ;;  %4465 = vmatpush.bf16.msra.mxu1 %v9063_v51 }
 0x1c1   :  { %931 = vmatmul.bf16.gmra.mxu1 %v8911_v52  ;;  %2160 = vmatmul.bf16.gmra.mxu2 %v1968_v18  ;;  %v10307_v47 = vadd.f32 %v3226_v60, %v2804_v24  ;;  %v1570_v60 = vsel %vm9654_vm2, %v1565_v37, %v1569_v21  ;;  %v9151_v21 = vld [vmem:[%s12270_s4 + $0x210] sm:$0xff]  ;;  %v1587_v24 = vrot.slane %v1585_v43, 5  ;;  %v1593_v37 = vrot.slane %v1591_v5, 5 }
 0x1c2   :  { %2714 = vmatmul.bf16.gmra.mxu3 %v8999_v36  ;;  %v1924_v35 = vunpack.c.l.b16 %v1570_v60  ;;  %v1925_v36 = vunpack.c.l.b16 %v1580_v20  ;;  %v1597_v10 = vrot.slane %v1595_v49, 4  ;;  %6865 = vmatpush.bf16.msra.mxu0 %v9151_v21  ;;  %v8912_v60 = vld [vmem:[%s12272_s3 + $0xf0] sm:$0xff] }
 0x1c3   :  { %3268 = vmatmul.bf16.gmra.mxu0 %v9039_v33  ;;  %v1584_v33 = vrot.slane %v1582_v50, 4 }
 0x1c4   :  { %v2121_v16 = vpop.f32.mrf.mxu2  ;;  %v1969_v19 = vpack.c.b16 %v1925_v36, %v1924_v35  ;;  %v1598_v50 = vor.u32 %v1597_v10, %v1593_v37  ;;  %v1065_v35 = vld [vmem:[%s12272_s3 + $0x108] sm:$0xf]  ;;  %v1066_v36 = vld [vmem:[%s12272_s3 + $0x10c] sm:$0xf] }
 0x1c5   :  { %v2251_v8 = vadd.f32 %v2121_v16, %v893_v44  ;;  %v2675_v9 = vpop.f32.mrf.mxu3  ;;  %v1588_v20 = vor.u32 %v1587_v24, %v1584_v33 }
 0x1c6   :  { %v894_v1 = vpop.f32.mrf.mxu1 }
 0x1c7   :  { %v2805_v52 = vadd.f32 %v2675_v9, %v2251_v8  ;;  %v895_v3 = vadd.f32 %v894_v1, %v9773_v15  ;;  %v1601_v8 = vshll.u32 %v1064_v25, 16  ;;  %v9040_v15 = vld [vmem:[%s12274_s0 + $0x98] sm:$0xff]  ;;  %v1589_v49 = vrot.slane %v1588_v20, 4 }
 0x1c8   :  { %v3231_v18 = vpop.f32.mrf.mxu0  ;;  %v1599_v1 = vrot.slane %v1598_v50, 4 }
 0x1c9   :  { %v10329_v14 = vadd.f32 %v3229_v11, %v2805_v52  ;;  %v9000_v11 = vld [vmem:[%s12273_s1 + $0xe4] sm:$0xff]  ;;  %v1603_v52 = vrot.slane %v1601_v8, 5  ;;  %v1594_v25 = vsel %vm9654_vm2, %v1589_v49, %v1593_v37  ;;  %v1067_v49 = vld [vmem:[%s12272_s3 + $0x110] sm:$0x1] }
 0x1ca   :  { %v1926_v20 = vunpack.c.l.b16 %v1594_v25  ;;  %v1625_v25 = vshll.u32 %v1067_v49, 16 }
 0x1cc   :  { %v2123_v39 = vpop.f32.mrf.mxu2 }
 0x1cd   :  { %v2252_v44 = vadd.f32 %v2123_v39, %v895_v3  ;;  %v2677_v16 = vpop.f32.mrf.mxu3  ;;  %v1606_v39 = vshrl.u32 %v1065_v35, 16 }
 0x1ce   :  { %v897_v9 = vpop.f32.mrf.mxu1 }
 0x1cf   :  { %v2806_v43 = vadd.f32 %v2677_v16, %v2252_v44  ;;  %v898_v21 = vadd.f32 %v897_v9, %v9794_v41  ;;  %v1609_v41 = vshll.u32 %v1065_v35, 16  ;;  %v1619_v44 = vshrl.u32 %v1066_v36, 16  ;;  %v8913_v35 = vld [vmem:[%s12272_s3 + $0xfc] sm:$0xff] }
 0x1d0   :  { %v3234_v5 = vpop.f32.mrf.mxu0  ;;  %v1608_v9 = vrot.slane %v1606_v39, 4  ;;  %v1068_v39 = vld [vmem:[%s12272_s3 + $0x114] sm:$0xf] }
 0x1d1   :  { %936 = vmatmul.bf16.gmra.mxu1 %v8912_v60  ;;  %2165 = vmatmul.bf16.gmra.mxu2 %v1969_v19  ;;  %v10344_v51 = vadd.f32 %v3231_v18, %v2806_v43  ;;  %v1604_v18 = vsel %vm9654_vm2, %v1599_v1, %v1603_v52  ;;  %v1615_v19 = vshll.u32 %v1066_v36, 16  ;;  %v1621_v43 = vrot.slane %v1619_v44, 4 }
 0x1d2   :  { %2719 = vmatmul.bf16.gmra.mxu3 %v9000_v11  ;;  %v1927_v50 = vunpack.c.l.b16 %v1604_v18  ;;  %v1611_v11 = vrot.slane %v1609_v41, 5  ;;  %v1069_v41 = vld [vmem:[%s12272_s3 + $0x118] sm:$0xf] }
 0x1d3   :  { %3273 = vmatmul.bf16.gmra.mxu0 %v9040_v15  ;;  %v1617_v15 = vrot.slane %v1615_v19, 5  ;;  %v1643_v49 = vshrl.u32 %v1069_v41, 16 }
 0x1d4   :  { %v2126_v33 = vpop.f32.mrf.mxu2  ;;  %v1970_v36 = vpack.c.b16 %v1927_v50, %v1926_v20  ;;  %v1627_v20 = vrot.slane %v1625_v25, 5 }
 0x1d5   :  { %v2253_v24 = vadd.f32 %v2126_v33, %v898_v21  ;;  %v2680_v10 = vpop.f32.mrf.mxu3  ;;  %v9001_v33 = vld [vmem:[%s12273_s1 + $0xf0] sm:$0xff] }
 0x1d6   :  { %v899_v3 = vpop.f32.mrf.mxu1 }
 0x1d7   :  { %v2807_v16 = vadd.f32 %v2680_v10, %v2253_v24  ;;  %v900_v37 = vadd.f32 %v899_v3, %v9818_v2  ;;  %v9041_v2 = vld [vmem:[%s12274_s0 + $0xa0] sm:$0xff]  ;;  %v1612_v24 = vor.u32 %v1611_v11, %v1608_v9  ;;  %v1622_v10 = vor.u32 %v1621_v43, %v1617_v15 }
 0x1d8   :  { %v3236_v60 = vpop.f32.mrf.mxu0  ;;  %v1630_v11 = vshrl.u32 %v1068_v39, 16  ;;  %v1633_v43 = vshll.u32 %v1068_v39, 16 }
 0x1d9   :  { %v10357_v8 = vadd.f32 %v3234_v5, %v2807_v16  ;;  %v1613_v44 = vrot.slane %v1612_v24, 4  ;;  %v1623_v16 = vrot.slane %v1622_v10, 4 }
 0x1da   :  { %v1635_v24 = vrot.slane %v1633_v43, 5 }
 0x1dc   :  { %v2128_v1 = vpop.f32.mrf.mxu2 }
 0x1dd   :  { %v2254_v52 = vadd.f32 %v2128_v1, %v900_v37  ;;  %v2682_v21 = vpop.f32.mrf.mxu3  ;;  %v1639_v37 = vshll.u32 %v1069_v41, 16 }
 0x1de   :  { %v902_v5 = vpop.f32.mrf.mxu1 }
 0x1df   :  { %v2808_v18 = vadd.f32 %v2682_v21, %v2254_v52  ;;  %v903_v50 = vadd.f32 %v902_v5, %v9832_v30  ;;  %v1641_v10 = vrot.slane %v1639_v37, 5  ;;  %v1645_v30 = vrot.slane %v1643_v49, 4  ;;  %v9002_v49 = vld [vmem:[%s12273_s1 + $0xfc] sm:$0xff] }
 0x1e0   :  { %v3239_v3 = vpop.f32.mrf.mxu0 }
 0x1e1   :  { %941 = vmatmul.bf16.gmra.mxu1 %v8913_v35  ;;  %2170 = vmatmul.bf16.gmra.mxu2 %v1970_v36  ;;  %v10378_v19 = vadd.f32 %v3236_v60, %v2808_v18  ;;  %v1618_v35 = vsel %vm9654_vm2, %v1613_v44, %v1617_v15  ;;  %v1628_v60 = vsel %vm9654_vm2, %v1623_v16, %v1627_v20  ;;  %v1070_v18 = vld [vmem:[%s12272_s3 + $0x11c] sm:$0x1] }
 0x1e2   :  { %2724 = vmatmul.bf16.gmra.mxu3 %v9001_v33  ;;  %v1928_v5 = vunpack.c.l.b16 %v1618_v35  ;;  %v1929_v25 = vunpack.c.l.b16 %v1628_v60  ;;  %v1649_v16 = vshll.u32 %v1070_v18, 16  ;;  %v1071_v60 = vld [vmem:[%s12272_s3 + $0x120] sm:$0xf] }
 0x1e3   :  { %3278 = vmatmul.bf16.gmra.mxu0 %v9041_v2  ;;  %v1632_v2 = vrot.slane %v1630_v11, 4  ;;  %v8914_v11 = vld [vmem:[%s12272_s3 + $0x108] sm:$0xff]  ;;  %v1654_v18 = vshrl.u32 %v1071_v60, 16 }
 0x1e4   :  { %v2131_v9 = vpop.f32.mrf.mxu2  ;;  %v1971_v43 = vpack.c.b16 %v1929_v25, %v1928_v5  ;;  %v1651_v35 = vrot.slane %v1649_v16, 5 }
 0x1e5   :  { %v2255_v1 = vadd.f32 %v2131_v9, %v903_v50  ;;  %v2685_v52 = vpop.f32.mrf.mxu3  ;;  %v1636_v44 = vor.u32 %v1635_v24, %v1632_v2  ;;  %v1646_v50 = vor.u32 %v1645_v30, %v1641_v10  ;;  %v1072_v2 = vld [vmem:[%s12272_s3 + $0x124] sm:$0xf] }
 0x1e6   :  { %v904_v21 = vpop.f32.mrf.mxu1 }
 0x1e7   :  { %v2809_v36 = vadd.f32 %v2685_v52, %v2255_v1  ;;  %v905_v41 = vadd.f32 %v904_v21, %v9856_v56  ;;  %v9042_v56 = vld [vmem:[%s12274_s0 + $0xa8] sm:$0xff]  ;;  %v1637_v52 = vrot.slane %v1636_v44, 4  ;;  %v1647_v21 = vrot.slane %v1646_v50, 4 }
 0x1e8   :  { %v3241_v33 = vpop.f32.mrf.mxu0  ;;  %v1663_v44 = vshll.u32 %v1072_v2, 16  ;;  %v1667_v50 = vshrl.u32 %v1072_v2, 16 }
 0x1e9   :  { %v10388_v39 = vadd.f32 %v3239_v3, %v2809_v36  ;;  %v1642_v5 = vsel %vm9654_vm2, %v1637_v52, %v1641_v10  ;;  %v1652_v25 = vsel %vm9654_vm2, %v1647_v21, %v1651_v35  ;;  %v1073_v10 = vld [vmem:[%s12272_s3 + $0x128] sm:$0x1] }
 0x1ec   :  { %v2133_v15 = vpop.f32.mrf.mxu2 }
 0x1ed   :  { %v2256_v20 = vadd.f32 %v2133_v15, %v905_v41  ;;  %v2687_v9 = vpop.f32.mrf.mxu3 }
 0x1ee   :  { %v907_v37 = vpop.f32.mrf.mxu1 }
 0x1ef   :  { %v2810_v3 = vadd.f32 %v2687_v9, %v2256_v20  ;;  %v908_v24 = vadd.f32 %v907_v37, %v9870_v27  ;;  %v1665_v37 = vrot.slane %v1663_v44, 5 }
 0x1f0   :  { %v3244_v1 = vpop.f32.mrf.mxu0 }
 0x1f1   :  { %946 = vmatmul.bf16.gmra.mxu1 %v8914_v11  ;;  %2175 = vmatmul.bf16.gmra.mxu2 %v1971_v43  ;;  %v10403_v36 = vadd.f32 %v3241_v33, %v2810_v3  ;;  %v1657_v33 = vshll.u32 %v1071_v60, 16  ;;  %v1930_v11 = vunpack.c.l.b16 %v1642_v5  ;;  %v1931_v43 = vunpack.c.l.b16 %v1652_v25 }
 0x1f2   :  { %2729 = vmatmul.bf16.gmra.mxu3 %v9002_v49  ;;  %v1656_v49 = vrot.slane %v1654_v18, 4  ;;  %v1673_v25 = vshll.u32 %v1073_v10, 16 }
 0x1f3   :  { %3283 = vmatmul.bf16.gmra.mxu0 %v9042_v56  ;;  %v1659_v27 = vrot.slane %v1657_v33, 5  ;;  %v1669_v56 = vrot.slane %v1667_v50, 4  ;;  %v1972_v35 = vpack.c.b16 %v1931_v43, %v1930_v11  ;;  %v9142_v11 = vld [vmem:[%s12270_s4 + $0x1c8] sm:$0xff] }
 0x1f4   :  { %v2136_v30 = vpop.f32.mrf.mxu2  ;;  %v1675_v50 = vrot.slane %v1673_v25, 5  ;;  %5576 = vmatpush.bf16.msra.mxu3 %v9142_v11  ;;  %v9062_v25 = vld [vmem:[%s12270_s4 + $0x148] sm:$0xff]  ;;  %v1076_v11 = vld [vmem:[%s12272_s3 + $0x134] sm:$0x1] }
 0x1f5   :  { %v2257_v41 = vadd.f32 %v2136_v30, %v908_v24  ;;  %v2690_v15 = vpop.f32.mrf.mxu3  ;;  %v8915_v24 = vld [vmem:[%s12272_s3 + $0x114] sm:$0xff]  ;;  %v1660_v30 = vor.u32 %v1659_v27, %v1656_v49  ;;  %v1670_v5 = vor.u32 %v1669_v56, %v1665_v37  ;;  %v1074_v49 = vld [vmem:[%s12272_s3 + $0x12c] sm:$0xf]  ;;  %4466 = vmatpush.bf16.msra.mxu1 %v9062_v25 }
 0x1f6   :  { %v909_v16 = vpop.f32.mrf.mxu1 }
 0x1f7   :  { %v2811_v20 = vadd.f32 %v2690_v15, %v2257_v41  ;;  %v910_v52 = vadd.f32 %v909_v16, %v9890_v17  ;;  %v9043_v17 = vld [vmem:[%s12274_s0 + $0xb0] sm:$0xff]  ;;  %v1661_v33 = vrot.slane %v1660_v30, 4  ;;  %v1671_v44 = vrot.slane %v1670_v5, 4 }
 0x1f8   :  { %v3246_v9 = vpop.f32.mrf.mxu0 }
 0x1f9   :  { %v10413_v3 = vadd.f32 %v3244_v1, %v2811_v20  ;;  %v9003_v1 = vld [vmem:[%s12273_s1 + $0x108] sm:$0xff] }
 0x1fa   :  { %v9102_v20 = vld [vmem:[%s12270_s4 + $0x188] sm:$0xff] }
 0x1fb   :  { %5021 = vmatpush.bf16.msra.mxu2 %v9102_v20 }
 0x1fc   :  { %v2138_v21 = vpop.f32.mrf.mxu2 }
 0x1fd   :  { %v2258_v60 = vadd.f32 %v2138_v21, %v910_v52  ;;  %v2692_v2 = vpop.f32.mrf.mxu3  ;;  %v1666_v52 = vsel %vm9654_vm2, %v1661_v33, %v1665_v37  ;;  %v1676_v21 = vsel %vm9654_vm2, %v1671_v44, %v1675_v50 }
 0x1fe   :  { %v912_v18 = vpop.f32.mrf.mxu1  ;;  %v1933_v37 = vunpack.c.l.b16 %v1676_v21 }
 0x1ff   :  { %v2812_v41 = vadd.f32 %v2692_v2, %v2258_v60  ;;  %v913_v43 = vadd.f32 %v912_v18, %v9908_v0  ;;  %v1681_v60 = vshll.u32 %v1074_v49, 16  ;;  %v9150_v18 = vld [vmem:[%s12270_s4 + $0x208] sm:$0xff] }
 0x200   :  { %v3249_v15 = vpop.f32.mrf.mxu0  ;;  %6866 = vmatpush.bf16.msra.mxu0 %v9150_v18 }
 0x201   :  { %951 = vmatmul.bf16.gmra.mxu1 %v8915_v24  ;;  %2180 = vmatmul.bf16.gmra.mxu2 %v1972_v35  ;;  %v10428_v16 = vadd.f32 %v3246_v9, %v2812_v41  ;;  %v1075_v9 = vld [vmem:[%s12272_s3 + $0x130] sm:$0xf]  ;;  %v1678_v35 = vshrl.u32 %v1074_v49, 16  ;;  %v1683_v33 = vrot.slane %v1681_v60, 5 }
 0x202   :  { %2734 = vmatmul.bf16.gmra.mxu3 %v9003_v1  ;;  %v1687_v2 = vshll.u32 %v1075_v9, 16  ;;  %v1691_v24 = vshrl.u32 %v1075_v9, 16  ;;  %v1932_v1 = vunpack.c.l.b16 %v1666_v52 }
 0x203   :  { %3288 = vmatmul.bf16.gmra.mxu0 %v9043_v17  ;;  %v1680_v41 = vrot.slane %v1678_v35, 4 }
 0x204   :  { %v2141_v27 = vpop.f32.mrf.mxu2  ;;  %v1689_v44 = vrot.slane %v1687_v2, 5  ;;  %v1693_v50 = vrot.slane %v1691_v24, 4  ;;  %v1077_v2 = vld [vmem:[%s12272_s3 + $0x138] sm:$0xf]  ;;  %v1078_v24 = vld [vmem:[%s12272_s3 + $0x13c] sm:$0xf] }
 0x205   :  { %v2259_v56 = vadd.f32 %v2141_v27, %v913_v43  ;;  %v2695_v10 = vpop.f32.mrf.mxu3  ;;  %v8916_v27 = vld [vmem:[%s12272_s3 + $0x120] sm:$0xff]  ;;  %v1684_v52 = vor.u32 %v1683_v33, %v1680_v41  ;;  %v1702_v33 = vshrl.u32 %v1077_v2, 16 }
 0x206   :  { %v914_v0 = vpop.f32.mrf.mxu1  ;;  %v1694_v21 = vor.u32 %v1693_v50, %v1689_v44  ;;  %v1705_v50 = vshll.u32 %v1077_v2, 16 }
 0x207   :  { %v2813_v30 = vadd.f32 %v2695_v10, %v2259_v56  ;;  %v915_v20 = vadd.f32 %v914_v0, %v9938_v54  ;;  %v1973_v56 = vpack.c.b16 %v1933_v37, %v1932_v1  ;;  %v9004_v10 = vld [vmem:[%s12273_s1 + $0x114] sm:$0xff]  ;;  %v1697_v0 = vshll.u32 %v1076_v11, 16 }
 0x208   :  { %v3251_v5 = vpop.f32.mrf.mxu0  ;;  %v9044_v54 = vld [vmem:[%s12274_s0 + $0xb8] sm:$0xff]  ;;  %v1685_v25 = vrot.slane %v1684_v52, 4  ;;  %v1695_v18 = vrot.slane %v1694_v21, 4  ;;  %v1715_v11 = vshrl.u32 %v1078_v24, 16  ;;  %v1707_v52 = vrot.slane %v1705_v50, 5 }
 0x209   :  { %v10453_v17 = vadd.f32 %v3249_v15, %v2813_v30  ;;  %v1699_v1 = vrot.slane %v1697_v0, 5 }
 0x20c   :  { %v2143_v43 = vpop.f32.mrf.mxu2 }
 0x20d   :  { %v2260_v49 = vadd.f32 %v2143_v43, %v915_v20  ;;  %v2697_v9 = vpop.f32.mrf.mxu3  ;;  %v1711_v20 = vshll.u32 %v1078_v24, 16 }
 0x20e   :  { %v917_v15 = vpop.f32.mrf.mxu1 }
 0x20f   :  { %v2814_v35 = vadd.f32 %v2697_v9, %v2260_v49  ;;  %v918_v37 = vadd.f32 %v917_v15, %v9958_v7  ;;  %v1713_v21 = vrot.slane %v1711_v20, 5  ;;  %v1717_v7 = vrot.slane %v1715_v11, 4  ;;  %v9005_v11 = vld [vmem:[%s12273_s1 + $0x120] sm:$0xff] }
 0x210   :  { %v3254_v60 = vpop.f32.mrf.mxu0 }
 0x211   :  { %956 = vmatmul.bf16.gmra.mxu1 %v8916_v27  ;;  %2185 = vmatmul.bf16.gmra.mxu2 %v1973_v56  ;;  %v10474_v30 = vadd.f32 %v3251_v5, %v2814_v35  ;;  %v1690_v27 = vsel %vm9654_vm2, %v1685_v25, %v1689_v44  ;;  %v1700_v5 = vsel %vm9654_vm2, %v1695_v18, %v1699_v1  ;;  %v1079_v35 = vld [vmem:[%s12272_s3 + $0x140] sm:$0x1] }
 0x212   :  { %2739 = vmatmul.bf16.gmra.mxu3 %v9004_v10  ;;  %v1934_v15 = vunpack.c.l.b16 %v1690_v27  ;;  %v1935_v0 = vunpack.c.l.b16 %v1700_v5  ;;  %v1721_v18 = vshll.u32 %v1079_v35, 16  ;;  %v1080_v5 = vld [vmem:[%s12272_s3 + $0x144] sm:$0xf] }
 0x213   :  { %12306 = vst [vmem:[#allocation29_spill] sm:$0xff] %v10474_v30  ;;  %3293 = vmatmul.bf16.gmra.mxu0 %v9044_v54  ;;  %v1704_v54 = vrot.slane %v1702_v33, 4  ;;  %v8917_v33 = vld [vmem:[%s12272_s3 + $0x12c] sm:$0xff]  ;;  %v1726_v35 = vshrl.u32 %v1080_v5, 16 }
 0x214   :  { %v2146_v41 = vpop.f32.mrf.mxu2  ;;  %v1974_v50 = vpack.c.b16 %v1935_v0, %v1934_v15  ;;  %v1723_v27 = vrot.slane %v1721_v18, 5 }
 0x215   :  { %v2261_v43 = vadd.f32 %v2146_v41, %v918_v37  ;;  %v2700_v49 = vpop.f32.mrf.mxu3  ;;  %v1708_v25 = vor.u32 %v1707_v52, %v1704_v54  ;;  %v1718_v37 = vor.u32 %v1717_v7, %v1713_v21  ;;  %v1081_v54 = vld [vmem:[%s12272_s3 + $0x148] sm:$0xf] }
 0x216   :  { %v919_v9 = vpop.f32.mrf.mxu1 }
 0x217   :  { %v2815_v56 = vadd.f32 %v2700_v49, %v2261_v43  ;;  %v920_v24 = vadd.f32 %v919_v9, %v9982_v45  ;;  %v9045_v45 = vld [vmem:[%s12274_s0 + $0xc0] sm:$0xff]  ;;  %v1709_v49 = vrot.slane %v1708_v25, 4  ;;  %v1719_v9 = vrot.slane %v1718_v37, 4 }
 0x218   :  { %v3256_v10 = vpop.f32.mrf.mxu0  ;;  %v1735_v25 = vshll.u32 %v1081_v54, 16  ;;  %v1739_v37 = vshrl.u32 %v1081_v54, 16 }
 0x219   :  { %v10484_v2 = vadd.f32 %v3254_v60, %v2815_v56  ;;  %v1714_v15 = vsel %vm9654_vm2, %v1709_v49, %v1713_v21  ;;  %v1724_v0 = vsel %vm9654_vm2, %v1719_v9, %v1723_v27  ;;  %v1082_v21 = vld [vmem:[%s12272_s3 + $0x14c] sm:$0x1] }
 0x21b   :  { %12307 = vst [vmem:[#allocation30_spill] sm:$0xff] %v10484_v2 }
 0x21c   :  { %v2148_v44 = vpop.f32.mrf.mxu2 }
 0x21d   :  { %v2262_v1 = vadd.f32 %v2148_v44, %v920_v24  ;;  %v2702_v41 = vpop.f32.mrf.mxu3 }
 0x21e   :  { %v922_v20 = vpop.f32.mrf.mxu1 }
 0x21f   :  { %v2816_v60 = vadd.f32 %v2702_v41, %v2262_v1  ;;  %v923_v52 = vadd.f32 %v922_v20, %v9684_v59  ;;  %v1737_v20 = vrot.slane %v1735_v25, 5 }
 0x220   :  { %v3259_v43 = vpop.f32.mrf.mxu0 }
 0x221   :  { %961 = vmatmul.bf16.gmra.mxu1 %v8917_v33  ;;  %2190 = vmatmul.bf16.gmra.mxu2 %v1974_v50  ;;  %v10499_v56 = vadd.f32 %v3256_v10, %v2816_v60  ;;  %v1729_v10 = vshll.u32 %v1080_v5, 16  ;;  %v1936_v33 = vunpack.c.l.b16 %v1714_v15  ;;  %v1937_v50 = vunpack.c.l.b16 %v1724_v0 }
 0x222   :  { %2744 = vmatmul.bf16.gmra.mxu3 %v9005_v11  ;;  %v1728_v11 = vrot.slane %v1726_v35, 4  ;;  %v1745_v0 = vshll.u32 %v1082_v21, 16 }
 0x223   :  { %12308 = vst [vmem:[#allocation31_spill] sm:$0xff] %v10499_v56  ;;  %3298 = vmatmul.bf16.gmra.mxu0 %v9045_v45  ;;  %v1731_v59 = vrot.slane %v1729_v10, 5  ;;  %v1741_v45 = vrot.slane %v1739_v37, 4  ;;  %v1975_v27 = vpack.c.b16 %v1937_v50, %v1936_v33  ;;  %v1083_v33 = vld [vmem:[%s12272_s3 + $0x150] sm:$0xf] }
 0x224   :  { %v2151_v7 = vpop.f32.mrf.mxu2  ;;  %v1747_v37 = vrot.slane %v1745_v0, 5  ;;  %v1084_v50 = vld [vmem:[%s12272_s3 + $0x154] sm:$0xf] }
 0x225   :  { %v2263_v24 = vadd.f32 %v2151_v7, %v923_v52  ;;  %v2705_v44 = vpop.f32.mrf.mxu3  ;;  %v8918_v52 = vld [vmem:[%s12272_s3 + $0x138] sm:$0xff]  ;;  %v1732_v7 = vor.u32 %v1731_v59, %v1728_v11  ;;  %v1742_v15 = vor.u32 %v1741_v45, %v1737_v20 }
 0x226   :  { %v924_v18 = vpop.f32.mrf.mxu1 }
 0x227   :  { %v2817_v1 = vadd.f32 %v2705_v44, %v2263_v24  ;;  %v925_v49 = vadd.f32 %v924_v18, %v9699_v12  ;;  %v9046_v12 = vld [vmem:[%s12274_s0 + $0xc8] sm:$0xff]  ;;  %v1733_v10 = vrot.slane %v1732_v7, 4  ;;  %v1743_v25 = vrot.slane %v1742_v15, 4 }
 0x228   :  { %v3261_v41 = vpop.f32.mrf.mxu0 }
 0x229   :  { %v10509_v60 = vadd.f32 %v3259_v43, %v2817_v1  ;;  %v9006_v43 = vld [vmem:[%s12273_s1 + $0x12c] sm:$0xff]  ;;  %v1738_v21 = vsel %vm9654_vm2, %v1733_v10, %v1737_v20  ;;  %v1085_v10 = vld [vmem:[%s12272_s3 + $0x158] sm:$0x1] }
 0x22a   :  { %v1938_v7 = vunpack.c.l.b16 %v1738_v21  ;;  %v1769_v21 = vshll.u32 %v1085_v10, 16 }
 0x22b   :  { %12309 = vst [vmem:[#allocation32_spill] sm:$0xff] %v10509_v60 }
 0x22c   :  { %v2153_v9 = vpop.f32.mrf.mxu2 }
 0x22d   :  { %v2264_v5 = vadd.f32 %v2153_v9, %v925_v49  ;;  %v2707_v54 = vpop.f32.mrf.mxu3  ;;  %v1750_v9 = vshrl.u32 %v1083_v33, 16 }
 0x22e   :  { %v927_v35 = vpop.f32.mrf.mxu1 }
 0x22f   :  { %v2818_v24 = vadd.f32 %v2707_v54, %v2264_v5  ;;  %v928_v1 = vadd.f32 %v927_v35, %v9722_v28  ;;  %v1753_v28 = vshll.u32 %v1083_v33, 16  ;;  %v1763_v5 = vshrl.u32 %v1084_v50, 16  ;;  %v8919_v33 = vld [vmem:[%s12272_s3 + $0x144] sm:$0xff] }
 0x230   :  { %v3264_v44 = vpop.f32.mrf.mxu0  ;;  %v1752_v35 = vrot.slane %v1750_v9, 4  ;;  %v1086_v9 = vld [vmem:[%s12272_s3 + $0x15c] sm:$0xf] }
 0x231   :  { %966 = vmatmul.bf16.gmra.mxu1 %v8918_v52  ;;  %2195 = vmatmul.bf16.gmra.mxu2 %v1975_v27  ;;  %v10524_v18 = vadd.f32 %v3261_v41, %v2818_v24  ;;  %v1748_v41 = vsel %vm9654_vm2, %v1743_v25, %v1747_v37  ;;  %v1759_v27 = vshll.u32 %v1084_v50, 16  ;;  %v1765_v24 = vrot.slane %v1763_v5, 4 }
 0x232   :  { %2749 = vmatmul.bf16.gmra.mxu3 %v9006_v43  ;;  %v1939_v15 = vunpack.c.l.b16 %v1748_v41  ;;  %v1755_v43 = vrot.slane %v1753_v28, 5  ;;  %v1087_v28 = vld [vmem:[%s12272_s3 + $0x160] sm:$0xf]  ;;  %v1777_v10 = vshll.u32 %v1086_v9, 16 }
 0x233   :  { %12310 = vst [vmem:[#allocation33_spill] sm:$0xff] %v10524_v18  ;;  %3303 = vmatmul.bf16.gmra.mxu0 %v9046_v12  ;;  %v1761_v12 = vrot.slane %v1759_v27, 5 }
 0x234   :  { %v2156_v11 = vpop.f32.mrf.mxu2  ;;  %v1976_v50 = vpack.c.b16 %v1939_v15, %v1938_v7  ;;  %v1771_v7 = vrot.slane %v1769_v21, 5  ;;  %v9101_v15 = vld [vmem:[%s12270_s4 + $0x180] sm:$0xff]  ;;  %v1779_v21 = vrot.slane %v1777_v10, 5 }
 0x235   :  { %v2265_v59 = vadd.f32 %v2156_v11, %v928_v1  ;;  %v2710_v45 = vpop.f32.mrf.mxu3  ;;  %v9007_v11 = vld [vmem:[%s12273_s1 + $0x138] sm:$0xff]  ;;  %5022 = vmatpush.bf16.msra.mxu2 %v9101_v15 }
 0x236   :  { %v929_v49 = vpop.f32.mrf.mxu1 }
 0x237   :  { %v2819_v54 = vadd.f32 %v2710_v45, %v2265_v59  ;;  %v930_v20 = vadd.f32 %v929_v49, %v9737_v46  ;;  %v9047_v46 = vld [vmem:[%s12274_s0 + $0xd0] sm:$0xff]  ;;  %v1756_v59 = vor.u32 %v1755_v43, %v1752_v35  ;;  %v1766_v45 = vor.u32 %v1765_v24, %v1761_v12  ;;  %v9141_v35 = vld [vmem:[%s12270_s4 + $0x1c0] sm:$0xff] }
 0x238   :  { %v3266_v52 = vpop.f32.mrf.mxu0  ;;  %5577 = vmatpush.bf16.msra.mxu3 %v9141_v35 }
 0x239   :  { %v10537_v0 = vadd.f32 %v3264_v44, %v2819_v54  ;;  %v1757_v5 = vrot.slane %v1756_v59, 4  ;;  %v1767_v54 = vrot.slane %v1766_v45, 4 }
 0x23b   :  { %12311 = vst [vmem:[#allocation34_spill] sm:$0xff] %v10537_v0 }
 0x23c   :  { %v2158_v25 = vpop.f32.mrf.mxu2 }
 0x23d   :  { %v2266_v37 = vadd.f32 %v2158_v25, %v930_v20  ;;  %v2712_v1 = vpop.f32.mrf.mxu3  ;;  %v1774_v20 = vshrl.u32 %v1086_v9, 16  ;;  %v1787_v25 = vshrl.u32 %v1087_v28, 16 }
 0x23e   :  { %v932_v44 = vpop.f32.mrf.mxu1 }
 0x23f   :  { %v2820_v41 = vadd.f32 %v2712_v1, %v2266_v37  ;;  %v933_v43 = vadd.f32 %v932_v44, %v9766_v6  ;;  %v9061_v6 = vld [vmem:[%s12270_s4 + $0x140] sm:$0xff]  ;;  %v1776_v45 = vrot.slane %v1774_v20, 4  ;;  %v1789_v9 = vrot.slane %v1787_v25, 4 }
 0x240   :  { %v3269_v49 = vpop.f32.mrf.mxu0  ;;  %v9149_v44 = vld [vmem:[%s12270_s4 + $0x200] sm:$0xff]  ;;  %4467 = vmatpush.bf16.msra.mxu1 %v9061_v6  ;;  %v1089_v6 = vld [vmem:[%s12272_s3 + $0x168] sm:$0xf] }
 0x241   :  { %971 = vmatmul.bf16.gmra.mxu1 %v8919_v33  ;;  %2200 = vmatmul.bf16.gmra.mxu2 %v1976_v50  ;;  %v10558_v27 = vadd.f32 %v3266_v52, %v2820_v41  ;;  %v1783_v52 = vshll.u32 %v1087_v28, 16  ;;  %v1762_v50 = vsel %vm9654_vm2, %v1757_v5, %v1761_v12  ;;  %v1088_v12 = vld [vmem:[%s12272_s3 + $0x164] sm:$0x1]  ;;  %v1780_v35 = vor.u32 %v1779_v21, %v1776_v45  ;;  %v1090_v45 = vld [vmem:[%s12272_s3 + $0x16c] sm:$0xf]  ;;  %v12315_v21 = vld [vmem:[#allocation8_spill] sm:$0xff] }
 0x242   :  { %2754 = vmatmul.bf16.gmra.mxu3 %v9007_v11  ;;  %v1772_v11 = vsel %vm9654_vm2, %v1767_v54, %v1771_v7  ;;  %v1940_v28 = vunpack.c.l.b16 %v1762_v50  ;;  %6867 = vmatpush.bf16.msra.mxu0 %v9149_v44 }
 0x243   :  { %12312 = vst [vmem:[#allocation35_spill] sm:$0xff] %v10558_v27  ;;  %3308 = vmatmul.bf16.gmra.mxu0 %v9047_v46  ;;  %v1785_v41 = vrot.slane %v1783_v52, 5  ;;  %v1941_v15 = vunpack.c.l.b16 %v1772_v11  ;;  %v8920_v52 = vld [vmem:[%s12272_s3 + $0x150] sm:$0xff]  ;;  %v1781_v50 = vrot.slane %v1780_v35, 4 }
 0x244   :  { %v2161_v24 = vpop.f32.mrf.mxu2 }
 0x245   :  { %v2267_v37 = vadd.f32 %v2161_v24, %v933_v43  ;;  %v2715_v1 = vpop.f32.mrf.mxu3  ;;  %v1790_v43 = vor.u32 %v1789_v9, %v1785_v41  ;;  %v1793_v24 = vshll.u32 %v1088_v12, 16  ;;  %v1977_v25 = vpack.c.b16 %v1941_v15, %v1940_v28 }
 0x246   :  { %v934_v33 = vpop.f32.mrf.mxu1  ;;  %v1786_v15 = vsel %vm9654_vm2, %v1781_v50, %v1785_v41  ;;  %v1091_v41 = vld [vmem:[%s12272_s3 + $0x170] sm:$0x1]  ;;  %v12317_v50 = vld [vmem:[#allocation10_spill] sm:$0xff] }
 0x247   :  { %v2821_v46 = vadd.f32 %v2715_v1, %v2267_v37  ;;  %v935_v54 = vadd.f32 %v934_v33, %v9787_v32  ;;  %v9008_v1 = vld [vmem:[%s12273_s1 + $0x144] sm:$0xff]  ;;  %v9048_v32 = vld [vmem:[%s12274_s0 + $0xd8] sm:$0xff]  ;;  %v1791_v11 = vrot.slane %v1790_v43, 4  ;;  %v1807_v43 = vshll.u32 %v1090_v45, 16 }
 0x248   :  { %v3271_v59 = vpop.f32.mrf.mxu0 }
 0x249   :  { %v10580_v5 = vadd.f32 %v3269_v49, %v2821_v46  ;;  %v1795_v46 = vrot.slane %v1793_v24, 5  ;;  %v1811_v24 = vshrl.u32 %v1090_v45, 16 }
 0x24b   :  { %12313 = vst [vmem:[#allocation36_spill] sm:$0xff] %v10580_v5  ;;  %v1796_v12 = vsel %vm9654_vm2, %v1791_v11, %v1795_v46 }
 0x24c   :  { %v2163_v7 = vpop.f32.mrf.mxu2 }
 0x24d   :  { %v2268_v20 = vadd.f32 %v2163_v7, %v935_v54  ;;  %v2717_v10 = vpop.f32.mrf.mxu3  ;;  %v1798_v54 = vshrl.u32 %v1089_v6, 16 }
 0x24e   :  { %v937_v37 = vpop.f32.mrf.mxu1 }
 0x24f   :  { %v2822_v49 = vadd.f32 %v2717_v10, %v2268_v20  ;;  %v938_v9 = vadd.f32 %v937_v37, %v12315_v21  ;;  %v1813_v21 = vrot.slane %v1811_v24, 4 }
 0x250   :  { %v3274_v33 = vpop.f32.mrf.mxu0 }
 0x251   :  { %976 = vmatmul.bf16.gmra.mxu1 %v8920_v52  ;;  %2205 = vmatmul.bf16.gmra.mxu2 %v1977_v25  ;;  %v10595_v44 = vadd.f32 %v3271_v59, %v2822_v49  ;;  %v1801_v59 = vshll.u32 %v1089_v6, 16  ;;  %v1942_v25 = vunpack.c.l.b16 %v1786_v15  ;;  %v1809_v49 = vrot.slane %v1807_v43, 5 }
 0x252   :  { %2759 = vmatmul.bf16.gmra.mxu3 %v9008_v1  ;;  %v1943_v1 = vunpack.c.l.b16 %v1796_v12 }
 0x253   :  { %12314 = vst [vmem:[#allocation37_spill] sm:$0xff] %v10595_v44  ;;  %3313 = vmatmul.bf16.gmra.mxu0 %v9048_v32  ;;  %v1800_v32 = vrot.slane %v1798_v54, 4  ;;  %v1803_v37 = vrot.slane %v1801_v59, 5  ;;  %v1814_v12 = vor.u32 %v1813_v21, %v1809_v49  ;;  %v1817_v54 = vshll.u32 %v1091_v41, 16  ;;  %v1093_v21 = vld [vmem:[%s12272_s3 + $0x178] sm:$0xf] }
 0x254   :  { %v2166_v28 = vpop.f32.mrf.mxu2  ;;  %v1978_v6 = vpack.c.b16 %v1943_v1, %v1942_v25  ;;  %v12319_v1 = vld [vmem:[#allocation12_spill] sm:$0xff] }
 0x255   :  { %v2269_v7 = vadd.f32 %v2166_v28, %v938_v9  ;;  %v2720_v35 = vpop.f32.mrf.mxu3  ;;  %v8921_v28 = vld [vmem:[%s12272_s3 + $0x15c] sm:$0xff]  ;;  %v1804_v15 = vor.u32 %v1803_v37, %v1800_v32  ;;  %v1092_v37 = vld [vmem:[%s12272_s3 + $0x174] sm:$0xf] }
 0x256   :  { %v939_v20 = vpop.f32.mrf.mxu1 }
 0x257   :  { %v2823_v10 = vadd.f32 %v2720_v35, %v2269_v7  ;;  %v940_v11 = vadd.f32 %v939_v20, %v12317_v50  ;;  %v9049_v35 = vld [vmem:[%s12274_s0 + $0xe0] sm:$0xff]  ;;  %v1805_v24 = vrot.slane %v1804_v15, 4  ;;  %v1815_v20 = vrot.slane %v1814_v12, 4 }
 0x258   :  { %v3276_v52 = vpop.f32.mrf.mxu0  ;;  %v1835_v15 = vshrl.u32 %v1093_v21, 16 }
 0x259   :  { %v10605_v44 = vadd.f32 %v3274_v33, %v2823_v10  ;;  %v9009_v33 = vld [vmem:[%s12273_s1 + $0x150] sm:$0xff]  ;;  %v1819_v10 = vrot.slane %v1817_v54, 5 }
 0x25b   :  { %12316 = vst [vmem:[#allocation8_spill] sm:$0xff] %v10605_v44 }
 0x25c   :  { %v2168_v46 = vpop.f32.mrf.mxu2 }
 0x25d   :  { %v2270_v45 = vadd.f32 %v2168_v46, %v940_v11  ;;  %v2722_v9 = vpop.f32.mrf.mxu3  ;;  %v1810_v46 = vsel %vm9654_vm2, %v1805_v24, %v1809_v49  ;;  %v1094_v24 = vld [vmem:[%s12272_s3 + $0x17c] sm:$0x1] }
 0x25e   :  { %v942_v7 = vpop.f32.mrf.mxu1 }
 0x25f   :  { %v2824_v59 = vadd.f32 %v2722_v9, %v2270_v45  ;;  %v943_v32 = vadd.f32 %v942_v7, %v12319_v1  ;;  %v1822_v45 = vshrl.u32 %v1092_v37, 16  ;;  %v1825_v9 = vshll.u32 %v1092_v37, 16 }
 0x260   :  { %v3279_v43 = vpop.f32.mrf.mxu0  ;;  %v1944_v7 = vunpack.c.l.b16 %v1810_v46 }
 0x261   :  { %981 = vmatmul.bf16.gmra.mxu1 %v8921_v28  ;;  %2210 = vmatmul.bf16.gmra.mxu2 %v1978_v6  ;;  %v10620_v25 = vadd.f32 %v3276_v52, %v2824_v59  ;;  %v1820_v52 = vsel %vm9654_vm2, %v1815_v20, %v1819_v10  ;;  %v1831_v28 = vshll.u32 %v1093_v21, 16  ;;  %v1824_v59 = vrot.slane %v1822_v45, 4  ;;  %v8922_v21 = vld [vmem:[%s12272_s3 + $0x168] sm:$0xff] }
 0x262   :  { %2764 = vmatmul.bf16.gmra.mxu3 %v9009_v33  ;;  %v1945_v33 = vunpack.c.l.b16 %v1820_v52  ;;  %v1827_v1 = vrot.slane %v1825_v9, 5 }
 0x263   :  { %12318 = vst [vmem:[#allocation10_spill] sm:$0xff] %v10620_v25  ;;  %3318 = vmatmul.bf16.gmra.mxu0 %v9049_v35  ;;  %v12321_v25 = vld [vmem:[#allocation14_spill] sm:$0xff] }
 0x264   :  { %v2171_v41 = vpop.f32.mrf.mxu2  ;;  %v1828_v46 = vor.u32 %v1827_v1, %v1824_v59  ;;  %v12323_v1 = vld [vmem:[#allocation16_spill] sm:$0xff] }
 0x265   :  { %v2271_v50 = vadd.f32 %v2171_v41, %v943_v32  ;;  %v2725_v11 = vpop.f32.mrf.mxu3  ;;  %v1833_v32 = vrot.slane %v1831_v28, 5  ;;  %v1837_v41 = vrot.slane %v1835_v15, 4  ;;  %v1095_v28 = vld [vmem:[%s12272_s3 + $0x180] sm:$0xf]  ;;  %v1096_v15 = vld [vmem:[%s12272_s3 + $0x184] sm:$0xf] }
 0x266   :  { %v944_v6 = vpop.f32.mrf.mxu1 }
 0x267   :  { %v2825_v12 = vadd.f32 %v2725_v11, %v2271_v50  ;;  %v945_v49 = vadd.f32 %v944_v6, %v12321_v25  ;;  %v1979_v50 = vpack.c.b16 %v1945_v33, %v1944_v7  ;;  %v9010_v11 = vld [vmem:[%s12273_s1 + $0x15c] sm:$0xff]  ;;  %v9050_v25 = vld [vmem:[%s12274_s0 + $0xe8] sm:$0xff]  ;;  %v1838_v52 = vor.u32 %v1837_v41, %v1833_v32 }
 0x268   :  { %v3281_v54 = vpop.f32.mrf.mxu0  ;;  %v1841_v6 = vshll.u32 %v1094_v24, 16  ;;  %v1829_v7 = vrot.slane %v1828_v46, 4  ;;  %v1849_v24 = vshll.u32 %v1095_v28, 16 }
 0x269   :  { %v10633_v35 = vadd.f32 %v3279_v43, %v2825_v12  ;;  %v1839_v33 = vrot.slane %v1838_v52, 4 }
 0x26a   :  { %v1843_v59 = vrot.slane %v1841_v6, 5  ;;  %v1834_v44 = vsel %vm9654_vm2, %v1829_v7, %v1833_v32  ;;  %v1851_v52 = vrot.slane %v1849_v24, 5 }
 0x26b   :  { %12320 = vst [vmem:[#allocation12_spill] sm:$0xff] %v10633_v35 }
 0x26c   :  { %v2173_v20 = vpop.f32.mrf.mxu2 }
 0x26d   :  { %v2272_v10 = vadd.f32 %v2173_v20, %v945_v49  ;;  %v2727_v37 = vpop.f32.mrf.mxu3  ;;  %v1846_v49 = vshrl.u32 %v1095_v28, 16 }
 0x26e   :  { %v947_v43 = vpop.f32.mrf.mxu1 }
 0x26f   :  { %v2826_v45 = vadd.f32 %v2727_v37, %v2272_v10  ;;  %v948_v41 = vadd.f32 %v947_v43, %v12323_v1  ;;  %v1855_v10 = vshll.u32 %v1096_v15, 16  ;;  %v1859_v37 = vshrl.u32 %v1096_v15, 16  ;;  %v1097_v15 = vld [vmem:[%s12272_s3 + $0x188] sm:$0x1] }
 0x270   :  { %v3284_v9 = vpop.f32.mrf.mxu0  ;;  %v1848_v46 = vrot.slane %v1846_v49, 4  ;;  %v8923_v49 = vld [vmem:[%s12272_s3 + $0x174] sm:$0xff] }
 0x271   :  { %986 = vmatmul.bf16.gmra.mxu1 %v8922_v21  ;;  %2215 = vmatmul.bf16.gmra.mxu2 %v1979_v50  ;;  %v10654_v12 = vadd.f32 %v3281_v54, %v2826_v45  ;;  %v1844_v54 = vsel %vm9654_vm2, %v1839_v33, %v1843_v59  ;;  %v1857_v6 = vrot.slane %v1855_v10, 5  ;;  %v1861_v43 = vrot.slane %v1859_v37, 4  ;;  %v9011_v10 = vld [vmem:[%s12273_s1 + $0x168] sm:$0xff] }
 0x272   :  { %2769 = vmatmul.bf16.gmra.mxu3 %v9010_v11  ;;  %v1946_v45 = vunpack.c.l.b16 %v1834_v44  ;;  %v1947_v28 = vunpack.c.l.b16 %v1844_v54  ;;  %v1852_v32 = vor.u32 %v1851_v52, %v1848_v46  ;;  %v1865_v33 = vshll.u32 %v1097_v15, 16  ;;  %v3403_v46 = vld [vmem:[%s12273_s1] sm:$0xf]  ;;  %v3404_v52 = vld [vmem:[%s12273_s1 + $0x4] sm:$0xf] }
 0x273   :  { %12322 = vst [vmem:[#allocation14_spill] sm:$0xff] %v10654_v12  ;;  %3323 = vmatmul.bf16.gmra.mxu0 %v9050_v25  ;;  %v1862_v12 = vor.u32 %v1861_v43, %v1857_v6 }
 0x274   :  { %v2176_v20 = vpop.f32.mrf.mxu2  ;;  %v1980_v44 = vpack.c.b16 %v1947_v28, %v1946_v45  ;;  %v8749_v45 = vld [vmem:[%s12272_s3 + $0xc] sm:$0xf] }
 0x275   :  { %v2273_v21 = vadd.f32 %v2176_v20, %v948_v41  ;;  %v2730_v50 = vpop.f32.mrf.mxu3  ;;  %v12325_v41 = vld [vmem:[#allocation18_spill] sm:$0xff]  ;;  %v1863_v54 = vrot.slane %v1862_v12, 4  ;;  %v12327_v12 = vld [vmem:[#allocation20_spill] sm:$0xff] }
 0x276   :  { %v949_v35 = vpop.f32.mrf.mxu1 }
 0x277   :  { %v2827_v11 = vadd.f32 %v2730_v50, %v2273_v21  ;;  %v950_v20 = vadd.f32 %v949_v35, %v12325_v41  ;;  %v9051_v35 = vld [vmem:[%s12274_s0 + $0xf0] sm:$0xff]  ;;  %v1853_v50 = vrot.slane %v1852_v32, 4  ;;  %v3500_v32 = vshrl.u32 %v3403_v46, 16 }
 0x278   :  { %v3286_v25 = vpop.f32.mrf.mxu0  ;;  %v8750_v41 = vld [vmem:[%s12272_s3 + $0x10] sm:$0xf] }
 0x279   :  { %v10664_v1 = vadd.f32 %v3284_v9, %v2827_v11  ;;  %v1867_v11 = vrot.slane %v1865_v33, 5  ;;  %v1858_v15 = vsel %vm9654_vm2, %v1853_v50, %v1857_v6  ;;  %v3509_v33 = vshll.u32 %v3404_v52, 16 }
 0x27b   :  { %12324 = vst [vmem:[#allocation16_spill] sm:$0xff] %v10664_v1  ;;  %v3502_v1 = vrot.slane %v3500_v32, 4 }
 0x27c   :  { %v2178_v7 = vpop.f32.mrf.mxu2 }
 0x27d   :  { %v2274_v59 = vadd.f32 %v2178_v7, %v950_v20  ;;  %v2732_v21 = vpop.f32.mrf.mxu3  ;;  %v3503_v7 = vshll.u32 %v3403_v46, 16 }
 0x27e   :  { %v952_v24 = vpop.f32.mrf.mxu1 }
 0x27f   :  { %v2828_v9 = vadd.f32 %v2732_v21, %v2274_v59  ;;  %v953_v28 = vadd.f32 %v952_v24, %v12327_v12  ;;  %v1948_v12 = vunpack.c.l.b16 %v1858_v15  ;;  %v3505_v5 = vrot.slane %v3503_v7, 5 }
 0x280   :  { %v3289_v37 = vpop.f32.mrf.mxu0 }
 0x281   :  { %991 = vmatmul.bf16.gmra.mxu1 %v8923_v49  ;;  %2220 = vmatmul.bf16.gmra.mxu2 %v1980_v44  ;;  %v10682_v43 = vadd.f32 %v3286_v25, %v2828_v9  ;;  %v1868_v25 = vsel %vm9654_vm2, %v1863_v54, %v1867_v11  ;;  %v3513_v49 = vshrl.u32 %v3404_v52, 16  ;;  %v5900_v44 = vshrl.u32 %v8749_v45, 16  ;;  %v3405_v54 = vld [vmem:[%s12273_s1 + $0x8] sm:$0x1] }
 0x282   :  { %2774 = vmatmul.bf16.gmra.mxu3 %v9011_v10  ;;  %v5903_v10 = vshll.u32 %v8749_v45, 16  ;;  %v5913_v9 = vshrl.u32 %v8750_v41, 16  ;;  %v10698_v11 = vrot.slane %v3509_v33, 5  ;;  %v8751_v45 = vld [vmem:[%s12272_s3 + $0x14] sm:$0x1]  ;;  %v3519_v27 = vshll.u32 %v3405_v54, 16 }
 0x283   :  { %12326 = vst [vmem:[#allocation18_spill] sm:$0xff] %v10682_v43  ;;  %3328 = vmatmul.bf16.gmra.mxu0 %v9051_v35  ;;  %v5909_v35 = vshll.u32 %v8750_v41, 16  ;;  %v1949_v43 = vunpack.c.l.b16 %v1868_v25  ;;  %v3515_v46 = vrot.slane %v3513_v49, 4  ;;  %v12329_v25 = vld [vmem:[#allocation22_spill] sm:$0xff] }
 0x284   :  { %v2181_v20 = vpop.f32.mrf.mxu2  ;;  %v5905_v52 = vrot.slane %v5903_v10, 5  ;;  %v8924_v49 = vld [vmem:[%s12272_s3 + $0x180] sm:$0xff]  ;;  %v3521_v54 = vrot.slane %v3519_v27, 5 }
 0x285   :  { %v2275_v59 = vadd.f32 %v2181_v20, %v953_v28  ;;  %v2735_v21 = vpop.f32.mrf.mxu3  ;;  %v5902_v28 = vrot.slane %v5900_v44, 4  ;;  %v10703_v41 = vrot.slane %v5909_v35, 5  ;;  %v5915_v20 = vrot.slane %v5913_v9, 4  ;;  %v3406_v9 = vld [vmem:[%s12273_s1 + $0xc] sm:$0xf] }
 0x286   :  { %v954_v24 = vpop.f32.mrf.mxu1  ;;  %v3516_v44 = vor.u32 %v3515_v46, %v10698_v11  ;;  %v5919_v35 = vshll.u32 %v8751_v45, 16 }
 0x287   :  { %v2829_v6 = vadd.f32 %v2735_v21, %v2275_v59  ;;  %v955_v32 = vadd.f32 %v954_v24, %v12329_v25  ;;  %v1981_v59 = vpack.c.b16 %v1949_v43, %v1948_v12  ;;  %v3506_v21 = vor.u32 %v3505_v5, %v3502_v1  ;;  %v9052_v5 = vld [vmem:[%s12274_s0 + $0xf8] sm:$0xff] }
 0x288   :  { %v3291_v50 = vpop.f32.mrf.mxu0  ;;  %v5906_v10 = vor.u32 %v5905_v52, %v5902_v28  ;;  %v5916_v1 = vor.u32 %v5915_v20, %v10703_v41  ;;  %v3517_v46 = vrot.slane %v3516_v44, 4  ;;  %v5921_v52 = vrot.slane %v5919_v35, 5 }
 0x289   :  { %v10705_v15 = vadd.f32 %v3289_v37, %v2829_v6  ;;  %v9012_v37 = vld [vmem:[%s12273_s1 + $0x174] sm:$0xff]  ;;  %v3407_v6 = vld [vmem:[%s12273_s1 + $0x10] sm:$0xf]  ;;  %v3507_v12 = vrot.slane %v3506_v21, 4  ;;  %v3524_v25 = vshrl.u32 %v3406_v9, 16 }
 0x28a   :  { %v5907_v28 = vrot.slane %v5906_v10, 4  ;;  %v5917_v20 = vrot.slane %v5916_v1, 4  ;;  %v3537_v27 = vshrl.u32 %v3407_v6, 16 }
 0x28b   :  { %12328 = vst [vmem:[#allocation20_spill] sm:$0xff] %v10705_v15 }
 0x28c   :  { %v2183_v7 = vpop.f32.mrf.mxu2  ;;  %v5922_v1 = vsel %vm9654_vm2, %v5917_v20, %v5921_v52 }
 0x28d   :  { %v2276_v33 = vadd.f32 %v2183_v7, %v955_v32  ;;  %v2737_v0 = vpop.f32.mrf.mxu3  ;;  %v3527_v32 = vshll.u32 %v3406_v9, 16  ;;  %v3533_v7 = vshll.u32 %v3407_v6, 16  ;;  %v6685_v60 = vunpack.c.l.b16 %v5922_v1 }
 0x28e   :  { %v957_v18 = vpop.f32.mrf.mxu1 }
 0x28f   :  { %v2830_v43 = vadd.f32 %v2737_v0, %v2276_v33  ;;  %v8752_v0 = vld [vmem:[%s12272_s3 + $0x18] sm:$0xf]  ;;  %v12331_v33 = vld [vmem:[#allocation24_spill] sm:$0xff]  ;;  %v3529_v9 = vrot.slane %v3527_v32, 5  ;;  %v10744_v6 = vrot.slane %v3533_v7, 5  ;;  %v12333_v32 = vld [vmem:[#allocation26_spill] sm:$0xff] }
 0x290   :  { %v3294_v24 = vpop.f32.mrf.mxu0  ;;  %v958_v21 = vadd.f32 %v957_v18, %v12331_v33  ;;  %v5924_v44 = vshrl.u32 %v8752_v0, 16  ;;  %v5927_v10 = vshll.u32 %v8752_v0, 16  ;;  %v5912_v18 = vsel %vm9654_vm2, %v5907_v28, %v10703_v41 }
 0x291   :  { %996 = vmatmul.bf16.gmra.mxu1 %v8924_v49  ;;  %2225 = vmatmul.bf16.gmra.mxu2 %v1981_v59  ;;  %v10728_v45 = vadd.f32 %v3291_v50, %v2830_v43  ;;  %v8753_v59 = vld [vmem:[%s12272_s3 + $0x1c] sm:$0xf]  ;;  %v3512_v50 = vsel %vm9654_vm2, %v3507_v12, %v10698_v11  ;;  %v3526_v43 = vrot.slane %v3524_v25, 4  ;;  %v3408_v11 = vld [vmem:[%s12273_s1 + $0x14] sm:$0x1]  ;;  %v3539_v12 = vrot.slane %v3537_v27, 4 }
 0x292   :  { %2779 = vmatmul.bf16.gmra.mxu3 %v9012_v37  ;;  %v3522_v37 = vsel %vm9654_vm2, %v3517_v46, %v3521_v54  ;;  %v5933_v54 = vshll.u32 %v8753_v59, 16  ;;  %v5937_v46 = vshrl.u32 %v8753_v59, 16  ;;  %v4284_v41 = vunpack.c.l.b16 %v3512_v50  ;;  %v8754_v27 = vld [vmem:[%s12272_s3 + $0x20] sm:$0x1] }
 0x293   :  { %12330 = vst [vmem:[#allocation22_spill] sm:$0xff] %v10728_v45  ;;  %3333 = vmatmul.bf16.gmra.mxu0 %v9052_v5  ;;  %v4285_v28 = vunpack.c.l.b16 %v3522_v37  ;;  %v6684_v45 = vunpack.c.l.b16 %v5912_v18  ;;  %v3530_v52 = vor.u32 %v3529_v9, %v3526_v43  ;;  %v3543_v20 = vshll.u32 %v3408_v11, 16  ;;  %v9109_v18 = vld [vmem:[%s12271_s2 + $0x8] sm:$0xff] }
 0x294   :  { %v2186_v49 = vpop.f32.mrf.mxu2  ;;  %v3540_v7 = vor.u32 %v3539_v12, %v10744_v6  ;;  %v5939_v56 = vrot.slane %v5937_v46, 4  ;;  %v3409_v46 = vld [vmem:[%s12273_s1 + $0x18] sm:$0xf] }
 0x295   :  { %v2277_v35 = vadd.f32 %v2186_v49, %v958_v21  ;;  %v2740_v15 = vpop.f32.mrf.mxu3  ;;  %v5926_v21 = vrot.slane %v5924_v44, 4  ;;  %v5929_v49 = vrot.slane %v5927_v10, 5  ;;  %v4348_v50 = vpack.c.b16 %v4285_v28, %v4284_v41 }
 0x296   :  { %v959_v5 = vpop.f32.mrf.mxu1  ;;  %v3531_v1 = vrot.slane %v3530_v52, 4  ;;  %v3545_v43 = vrot.slane %v3543_v20, 5  ;;  %v3541_v11 = vrot.slane %v3540_v7, 4  ;;  %v3551_v7 = vshll.u32 %v3409_v46, 16 }
 0x297   :  { %v2831_v0 = vadd.f32 %v2740_v15, %v2277_v35  ;;  %v960_v15 = vadd.f32 %v959_v5, %v12333_v32  ;;  %v5935_v35 = vrot.slane %v5933_v54, 5  ;;  %v5930_v59 = vor.u32 %v5929_v49, %v5926_v21  ;;  %v3410_v21 = vld [vmem:[%s12273_s1 + $0x1c] sm:$0xf] }
 0x298   :  { %v3296_v33 = vpop.f32.mrf.mxu0  ;;  %v6748_v5 = vpack.c.b16 %v6685_v60, %v6684_v45  ;;  %v5943_v54 = vshll.u32 %v8754_v27, 16  ;;  %v8755_v60 = vld [vmem:[%s12272_s3 + $0x24] sm:$0xf]  ;;  %v3546_v28 = vsel %vm9654_vm2, %v3541_v11, %v3545_v43  ;;  %v3557_v27 = vshll.u32 %v3410_v21, 16 }
 0x299   :  { %v10749_v25 = vadd.f32 %v3294_v24, %v2831_v0  ;;  %v9069_v24 = vld [vmem:[%s12272_s3 + $0xc] sm:$0xff]  ;;  %v5940_v12 = vor.u32 %v5939_v56, %v5935_v35  ;;  %v3536_v56 = vsel %vm9654_vm2, %v3531_v1, %v10744_v6  ;;  %v12335_v45 = vld [vmem:[#allocation2_spill] sm:$0xff]  ;;  %v3548_v6 = vshrl.u32 %v3409_v46, 16 }
 0x29a   :  { %v5945_v20 = vrot.slane %v5943_v54, 5  ;;  %v3411_v46 = vld [vmem:[%s12273_s1 + $0x20] sm:$0x1] }
 0x29b   :  { %12332 = vst [vmem:[#allocation24_spill] sm:$0xff] %v10749_v25  ;;  %v5941_v52 = vrot.slane %v5940_v12, 4  ;;  %v4287_v12 = vunpack.c.l.b16 %v3546_v28 }
 0x29c   :  { %v2188_v2 = vpop.f32.mrf.mxu2 }
 0x29d   :  { %v2278_v44 = vadd.f32 %v2188_v2, %v960_v15  ;;  %v2742_v10 = vpop.f32.mrf.mxu3  ;;  %v5931_v2 = vrot.slane %v5930_v59, 4  ;;  %v5946_v11 = vsel %vm9654_vm2, %v5941_v52, %v5945_v20  ;;  %v12337_v20 = vld [vmem:[#allocation3_spill] sm:$0xff] }
 0x29e   :  { %v962_v37 = vpop.f32.mrf.mxu1 }
 0x29f   :  { %v2832_v9 = vadd.f32 %v2742_v10, %v2278_v44  ;;  %v963_v41 = vadd.f32 %v962_v37, %v12335_v45  ;;  %v5936_v15 = vsel %vm9654_vm2, %v5931_v2, %v5935_v35  ;;  %v3561_v10 = vshrl.u32 %v3410_v21, 16 }
 0x2a0   :  { %v3299_v0 = vpop.f32.mrf.mxu0  ;;  %v6686_v54 = vunpack.c.l.b16 %v5936_v15  ;;  %v3550_v35 = vrot.slane %v3548_v6, 4  ;;  %v3553_v2 = vrot.slane %v3551_v7, 5  ;;  %v10789_v21 = vrot.slane %v3557_v27, 5 }
 0x2a1   :  { %4468 = vmatmul.bf16.vlgmr.msra.gmra.mxu1 %v4348_v50  ;;  %5023 = vmatmul.bf16.vlgmr.msra.gmra.mxu2 %v9069_v24  ;;  %v10768_v49 = vadd.f32 %v3296_v33, %v2832_v9  ;;  %v8756_v33 = vld [vmem:[%s12272_s3 + $0x28] sm:$0xf]  ;;  %v5948_v50 = vshrl.u32 %v8755_v60, 16  ;;  %v5951_v24 = vshll.u32 %v8755_v60, 16  ;;  %v4286_v9 = vunpack.c.l.b16 %v3536_v56  ;;  %v8757_v56 = vld [vmem:[%s12272_s3 + $0x2c] sm:$0x1] }
 0x2a2   :  { %5578 = vmatmul.bf16.vlgmr.msra.gmra.mxu3 %v9109_v18  ;;  %v5957_v18 = vshll.u32 %v8756_v33, 16  ;;  %v3563_v60 = vrot.slane %v3561_v10, 4  ;;  %v3567_v27 = vshll.u32 %v3411_v46, 16 }
 0x2a3   :  { %12334 = vst [vmem:[#allocation26_spill] sm:$0xff] %v10768_v49  ;;  %6868 = vmatmul.bf16.vlgmr.msra.gmra.mxu0 %v6748_v5  ;;  %v5961_v5 = vshrl.u32 %v8756_v33, 16  ;;  %v5950_v45 = vrot.slane %v5948_v50, 4  ;;  %v6687_v33 = vunpack.c.l.b16 %v5946_v11  ;;  %v4349_v7 = vpack.c.b16 %v4287_v12, %v4286_v9  ;;  %v9070_v50 = vld [vmem:[%s12272_s3 + $0x18] sm:$0xff]  ;;  %v3412_v12 = vld [vmem:[%s12273_s1 + $0x24] sm:$0xf] }
 0x2a4   :  { %v2191_v32 = vpop.f32.mrf.mxu2  ;;  %v3569_v46 = vrot.slane %v3567_v27, 5 }
 0x2a5   :  { %v2279_v59 = vadd.f32 %v2191_v32, %v963_v41  ;;  %v2745_v44 = vpop.f32.mrf.mxu3  ;;  %v5953_v41 = vrot.slane %v5951_v24, 5  ;;  %v10794_v32 = vrot.slane %v5957_v18, 5  ;;  %v5963_v28 = vrot.slane %v5961_v5, 4 }
 0x2a6   :  { %v964_v37 = vpop.f32.mrf.mxu1  ;;  %v3564_v24 = vor.u32 %v3563_v60, %v10789_v21  ;;  %v5967_v18 = vshll.u32 %v8757_v56, 16 }
 0x2a7   :  { %v2833_v1 = vadd.f32 %v2745_v44, %v2279_v59  ;;  %v965_v15 = vadd.f32 %v964_v37, %v12337_v20  ;;  %v3554_v59 = vor.u32 %v3553_v2, %v3550_v35  ;;  %v5954_v11 = vor.u32 %v5953_v41, %v5950_v45  ;;  %v3413_v35 = vld [vmem:[%s12273_s1 + $0x28] sm:$0xf] }
 0x2a8   :  { %v3301_v43 = vpop.f32.mrf.mxu0  ;;  %v6749_v37 = vpack.c.b16 %v6687_v33, %v6686_v54  ;;  %v5964_v5 = vor.u32 %v5963_v28, %v10794_v32  ;;  %v3565_v60 = vrot.slane %v3564_v24, 4  ;;  %v5969_v41 = vrot.slane %v5967_v18, 5  ;;  %v8758_v54 = vld [vmem:[%s12272_s3 + $0x30] sm:$0xf] }
 0x2a9   :  { %v10796_v52 = vadd.f32 %v3299_v0, %v2833_v1  ;;  %v9110_v0 = vld [vmem:[%s12271_s2 + $0x10] sm:$0xff]  ;;  %v3555_v2 = vrot.slane %v3554_v59, 4  ;;  %v5955_v45 = vrot.slane %v5954_v11, 4  ;;  %v3572_v28 = vshrl.u32 %v3412_v12, 16 }
 0x2aa   :  { %v5965_v56 = vrot.slane %v5964_v5, 4  ;;  %v3575_v20 = vshll.u32 %v3412_v12, 16  ;;  %v3585_v27 = vshrl.u32 %v3413_v35, 16  ;;  %v3570_v18 = vsel %vm9654_vm2, %v3565_v60, %v3569_v46 }
 0x2ab   :  { %12336 = vst [vmem:[#allocation2_spill] sm:$0xff] %v10796_v52  ;;  %v3574_v5 = vrot.slane %v3572_v28, 4 }
 0x2ac   :  { %v2193_v6 = vpop.f32.mrf.mxu2 }
 0x2ad   :  { %v2280_v44 = vadd.f32 %v2193_v6, %v965_v15  ;;  %v2747_v10 = vpop.f32.mrf.mxu3  ;;  %v3581_v15 = vshll.u32 %v3413_v35, 16  ;;  %v12339_v6 = vld [vmem:[#allocation4_spill] sm:$0xff] }
 0x2ae   :  { %v967_v49 = vpop.f32.mrf.mxu1 }
 0x2af   :  { %v2834_v1 = vadd.f32 %v2747_v10, %v2280_v44  ;;  %v968_v59 = vadd.f32 %v967_v49, %v12339_v6  ;;  %v8759_v44 = vld [vmem:[%s12272_s3 + $0x34] sm:$0xf]  ;;  %v5972_v10 = vshrl.u32 %v8758_v54, 16  ;;  %v5960_v49 = vsel %vm9654_vm2, %v5955_v45, %v10794_v32 }
 0x2b0   :  { %v3304_v9 = vpop.f32.mrf.mxu0  ;;  %v10832_v12 = vrot.slane %v3581_v15, 5  ;;  %v5981_v46 = vshll.u32 %v8759_v44, 16  ;;  %v5985_v60 = vshrl.u32 %v8759_v44, 16  ;;  %v4289_v45 = vunpack.c.l.b16 %v3570_v18 }
 0x2b1   :  { %4473 = vmatmul.bf16.gmra.mxu1 %v4349_v7  ;;  %5028 = vmatmul.bf16.gmra.mxu2 %v9070_v50  ;;  %v10816_v33 = vadd.f32 %v3301_v43, %v2834_v1  ;;  %v5975_v50 = vshll.u32 %v8758_v54, 16  ;;  %v3560_v43 = vsel %vm9654_vm2, %v3555_v2, %v10789_v21  ;;  %v3577_v1 = vrot.slane %v3575_v20, 5  ;;  %v3414_v21 = vld [vmem:[%s12273_s1 + $0x2c] sm:$0x1]  ;;  %v12341_v20 = vld [vmem:[#allocation5_spill] sm:$0xff] }
 0x2b2   :  { %5583 = vmatmul.bf16.gmra.mxu3 %v9110_v0  ;;  %v3587_v2 = vrot.slane %v3585_v27, 4  ;;  %v5974_v6 = vrot.slane %v5972_v10, 4  ;;  %v4288_v32 = vunpack.c.l.b16 %v3560_v43  ;;  %v5987_v52 = vrot.slane %v5985_v60, 4  ;;  %v8760_v27 = vld [vmem:[%s12272_s3 + $0x38] sm:$0x1] }
 0x2b3   :  { %12338 = vst [vmem:[#allocation3_spill] sm:$0xff] %v10816_v33  ;;  %6873 = vmatmul.bf16.gmra.mxu0 %v6749_v37  ;;  %v5970_v37 = vsel %vm9654_vm2, %v5965_v56, %v5969_v41  ;;  %v3578_v41 = vor.u32 %v3577_v1, %v3574_v5  ;;  %v3591_v56 = vshll.u32 %v3414_v21, 16  ;;  %v3415_v60 = vld [vmem:[%s12273_s1 + $0x30] sm:$0xf] }
 0x2b4   :  { %v2196_v7 = vpop.f32.mrf.mxu2  ;;  %v6689_v33 = vunpack.c.l.b16 %v5970_v37  ;;  %v4350_v43 = vpack.c.b16 %v4289_v45, %v4288_v32  ;;  %v12343_v32 = vld [vmem:[#allocation6_spill] sm:$0xff] }
 0x2b5   :  { %v2281_v24 = vadd.f32 %v2196_v7, %v968_v59  ;;  %v2750_v11 = vpop.f32.mrf.mxu3  ;;  %v5977_v59 = vrot.slane %v5975_v50, 5  ;;  %v6688_v7 = vunpack.c.l.b16 %v5960_v49  ;;  %v9111_v49 = vld [vmem:[%s12271_s2 + $0x18] sm:$0xff]  ;;  %v3579_v37 = vrot.slane %v3578_v41, 4 }
 0x2b6   :  { %v969_v0 = vpop.f32.mrf.mxu1  ;;  %v3593_v5 = vrot.slane %v3591_v56, 5 }
 0x2b7   :  { %v2835_v35 = vadd.f32 %v2750_v11, %v2281_v24  ;;  %v970_v15 = vadd.f32 %v969_v0, %v12341_v20  ;;  %v3588_v24 = vor.u32 %v3587_v2, %v10832_v12  ;;  %v5983_v11 = vrot.slane %v5981_v46, 5 }
 0x2b8   :  { %v3306_v54 = vpop.f32.mrf.mxu0  ;;  %v5978_v44 = vor.u32 %v5977_v59, %v5974_v6  ;;  %v6750_v0 = vpack.c.b16 %v6689_v33, %v6688_v7  ;;  %v5991_v46 = vshll.u32 %v8760_v27, 16  ;;  %v3416_v6 = vld [vmem:[%s12273_s1 + $0x34] sm:$0xf]  ;;  %v8761_v33 = vld [vmem:[%s12272_s3 + $0x3c] sm:$0xf] }
 0x2b9   :  { %v10837_v28 = vadd.f32 %v3304_v9, %v2835_v35  ;;  %v9071_v9 = vld [vmem:[%s12272_s3 + $0x24] sm:$0xff]  ;;  %v3589_v21 = vrot.slane %v3588_v24, 4  ;;  %v5988_v2 = vor.u32 %v5987_v52, %v5983_v11  ;;  %v3584_v52 = vsel %vm9654_vm2, %v3579_v37, %v10832_v12 }
 0x2ba   :  { %v5993_v56 = vrot.slane %v5991_v46, 5  ;;  %v3596_v12 = vshrl.u32 %v3415_v60, 16  ;;  %v3599_v24 = vshll.u32 %v3415_v60, 16  ;;  %v3605_v27 = vshll.u32 %v3416_v6, 16  ;;  %v3417_v60 = vld [vmem:[%s12273_s1 + $0x38] sm:$0x1] }
 0x2bb   :  { %12340 = vst [vmem:[#allocation4_spill] sm:$0xff] %v10837_v28  ;;  %v3594_v7 = vsel %vm9654_vm2, %v3589_v21, %v3593_v5  ;;  %v5989_v41 = vrot.slane %v5988_v2, 4 }
 0x2bc   :  { %v2198_v25 = vpop.f32.mrf.mxu2  ;;  %v4291_v2 = vunpack.c.l.b16 %v3594_v7 }
 0x2bd   :  { %v2282_v10 = vadd.f32 %v2198_v25, %v970_v15  ;;  %v2752_v50 = vpop.f32.mrf.mxu3  ;;  %v5979_v25 = vrot.slane %v5978_v44, 4  ;;  %v5994_v21 = vsel %vm9654_vm2, %v5989_v41, %v5993_v56  ;;  %v12345_v56 = vld [vmem:[#allocation7_spill] sm:$0xff] }
 0x2be   :  { %v972_v18 = vpop.f32.mrf.mxu1 }
 0x2bf   :  { %v2836_v1 = vadd.f32 %v2752_v50, %v2282_v10  ;;  %v973_v45 = vadd.f32 %v972_v18, %v12343_v32  ;;  %v5984_v15 = vsel %vm9654_vm2, %v5979_v25, %v5983_v11  ;;  %v3609_v50 = vshrl.u32 %v3416_v6, 16 }
 0x2c0   :  { %v3309_v35 = vpop.f32.mrf.mxu0  ;;  %v6690_v46 = vunpack.c.l.b16 %v5984_v15  ;;  %v3598_v11 = vrot.slane %v3596_v12, 4  ;;  %v3601_v25 = vrot.slane %v3599_v24, 5  ;;  %v10877_v6 = vrot.slane %v3605_v27, 5 }
 0x2c1   :  { %4478 = vmatmul.bf16.gmra.mxu1 %v4350_v43  ;;  %5033 = vmatmul.bf16.gmra.mxu2 %v9071_v9  ;;  %v10856_v59 = vadd.f32 %v3306_v54, %v2836_v1  ;;  %v8762_v54 = vld [vmem:[%s12272_s3 + $0x40] sm:$0xf]  ;;  %v5996_v43 = vshrl.u32 %v8761_v33, 16  ;;  %v5999_v9 = vshll.u32 %v8761_v33, 16  ;;  %v4290_v1 = vunpack.c.l.b16 %v3584_v52  ;;  %v8763_v52 = vld [vmem:[%s12272_s3 + $0x44] sm:$0x1] }
 0x2c2   :  { %5588 = vmatmul.bf16.gmra.mxu3 %v9111_v49  ;;  %v6005_v49 = vshll.u32 %v8762_v54, 16  ;;  %v3611_v33 = vrot.slane %v3609_v50, 4  ;;  %v3615_v27 = vshll.u32 %v3417_v60, 16 }
 0x2c3   :  { %12342 = vst [vmem:[#allocation5_spill] sm:$0xff] %v10856_v59  ;;  %6878 = vmatmul.bf16.gmra.mxu0 %v6750_v0  ;;  %v6009_v0 = vshrl.u32 %v8762_v54, 16  ;;  %v5998_v32 = vrot.slane %v5996_v43, 4  ;;  %v6691_v54 = vunpack.c.l.b16 %v5994_v21  ;;  %v4351_v24 = vpack.c.b16 %v4291_v2, %v4290_v1  ;;  %v9072_v43 = vld [vmem:[%s12272_s3 + $0x30] sm:$0xff]  ;;  %v3418_v2 = vld [vmem:[%s12273_s1 + $0x3c] sm:$0xf] }
 0x2c4   :  { %v2201_v20 = vpop.f32.mrf.mxu2  ;;  %v3617_v60 = vrot.slane %v3615_v27, 5 }
 0x2c5   :  { %v2283_v44 = vadd.f32 %v2201_v20, %v973_v45  ;;  %v2755_v10 = vpop.f32.mrf.mxu3  ;;  %v6001_v45 = vrot.slane %v5999_v9, 5  ;;  %v10882_v20 = vrot.slane %v6005_v49, 5  ;;  %v6011_v7 = vrot.slane %v6009_v0, 4 }
 0x2c6   :  { %v974_v18 = vpop.f32.mrf.mxu1  ;;  %v3612_v9 = vor.u32 %v3611_v33, %v10877_v6  ;;  %v6015_v49 = vshll.u32 %v8763_v52, 16 }
 0x2c7   :  { %v2837_v37 = vadd.f32 %v2755_v10, %v2283_v44  ;;  %v975_v15 = vadd.f32 %v974_v18, %v12345_v56  ;;  %v3602_v44 = vor.u32 %v3601_v25, %v3598_v11  ;;  %v6002_v21 = vor.u32 %v6001_v45, %v5998_v32  ;;  %v3419_v11 = vld [vmem:[%s12273_s1 + $0x40] sm:$0xf] }
 0x2c8   :  { %v3311_v5 = vpop.f32.mrf.mxu0  ;;  %v6751_v18 = vpack.c.b16 %v6691_v54, %v6690_v46  ;;  %v6012_v0 = vor.u32 %v6011_v7, %v10882_v20  ;;  %v3613_v33 = vrot.slane %v3612_v9, 4  ;;  %v6017_v45 = vrot.slane %v6015_v49, 5  ;;  %v8764_v46 = vld [vmem:[%s12272_s3 + $0x48] sm:$0xf] }
 0x2c9   :  { %v10884_v41 = vadd.f32 %v3309_v35, %v2837_v37  ;;  %v9112_v35 = vld [vmem:[%s12271_s2 + $0x20] sm:$0xff]  ;;  %v3603_v25 = vrot.slane %v3602_v44, 4  ;;  %v6003_v32 = vrot.slane %v6002_v21, 4  ;;  %v3620_v7 = vshrl.u32 %v3418_v2, 16 }
 0x2ca   :  { %v6013_v52 = vrot.slane %v6012_v0, 4  ;;  %v3623_v56 = vshll.u32 %v3418_v2, 16  ;;  %v3633_v27 = vshrl.u32 %v3419_v11, 16  ;;  %v3618_v49 = vsel %vm9654_vm2, %v3613_v33, %v3617_v60 }
 0x2cb   :  { %12344 = vst [vmem:[#allocation6_spill] sm:$0xff] %v10884_v41  ;;  %v3622_v0 = vrot.slane %v3620_v7, 4 }
 0x2cc   :  { %v2203_v12 = vpop.f32.mrf.mxu2 }
 0x2cd   :  { %v2284_v10 = vadd.f32 %v2203_v12, %v975_v15  ;;  %v2757_v50 = vpop.f32.mrf.mxu3  ;;  %v3629_v15 = vshll.u32 %v3419_v11, 16  ;;  %v12347_v12 = vld [vmem:[#allocation9_spill] sm:$0xff] }
 0x2ce   :  { %v977_v59 = vpop.f32.mrf.mxu1 }
 0x2cf   :  { %v2838_v37 = vadd.f32 %v2757_v50, %v2284_v10  ;;  %v978_v44 = vadd.f32 %v977_v59, %v12347_v12  ;;  %v8765_v10 = vld [vmem:[%s12272_s3 + $0x4c] sm:$0xf]  ;;  %v6020_v50 = vshrl.u32 %v8764_v46, 16  ;;  %v6008_v59 = vsel %vm9654_vm2, %v6003_v32, %v10882_v20 }
 0x2d0   :  { %v3314_v1 = vpop.f32.mrf.mxu0  ;;  %v10920_v2 = vrot.slane %v3629_v15, 5  ;;  %v6029_v60 = vshll.u32 %v8765_v10, 16  ;;  %v6033_v33 = vshrl.u32 %v8765_v10, 16  ;;  %v4293_v32 = vunpack.c.l.b16 %v3618_v49 }
 0x2d1   :  { %4483 = vmatmul.bf16.gmra.mxu1 %v4351_v24  ;;  %5038 = vmatmul.bf16.gmra.mxu2 %v9072_v43  ;;  %v10904_v54 = vadd.f32 %v3311_v5, %v2838_v37  ;;  %v6023_v43 = vshll.u32 %v8764_v46, 16  ;;  %v3608_v5 = vsel %vm9654_vm2, %v3603_v25, %v10877_v6  ;;  %v3625_v37 = vrot.slane %v3623_v56, 5  ;;  %v3420_v6 = vld [vmem:[%s12273_s1 + $0x44] sm:$0x1]  ;;  %v12349_v56 = vld [vmem:[#allocation11_spill] sm:$0xff] }
 0x2d2   :  { %5593 = vmatmul.bf16.gmra.mxu3 %v9112_v35  ;;  %v3635_v25 = vrot.slane %v3633_v27, 4  ;;  %v6022_v12 = vrot.slane %v6020_v50, 4  ;;  %v4292_v20 = vunpack.c.l.b16 %v3608_v5  ;;  %v6035_v41 = vrot.slane %v6033_v33, 4  ;;  %v8766_v27 = vld [vmem:[%s12272_s3 + $0x50] sm:$0x1] }
 0x2d3   :  { %12346 = vst [vmem:[#allocation7_spill] sm:$0xff] %v10904_v54  ;;  %6883 = vmatmul.bf16.gmra.mxu0 %v6751_v18  ;;  %v6018_v18 = vsel %vm9654_vm2, %v6013_v52, %v6017_v45  ;;  %v3626_v45 = vor.u32 %v3625_v37, %v3622_v0  ;;  %v3639_v52 = vshll.u32 %v3420_v6, 16  ;;  %v3421_v33 = vld [vmem:[%s12273_s1 + $0x48] sm:$0xf] }
 0x2d4   :  { %v2206_v24 = vpop.f32.mrf.mxu2  ;;  %v6693_v54 = vunpack.c.l.b16 %v6018_v18  ;;  %v4352_v5 = vpack.c.b16 %v4293_v32, %v4292_v20  ;;  %v12351_v20 = vld [vmem:[#allocation13_spill] sm:$0xff] }
 0x2d5   :  { %v2285_v9 = vadd.f32 %v2206_v24, %v978_v44  ;;  %v2760_v21 = vpop.f32.mrf.mxu3  ;;  %v6025_v44 = vrot.slane %v6023_v43, 5  ;;  %v6692_v24 = vunpack.c.l.b16 %v6008_v59  ;;  %v9113_v59 = vld [vmem:[%s12271_s2 + $0x28] sm:$0xff]  ;;  %v3627_v18 = vrot.slane %v3626_v45, 4 }
 0x2d6   :  { %v979_v35 = vpop.f32.mrf.mxu1  ;;  %v3641_v0 = vrot.slane %v3639_v52, 5 }
 0x2d7   :  { %v2839_v11 = vadd.f32 %v2760_v21, %v2285_v9  ;;  %v980_v15 = vadd.f32 %v979_v35, %v12349_v56  ;;  %v3636_v9 = vor.u32 %v3635_v25, %v10920_v2  ;;  %v6031_v21 = vrot.slane %v6029_v60, 5 }
 0x2d8   :  { %v3316_v46 = vpop.f32.mrf.mxu0  ;;  %v6026_v10 = vor.u32 %v6025_v44, %v6022_v12  ;;  %v6752_v35 = vpack.c.b16 %v6693_v54, %v6692_v24  ;;  %v6039_v60 = vshll.u32 %v8766_v27, 16  ;;  %v3422_v12 = vld [vmem:[%s12273_s1 + $0x4c] sm:$0xf]  ;;  %v8767_v54 = vld [vmem:[%s12272_s3 + $0x54] sm:$0xf] }
 0x2d9   :  { %v10925_v7 = vadd.f32 %v3314_v1, %v2839_v11  ;;  %v9073_v1 = vld [vmem:[%s12272_s3 + $0x3c] sm:$0xff]  ;;  %v3637_v6 = vrot.slane %v3636_v9, 4  ;;  %v6036_v25 = vor.u32 %v6035_v41, %v6031_v21  ;;  %v3632_v41 = vsel %vm9654_vm2, %v3627_v18, %v10920_v2 }
 0x2da   :  { %v6041_v52 = vrot.slane %v6039_v60, 5  ;;  %v3644_v2 = vshrl.u32 %v3421_v33, 16  ;;  %v3647_v9 = vshll.u32 %v3421_v33, 16  ;;  %v3653_v27 = vshll.u32 %v3422_v12, 16  ;;  %v3423_v33 = vld [vmem:[%s12273_s1 + $0x50] sm:$0x1] }
 0x2db   :  { %12348 = vst [vmem:[#allocation9_spill] sm:$0xff] %v10925_v7  ;;  %v3642_v24 = vsel %vm9654_vm2, %v3637_v6, %v3641_v0  ;;  %v6037_v45 = vrot.slane %v6036_v25, 4 }
 0x2dc   :  { %v2208_v28 = vpop.f32.mrf.mxu2  ;;  %v4295_v25 = vunpack.c.l.b16 %v3642_v24 }
 0x2dd   :  { %v2286_v50 = vadd.f32 %v2208_v28, %v980_v15  ;;  %v2762_v43 = vpop.f32.mrf.mxu3  ;;  %v6027_v28 = vrot.slane %v6026_v10, 4  ;;  %v6042_v6 = vsel %vm9654_vm2, %v6037_v45, %v6041_v52  ;;  %v12353_v52 = vld [vmem:[#allocation15_spill] sm:$0xff] }
 0x2de   :  { %v982_v49 = vpop.f32.mrf.mxu1 }
 0x2df   :  { %v2840_v37 = vadd.f32 %v2762_v43, %v2286_v50  ;;  %v983_v32 = vadd.f32 %v982_v49, %v12351_v20  ;;  %v6032_v15 = vsel %vm9654_vm2, %v6027_v28, %v6031_v21  ;;  %v3657_v43 = vshrl.u32 %v3422_v12, 16 }
 0x2e0   :  { %v3319_v11 = vpop.f32.mrf.mxu0  ;;  %v6694_v60 = vunpack.c.l.b16 %v6032_v15  ;;  %v3646_v21 = vrot.slane %v3644_v2, 4  ;;  %v3649_v28 = vrot.slane %v3647_v9, 5  ;;  %v10965_v12 = vrot.slane %v3653_v27, 5 }
 0x2e1   :  { %4488 = vmatmul.bf16.gmra.mxu1 %v4352_v5  ;;  %5043 = vmatmul.bf16.gmra.mxu2 %v9073_v1  ;;  %v10944_v44 = vadd.f32 %v3316_v46, %v2840_v37  ;;  %v8768_v46 = vld [vmem:[%s12272_s3 + $0x58] sm:$0xf]  ;;  %v6044_v5 = vshrl.u32 %v8767_v54, 16  ;;  %v6047_v1 = vshll.u32 %v8767_v54, 16  ;;  %v4294_v37 = vunpack.c.l.b16 %v3632_v41  ;;  %v8769_v41 = vld [vmem:[%s12272_s3 + $0x5c] sm:$0x1] }
 0x2e2   :  { %5598 = vmatmul.bf16.gmra.mxu3 %v9113_v59  ;;  %v6053_v59 = vshll.u32 %v8768_v46, 16  ;;  %v3659_v54 = vrot.slane %v3657_v43, 4  ;;  %v3663_v27 = vshll.u32 %v3423_v33, 16 }
 0x2e3   :  { %12350 = vst [vmem:[#allocation11_spill] sm:$0xff] %v10944_v44  ;;  %6888 = vmatmul.bf16.gmra.mxu0 %v6752_v35  ;;  %v6057_v35 = vshrl.u32 %v8768_v46, 16  ;;  %v6046_v20 = vrot.slane %v6044_v5, 4  ;;  %v6695_v46 = vunpack.c.l.b16 %v6042_v6  ;;  %v4353_v9 = vpack.c.b16 %v4295_v25, %v4294_v37  ;;  %v9074_v5 = vld [vmem:[%s12272_s3 + $0x48] sm:$0xff]  ;;  %v3424_v25 = vld [vmem:[%s12273_s1 + $0x54] sm:$0xf] }
 0x2e4   :  { %v2211_v56 = vpop.f32.mrf.mxu2  ;;  %v3665_v33 = vrot.slane %v3663_v27, 5 }
 0x2e5   :  { %v2287_v10 = vadd.f32 %v2211_v56, %v983_v32  ;;  %v2765_v50 = vpop.f32.mrf.mxu3  ;;  %v6049_v32 = vrot.slane %v6047_v1, 5  ;;  %v10970_v56 = vrot.slane %v6053_v59, 5  ;;  %v6059_v24 = vrot.slane %v6057_v35, 4 }
 0x2e6   :  { %v984_v49 = vpop.f32.mrf.mxu1  ;;  %v3660_v1 = vor.u32 %v3659_v54, %v10965_v12  ;;  %v6063_v59 = vshll.u32 %v8769_v41, 16 }
 0x2e7   :  { %v2841_v18 = vadd.f32 %v2765_v50, %v2287_v10  ;;  %v985_v15 = vadd.f32 %v984_v49, %v12353_v52  ;;  %v3650_v10 = vor.u32 %v3649_v28, %v3646_v21  ;;  %v6050_v6 = vor.u32 %v6049_v32, %v6046_v20  ;;  %v3425_v21 = vld [vmem:[%s12273_s1 + $0x58] sm:$0xf] }
 0x2e8   :  { %v3321_v0 = vpop.f32.mrf.mxu0  ;;  %v6753_v49 = vpack.c.b16 %v6695_v46, %v6694_v60  ;;  %v6060_v35 = vor.u32 %v6059_v24, %v10970_v56  ;;  %v3661_v54 = vrot.slane %v3660_v1, 4  ;;  %v6065_v32 = vrot.slane %v6063_v59, 5  ;;  %v8770_v60 = vld [vmem:[%s12272_s3 + $0x60] sm:$0xf] }
 0x2e9   :  { %v10972_v45 = vadd.f32 %v3319_v11, %v2841_v18  ;;  %v9114_v11 = vld [vmem:[%s12271_s2 + $0x30] sm:$0xff]  ;;  %v3651_v28 = vrot.slane %v3650_v10, 4  ;;  %v6051_v20 = vrot.slane %v6050_v6, 4  ;;  %v3668_v24 = vshrl.u32 %v3424_v25, 16 }
 0x2ea   :  { %v6061_v41 = vrot.slane %v6060_v35, 4  ;;  %v3671_v52 = vshll.u32 %v3424_v25, 16  ;;  %v3681_v27 = vshrl.u32 %v3425_v21, 16  ;;  %v3666_v59 = vsel %vm9654_vm2, %v3661_v54, %v3665_v33 }
 0x2eb   :  { %12352 = vst [vmem:[#allocation13_spill] sm:$0xff] %v10972_v45  ;;  %v3670_v35 = vrot.slane %v3668_v24, 4 }
 0x2ec   :  { %v2213_v2 = vpop.f32.mrf.mxu2 }
 0x2ed   :  { %v2288_v50 = vadd.f32 %v2213_v2, %v985_v15  ;;  %v2767_v43 = vpop.f32.mrf.mxu3  ;;  %v3677_v15 = vshll.u32 %v3425_v21, 16  ;;  %v12355_v2 = vld [vmem:[#allocation17_spill] sm:$0xff] }
 0x2ee   :  { %v987_v44 = vpop.f32.mrf.mxu1 }
 0x2ef   :  { %v2842_v18 = vadd.f32 %v2767_v43, %v2288_v50  ;;  %v988_v10 = vadd.f32 %v987_v44, %v12355_v2  ;;  %v8771_v50 = vld [vmem:[%s12272_s3 + $0x64] sm:$0xf]  ;;  %v6068_v43 = vshrl.u32 %v8770_v60, 16  ;;  %v6056_v44 = vsel %vm9654_vm2, %v6051_v20, %v10970_v56 }
 0x2f0   :  { %v3324_v37 = vpop.f32.mrf.mxu0  ;;  %v11008_v25 = vrot.slane %v3677_v15, 5  ;;  %v6077_v33 = vshll.u32 %v8771_v50, 16  ;;  %v6081_v54 = vshrl.u32 %v8771_v50, 16  ;;  %v4297_v20 = vunpack.c.l.b16 %v3666_v59 }
 0x2f1   :  { %4493 = vmatmul.bf16.gmra.mxu1 %v4353_v9  ;;  %5048 = vmatmul.bf16.gmra.mxu2 %v9074_v5  ;;  %v10992_v46 = vadd.f32 %v3321_v0, %v2842_v18  ;;  %v6071_v5 = vshll.u32 %v8770_v60, 16  ;;  %v3656_v0 = vsel %vm9654_vm2, %v3651_v28, %v10965_v12  ;;  %v3673_v18 = vrot.slane %v3671_v52, 5  ;;  %v3426_v12 = vld [vmem:[%s12273_s1 + $0x5c] sm:$0x1]  ;;  %v12357_v52 = vld [vmem:[#allocation19_spill] sm:$0xff] }
 0x2f2   :  { %5603 = vmatmul.bf16.gmra.mxu3 %v9114_v11  ;;  %v3683_v28 = vrot.slane %v3681_v27, 4  ;;  %v6070_v2 = vrot.slane %v6068_v43, 4  ;;  %v4296_v56 = vunpack.c.l.b16 %v3656_v0  ;;  %v6083_v45 = vrot.slane %v6081_v54, 4  ;;  %v8772_v27 = vld [vmem:[%s12272_s3 + $0x68] sm:$0x1] }
 0x2f3   :  { %12354 = vst [vmem:[#allocation15_spill] sm:$0xff] %v10992_v46  ;;  %6893 = vmatmul.bf16.gmra.mxu0 %v6753_v49  ;;  %v6066_v49 = vsel %vm9654_vm2, %v6061_v41, %v6065_v32  ;;  %v3674_v32 = vor.u32 %v3673_v18, %v3670_v35  ;;  %v3687_v41 = vshll.u32 %v3426_v12, 16  ;;  %v3427_v54 = vld [vmem:[%s12273_s1 + $0x60] sm:$0xf] }
 0x2f4   :  { %v2216_v9 = vpop.f32.mrf.mxu2  ;;  %v6697_v46 = vunpack.c.l.b16 %v6066_v49  ;;  %v4354_v0 = vpack.c.b16 %v4297_v20, %v4296_v56  ;;  %v12359_v56 = vld [vmem:[#allocation21_spill] sm:$0xff] }
 0x2f5   :  { %v2289_v1 = vadd.f32 %v2216_v9, %v988_v10  ;;  %v2770_v6 = vpop.f32.mrf.mxu3  ;;  %v6073_v10 = vrot.slane %v6071_v5, 5  ;;  %v6696_v9 = vunpack.c.l.b16 %v6056_v44  ;;  %v9115_v44 = vld [vmem:[%s12271_s2 + $0x38] sm:$0xff]  ;;  %v3675_v49 = vrot.slane %v3674_v32, 4 }
 0x2f6   :  { %v989_v11 = vpop.f32.mrf.mxu1  ;;  %v3689_v35 = vrot.slane %v3687_v41, 5 }
 0x2f7   :  { %v2843_v21 = vadd.f32 %v2770_v6, %v2289_v1  ;;  %v990_v15 = vadd.f32 %v989_v11, %v12357_v52  ;;  %v3684_v1 = vor.u32 %v3683_v28, %v11008_v25  ;;  %v6079_v6 = vrot.slane %v6077_v33, 5 }
 0x2f8   :  { %v3326_v60 = vpop.f32.mrf.mxu0  ;;  %v6074_v50 = vor.u32 %v6073_v10, %v6070_v2  ;;  %v6754_v11 = vpack.c.b16 %v6697_v46, %v6696_v9  ;;  %v6087_v33 = vshll.u32 %v8772_v27, 16  ;;  %v3428_v2 = vld [vmem:[%s12273_s1 + $0x64] sm:$0xf]  ;;  %v8773_v46 = vld [vmem:[%s12272_s3 + $0x6c] sm:$0xf] }
 0x2f9   :  { %v11013_v24 = vadd.f32 %v3324_v37, %v2843_v21  ;;  %v9075_v37 = vld [vmem:[%s12272_s3 + $0x54] sm:$0xff]  ;;  %v3685_v12 = vrot.slane %v3684_v1, 4  ;;  %v6084_v28 = vor.u32 %v6083_v45, %v6079_v6  ;;  %v3680_v45 = vsel %vm9654_vm2, %v3675_v49, %v11008_v25 }
 0x2fa   :  { %v6089_v41 = vrot.slane %v6087_v33, 5  ;;  %v3692_v25 = vshrl.u32 %v3427_v54, 16  ;;  %v3695_v1 = vshll.u32 %v3427_v54, 16  ;;  %v3701_v27 = vshll.u32 %v3428_v2, 16 }
 0x2fb   :  { %12356 = vst [vmem:[#allocation17_spill] sm:$0xff] %v11013_v24  ;;  %v3690_v9 = vsel %vm9654_vm2, %v3685_v12, %v3689_v35  ;;  %v6085_v32 = vrot.slane %v6084_v28, 4 }
 0x2fc   :  { %v2218_v7 = vpop.f32.mrf.mxu2  ;;  %v4299_v28 = vunpack.c.l.b16 %v3690_v9  ;;  %v11050_v54 = vrot.slane %v3701_v27, 5  ;;  %v8775_v9 = vld [vmem:[%s12272_s3 + $0x74] sm:$0x1] }
 0x2fd   :  { %v2290_v43 = vadd.f32 %v2218_v7, %v990_v15  ;;  %v2772_v5 = vpop.f32.mrf.mxu3  ;;  %v6075_v7 = vrot.slane %v6074_v50, 4  ;;  %v6090_v12 = vsel %vm9654_vm2, %v6085_v32, %v6089_v41 }
 0x2fe   :  { %v992_v59 = vpop.f32.mrf.mxu1 }
 0x2ff   :  { %v2844_v18 = vadd.f32 %v2772_v5, %v2290_v43  ;;  %v993_v20 = vadd.f32 %v992_v59, %v12359_v56  ;;  %v6080_v15 = vsel %vm9654_vm2, %v6075_v7, %v6079_v6  ;;  %v3705_v5 = vshrl.u32 %v3428_v2, 16 }
 0x300   :  { %v3329_v21 = vpop.f32.mrf.mxu0  ;;  %v6698_v33 = vunpack.c.l.b16 %v6080_v15  ;;  %v3694_v6 = vrot.slane %v3692_v25, 4  ;;  %v3697_v7 = vrot.slane %v3695_v1, 5 }
 0x301   :  { %4498 = vmatmul.bf16.gmra.mxu1 %v4354_v0  ;;  %5053 = vmatmul.bf16.gmra.mxu2 %v9075_v37  ;;  %v11032_v10 = vadd.f32 %v3326_v60, %v2844_v18  ;;  %v8774_v60 = vld [vmem:[%s12272_s3 + $0x70] sm:$0xf]  ;;  %v6092_v0 = vshrl.u32 %v8773_v46, 16  ;;  %v6095_v37 = vshll.u32 %v8773_v46, 16  ;;  %v4298_v18 = vunpack.c.l.b16 %v3680_v45  ;;  %v3429_v46 = vld [vmem:[%s12273_s1 + $0x68] sm:$0x1] }
 0x302   :  { %5608 = vmatmul.bf16.gmra.mxu3 %v9115_v44  ;;  %v6101_v44 = vshll.u32 %v8774_v60, 16  ;;  %v3707_v56 = vrot.slane %v3705_v5, 4  ;;  %v3698_v25 = vor.u32 %v3697_v7, %v3694_v6  ;;  %v9076_v5 = vld [vmem:[%s12272_s3 + $0x60] sm:$0xff]  ;;  %v3430_v6 = vld [vmem:[%s12273_s1 + $0x6c] sm:$0xf] }
 0x303   :  { %12358 = vst [vmem:[#allocation19_spill] sm:$0xff] %v11032_v10  ;;  %6898 = vmatmul.bf16.gmra.mxu0 %v6754_v11  ;;  %v6105_v11 = vshrl.u32 %v8774_v60, 16  ;;  %v6097_v2 = vrot.slane %v6095_v37, 5  ;;  %v4355_v15 = vpack.c.b16 %v4299_v28, %v4298_v18  ;;  %v3711_v37 = vshll.u32 %v3429_v46, 16 }
 0x304   :  { %v2221_v52 = vpop.f32.mrf.mxu2  ;;  %v6103_v60 = vrot.slane %v6101_v44, 5  ;;  %v3699_v7 = vrot.slane %v3698_v25, 4 }
 0x305   :  { %v2291_v50 = vadd.f32 %v2221_v52, %v993_v20  ;;  %v2775_v43 = vpop.f32.mrf.mxu3  ;;  %v6094_v20 = vrot.slane %v6092_v0, 4  ;;  %v6699_v52 = vunpack.c.l.b16 %v6090_v12  ;;  %v3708_v0 = vor.u32 %v3707_v56, %v11050_v54 }
 0x306   :  { %v994_v59 = vpop.f32.mrf.mxu1  ;;  %v6111_v12 = vshll.u32 %v8775_v9, 16  ;;  %v3713_v46 = vrot.slane %v3711_v37, 5  ;;  %v12363_v9 = vld [vmem:[#allocation25_spill] sm:$0xff]  ;;  %v3704_v37 = vsel %vm9654_vm2, %v3699_v7, %v11050_v54 }
 0x307   :  { %v2845_v49 = vadd.f32 %v2775_v43, %v2291_v50  ;;  %v6107_v50 = vrot.slane %v6105_v11, 4  ;;  %v12361_v43 = vld [vmem:[#allocation23_spill] sm:$0xff]  ;;  %v6755_v11 = vpack.c.b16 %v6699_v52, %v6698_v33  ;;  %v3709_v56 = vrot.slane %v3708_v0, 4 }
 0x308   :  { %v3331_v35 = vpop.f32.mrf.mxu0  ;;  %v995_v32 = vadd.f32 %v994_v59, %v12361_v43  ;;  %v9116_v59 = vld [vmem:[%s12271_s2 + $0x40] sm:$0xff]  ;;  %v6113_v52 = vrot.slane %v6111_v12, 5 }
 0x309   :  { %v11055_v45 = vadd.f32 %v3329_v21, %v2845_v49  ;;  %v6098_v21 = vor.u32 %v6097_v2, %v6094_v20  ;;  %v6108_v49 = vor.u32 %v6107_v50, %v6103_v60  ;;  %v3431_v2 = vld [vmem:[%s12273_s1 + $0x70] sm:$0xf]  ;;  %v3716_v50 = vshrl.u32 %v3430_v6, 16 }
 0x30b   :  { %12360 = vst [vmem:[#allocation21_spill] sm:$0xff] %v11055_v45  ;;  %v6099_v20 = vrot.slane %v6098_v21, 4  ;;  %v6109_v33 = vrot.slane %v6108_v49, 4  ;;  %v3714_v21 = vsel %vm9654_vm2, %v3709_v56, %v3713_v46  ;;  %v3718_v49 = vrot.slane %v3716_v50, 4 }
 0x30c   :  { %v2223_v41 = vpop.f32.mrf.mxu2 }
 0x30d   :  { %v2292_v1 = vadd.f32 %v2223_v41, %v995_v32  ;;  %v2777_v27 = vpop.f32.mrf.mxu3  ;;  %v3719_v32 = vshll.u32 %v3430_v6, 16 }
 0x30e   :  { %v997_v44 = vpop.f32.mrf.mxu1 }
 0x30f   :  { %v2846_v18 = vadd.f32 %v2777_v27, %v2292_v1  ;;  %v998_v41 = vadd.f32 %v997_v44, %v12363_v9  ;;  %v3725_v1 = vshll.u32 %v3431_v2, 16  ;;  %v3729_v27 = vshrl.u32 %v3431_v2, 16  ;;  %v3432_v9 = vld [vmem:[%s12273_s1 + $0x74] sm:$0x1] }
 0x310   :  { %v3334_v28 = vpop.f32.mrf.mxu0  ;;  %v6104_v44 = vsel %vm9654_vm2, %v6099_v20, %v6103_v60  ;;  %v3721_v12 = vrot.slane %v3719_v32, 5  ;;  %v4300_v60 = vunpack.c.l.b16 %v3704_v37  ;;  %v4301_v20 = vunpack.c.l.b16 %v3714_v21 }
 0x311   :  { %4503 = vmatmul.bf16.gmra.mxu1 %v4355_v15  ;;  %5058 = vmatmul.bf16.gmra.mxu2 %v9076_v5  ;;  %v11074_v43 = vadd.f32 %v3331_v35, %v2846_v18  ;;  %v8776_v15 = vld [vmem:[%s12272_s3 + $0x78] sm:$0xf]  ;;  %v8777_v35 = vld [vmem:[%s12272_s3 + $0x7c] sm:$0xf]  ;;  %v11095_v56 = vrot.slane %v3725_v1, 5  ;;  %v3731_v46 = vrot.slane %v3729_v27, 4 }
 0x312   :  { %5613 = vmatmul.bf16.gmra.mxu3 %v9116_v59  ;;  %v6116_v18 = vshrl.u32 %v8776_v15, 16  ;;  %v6119_v54 = vshll.u32 %v8776_v15, 16  ;;  %v6125_v7 = vshll.u32 %v8777_v35, 16  ;;  %v8778_v27 = vld [vmem:[%s12272_s3 + $0x80] sm:$0x1]  ;;  %v4356_v21 = vpack.c.b16 %v4301_v20, %v4300_v60 }
 0x313   :  { %12362 = vst [vmem:[#allocation23_spill] sm:$0xff] %v11074_v43  ;;  %6903 = vmatmul.bf16.gmra.mxu0 %v6755_v11  ;;  %v6114_v11 = vsel %vm9654_vm2, %v6109_v33, %v6113_v52  ;;  %v3722_v33 = vor.u32 %v3721_v12, %v3718_v49  ;;  %v3735_v52 = vshll.u32 %v3432_v9, 16  ;;  %v3732_v1 = vor.u32 %v3731_v46, %v11095_v56  ;;  %v9117_v49 = vld [vmem:[%s12271_s2 + $0x48] sm:$0xff] }
 0x314   :  { %v2226_v25 = vpop.f32.mrf.mxu2  ;;  %v6701_v43 = vunpack.c.l.b16 %v6114_v11  ;;  %v6118_v50 = vrot.slane %v6116_v18, 4  ;;  %v6121_v45 = vrot.slane %v6119_v54, 5  ;;  %v11100_v10 = vrot.slane %v6125_v7, 5 }
 0x315   :  { %v2293_v5 = vadd.f32 %v2226_v25, %v998_v41  ;;  %v2780_v0 = vpop.f32.mrf.mxu3  ;;  %v6129_v41 = vshrl.u32 %v8777_v35, 16  ;;  %v6700_v25 = vunpack.c.l.b16 %v6104_v44  ;;  %v3433_v44 = vld [vmem:[%s12273_s1 + $0x78] sm:$0xf]  ;;  %v3723_v12 = vrot.slane %v3722_v33, 4 }
 0x316   :  { %v999_v59 = vpop.f32.mrf.mxu1  ;;  %v3737_v18 = vrot.slane %v3735_v52, 5  ;;  %v6122_v54 = vor.u32 %v6121_v45, %v6118_v50  ;;  %v3733_v46 = vrot.slane %v3732_v1, 4  ;;  %v3740_v60 = vshrl.u32 %v3433_v44, 16  ;;  %v8779_v45 = vld [vmem:[%s12272_s3 + $0x84] sm:$0xf] }
 0x317   :  { %v2847_v6 = vadd.f32 %v2780_v0, %v2293_v5  ;;  %v12365_v5 = vld [vmem:[#allocation27_spill] sm:$0xff]  ;;  %v6131_v15 = vrot.slane %v6129_v41, 4  ;;  %v6135_v41 = vshll.u32 %v8778_v27, 16  ;;  %v3743_v20 = vshll.u32 %v3433_v44, 16 }
 0x318   :  { %v3336_v2 = vpop.f32.mrf.mxu0  ;;  %v1000_v0 = vadd.f32 %v999_v59, %v12365_v5  ;;  %v3434_v59 = vld [vmem:[%s12273_s1 + $0x7c] sm:$0xf]  ;;  %v6123_v33 = vrot.slane %v6122_v54, 4  ;;  %v3738_v1 = vsel %vm9654_vm2, %v3733_v46, %v3737_v18  ;;  %v3742_v27 = vrot.slane %v3740_v60, 4 }
 0x319   :  { %v11097_v32 = vadd.f32 %v3334_v28, %v2847_v6  ;;  %v9077_v28 = vld [vmem:[%s12272_s3 + $0x6c] sm:$0xff]  ;;  %v6132_v7 = vor.u32 %v6131_v15, %v11100_v10  ;;  %v3749_v5 = vshll.u32 %v3434_v59, 16  ;;  %v6137_v50 = vrot.slane %v6135_v41, 5 }
 0x31a   :  { %v6140_v44 = vshrl.u32 %v8779_v45, 16  ;;  %v6128_v18 = vsel %vm9654_vm2, %v6123_v33, %v11100_v10  ;;  %v4303_v41 = vunpack.c.l.b16 %v3738_v1  ;;  %v3436_v1 = vld [vmem:[%s12273_s1 + $0x84] sm:$0xf] }
 0x31b   :  { %12364 = vst [vmem:[#allocation25_spill] sm:$0xff] %v11097_v32  ;;  %v6133_v52 = vrot.slane %v6132_v7, 4 }
 0x31c   :  { %v2228_v24 = vpop.f32.mrf.mxu2 }
 0x31d   :  { %v2294_v35 = vadd.f32 %v2228_v24, %v1000_v0  ;;  %v2782_v37 = vpop.f32.mrf.mxu3  ;;  %v6756_v24 = vpack.c.b16 %v6701_v43, %v6700_v25  ;;  %v3753_v0 = vshrl.u32 %v3434_v59, 16  ;;  %v3728_v43 = vsel %vm9654_vm2, %v3723_v12, %v11095_v56 }
 0x31e   :  { %v4469_v11 = vpop.f32.mrf.mxu1  ;;  %v11133_v56 = vrot.slane %v3749_v5, 5  ;;  %v6143_v59 = vshll.u32 %v8779_v45, 16  ;;  %v6138_v54 = vsel %vm9654_vm2, %v6133_v52, %v6137_v50  ;;  %v4302_v7 = vunpack.c.l.b16 %v3728_v43  ;;  %v11152_v43 = vld [vmem:[%s12275_s5] ss:$0 sm:$0xff]  ;;  %v12367_v52 = vld [vmem:[#allocation28_spill] sm:$0xff] }
 0x31f   :  { %v2848_v6 = vadd.f32 %v2782_v37, %v2294_v35  ;;  %v4629_v25 = vadd.f32 %v4469_v11, %v10016_v13  ;;  %v3745_v35 = vrot.slane %v3743_v20, 5  ;;  %v3435_v13 = vld [vmem:[%s12273_s1 + $0x80] sm:$0x1]  ;;  %v6142_v5 = vrot.slane %v6140_v44, 4 }
 0x320   :  { %v6869_v9 = vpop.f32.mrf.mxu0  ;;  %v3759_v60 = vshll.u32 %v3435_v13, 16  ;;  %v6702_v45 = vunpack.c.l.b16 %v6128_v18 }
 0x321   :  { %4508 = vmatmul.bf16.gmra.mxu1 %v4356_v21  ;;  %5063 = vmatmul.bf16.gmra.mxu2 %v9077_v28  ;;  %v11119_v32 = vadd.f32 %v3336_v2, %v2848_v6  ;;  %v8780_v2 = vld [vmem:[%s12272_s3 + $0x88] sm:$0xf]  ;;  %v3755_v28 = vrot.slane %v3753_v0, 4  ;;  %v3746_v46 = vor.u32 %v3745_v35, %v3742_v27  ;;  %v6145_v0 = vrot.slane %v6143_v59, 5 }
 0x322   :  { %5618 = vmatmul.bf16.gmra.mxu3 %v9117_v49  ;;  %v6149_v49 = vshll.u32 %v8780_v2, 16  ;;  %v4357_v35 = vpack.c.b16 %v4303_v41, %v4302_v7 }
 0x323   :  { %12366 = vst [vmem:[#allocation27_spill] sm:$0xff] %v11119_v32  ;;  %6908 = vmatmul.bf16.gmra.mxu0 %v6756_v24  ;;  %v6153_v24 = vshrl.u32 %v8780_v2, 16  ;;  %v3756_v20 = vor.u32 %v3755_v28, %v11133_v56  ;;  %v8781_v2 = vld [vmem:[%s12272_s3 + $0x8c] sm:$0x1]  ;;  %v6146_v59 = vor.u32 %v6145_v0, %v6142_v5 }
 0x324   :  { %v5024_v15 = vpop.f32.mrf.mxu2 }
 0x325   :  { %v5184_v37 = vadd.f32 %v5024_v15, %v4629_v25  ;;  %v5579_v21 = vpop.f32.mrf.mxu3  ;;  %v6703_v25 = vunpack.c.l.b16 %v6138_v54  ;;  %v11147_v15 = vrot.slane %v6149_v49, 5  ;;  %v6155_v10 = vrot.slane %v6153_v24, 4 }
 0x326   :  { %v4471_v11 = vpop.f32.mrf.mxu1  ;;  %v3757_v44 = vrot.slane %v3756_v20, 4  ;;  %v6159_v49 = vshll.u32 %v8781_v2, 16  ;;  %v3764_v54 = vshrl.u32 %v3436_v1, 16  ;;  %v3767_v20 = vshll.u32 %v3436_v1, 16 }
 0x327   :  { %v5739_v12 = vadd.f32 %v5579_v21, %v5184_v37  ;;  %v4630_v50 = vadd.f32 %v4471_v11, %v12367_v52  ;;  %v3747_v37 = vrot.slane %v3746_v46, 4  ;;  %v3761_v21 = vrot.slane %v3759_v60, 5  ;;  %v9118_v11 = vld [vmem:[%s12271_s2 + $0x50] sm:$0xff]  ;;  %v3437_v60 = vld [vmem:[%s12273_s1 + $0x88] sm:$0xf] }
 0x328   :  { %v6871_v6 = vpop.f32.mrf.mxu0  ;;  %v6156_v18 = vor.u32 %v6155_v10, %v11147_v15  ;;  %v6161_v2 = vrot.slane %v6159_v49, 5  ;;  %v8782_v10 = vld [vmem:[%s12272_s3 + $0x90] sm:$0xf] }
 0x329   :  { %v7029_v33 = vadd.f32 %v6869_v9, %v5739_v12  ;;  %v9078_v9 = vld [vmem:[%s12272_s3 + $0x78] sm:$0xff]  ;;  %v6757_v12 = vpack.c.b16 %v6703_v25, %v6702_v45  ;;  %v3752_v5 = vsel %vm9654_vm2, %v3747_v37, %v11133_v56  ;;  %v3762_v45 = vsel %vm9654_vm2, %v3757_v44, %v3761_v21 }
 0x32a   :  { %v6147_v25 = vrot.slane %v6146_v59, 4  ;;  %v6157_v52 = vrot.slane %v6156_v18, 4  ;;  %v3766_v56 = vrot.slane %v3764_v54, 4  ;;  %v3769_v37 = vrot.slane %v3767_v20, 5 }
 0x32b   :  { %v7097_v7 = vadd.f32 %v11152_v43, %v7029_v33  ;;  %v8783_v33 = vld [vmem:[%s12272_s3 + $0x94] sm:$0xf]  ;;  %v4304_v32 = vunpack.c.l.b16 %v3752_v5 }
 0x32c   :  { %v5026_v27 = vpop.f32.mrf.mxu2  ;;  %v6152_v18 = vsel %vm9654_vm2, %v6147_v25, %v11147_v15  ;;  %v6162_v54 = vsel %vm9654_vm2, %v6157_v52, %v6161_v2 }
 0x32d   :  { %v5185_v13 = vadd.f32 %v5026_v27, %v4630_v50  ;;  %v5581_v28 = vpop.f32.mrf.mxu3  ;;  %v3777_v50 = vshrl.u32 %v3437_v60, 16  ;;  %v7225_v1 = vmul.f32 0.01, %v7097_v7  ;;  %vm7161_vm3 = vcmp.gt.f32.partialorder %v7097_v7, 0.0 }
 0x32e   :  { %v4474_v24 = vpop.f32.mrf.mxu1  ;;  %v6705_v52 = vunpack.c.l.b16 %v6162_v54 }
 0x32f   :  { %v5740_v41 = vadd.f32 %v5581_v28, %v5185_v13  ;;  %v6164_v13 = vshrl.u32 %v8782_v10, 16  ;;  %v6167_v28 = vshll.u32 %v8782_v10, 16 }
 0x330   :  { %v6874_v46 = vpop.f32.mrf.mxu0 }
 0x331   :  { %v7030_v0 = vadd.f32 %v6871_v6, %v5740_v41  ;;  %4513 = vmatmul.bf16.gmra.mxu1 %v4357_v35  ;;  %5068 = vmatmul.bf16.gmra.mxu2 %v9078_v9  ;;  %v3773_v6 = vshll.u32 %v3437_v60, 16  ;;  %v4631_v35 = vadd.f32 %v4474_v24, %v10041_v40  ;;  %v6173_v9 = vshll.u32 %v8783_v33, 16 }
 0x332   :  { %5623 = vmatmul.bf16.gmra.mxu3 %v9118_v11  ;;  %v6177_v11 = vshrl.u32 %v8783_v33, 16  ;;  %v7289_v24 = vsel %vm7161_vm3, %v7097_v7, %v7225_v1  ;;  %v3438_v33 = vld [vmem:[%s12273_s1 + $0x8c] sm:$0x1]  ;;  %v6166_v30 = vrot.slane %v6164_v13, 4  ;;  %v6169_v15 = vrot.slane %v6167_v28, 5 }
 0x333   :  { %6913 = vmatmul.bf16.gmra.mxu0 %v6757_v12  ;;  %v7098_v27 = vadd.f32 %v11152_v43, %v7030_v0  ;;  %v11187_v40 = vrot.slane %v3773_v6, 5  ;;  %v3779_v0 = vrot.slane %v3777_v50, 4  ;;  %v11192_v25 = vrot.slane %v6173_v9, 5  ;;  %v3439_v1 = vld [vmem:[%s12273_s1 + $0x90] sm:$0xf] }
 0x334   :  { %v5029_v21 = vpop.f32.mrf.mxu2  ;;  %v6179_v2 = vrot.slane %v6177_v11, 4  ;;  %v6704_v7 = vunpack.c.l.b16 %v6152_v18  ;;  %v3783_v50 = vshll.u32 %v3438_v33, 16  ;;  %v3788_v54 = vshrl.u32 %v3439_v1, 16 }
 0x335   :  { %vm7162_vm4 = vcmp.gt.f32.partialorder %v7098_v27, 0.0  ;;  %v7226_v44 = vmul.f32 0.01, %v7098_v27  ;;  %v5186_v59 = vadd.f32 %v5029_v21, %v4631_v35  ;;  %v5584_v49 = vpop.f32.mrf.mxu3  ;;  %v4305_v35 = vunpack.c.l.b16 %v3762_v45 }
 0x336   :  { %v4476_v12 = vpop.f32.mrf.mxu1  ;;  %v3770_v21 = vor.u32 %v3769_v37, %v3766_v56  ;;  %v3780_v45 = vor.u32 %v3779_v0, %v11187_v40  ;;  %v8784_v56 = vld [vmem:[%s12272_s3 + $0x98] sm:$0x1] }
 0x337   :  { %v7290_v41 = vsel %vm7162_vm4, %v7098_v27, %v7226_v44  ;;  %v5741_v60 = vadd.f32 %v5584_v49, %v5186_v59  ;;  %v4632_v5 = vadd.f32 %v4476_v12, %v10056_v63  ;;  %v4358_v9 = vpack.c.b16 %v4305_v35, %v4304_v32  ;;  %v9079_v63 = vld [vmem:[%s12272_s3 + $0x84] sm:$0xff]  ;;  %v3440_v59 = vld [vmem:[%s12273_s1 + $0x94] sm:$0xf]  ;;  %v8785_v49 = vld [vmem:[%s12272_s3 + $0x9c] sm:$0xf] }
 0x338   :  { %v6876_v20 = vpop.f32.mrf.mxu0  ;;  %v9160_v10 = vpack.c.bf16 %v7290_v41, %v7289_v24  ;;  %v11205_v37 = vrot.slane %v3770_v21, 4  ;;  %v6180_v44 = vor.u32 %v6179_v2, %v11192_v25  ;;  %v9119_v32 = vld [vmem:[%s12271_s2 + $0x58] sm:$0xff]  ;;  %v6758_v12 = vpack.c.b16 %v6705_v52, %v6704_v7  ;;  %v8786_v35 = vld [vmem:[%s12272_s3 + $0xa0] sm:$0xf] }
 0x339   :  { %v7031_v6 = vadd.f32 %v6874_v46, %v5741_v60  ;;  %v6170_v46 = vor.u32 %v6169_v15, %v6166_v30  ;;  %v6183_v18 = vshll.u32 %v8784_v56, 16  ;;  %v3791_v24 = vshll.u32 %v3439_v1, 16 }
 0x33a   :  { %9161 = vst [vmem:[%s12276_s6] sm:$0xff] %v9160_v10   ;;  %v3781_v0 = vrot.slane %v3780_v45, 4  ;;  %v3785_v10 = vrot.slane %v3783_v50, 5  ;;  %v3776_v33 = vsel %vm9654_vm2, %v11205_v37, %v11187_v40  ;;  %v3797_v21 = vshll.u32 %v3440_v59, 16 }
 0x33b   :  { %v7099_v30 = vadd.f32 %v11152_v43, %v7031_v6  ;;  %v3801_v15 = vshrl.u32 %v3440_v59, 16  ;;  %v6188_v2 = vshrl.u32 %v8785_v49, 16  ;;  %v6171_v52 = vrot.slane %v6170_v46, 4 }
 0x33c   :  { %v5031_v27 = vpop.f32.mrf.mxu2  ;;  %v6181_v6 = vrot.slane %v6180_v44, 4  ;;  %v6185_v45 = vrot.slane %v6183_v18, 5  ;;  %v3790_v50 = vrot.slane %v3788_v54, 4  ;;  %v3793_v56 = vrot.slane %v3791_v24, 5 }
 0x33d   :  { %v5187_v13 = vadd.f32 %v5031_v27, %v4632_v5  ;;  %v5586_v28 = vpop.f32.mrf.mxu3  ;;  %v6191_v5 = vshll.u32 %v8785_v49, 16  ;;  %v6197_v1 = vshll.u32 %v8786_v35, 16  ;;  %v7227_v27 = vmul.f32 0.01, %v7099_v30  ;;  %v3441_v49 = vld [vmem:[%s12273_s1 + $0x98] sm:$0x1] }
 0x33e   :  { %v4479_v11 = vpop.f32.mrf.mxu1  ;;  %v6201_v37 = vshrl.u32 %v8786_v35, 16  ;;  %vm7163_vm5 = vcmp.gt.f32.partialorder %v7099_v30, 0.0  ;;  %v6186_v18 = vsel %vm9654_vm2, %v6181_v6, %v6185_v45 }
 0x33f   :  { %v5742_v41 = vadd.f32 %v5586_v28, %v5187_v13  ;;  %v4633_v40 = vadd.f32 %v4479_v11, %v10081_v38  ;;  %v3786_v38 = vsel %vm9654_vm2, %v3781_v0, %v3785_v10  ;;  %v6176_v11 = vsel %vm9654_vm2, %v6171_v52, %v11192_v25  ;;  %v8787_v0 = vld [vmem:[%s12272_s3 + $0xa4] sm:$0x1] }
 0x340   :  { %v6879_v60 = vpop.f32.mrf.mxu0  ;;  %v11242_v54 = vrot.slane %v6197_v1, 5  ;;  %v7291_v24 = vsel %vm7163_vm5, %v7099_v30, %v7227_v27  ;;  %v4306_v10 = vunpack.c.l.b16 %v3776_v33  ;;  %v4307_v25 = vunpack.c.l.b16 %v3786_v38  ;;  %v9080_v33 = vld [vmem:[%s12272_s3 + $0x90] sm:$0xff] }
 0x341   :  { %v7032_v7 = vadd.f32 %v6876_v20, %v5742_v41  ;;  %4518 = vmatmul.bf16.gmra.mxu1 %v4358_v9  ;;  %5073 = vmatmul.bf16.gmra.mxu2 %v9079_v63  ;;  %v11230_v20 = vrot.slane %v3797_v21, 5  ;;  %v3803_v9 = vrot.slane %v3801_v15, 4  ;;  %v6190_v63 = vrot.slane %v6188_v2, 4 }
 0x342   :  { %5628 = vmatmul.bf16.gmra.mxu3 %v9119_v32  ;;  %v6193_v32 = vrot.slane %v6191_v5, 5  ;;  %v6203_v15 = vrot.slane %v6201_v37, 4  ;;  %v3807_v5 = vshll.u32 %v3441_v49, 16  ;;  %v6706_v30 = vunpack.c.l.b16 %v6176_v11  ;;  %v9120_v49 = vld [vmem:[%s12271_s2 + $0x60] sm:$0xff] }
 0x343   :  { %6918 = vmatmul.bf16.gmra.mxu0 %v6758_v12  ;;  %v7100_v13 = vadd.f32 %v11152_v43, %v7032_v7  ;;  %v3794_v7 = vor.u32 %v3793_v56, %v3790_v50  ;;  %v3804_v52 = vor.u32 %v3803_v9, %v11230_v20  ;;  %v6707_v45 = vunpack.c.l.b16 %v6186_v18 }
 0x344   :  { %v5034_v28 = vpop.f32.mrf.mxu2  ;;  %v6194_v6 = vor.u32 %v6193_v32, %v6190_v63  ;;  %v6204_v50 = vor.u32 %v6203_v15, %v11242_v54  ;;  %v6207_v56 = vshll.u32 %v8787_v0, 16  ;;  %v3809_v37 = vrot.slane %v3807_v5, 5 }
 0x345   :  { %vm7164_vm6 = vcmp.gt.f32.partialorder %v7100_v13, 0.0  ;;  %v7228_v46 = vmul.f32 0.01, %v7100_v13  ;;  %v5188_v44 = vadd.f32 %v5034_v28, %v4633_v40  ;;  %v5589_v59 = vpop.f32.mrf.mxu3  ;;  %v3795_v40 = vrot.slane %v3794_v7, 4 }
 0x346   :  { %v4481_v12 = vpop.f32.mrf.mxu1  ;;  %v4359_v63 = vpack.c.b16 %v4307_v25, %v4306_v10  ;;  %v6759_v32 = vpack.c.b16 %v6707_v45, %v6706_v30  ;;  %v6205_v18 = vrot.slane %v6204_v50, 4 }
 0x347   :  { %v7292_v41 = vsel %vm7164_vm6, %v7100_v13, %v7228_v46  ;;  %v5743_v35 = vadd.f32 %v5589_v59, %v5188_v44  ;;  %v4634_v27 = vadd.f32 %v4481_v12, %v10102_v53  ;;  %v3805_v46 = vrot.slane %v3804_v52, 4  ;;  %v3443_v53 = vld [vmem:[%s12273_s1 + $0xa0] sm:$0xf] }
 0x348   :  { %v6881_v21 = vpop.f32.mrf.mxu0  ;;  %v9165_v2 = vpack.c.bf16 %v7292_v41, %v7291_v24  ;;  %v6195_v44 = vrot.slane %v6194_v6, 4  ;;  %v6209_v24 = vrot.slane %v6207_v56, 5  ;;  %v8788_v41 = vld [vmem:[%s12272_s3 + $0xa8] sm:$0xf]  ;;  %v3800_v15 = vsel %vm9654_vm2, %v3795_v40, %v11230_v20 }
 0x349   :  { %v7033_v1 = vadd.f32 %v6879_v60, %v5743_v35  ;;  %v3442_v60 = vld [vmem:[%s12273_s1 + $0x9c] sm:$0xf]  ;;  %v8789_v35 = vld [vmem:[%s12272_s3 + $0xac] sm:$0xf]  ;;  %v3821_v5 = vshll.u32 %v3443_v53, 16  ;;  %v3810_v10 = vsel %vm9654_vm2, %v3805_v46, %v3809_v37  ;;  %v3825_v52 = vshrl.u32 %v3443_v53, 16 }
 0x34a   :  { %9317 = vst [vmem:[%s12276_s6 + $0x8] sm:$0xff] %v9165_v2   ;;  %v3812_v2 = vshrl.u32 %v3442_v60, 16  ;;  %v3815_v7 = vshll.u32 %v3442_v60, 16  ;;  %v6200_v25 = vsel %vm9654_vm2, %v6195_v44, %v11242_v54  ;;  %v6212_v6 = vshrl.u32 %v8788_v41, 16  ;;  %v3444_v46 = vld [vmem:[%s12273_s1 + $0xa4] sm:$0x1] }
 0x34b   :  { %v7101_v12 = vadd.f32 %v11152_v43, %v7033_v1  ;;  %v6215_v30 = vshll.u32 %v8788_v41, 16  ;;  %v6221_v45 = vshll.u32 %v8789_v35, 16  ;;  %v6225_v20 = vshrl.u32 %v8789_v35, 16 }
 0x34c   :  { %v5036_v13 = vpop.f32.mrf.mxu2  ;;  %v6210_v50 = vsel %vm9654_vm2, %v6205_v18, %v6209_v24  ;;  %v11285_v54 = vrot.slane %v3821_v5, 5  ;;  %v8790_v18 = vld [vmem:[%s12272_s3 + $0xb0] sm:$0x1]  ;;  %v4308_v41 = vunpack.c.l.b16 %v3800_v15  ;;  %v4309_v35 = vunpack.c.l.b16 %v3810_v10  ;;  %v3445_v10 = vld [vmem:[%s12273_s1 + $0xa8] sm:$0xf] }
 0x34d   :  { %v5189_v28 = vadd.f32 %v5036_v13, %v4634_v27  ;;  %v5591_v9 = vpop.f32.mrf.mxu3  ;;  %v7229_v1 = vmul.f32 0.01, %v7101_v12  ;;  %vm7165_vm7 = vcmp.gt.f32.partialorder %v7101_v12, 0.0  ;;  %v3814_v13 = vrot.slane %v3812_v2, 4 }
 0x34e   :  { %v4484_v59 = vpop.f32.mrf.mxu1  ;;  %v6217_v44 = vrot.slane %v6215_v30, 5  ;;  %v11290_v60 = vrot.slane %v6221_v45, 5  ;;  %v6227_v53 = vrot.slane %v6225_v20, 4  ;;  %v6708_v2 = vunpack.c.l.b16 %v6200_v25 }
 0x34f   :  { %v5744_v38 = vadd.f32 %v5591_v9, %v5189_v28  ;;  %v3827_v9 = vrot.slane %v3825_v52, 4  ;;  %v6231_v30 = vshll.u32 %v8790_v18, 16  ;;  %v4360_v15 = vpack.c.b16 %v4309_v35, %v4308_v41 }
 0x350   :  { %v6884_v11 = vpop.f32.mrf.mxu0 }
 0x351   :  { %v7034_v0 = vadd.f32 %v6881_v21, %v5744_v38  ;;  %4523 = vmatmul.bf16.gmra.mxu1 %v4359_v63  ;;  %5078 = vmatmul.bf16.gmra.mxu2 %v9080_v33  ;;  %v4635_v21 = vadd.f32 %v4484_v59, %v10112_v57  ;;  %v3817_v33 = vrot.slane %v3815_v7, 5  ;;  %v6214_v57 = vrot.slane %v6212_v6, 4 }
 0x352   :  { %5633 = vmatmul.bf16.gmra.mxu3 %v9120_v49  ;;  %v7293_v59 = vsel %vm7165_vm7, %v7101_v12, %v7229_v1  ;;  %v6709_v7 = vunpack.c.l.b16 %v6210_v50  ;;  %v3828_v12 = vor.u32 %v3827_v9, %v11285_v54  ;;  %v6228_v6 = vor.u32 %v6227_v53, %v11290_v60  ;;  %v8791_v53 = vld [vmem:[%s12272_s3 + $0xb4] sm:$0xf] }
 0x353   :  { %6923 = vmatmul.bf16.gmra.mxu0 %v6759_v32  ;;  %v7102_v27 = vadd.f32 %v11152_v43, %v7034_v0  ;;  %v3818_v5 = vor.u32 %v3817_v33, %v3814_v13  ;;  %v3831_v0 = vshll.u32 %v3444_v46, 16  ;;  %v6218_v52 = vor.u32 %v6217_v44, %v6214_v57  ;;  %v9121_v33 = vld [vmem:[%s12271_s2 + $0x68] sm:$0xff] }
 0x354   :  { %v5039_v56 = vpop.f32.mrf.mxu2  ;;  %v6760_v50 = vpack.c.b16 %v6709_v7, %v6708_v2  ;;  %v6233_v9 = vrot.slane %v6231_v30, 5  ;;  %v3836_v44 = vshrl.u32 %v3445_v10, 16  ;;  %v6236_v7 = vshrl.u32 %v8791_v53, 16 }
 0x355   :  { %vm7166_vm8 = vcmp.gt.f32.partialorder %v7102_v27, 0.0  ;;  %v7230_v40 = vmul.f32 0.01, %v7102_v27  ;;  %v5190_v37 = vadd.f32 %v5039_v56, %v4635_v21  ;;  %v5594_v28 = vpop.f32.mrf.mxu3  ;;  %v9081_v21 = vld [vmem:[%s12272_s3 + $0x9c] sm:$0xff]  ;;  %v3819_v56 = vrot.slane %v3818_v5, 4 }
 0x356   :  { %v4486_v63 = vpop.f32.mrf.mxu1  ;;  %v3833_v13 = vrot.slane %v3831_v0, 5 }
 0x357   :  { %v7294_v49 = vsel %vm7166_vm8, %v7102_v27, %v7230_v40  ;;  %v5745_v32 = vadd.f32 %v5594_v28, %v5190_v37  ;;  %v4636_v20 = vadd.f32 %v4486_v63, %v10127_v23  ;;  %v3829_v40 = vrot.slane %v3828_v12, 4 }
 0x358   :  { %v6886_v38 = vpop.f32.mrf.mxu0  ;;  %v9170_v24 = vpack.c.bf16 %v7294_v49, %v7293_v59  ;;  %v6219_v37 = vrot.slane %v6218_v52, 4  ;;  %v6229_v28 = vrot.slane %v6228_v6, 4  ;;  %v3839_v59 = vshll.u32 %v3445_v10, 16 }
 0x359   :  { %v7035_v45 = vadd.f32 %v6884_v11, %v5745_v32  ;;  %v3446_v11 = vld [vmem:[%s12273_s1 + $0xac] sm:$0xf]  ;;  %v3834_v41 = vsel %vm9654_vm2, %v3829_v40, %v3833_v13  ;;  %v3838_v12 = vrot.slane %v3836_v44, 4  ;;  %v8793_v44 = vld [vmem:[%s12272_s3 + $0xbc] sm:$0x1] }
 0x35a   :  { %9318 = vst [vmem:[%s12276_s6 + $0x10] sm:$0xff] %v9170_v24   ;;  %v3845_v49 = vshll.u32 %v3446_v11, 16  ;;  %v3849_v32 = vshrl.u32 %v3446_v11, 16  ;;  %v3824_v24 = vsel %vm9654_vm2, %v3819_v56, %v11285_v54  ;;  %v6224_v35 = vsel %vm9654_vm2, %v6219_v37, %v11290_v60  ;;  %v8792_v54 = vld [vmem:[%s12272_s3 + $0xb8] sm:$0xf] }
 0x35b   :  { %v7103_v63 = vadd.f32 %v11152_v43, %v7035_v45  ;;  %v6234_v2 = vsel %vm9654_vm2, %v6229_v28, %v6233_v9  ;;  %v3841_v6 = vrot.slane %v3839_v59, 5  ;;  %v6710_v40 = vunpack.c.l.b16 %v6224_v35 }
 0x35c   :  { %v5041_v1 = vpop.f32.mrf.mxu2  ;;  %v11333_v30 = vrot.slane %v3845_v49, 5  ;;  %v3851_v60 = vrot.slane %v3849_v32, 4  ;;  %v6711_v37 = vunpack.c.l.b16 %v6234_v2 }
 0x35d   :  { %v5191_v25 = vadd.f32 %v5041_v1, %v4636_v20  ;;  %v5596_v27 = vpop.f32.mrf.mxu3  ;;  %vm7167_vm9 = vcmp.gt.f32.partialorder %v7103_v63, 0.0  ;;  %v3842_v28 = vor.u32 %v3841_v6, %v3838_v12  ;;  %v8794_v6 = vld [vmem:[%s12272_s3 + $0xc0] sm:$0xf] }
 0x35e   :  { %v4489_v23 = vpop.f32.mrf.mxu1  ;;  %v3852_v9 = vor.u32 %v3851_v60, %v11333_v30 }
 0x35f   :  { %v5746_v46 = vadd.f32 %v5596_v27, %v5191_v25  ;;  %v4637_v0 = vadd.f32 %v4489_v23, %v10137_v55  ;;  %v4310_v25 = vunpack.c.l.b16 %v3824_v24  ;;  %v3447_v55 = vld [vmem:[%s12273_s1 + $0xb0] sm:$0x1]  ;;  %v6245_v27 = vshll.u32 %v8792_v54, 16  ;;  %v3448_v24 = vld [vmem:[%s12273_s1 + $0xb4] sm:$0xf] }
 0x360   :  { %v6889_v57 = vpop.f32.mrf.mxu0  ;;  %v4311_v23 = vunpack.c.l.b16 %v3834_v41  ;;  %v3449_v41 = vld [vmem:[%s12273_s1 + $0xb8] sm:$0xf] }
 0x361   :  { %v7036_v18 = vadd.f32 %v6886_v38, %v5746_v46  ;;  %4528 = vmatmul.bf16.gmra.mxu1 %v4360_v15  ;;  %5083 = vmatmul.bf16.gmra.mxu2 %v9081_v21  ;;  %v7231_v38 = vmul.f32 0.01, %v7103_v63  ;;  %v6239_v15 = vshll.u32 %v8791_v53, 16  ;;  %v6249_v21 = vshrl.u32 %v8792_v54, 16 }
 0x362   :  { %5638 = vmatmul.bf16.gmra.mxu3 %v9121_v33  ;;  %v3855_v46 = vshll.u32 %v3447_v55, 16  ;;  %v6238_v53 = vrot.slane %v6236_v7, 4  ;;  %v4361_v2 = vpack.c.b16 %v4311_v23, %v4310_v25  ;;  %v6761_v7 = vpack.c.b16 %v6711_v37, %v6710_v40  ;;  %v8795_v37 = vld [vmem:[%s12272_s3 + $0xc4] sm:$0xf] }
 0x363   :  { %6928 = vmatmul.bf16.gmra.mxu0 %v6760_v50  ;;  %v7104_v5 = vadd.f32 %v11152_v43, %v7036_v18  ;;  %v7295_v50 = vsel %vm7167_vm9, %v7103_v63, %v7231_v38  ;;  %v6241_v59 = vrot.slane %v6239_v15, 5  ;;  %v11345_v63 = vrot.slane %v6245_v27, 5 }
 0x364   :  { %v5044_v52 = vpop.f32.mrf.mxu2  ;;  %v6251_v49 = vrot.slane %v6249_v21, 4  ;;  %v3843_v38 = vrot.slane %v3842_v28, 4  ;;  %v3857_v54 = vrot.slane %v3855_v46, 5  ;;  %v3863_v15 = vshll.u32 %v3448_v24, 16 }
 0x365   :  { %vm7168_vm10 = vcmp.gt.f32.partialorder %v7104_v5, 0.0  ;;  %v7232_v45 = vmul.f32 0.01, %v7104_v5  ;;  %v5192_v20 = vadd.f32 %v5044_v52, %v4637_v0  ;;  %v5599_v1 = vpop.f32.mrf.mxu3  ;;  %v6242_v52 = vor.u32 %v6241_v59, %v6238_v53 }
 0x366   :  { %v4491_v10 = vpop.f32.mrf.mxu1  ;;  %v3873_v21 = vshrl.u32 %v3449_v41, 16  ;;  %v6263_v28 = vshll.u32 %v8794_v6, 16 }
 0x367   :  { %v7296_v56 = vsel %vm7168_vm10, %v7104_v5, %v7232_v45  ;;  %v5747_v13 = vadd.f32 %v5599_v1, %v5192_v20  ;;  %v4638_v18 = vadd.f32 %v4491_v10, %v10152_v62  ;;  %v6255_v5 = vshll.u32 %v8793_v44, 16  ;;  %v9122_v45 = vld [vmem:[%s12271_s2 + $0x70] sm:$0xff] }
 0x368   :  { %v6891_v11 = vpop.f32.mrf.mxu0  ;;  %v9175_v33 = vpack.c.bf16 %v7296_v56, %v7295_v50  ;;  %v3853_v62 = vrot.slane %v3852_v9, 4  ;;  %v6252_v20 = vor.u32 %v6251_v49, %v11345_v63  ;;  %v3860_v1 = vshrl.u32 %v3448_v24, 16 }
 0x369   :  { %v7037_v32 = vadd.f32 %v6889_v57, %v5747_v13  ;;  %v9082_v57 = vld [vmem:[%s12272_s3 + $0xa8] sm:$0xff]  ;;  %v3869_v10 = vshll.u32 %v3449_v41, 16  ;;  %v3848_v50 = vsel %vm9654_vm2, %v3843_v38, %v11333_v30  ;;  %v6257_v56 = vrot.slane %v6255_v5, 5 }
 0x36a   :  { %9319 = vst [vmem:[%s12276_s6 + $0x18] sm:$0xff] %v9175_v33   ;;  %v6260_v13 = vshrl.u32 %v8794_v6, 16  ;;  %v3858_v33 = vsel %vm9654_vm2, %v3853_v62, %v3857_v54  ;;  %v6243_v40 = vrot.slane %v6242_v52, 4  ;;  %v6253_v9 = vrot.slane %v6252_v20, 4 }
 0x36b   :  { %v7105_v25 = vadd.f32 %v11152_v43, %v7037_v32  ;;  %v3862_v46 = vrot.slane %v3860_v1, 4  ;;  %v3865_v44 = vrot.slane %v3863_v15, 5  ;;  %v11373_v30 = vrot.slane %v3869_v10, 5 }
 0x36c   :  { %v5046_v35 = vpop.f32.mrf.mxu2  ;;  %v3875_v49 = vrot.slane %v3873_v21, 4  ;;  %v6269_v24 = vshll.u32 %v8795_v37, 16  ;;  %v6273_v41 = vshrl.u32 %v8795_v37, 16  ;;  %v6265_v38 = vrot.slane %v6263_v28, 5 }
 0x36d   :  { %v5193_v0 = vadd.f32 %v5046_v35, %v4638_v18  ;;  %v5601_v12 = vpop.f32.mrf.mxu3  ;;  %v7233_v53 = vmul.f32 0.01, %v7105_v25  ;;  %vm7169_vm11 = vcmp.gt.f32.partialorder %v7105_v25, 0.0  ;;  %v6262_v18 = vrot.slane %v6260_v13, 4 }
 0x36e   :  { %v4494_v60 = vpop.f32.mrf.mxu1  ;;  %v4313_v20 = vunpack.c.l.b16 %v3858_v33  ;;  %v11385_v1 = vrot.slane %v6269_v24, 5  ;;  %v6275_v15 = vrot.slane %v6273_v41, 4  ;;  %v3876_v10 = vor.u32 %v3875_v49, %v11373_v30  ;;  %v9123_v49 = vld [vmem:[%s12271_s2 + $0x78] sm:$0xff] }
 0x36f   :  { %v5748_v55 = vadd.f32 %v5601_v12, %v5193_v0  ;;  %v4639_v59 = vadd.f32 %v4494_v60, %v10165_v58  ;;  %v4312_v0 = vunpack.c.l.b16 %v3848_v50  ;;  %v6248_v12 = vsel %vm9654_vm2, %v6243_v40, %v11345_v63 }
 0x370   :  { %v6894_v27 = vpop.f32.mrf.mxu0  ;;  %v6258_v58 = vsel %vm9654_vm2, %v6253_v9, %v6257_v56  ;;  %v7297_v62 = vsel %vm7169_vm11, %v7105_v25, %v7233_v53  ;;  %v3866_v60 = vor.u32 %v3865_v44, %v3862_v46  ;;  %v6266_v21 = vor.u32 %v6265_v38, %v6262_v18  ;;  %v9083_v44 = vld [vmem:[%s12272_s3 + $0xb4] sm:$0xff]  ;;  %v3452_v18 = vld [vmem:[%s12273_s1 + $0xc4] sm:$0xf]  ;;  %v8798_v38 = vld [vmem:[%s12272_s3 + $0xdc] sm:$0xf] }
 0x371   :  { %v7038_v23 = vadd.f32 %v6891_v11, %v5748_v55  ;;  %4533 = vmatmul.bf16.gmra.mxu1 %v4361_v2  ;;  %5088 = vmatmul.bf16.gmra.mxu2 %v9082_v57  ;;  %v3450_v57 = vld [vmem:[%s12273_s1 + $0xbc] sm:$0x1]  ;;  %v8796_v55 = vld [vmem:[%s12272_s3 + $0xc8] sm:$0x1]  ;;  %v6712_v25 = vunpack.c.l.b16 %v6248_v12  ;;  %v6713_v50 = vunpack.c.l.b16 %v6258_v58  ;;  %v4362_v40 = vpack.c.b16 %v4313_v20, %v4312_v0 }
 0x372   :  { %5643 = vmatmul.bf16.gmra.mxu3 %v9122_v45  ;;  %v3879_v63 = vshll.u32 %v3450_v57, 16  ;;  %v6276_v37 = vor.u32 %v6275_v15, %v11385_v1  ;;  %v6279_v28 = vshll.u32 %v8796_v55, 16  ;;  %v3877_v53 = vrot.slane %v3876_v10, 4 }
 0x373   :  { %6933 = vmatmul.bf16.gmra.mxu0 %v6761_v7  ;;  %v7106_v11 = vadd.f32 %v11152_v43, %v7038_v23  ;;  %v11395_v23 = vrot.slane %v3866_v60, 4  ;;  %v6293_v20 = vshll.u32 %v8798_v38, 16 }
 0x374   :  { %v5049_v32 = vpop.f32.mrf.mxu2  ;;  %v6281_v0 = vrot.slane %v6279_v28, 5 }
 0x375   :  { %vm7170_vm12 = vcmp.gt.f32.partialorder %v7106_v11, 0.0  ;;  %v7234_v35 = vmul.f32 0.01, %v7106_v11  ;;  %v5194_v2 = vadd.f32 %v5049_v32, %v4639_v59  ;;  %v5604_v7 = vpop.f32.mrf.mxu3  ;;  %v6267_v59 = vrot.slane %v6266_v21, 4 }
 0x376   :  { %v4496_v5 = vpop.f32.mrf.mxu1  ;;  %v6762_v32 = vpack.c.b16 %v6713_v50, %v6712_v25 }
 0x377   :  { %v7298_v54 = vsel %vm7170_vm12, %v7106_v11, %v7234_v35  ;;  %v5749_v52 = vadd.f32 %v5604_v7, %v5194_v2  ;;  %v4640_v13 = vadd.f32 %v4496_v5, %v10186_v22  ;;  %v3881_v11 = vrot.slane %v3879_v63, 5  ;;  %v3451_v22 = vld [vmem:[%s12273_s1 + $0xc0] sm:$0xf]  ;;  %v8797_v7 = vld [vmem:[%s12272_s3 + $0xd8] sm:$0xf] }
 0x378   :  { %v6896_v6 = vpop.f32.mrf.mxu0  ;;  %v9180_v45 = vpack.c.bf16 %v7298_v54, %v7297_v62  ;;  %v3872_v2 = vsel %vm9654_vm2, %v11395_v23, %v11373_v30  ;;  %v6277_v5 = vrot.slane %v6276_v37, 4  ;;  %v3884_v12 = vshrl.u32 %v3451_v22, 16 }
 0x379   :  { %v7039_v56 = vadd.f32 %v6894_v27, %v5749_v52  ;;  %v3887_v58 = vshll.u32 %v3451_v22, 16  ;;  %v3882_v62 = vsel %vm9654_vm2, %v3877_v53, %v3881_v11  ;;  %v6272_v30 = vsel %vm9654_vm2, %v6267_v59, %v11385_v1  ;;  %v3453_v11 = vld [vmem:[%s12273_s1 + $0xc8] sm:$0x1] }
 0x37a   :  { %9320 = vst [vmem:[%s12276_s6 + $0x20] sm:$0xff] %v9180_v45   ;;  %v3893_v54 = vshll.u32 %v3452_v18, 16  ;;  %v3897_v52 = vshrl.u32 %v3452_v18, 16  ;;  %v6284_v60 = vshrl.u32 %v8797_v7, 16  ;;  %v6287_v45 = vshll.u32 %v8797_v7, 16 }
 0x37b   :  { %v7107_v24 = vadd.f32 %v11152_v43, %v7039_v56  ;;  %v6297_v63 = vshrl.u32 %v8798_v38, 16  ;;  %v6282_v21 = vsel %vm9654_vm2, %v6277_v5, %v6281_v0  ;;  %v3886_v25 = vrot.slane %v3884_v12, 4 }
 0x37c   :  { %v5051_v33 = vpop.f32.mrf.mxu2  ;;  %v3889_v1 = vrot.slane %v3887_v58, 5  ;;  %v11430_v23 = vrot.slane %v3893_v54, 5  ;;  %v6286_v37 = vrot.slane %v6284_v60, 4  ;;  %v6289_v28 = vrot.slane %v6287_v45, 5  ;;  %v3454_v45 = vld [vmem:[%s12273_s1 + $0xcc] sm:$0xf] }
 0x37d   :  { %v5195_v9 = vadd.f32 %v5051_v33, %v4640_v13  ;;  %v5606_v46 = vpop.f32.mrf.mxu3  ;;  %v7235_v15 = vmul.f32 0.01, %v7107_v24  ;;  %vm7171_vm13 = vcmp.gt.f32.partialorder %v7107_v24, 0.0  ;;  %v6299_v59 = vrot.slane %v6297_v63, 4 }
 0x37e   :  { %v4499_v27 = vpop.f32.mrf.mxu1  ;;  %v6714_v18 = vunpack.c.l.b16 %v6272_v30  ;;  %v3903_v38 = vshll.u32 %v3453_v11, 16  ;;  %v6290_v5 = vor.u32 %v6289_v28, %v6286_v37 }
 0x37f   :  { %v5750_v41 = vadd.f32 %v5606_v46, %v5195_v9  ;;  %v11432_v9 = vrot.slane %v6293_v20, 5  ;;  %v9124_v20 = vld [vmem:[%s12271_s2 + $0x80] sm:$0xff] }
 0x380   :  { %v6899_v35 = vpop.f32.mrf.mxu0  ;;  %v6291_v63 = vrot.slane %v6290_v5, 4 }
 0x381   :  { %v7040_v57 = vadd.f32 %v6896_v6, %v5750_v41  ;;  %4538 = vmatmul.bf16.gmra.mxu1 %v4362_v40  ;;  %5093 = vmatmul.bf16.gmra.mxu2 %v9083_v44  ;;  %v4641_v6 = vadd.f32 %v4499_v27, %v10208_v34  ;;  %v3899_v40 = vrot.slane %v3897_v52, 4  ;;  %v7299_v34 = vsel %vm7171_vm13, %v7107_v24, %v7235_v15  ;;  %v8799_v27 = vld [vmem:[%s12272_s3 + $0xe0] sm:$0x1] }
 0x382   :  { %5648 = vmatmul.bf16.gmra.mxu3 %v9123_v49  ;;  %v4314_v49 = vunpack.c.l.b16 %v3872_v2  ;;  %v3890_v41 = vor.u32 %v3889_v1, %v3886_v25  ;;  %v6715_v24 = vunpack.c.l.b16 %v6282_v21  ;;  %v6300_v58 = vor.u32 %v6299_v59, %v11432_v9  ;;  %v9084_v52 = vld [vmem:[%s12272_s3 + $0xc0] sm:$0xff] }
 0x383   :  { %6938 = vmatmul.bf16.gmra.mxu0 %v6762_v32  ;;  %v7108_v10 = vadd.f32 %v11152_v43, %v7040_v57  ;;  %v4315_v32 = vunpack.c.l.b16 %v3882_v62  ;;  %v3900_v7 = vor.u32 %v3899_v40, %v11430_v23  ;;  %v6303_v57 = vshll.u32 %v8799_v27, 16 }
 0x384   :  { %v5054_v55 = vpop.f32.mrf.mxu2  ;;  %v3891_v60 = vrot.slane %v3890_v41, 4  ;;  %v6763_v15 = vpack.c.b16 %v6715_v24, %v6714_v18  ;;  %v6301_v1 = vrot.slane %v6300_v58, 4 }
 0x385   :  { %vm7172_vm14 = vcmp.gt.f32.partialorder %v7108_v10, 0.0  ;;  %v7236_v50 = vmul.f32 0.01, %v7108_v10  ;;  %v5196_v56 = vadd.f32 %v5054_v55, %v4641_v6  ;;  %v5609_v13 = vpop.f32.mrf.mxu3  ;;  %v4363_v30 = vpack.c.b16 %v4315_v32, %v4314_v49  ;;  %v8801_v49 = vld [vmem:[%s12272_s3 + $0xe8] sm:$0xf] }
 0x386   :  { %v4501_v33 = vpop.f32.mrf.mxu1  ;;  %v3905_v6 = vrot.slane %v3903_v38, 5  ;;  %v3896_v28 = vsel %vm9654_vm2, %v3891_v60, %v11430_v23  ;;  %v6317_v58 = vshll.u32 %v8801_v49, 16 }
 0x387   :  { %v7300_v46 = vsel %vm7172_vm14, %v7108_v10, %v7236_v50  ;;  %v5751_v44 = vadd.f32 %v5609_v13, %v5196_v56  ;;  %v4642_v12 = vadd.f32 %v4501_v33, %v10223_v42  ;;  %v3455_v42 = vld [vmem:[%s12273_s1 + $0xd0] sm:$0xf]  ;;  %v3901_v10 = vrot.slane %v3900_v7, 4  ;;  %v8800_v56 = vld [vmem:[%s12272_s3 + $0xe4] sm:$0xf] }
 0x388   :  { %v6901_v53 = vpop.f32.mrf.mxu0  ;;  %v9185_v22 = vpack.c.bf16 %v7300_v46, %v7299_v34  ;;  %v6305_v50 = vrot.slane %v6303_v57, 5  ;;  %v3908_v13 = vshrl.u32 %v3454_v45, 16  ;;  %v3911_v33 = vshll.u32 %v3454_v45, 16 }
 0x389   :  { %v7041_v0 = vadd.f32 %v6899_v35, %v5751_v44  ;;  %v3917_v40 = vshll.u32 %v3455_v42, 16  ;;  %v3921_v34 = vshrl.u32 %v3455_v42, 16  ;;  %v3906_v46 = vsel %vm9654_vm2, %v3901_v10, %v3905_v6  ;;  %v8802_v6 = vld [vmem:[%s12272_s3 + $0xec] sm:$0x1] }
 0x38a   :  { %9321 = vst [vmem:[%s12276_s6 + $0x28] sm:$0xff] %v9185_v22   ;;  %v6296_v44 = vsel %vm9654_vm2, %v6291_v63, %v11432_v9  ;;  %v6308_v11 = vshrl.u32 %v8800_v56, 16  ;;  %v6311_v59 = vshll.u32 %v8800_v56, 16  ;;  %v6306_v23 = vsel %vm9654_vm2, %v6301_v1, %v6305_v50 }
 0x38b   :  { %v7109_v55 = vadd.f32 %v11152_v43, %v7041_v0  ;;  %v3910_v18 = vrot.slane %v3908_v13, 4  ;;  %v3913_v41 = vrot.slane %v3911_v33, 5  ;;  %v11477_v24 = vrot.slane %v3917_v40, 5 }
 0x38c   :  { %v5056_v54 = vpop.f32.mrf.mxu2  ;;  %v6310_v0 = vrot.slane %v6308_v11, 4  ;;  %v6321_v57 = vshrl.u32 %v8801_v49, 16  ;;  %v4316_v60 = vunpack.c.l.b16 %v3896_v28  ;;  %v4317_v45 = vunpack.c.l.b16 %v3906_v46 }
 0x38d   :  { %v5197_v2 = vadd.f32 %v5056_v54, %v4642_v12  ;;  %v5611_v62 = vpop.f32.mrf.mxu3  ;;  %v7237_v22 = vmul.f32 0.01, %v7109_v55  ;;  %vm7173_vm15 = vcmp.gt.f32.partialorder %v7109_v55, 0.0  ;;  %v6313_v12 = vrot.slane %v6311_v59, 5 }
 0x38e   :  { %v4504_v35 = vpop.f32.mrf.mxu1  ;;  %v6716_v42 = vunpack.c.l.b16 %v6296_v44  ;;  %v4364_v13 = vpack.c.b16 %v4317_v45, %v4316_v60  ;;  %v6327_v46 = vshll.u32 %v8802_v6, 16  ;;  %v3457_v44 = vld [vmem:[%s12273_s1 + $0xd8] sm:$0xf] }
 0x38f   :  { %v5752_v21 = vadd.f32 %v5611_v62, %v5197_v2  ;;  %v4643_v27 = vadd.f32 %v4504_v35, %v10233_v4  ;;  %v3456_v4 = vld [vmem:[%s12273_s1 + $0xd4] sm:$0x1]  ;;  %v7301_v54 = vsel %vm7173_vm15, %v7109_v55, %v7237_v22  ;;  %v6717_v35 = vunpack.c.l.b16 %v6306_v23 }
 0x390   :  { %v6904_v25 = vpop.f32.mrf.mxu0  ;;  %v6314_v63 = vor.u32 %v6313_v12, %v6310_v0  ;;  %v11490_v55 = vrot.slane %v6317_v58, 5 }
 0x391   :  { %v7042_v37 = vadd.f32 %v6901_v53, %v5752_v21  ;;  %4543 = vmatmul.bf16.gmra.mxu1 %v4363_v30  ;;  %5098 = vmatmul.bf16.gmra.mxu2 %v9084_v52  ;;  %v6323_v21 = vrot.slane %v6321_v57, 4  ;;  %v6764_v28 = vpack.c.b16 %v6717_v35, %v6716_v42 }
 0x392   :  { %5653 = vmatmul.bf16.gmra.mxu3 %v9124_v20  ;;  %v3914_v20 = vor.u32 %v3913_v41, %v3910_v18  ;;  %v6315_v22 = vrot.slane %v6314_v63, 4  ;;  %v3458_v18 = vld [vmem:[%s12273_s1 + $0xdc] sm:$0xf]  ;;  %v3932_v41 = vshrl.u32 %v3457_v44, 16 }
 0x393   :  { %6943 = vmatmul.bf16.gmra.mxu0 %v6763_v15  ;;  %v7110_v53 = vadd.f32 %v11152_v43, %v7042_v37  ;;  %v3923_v43 = vrot.slane %v3921_v34, 4  ;;  %v3927_v15 = vshll.u32 %v3456_v4, 16  ;;  %v9085_v37 = vld [vmem:[%s12272_s3 + $0xd8] sm:$0xff]  ;;  %v3941_v58 = vshll.u32 %v3458_v18, 16 }
 0x394   :  { %v5059_v32 = vpop.f32.mrf.mxu2  ;;  %v3915_v34 = vrot.slane %v3914_v20, 4  ;;  %v6320_v0 = vsel %vm9654_vm2, %v6315_v22, %v11490_v55 }
 0x395   :  { %vm7174_vm0 = vcmp.gt.f32.partialorder %v7110_v53, 0.0  ;;  %v7238_v9 = vmul.f32 0.01, %v7110_v53  ;;  %v5198_v7 = vadd.f32 %v5059_v32, %v4643_v27  ;;  %v5614_v38 = vpop.f32.mrf.mxu3  ;;  %v3924_v10 = vor.u32 %v3923_v43, %v11477_v24  ;;  %v11506_v27 = vld [vmem:[%s12275_s5] ss:$0 sm:$0xff] }
 0x396   :  { %v4506_v5 = vpop.f32.mrf.mxu1  ;;  %v3929_v59 = vrot.slane %v3927_v15, 5  ;;  %v6329_v43 = vrot.slane %v6327_v46, 5 }
 0x397   :  { %v7302_v2 = vsel %vm7174_vm0, %v7110_v53, %v7238_v9  ;;  %v5753_v62 = vadd.f32 %v5614_v38, %v5198_v7  ;;  %v4644_v50 = vadd.f32 %v4506_v5, %v10248_v61  ;;  %v9125_v61 = vld [vmem:[%s12271_s2 + $0x90] sm:$0xff]  ;;  %v6324_v53 = vor.u32 %v6323_v21, %v11490_v55 }
 0x398   :  { %v6906_v30 = vpop.f32.mrf.mxu0  ;;  %v9190_v52 = vpack.c.bf16 %v7302_v2, %v7301_v54  ;;  %v3935_v9 = vshll.u32 %v3457_v44, 16  ;;  %v3920_v38 = vsel %vm9654_vm2, %v3915_v34, %v11477_v24  ;;  %v8803_v5 = vld [vmem:[%s12272_s3 + $0xf0] sm:$0xf]  ;;  %v3945_v2 = vshrl.u32 %v3458_v18, 16 }
 0x399   :  { %v7043_v1 = vadd.f32 %v6904_v25, %v5753_v62  ;;  %v3925_v25 = vrot.slane %v3924_v10, 4  ;;  %v6325_v12 = vrot.slane %v6324_v53, 4  ;;  %v8804_v62 = vld [vmem:[%s12272_s3 + $0xf4] sm:$0xf]  ;;  %v6332_v45 = vshrl.u32 %v8803_v5, 16 }
 0x39a   :  { %9322 = vst [vmem:[%s12276_s6 + $0x30] sm:$0xff] %v9190_v52   ;;  %v3934_v52 = vrot.slane %v3932_v41, 4  ;;  %v3937_v60 = vrot.slane %v3935_v9, 5  ;;  %v6335_v15 = vshll.u32 %v8803_v5, 16  ;;  %v6341_v63 = vshll.u32 %v8804_v62, 16 }
 0x39b   :  { %v7111_v23 = vadd.f32 %v11506_v27, %v7043_v1  ;;  %v3930_v4 = vsel %vm9654_vm2, %v3925_v25, %v3929_v59  ;;  %v6330_v6 = vsel %vm9654_vm2, %v6325_v12, %v6329_v43  ;;  %v6345_v55 = vshrl.u32 %v8804_v62, 16  ;;  %v8805_v25 = vld [vmem:[%s12272_s3 + $0xf8] sm:$0x1]  ;;  %v3460_v41 = vld [vmem:[%s12273_s1 + $0xe4] sm:$0xf] }
 0x39c   :  { %v5061_v56 = vpop.f32.mrf.mxu2  ;;  %v4319_v34 = vunpack.c.l.b16 %v3930_v4  ;;  %v6334_v46 = vrot.slane %v6332_v45, 4  ;;  %v6337_v44 = vrot.slane %v6335_v15, 5  ;;  %v11541_v59 = vrot.slane %v6341_v63, 5  ;;  %v9086_v4 = vld [vmem:[%s12272_s3 + $0xe4] sm:$0xff]  ;;  %v8806_v12 = vld [vmem:[%s12272_s3 + $0xfc] sm:$0xf] }
 0x39d   :  { %v5199_v33 = vadd.f32 %v5061_v56, %v4644_v50  ;;  %v5616_v40 = vpop.f32.mrf.mxu3  ;;  %v7239_v57 = vmul.f32 0.01, %v7111_v23  ;;  %vm7175_vm1 = vcmp.gt.f32.partialorder %v7111_v23, 0.0  ;;  %v6347_v22 = vrot.slane %v6345_v55, 4 }
 0x39e   :  { %v4509_v11 = vpop.f32.mrf.mxu1  ;;  %v3959_v62 = vshll.u32 %v3460_v41, 16 }
 0x39f   :  { %v5754_v49 = vadd.f32 %v5616_v40, %v5199_v33  ;;  %v4645_v24 = vadd.f32 %v4509_v11, %v10261_v29  ;;  %v11530_v29 = vrot.slane %v3941_v58, 5  ;;  %v7303_v21 = vsel %vm7175_vm1, %v7111_v23, %v7239_v57  ;;  %v3459_v40 = vld [vmem:[%s12273_s1 + $0xe0] sm:$0x1]  ;;  %v9126_v57 = vld [vmem:[%s12271_s2 + $0x98] sm:$0xff] }
 0x3a0   :  { %v6909_v32 = vpop.f32.mrf.mxu0  ;;  %v6718_v11 = vunpack.c.l.b16 %v6320_v0  ;;  %v3951_v18 = vshll.u32 %v3459_v40, 16  ;;  %v6351_v0 = vshll.u32 %v8805_v25, 16 }
 0x3a1   :  { %v7044_v7 = vadd.f32 %v6906_v30, %v5754_v49  ;;  %4548 = vmatmul.bf16.gmra.mxu1 %v4364_v13  ;;  %5103 = vmatmul.bf16.gmra.mxu2 %v9085_v37  ;;  %v3947_v13 = vrot.slane %v3945_v2, 4  ;;  %v3938_v37 = vor.u32 %v3937_v60, %v3934_v52  ;;  %v3956_v2 = vshrl.u32 %v3460_v41, 16 }
 0x3a2   :  { %5658 = vmatmul.bf16.gmra.mxu3 %v9125_v61  ;;  %v6719_v61 = vunpack.c.l.b16 %v6330_v6  ;;  %v6356_v6 = vshrl.u32 %v8806_v12, 16 }
 0x3a3   :  { %6948 = vmatmul.bf16.gmra.mxu0 %v6764_v28  ;;  %v7112_v54 = vadd.f32 %v11506_v27, %v7044_v7  ;;  %v4318_v28 = vunpack.c.l.b16 %v3920_v38  ;;  %v3948_v49 = vor.u32 %v3947_v13, %v11530_v29  ;;  %v11548_v7 = vrot.slane %v3938_v37, 4 }
 0x3a4   :  { %v5064_v30 = vpop.f32.mrf.mxu2  ;;  %v3958_v13 = vrot.slane %v3956_v2, 4 }
 0x3a5   :  { %vm7176_vm3 = vcmp.gt.f32.partialorder %v7112_v54, 0.0  ;;  %v7240_v42 = vmul.f32 0.01, %v7112_v54  ;;  %v5200_v35 = vadd.f32 %v5064_v30, %v4645_v24  ;;  %v5619_v20 = vpop.f32.mrf.mxu3  ;;  %v4365_v5 = vpack.c.b16 %v4319_v34, %v4318_v28 }
 0x3a6   :  { %v4511_v10 = vpop.f32.mrf.mxu1  ;;  %v6348_v24 = vor.u32 %v6347_v22, %v11541_v59  ;;  %v3949_v45 = vrot.slane %v3948_v49, 4 }
 0x3a7   :  { %v7304_v1 = vsel %vm7176_vm3, %v7112_v54, %v7240_v42  ;;  %v5755_v50 = vadd.f32 %v5619_v20, %v5200_v35  ;;  %v4646_v23 = vadd.f32 %v4511_v10, %v10282_v26  ;;  %v3461_v26 = vld [vmem:[%s12273_s1 + $0xe8] sm:$0xf]  ;;  %v6765_v54 = vpack.c.b16 %v6719_v61, %v6718_v11  ;;  %v8807_v35 = vld [vmem:[%s12272_s3 + $0x100] sm:$0xf] }
 0x3a8   :  { %v6911_v56 = vpop.f32.mrf.mxu0  ;;  %v9195_v33 = vpack.c.bf16 %v7304_v1, %v7303_v21  ;;  %v3953_v42 = vrot.slane %v3951_v18, 5  ;;  %v3944_v20 = vsel %vm9654_vm2, %v11548_v7, %v11530_v29  ;;  %v3965_v15 = vshll.u32 %v3461_v26, 16 }
 0x3a9   :  { %v7045_v53 = vadd.f32 %v6909_v32, %v5755_v50  ;;  %v6338_v32 = vor.u32 %v6337_v44, %v6334_v46  ;;  %v3969_v10 = vshrl.u32 %v3461_v26, 16  ;;  %v6353_v21 = vrot.slane %v6351_v0, 5 }
 0x3aa   :  { %9323 = vst [vmem:[%s12276_s6 + $0x38] sm:$0xff] %v9195_v33   ;;  %v6359_v1 = vshll.u32 %v8806_v12, 16  ;;  %v6349_v50 = vrot.slane %v6348_v24, 4  ;;  %v3961_v33 = vrot.slane %v3959_v62, 5  ;;  %v6365_v40 = vshll.u32 %v8807_v35, 16 }
 0x3ab   :  { %v7113_v30 = vadd.f32 %v11506_v27, %v7045_v53  ;;  %v6339_v55 = vrot.slane %v6338_v32, 4  ;;  %v6369_v34 = vshrl.u32 %v8807_v35, 16  ;;  %v3971_v44 = vrot.slane %v3969_v10, 4  ;;  %v3462_v53 = vld [vmem:[%s12273_s1 + $0xec] sm:$0x1]  ;;  %v9087_v35 = vld [vmem:[%s12272_s3 + $0xf0] sm:$0xff] }
 0x3ac   :  { %v5066_v9 = vpop.f32.mrf.mxu2  ;;  %v6358_v11 = vrot.slane %v6356_v6, 4  ;;  %v6354_v41 = vsel %vm9654_vm2, %v6349_v50, %v6353_v21  ;;  %v3962_v0 = vor.u32 %v3961_v33, %v3958_v13  ;;  %v3975_v26 = vshll.u32 %v3462_v53, 16  ;;  %v8808_v12 = vld [vmem:[%s12272_s3 + $0x104] sm:$0x1] }
 0x3ad   :  { %v5201_v38 = vadd.f32 %v5066_v9, %v4646_v23  ;;  %v5621_v43 = vpop.f32.mrf.mxu3  ;;  %v7241_v37 = vmul.f32 0.01, %v7113_v30  ;;  %vm7177_vm4 = vcmp.gt.f32.partialorder %v7113_v30, 0.0  ;;  %v6361_v23 = vrot.slane %v6359_v1, 5  ;;  %v9127_v50 = vld [vmem:[%s12271_s2 + $0xa0] sm:$0xff] }
 0x3ae   :  { %v4514_v58 = vpop.f32.mrf.mxu1  ;;  %v6344_v18 = vsel %vm9654_vm2, %v6339_v55, %v11541_v59  ;;  %v11585_v9 = vrot.slane %v6365_v40, 5  ;;  %v6721_v2 = vunpack.c.l.b16 %v6354_v41 }
 0x3af   :  { %v5756_v52 = vadd.f32 %v5621_v43, %v5201_v38  ;;  %v4647_v29 = vadd.f32 %v4514_v58, %v10292_v48  ;;  %v3954_v48 = vsel %vm9654_vm2, %v3949_v45, %v3953_v42  ;;  %v7305_v7 = vsel %vm7177_vm4, %v7113_v30, %v7241_v37 }
 0x3b0   :  { %v6914_v60 = vpop.f32.mrf.mxu0  ;;  %v4320_v58 = vunpack.c.l.b16 %v3944_v20  ;;  %v4321_v59 = vunpack.c.l.b16 %v3954_v48  ;;  %v6720_v24 = vunpack.c.l.b16 %v6344_v18  ;;  %v6375_v45 = vshll.u32 %v8808_v12, 16 }
 0x3b1   :  { %v7046_v63 = vadd.f32 %v6911_v56, %v5756_v52  ;;  %4553 = vmatmul.bf16.gmra.mxu1 %v4365_v5  ;;  %5108 = vmatmul.bf16.gmra.mxu2 %v9086_v4  ;;  %v11573_v56 = vrot.slane %v3965_v15, 5  ;;  %v6371_v4 = vrot.slane %v6369_v34, 4  ;;  %v3963_v20 = vrot.slane %v3962_v0, 4  ;;  %v8809_v34 = vld [vmem:[%s12272_s3 + $0x108] sm:$0xf] }
 0x3b2   :  { %5663 = vmatmul.bf16.gmra.mxu3 %v9126_v57  ;;  %v3977_v15 = vrot.slane %v3975_v26, 5  ;;  %v6766_v13 = vpack.c.b16 %v6721_v2, %v6720_v24  ;;  %v6380_v48 = vshrl.u32 %v8809_v34, 16  ;;  %v6383_v18 = vshll.u32 %v8809_v34, 16 }
 0x3b3   :  { %6953 = vmatmul.bf16.gmra.mxu0 %v6765_v54  ;;  %v7114_v28 = vadd.f32 %v11506_v27, %v7046_v63  ;;  %v3972_v57 = vor.u32 %v3971_v44, %v11573_v56  ;;  %v6362_v54 = vor.u32 %v6361_v23, %v6358_v11  ;;  %v6372_v52 = vor.u32 %v6371_v4, %v11585_v9 }
 0x3b4   :  { %v5069_v46 = vpop.f32.mrf.mxu2  ;;  %v4366_v63 = vpack.c.b16 %v4321_v59, %v4320_v58  ;;  %v3968_v44 = vsel %vm9654_vm2, %v3963_v20, %v11573_v56  ;;  %v6385_v24 = vrot.slane %v6383_v18, 5 }
 0x3b5   :  { %vm7178_vm5 = vcmp.gt.f32.partialorder %v7114_v28, 0.0  ;;  %v7242_v61 = vmul.f32 0.01, %v7114_v28  ;;  %v5202_v25 = vadd.f32 %v5069_v46, %v4647_v29  ;;  %v5624_v22 = vpop.f32.mrf.mxu3  ;;  %v3973_v55 = vrot.slane %v3972_v57, 4  ;;  %v8810_v46 = vld [vmem:[%s12272_s3 + $0x10c] sm:$0xf] }
 0x3b6   :  { %v4516_v49 = vpop.f32.mrf.mxu1  ;;  %v6363_v21 = vrot.slane %v6362_v54, 4  ;;  %v6377_v29 = vrot.slane %v6375_v45, 5  ;;  %v6389_v41 = vshll.u32 %v8810_v46, 16  ;;  %v6393_v56 = vshrl.u32 %v8810_v46, 16  ;;  %v3465_v54 = vld [vmem:[%s12273_s1 + $0xf8] sm:$0x1] }
 0x3b7   :  { %v7306_v38 = vsel %vm7178_vm5, %v7114_v28, %v7242_v61  ;;  %v5757_v43 = vadd.f32 %v5624_v22, %v5202_v25  ;;  %v4648_v30 = vadd.f32 %v4516_v49, %v10307_v47  ;;  %v3464_v47 = vld [vmem:[%s12273_s1 + $0xf4] sm:$0xf]  ;;  %v6373_v28 = vrot.slane %v6372_v52, 4 }
 0x3b8   :  { %v6916_v5 = vpop.f32.mrf.mxu0  ;;  %v9200_v32 = vpack.c.bf16 %v7306_v38, %v7305_v7  ;;  %v3989_v25 = vshll.u32 %v3464_v47, 16  ;;  %v3978_v53 = vsel %vm9654_vm2, %v3973_v55, %v3977_v15  ;;  %v6368_v23 = vsel %vm9654_vm2, %v6363_v21, %v11585_v9 }
 0x3b9   :  { %v7047_v62 = vadd.f32 %v6914_v60, %v5757_v43  ;;  %v3463_v60 = vld [vmem:[%s12273_s1 + $0xf0] sm:$0xf]  ;;  %v3993_v49 = vshrl.u32 %v3464_v47, 16  ;;  %v11633_v2 = vrot.slane %v6389_v41, 5  ;;  %v4322_v15 = vunpack.c.l.b16 %v3968_v44  ;;  %v9088_v44 = vld [vmem:[%s12272_s3 + $0xfc] sm:$0xff] }
 0x3ba   :  { %9324 = vst [vmem:[%s12276_s6 + $0x40] sm:$0xff] %v9200_v32   ;;  %v3980_v11 = vshrl.u32 %v3463_v60, 16  ;;  %v3983_v61 = vshll.u32 %v3463_v60, 16  ;;  %v11628_v9 = vrot.slane %v3989_v25, 5  ;;  %v3999_v21 = vshll.u32 %v3465_v54, 16 }
 0x3bb   :  { %v7115_v33 = vadd.f32 %v11506_v27, %v7047_v62  ;;  %v3995_v59 = vrot.slane %v3993_v49, 4  ;;  %v6395_v62 = vrot.slane %v6393_v56, 4 }
 0x3bc   :  { %v5071_v42 = vpop.f32.mrf.mxu2  ;;  %v3982_v32 = vrot.slane %v3980_v11, 4  ;;  %v3985_v0 = vrot.slane %v3983_v61, 5  ;;  %v4001_v25 = vrot.slane %v3999_v21, 5 }
 0x3bd   :  { %v5203_v10 = vadd.f32 %v5071_v42, %v4648_v30  ;;  %v5626_v6 = vpop.f32.mrf.mxu3  ;;  %v7243_v7 = vmul.f32 0.01, %v7115_v33  ;;  %vm7179_vm6 = vcmp.gt.f32.partialorder %v7115_v33, 0.0  ;;  %v3996_v60 = vor.u32 %v3995_v59, %v11628_v9 }
 0x3be   :  { %v4519_v1 = vpop.f32.mrf.mxu1  ;;  %v3986_v55 = vor.u32 %v3985_v0, %v3982_v32 }
 0x3bf   :  { %v5758_v40 = vadd.f32 %v5626_v6, %v5203_v10  ;;  %v4649_v43 = vadd.f32 %v4519_v1, %v10329_v14  ;;  %v6382_v14 = vrot.slane %v6380_v48, 4  ;;  %v7307_v30 = vsel %vm7179_vm6, %v7115_v33, %v7243_v7 }
 0x3c0   :  { %v6919_v37 = vpop.f32.mrf.mxu0  ;;  %v4323_v10 = vunpack.c.l.b16 %v3978_v53  ;;  %v6722_v6 = vunpack.c.l.b16 %v6368_v23  ;;  %v6396_v1 = vor.u32 %v6395_v62, %v11633_v2  ;;  %v3987_v61 = vrot.slane %v3986_v55, 4 }
 0x3c1   :  { %v7048_v22 = vadd.f32 %v6916_v5, %v5758_v40  ;;  %4558 = vmatmul.bf16.gmra.mxu1 %v4366_v63  ;;  %5113 = vmatmul.bf16.gmra.mxu2 %v9087_v35  ;;  %v6378_v5 = vsel %vm9654_vm2, %v6373_v28, %v6377_v29  ;;  %v8811_v35 = vld [vmem:[%s12272_s3 + $0x110] sm:$0x1]  ;;  %v6386_v47 = vor.u32 %v6385_v24, %v6382_v14  ;;  %v3466_v29 = vld [vmem:[%s12273_s1 + $0xfc] sm:$0xf]  ;;  %v3997_v53 = vrot.slane %v3996_v60, 4 }
 0x3c2   :  { %5668 = vmatmul.bf16.gmra.mxu3 %v9127_v50  ;;  %v6723_v63 = vunpack.c.l.b16 %v6378_v5  ;;  %v6399_v50 = vshll.u32 %v8811_v35, 16  ;;  %v4367_v28 = vpack.c.b16 %v4323_v10, %v4322_v15  ;;  %v6397_v49 = vrot.slane %v6396_v1, 4 }
 0x3c3   :  { %6958 = vmatmul.bf16.gmra.mxu0 %v6766_v13  ;;  %v7116_v38 = vadd.f32 %v11506_v27, %v7048_v22  ;;  %v9128_v22 = vld [vmem:[%s12271_s2 + $0xa8] sm:$0xff]  ;;  %v6387_v23 = vrot.slane %v6386_v47, 4  ;;  %v4004_v7 = vshrl.u32 %v3466_v29, 16  ;;  %v3992_v0 = vsel %vm9654_vm2, %v3987_v61, %v11628_v9  ;;  %v8813_v9 = vld [vmem:[%s12272_s3 + $0x118] sm:$0xf] }
 0x3c4   :  { %v5074_v4 = vpop.f32.mrf.mxu2  ;;  %v6767_v11 = vpack.c.b16 %v6723_v63, %v6722_v6  ;;  %v6401_v48 = vrot.slane %v6399_v50, 5  ;;  %v4324_v10 = vunpack.c.l.b16 %v3992_v0  ;;  %v6413_v6 = vshll.u32 %v8813_v9, 16 }
 0x3c5   :  { %vm7180_vm7 = vcmp.gt.f32.partialorder %v7116_v38, 0.0  ;;  %v7244_v26 = vmul.f32 0.01, %v7116_v38  ;;  %v5204_v12 = vadd.f32 %v5074_v4, %v4649_v43  ;;  %v5629_v58 = vpop.f32.mrf.mxu3  ;;  %v4007_v43 = vshll.u32 %v3466_v29, 16 }
 0x3c6   :  { %v4521_v57 = vpop.f32.mrf.mxu1  ;;  %v4006_v24 = vrot.slane %v4004_v7, 4  ;;  %v6417_v63 = vshrl.u32 %v8813_v9, 16 }
 0x3c7   :  { %v7308_v52 = vsel %vm7180_vm7, %v7116_v38, %v7244_v26  ;;  %v5759_v45 = vadd.f32 %v5629_v58, %v5204_v12  ;;  %v4650_v33 = vadd.f32 %v4521_v57, %v10344_v51  ;;  %v8812_v38 = vld [vmem:[%s12272_s3 + $0x114] sm:$0xf]  ;;  %v4002_v26 = vsel %vm9654_vm2, %v3997_v53, %v4001_v25 }
 0x3c8   :  { %v6921_v42 = vpop.f32.mrf.mxu0  ;;  %v9205_v20 = vpack.c.bf16 %v7308_v52, %v7307_v30  ;;  %v6392_v12 = vsel %vm9654_vm2, %v6387_v23, %v11633_v2  ;;  %v6402_v58 = vsel %vm9654_vm2, %v6397_v49, %v6401_v48  ;;  %v6404_v59 = vshrl.u32 %v8812_v38, 16 }
 0x3c9   :  { %v7049_v13 = vadd.f32 %v6919_v37, %v5759_v45  ;;  %v3467_v37 = vld [vmem:[%s12273_s1 + $0x100] sm:$0xf]  ;;  %v4009_v30 = vrot.slane %v4007_v43, 5  ;;  %v4325_v1 = vunpack.c.l.b16 %v4002_v26  ;;  %v6419_v61 = vrot.slane %v6417_v63, 4 }
 0x3ca   :  { %9325 = vst [vmem:[%s12276_s6 + $0x48] sm:$0xff] %v9205_v20   ;;  %v4013_v5 = vshll.u32 %v3467_v37, 16  ;;  %v4017_v4 = vshrl.u32 %v3467_v37, 16  ;;  %v6407_v20 = vshll.u32 %v8812_v38, 16 }
 0x3cb   :  { %v7117_v18 = vadd.f32 %v11506_v27, %v7049_v13  ;;  %v6724_v13 = vunpack.c.l.b16 %v6392_v12  ;;  %v4368_v23 = vpack.c.b16 %v4325_v1, %v4324_v10 }
 0x3cc   :  { %v5076_v40 = vpop.f32.mrf.mxu2  ;;  %v11676_v52 = vrot.slane %v4013_v5, 5  ;;  %v4019_v2 = vrot.slane %v4017_v4, 4  ;;  %v8815_v5 = vld [vmem:[%s12272_s3 + $0x120] sm:$0xf] }
 0x3cd   :  { %v5205_v34 = vadd.f32 %v5076_v40, %v4650_v33  ;;  %v5631_v46 = vpop.f32.mrf.mxu3  ;;  %v7245_v57 = vmul.f32 0.01, %v7117_v18  ;;  %vm7181_vm8 = vcmp.gt.f32.partialorder %v7117_v18, 0.0  ;;  %v6725_v33 = vunpack.c.l.b16 %v6402_v58 }
 0x3ce   :  { %v4524_v51 = vpop.f32.mrf.mxu1  ;;  %v4010_v40 = vor.u32 %v4009_v30, %v4006_v24 }
 0x3cf   :  { %v5760_v41 = vadd.f32 %v5631_v46, %v5205_v34  ;;  %v4651_v14 = vadd.f32 %v4524_v51, %v10357_v8  ;;  %v3468_v8 = vld [vmem:[%s12273_s1 + $0x104] sm:$0x1]  ;;  %v7309_v55 = vsel %vm7181_vm8, %v7117_v18, %v7245_v57  ;;  %v8814_v34 = vld [vmem:[%s12272_s3 + $0x11c] sm:$0x1]  ;;  %v6406_v46 = vrot.slane %v6404_v59, 4 }
 0x3d0   :  { %v6924_v56 = vpop.f32.mrf.mxu0  ;;  %v4023_v29 = vshll.u32 %v3468_v8, 16  ;;  %v3469_v51 = vld [vmem:[%s12273_s1 + $0x108] sm:$0xf]  ;;  %v6768_v49 = vpack.c.b16 %v6725_v33, %v6724_v13  ;;  %v4011_v48 = vrot.slane %v4010_v40, 4  ;;  %v6423_v18 = vshll.u32 %v8814_v34, 16 }
 0x3d1   :  { %v7050_v32 = vadd.f32 %v6921_v42, %v5760_v41  ;;  %4563 = vmatmul.bf16.gmra.mxu1 %v4367_v28  ;;  %5118 = vmatmul.bf16.gmra.mxu2 %v9088_v44  ;;  %v4020_v28 = vor.u32 %v4019_v2, %v11676_v52  ;;  %v6409_v44 = vrot.slane %v6407_v20, 5  ;;  %v4028_v26 = vshrl.u32 %v3469_v51, 16 }
 0x3d2   :  { %5673 = vmatmul.bf16.gmra.mxu3 %v9128_v22  ;;  %v3470_v22 = vld [vmem:[%s12273_s1 + $0x10c] sm:$0xf]  ;;  %v4025_v38 = vrot.slane %v4023_v29, 5  ;;  %v4031_v12 = vshll.u32 %v3469_v51, 16  ;;  %v4016_v24 = vsel %vm9654_vm2, %v4011_v48, %v11676_v52  ;;  %v6425_v9 = vrot.slane %v6423_v18, 5 }
 0x3d3   :  { %6963 = vmatmul.bf16.gmra.mxu0 %v6767_v11  ;;  %v7118_v54 = vadd.f32 %v11506_v27, %v7050_v32  ;;  %v11688_v11 = vrot.slane %v6413_v6, 5  ;;  %v6410_v43 = vor.u32 %v6409_v44, %v6406_v46  ;;  %v9129_v32 = vld [vmem:[%s12271_s2 + $0xb0] sm:$0xff]  ;;  %v4037_v58 = vshll.u32 %v3470_v22, 16  ;;  %v8817_v18 = vld [vmem:[%s12272_s3 + $0x128] sm:$0x1] }
 0x3d4   :  { %v5079_v62 = vpop.f32.mrf.mxu2  ;;  %v4033_v10 = vrot.slane %v4031_v12, 5  ;;  %v4326_v29 = vunpack.c.l.b16 %v4016_v24  ;;  %v3471_v46 = vld [vmem:[%s12273_s1 + $0x110] sm:$0x1]  ;;  %v9130_v24 = vld [vmem:[%s12271_s2 + $0xb8] sm:$0xff] }
 0x3d5   :  { %vm7182_vm9 = vcmp.gt.f32.partialorder %v7118_v54, 0.0  ;;  %v7246_v45 = vmul.f32 0.01, %v7118_v54  ;;  %v5206_v42 = vadd.f32 %v5079_v62, %v4651_v14  ;;  %v5634_v35 = vpop.f32.mrf.mxu3  ;;  %v6420_v0 = vor.u32 %v6419_v61, %v11688_v11 }
 0x3d6   :  { %v4526_v15 = vpop.f32.mrf.mxu1  ;;  %v4041_v14 = vshrl.u32 %v3470_v22, 16  ;;  %v6428_v62 = vshrl.u32 %v8815_v5, 16  ;;  %v11716_v52 = vrot.slane %v4037_v58, 5  ;;  %v9090_v58 = vld [vmem:[%s12272_s3 + $0x114] sm:$0xff] }
 0x3d7   :  { %v7310_v21 = vsel %vm7182_vm9, %v7118_v54, %v7246_v45  ;;  %v5761_v60 = vadd.f32 %v5634_v35, %v5206_v42  ;;  %v4652_v37 = vadd.f32 %v4526_v15, %v10378_v19  ;;  %v4021_v19 = vrot.slane %v4020_v28, 4  ;;  %v8816_v42 = vld [vmem:[%s12272_s3 + $0x124] sm:$0xf] }
 0x3d8   :  { %v6926_v47 = vpop.f32.mrf.mxu0  ;;  %v9210_v50 = vpack.c.bf16 %v7310_v21, %v7309_v55  ;;  %v6411_v45 = vrot.slane %v6410_v43, 4  ;;  %v6431_v35 = vshll.u32 %v8815_v5, 16  ;;  %v6421_v20 = vrot.slane %v6420_v0, 4 }
 0x3d9   :  { %v7051_v25 = vadd.f32 %v6924_v56, %v5761_v60  ;;  %v9089_v56 = vld [vmem:[%s12272_s3 + $0x108] sm:$0xff]  ;;  %v4026_v2 = vsel %vm9654_vm2, %v4021_v19, %v4025_v38  ;;  %v4030_v15 = vrot.slane %v4028_v26, 4  ;;  %v4043_v55 = vrot.slane %v4041_v14, 4 }
 0x3da   :  { %9326 = vst [vmem:[%s12276_s6 + $0x50] sm:$0xff] %v9210_v50   ;;  %v6430_v60 = vrot.slane %v6428_v62, 4  ;;  %v6441_v1 = vshrl.u32 %v8816_v42, 16  ;;  %v6433_v40 = vrot.slane %v6431_v35, 5  ;;  %v6416_v34 = vsel %vm9654_vm2, %v6411_v45, %v11688_v11  ;;  %v3473_v62 = vld [vmem:[%s12273_s1 + $0x118] sm:$0xf] }
 0x3db   :  { %v7119_v59 = vadd.f32 %v11506_v27, %v7051_v25  ;;  %v4034_v51 = vor.u32 %v4033_v10, %v4030_v15  ;;  %v4044_v48 = vor.u32 %v4043_v55, %v11716_v52  ;;  %v4047_v11 = vshll.u32 %v3471_v46, 16  ;;  %v8818_v35 = vld [vmem:[%s12272_s3 + $0x12c] sm:$0xf] }
 0x3dc   :  { %v5081_v53 = vpop.f32.mrf.mxu2  ;;  %v6447_v0 = vshll.u32 %v8817_v18, 16 }
 0x3dd   :  { %v5207_v41 = vadd.f32 %v5081_v53, %v4652_v37  ;;  %v5636_v7 = vpop.f32.mrf.mxu3  ;;  %v7247_v8 = vmul.f32 0.01, %v7119_v59  ;;  %vm7183_vm10 = vcmp.gt.f32.partialorder %v7119_v59, 0.0  ;;  %v4327_v53 = vunpack.c.l.b16 %v4026_v2 }
 0x3de   :  { %v4529_v4 = vpop.f32.mrf.mxu1  ;;  %v11738_v43 = vrot.slane %v4034_v51, 4  ;;  %v6449_v10 = vrot.slane %v6447_v0, 5 }
 0x3df   :  { %v5762_v57 = vadd.f32 %v5636_v7, %v5207_v41  ;;  %v4653_v63 = vadd.f32 %v4529_v4, %v10388_v39  ;;  %v6426_v39 = vsel %vm9654_vm2, %v6421_v20, %v6425_v9  ;;  %v7311_v44 = vsel %vm7183_vm10, %v7119_v59, %v7247_v8  ;;  %v8819_v20 = vld [vmem:[%s12272_s3 + $0x130] sm:$0xf] }
 0x3e0   :  { %v6929_v54 = vpop.f32.mrf.mxu0  ;;  %v6434_v41 = vor.u32 %v6433_v40, %v6430_v60  ;;  %v6726_v7 = vunpack.c.l.b16 %v6416_v34  ;;  %v4369_v4 = vpack.c.b16 %v4327_v53, %v4326_v29  ;;  %v4045_v59 = vrot.slane %v4044_v48, 4 }
 0x3e1   :  { %v7052_v30 = vadd.f32 %v6926_v47, %v5762_v57  ;;  %4568 = vmatmul.bf16.gmra.mxu1 %v4368_v23  ;;  %5123 = vmatmul.bf16.gmra.mxu2 %v9089_v56  ;;  %v6437_v47 = vshll.u32 %v8816_v42, 16  ;;  %v6727_v56 = vunpack.c.l.b16 %v6426_v39  ;;  %v4049_v57 = vrot.slane %v4047_v11, 5 }
 0x3e2   :  { %5678 = vmatmul.bf16.gmra.mxu3 %v9129_v32  ;;  %v6435_v14 = vrot.slane %v6434_v41, 4  ;;  %v4040_v42 = vsel %vm9654_vm2, %v11738_v43, %v11716_v52  ;;  %v4065_v60 = vshrl.u32 %v3473_v62, 16  ;;  %v3474_v41 = vld [vmem:[%s12273_s1 + $0x11c] sm:$0x1] }
 0x3e3   :  { %6968 = vmatmul.bf16.gmra.mxu0 %v6768_v49  ;;  %v7120_v6 = vadd.f32 %v11506_v27, %v7052_v30  ;;  %v11728_v23 = vrot.slane %v6437_v47, 5  ;;  %v6443_v49 = vrot.slane %v6441_v1, 4  ;;  %v6769_v9 = vpack.c.b16 %v6727_v56, %v6726_v7 }
 0x3e4   :  { %v5084_v21 = vpop.f32.mrf.mxu2  ;;  %v4050_v55 = vsel %vm9654_vm2, %v4045_v59, %v4049_v57  ;;  %v6452_v47 = vshrl.u32 %v8818_v35, 16  ;;  %v6455_v1 = vshll.u32 %v8818_v35, 16 }
 0x3e5   :  { %vm7184_vm11 = vcmp.gt.f32.partialorder %v7120_v6, 0.0  ;;  %v7248_v50 = vmul.f32 0.01, %v7120_v6  ;;  %v5208_v13 = vadd.f32 %v5084_v21, %v4653_v63  ;;  %v5639_v33 = vpop.f32.mrf.mxu3  ;;  %v6444_v32 = vor.u32 %v6443_v49, %v11728_v23 }
 0x3e6   :  { %v4531_v28 = vpop.f32.mrf.mxu1  ;;  %v6440_v52 = vsel %vm9654_vm2, %v6435_v14, %v11728_v23  ;;  %v4061_v21 = vshll.u32 %v3473_v62, 16  ;;  %v6454_v53 = vrot.slane %v6452_v47, 4  ;;  %v6457_v23 = vrot.slane %v6455_v1, 5  ;;  %v9091_v62 = vld [vmem:[%s12272_s3 + $0x120] sm:$0xff] }
 0x3e7   :  { %v7312_v61 = vsel %vm7184_vm11, %v7120_v6, %v7248_v50  ;;  %v5763_v25 = vadd.f32 %v5639_v33, %v5208_v13  ;;  %v4654_v38 = vadd.f32 %v4531_v28, %v10403_v36  ;;  %v3472_v36 = vld [vmem:[%s12273_s1 + $0x114] sm:$0xf]  ;;  %v6445_v15 = vrot.slane %v6444_v32, 4 }
 0x3e8   :  { %v6931_v37 = vpop.f32.mrf.mxu0  ;;  %v9215_v22 = vpack.c.bf16 %v7312_v61, %v7311_v44  ;;  %v4052_v8 = vshrl.u32 %v3472_v36, 16  ;;  %v4055_v6 = vshll.u32 %v3472_v36, 16  ;;  %v6461_v50 = vshll.u32 %v8819_v20, 16 }
 0x3e9   :  { %v7053_v19 = vadd.f32 %v6929_v54, %v5763_v25  ;;  %v6465_v28 = vshrl.u32 %v8819_v20, 16  ;;  %v6450_v34 = vsel %vm9654_vm2, %v6445_v15, %v6449_v10  ;;  %v4329_v43 = vunpack.c.l.b16 %v4050_v55 }
 0x3ea   :  { %9327 = vst [vmem:[%s12276_s6 + $0x58] sm:$0xff] %v9215_v22   ;;  %v4054_v39 = vrot.slane %v4052_v8, 4  ;;  %v4057_v46 = vrot.slane %v4055_v6, 5  ;;  %v4067_v22 = vrot.slane %v4065_v60, 4  ;;  %v11775_v49 = vrot.slane %v6461_v50, 5 }
 0x3eb   :  { %v7121_v30 = vadd.f32 %v11506_v27, %v7053_v19  ;;  %v6467_v7 = vrot.slane %v6465_v28, 4  ;;  %v8820_v19 = vld [vmem:[%s12272_s3 + $0x134] sm:$0x1]  ;;  %v6729_v32 = vunpack.c.l.b16 %v6450_v34 }
 0x3ec   :  { %v5086_v5 = vpop.f32.mrf.mxu2  ;;  %v6471_v14 = vshll.u32 %v8820_v19, 16 }
 0x3ed   :  { %v5209_v26 = vadd.f32 %v5086_v5, %v4654_v38  ;;  %v5641_v12 = vpop.f32.mrf.mxu3  ;;  %v7249_v13 = vmul.f32 0.01, %v7121_v30  ;;  %vm7185_vm12 = vcmp.gt.f32.partialorder %v7121_v30, 0.0  ;;  %v4328_v38 = vunpack.c.l.b16 %v4040_v42  ;;  %v9131_v42 = vld [vmem:[%s12271_s2 + $0xc0] sm:$0xff] }
 0x3ee   :  { %v4534_v54 = vpop.f32.mrf.mxu1  ;;  %v6728_v5 = vunpack.c.l.b16 %v6440_v52  ;;  %v6468_v57 = vor.u32 %v6467_v7, %v11775_v49  ;;  %v6473_v52 = vrot.slane %v6471_v14, 5 }
 0x3ef   :  { %v5764_v2 = vadd.f32 %v5641_v12, %v5209_v26  ;;  %v4655_v40 = vadd.f32 %v4534_v54, %v10413_v3  ;;  %v7313_v3 = vsel %vm7185_vm12, %v7121_v30, %v7249_v13  ;;  %v4071_v26 = vshll.u32 %v3474_v41, 16 }
 0x3f0   :  { %v6934_v45 = vpop.f32.mrf.mxu0  ;;  %v6458_v12 = vor.u32 %v6457_v23, %v6454_v53  ;;  %v6770_v35 = vpack.c.b16 %v6729_v32, %v6728_v5  ;;  %v6469_v55 = vrot.slane %v6468_v57, 4  ;;  %v8823_v57 = vld [vmem:[%s12272_s3 + $0x140] sm:$0x1] }
 0x3f1   :  { %v7054_v63 = vadd.f32 %v6931_v37, %v5764_v2  ;;  %4573 = vmatmul.bf16.gmra.mxu1 %v4369_v4  ;;  %5128 = vmatmul.bf16.gmra.mxu2 %v9090_v58  ;;  %v11773_v37 = vrot.slane %v4061_v21, 5  ;;  %v4058_v4 = vor.u32 %v4057_v46, %v4054_v39  ;;  %v3475_v2 = vld [vmem:[%s12273_s1 + $0x120] sm:$0xf]  ;;  %v4073_v15 = vrot.slane %v4071_v26, 5  ;;  %v8821_v21 = vld [vmem:[%s12272_s3 + $0x138] sm:$0xf] }
 0x3f2   :  { %5683 = vmatmul.bf16.gmra.mxu3 %v9130_v24  ;;  %v6459_v10 = vrot.slane %v6458_v12, 4  ;;  %v4076_v60 = vshrl.u32 %v3475_v2, 16  ;;  %v4079_v47 = vshll.u32 %v3475_v2, 16  ;;  %v6479_v34 = vshll.u32 %v8821_v21, 16 }
 0x3f3   :  { %6973 = vmatmul.bf16.gmra.mxu0 %v6769_v9  ;;  %v7122_v33 = vadd.f32 %v11506_v27, %v7054_v63  ;;  %v4068_v0 = vor.u32 %v4067_v22, %v11773_v37  ;;  %v4370_v9 = vpack.c.b16 %v4329_v43, %v4328_v38  ;;  %v4059_v30 = vrot.slane %v4058_v4, 4 }
 0x3f4   :  { %v5089_v29 = vpop.f32.mrf.mxu2  ;;  %v6464_v28 = vsel %vm9654_vm2, %v6459_v10, %v11775_v49  ;;  %v4081_v22 = vrot.slane %v4079_v47, 5  ;;  %v3478_v10 = vld [vmem:[%s12273_s1 + $0x12c] sm:$0xf] }
 0x3f5   :  { %vm7186_vm13 = vcmp.gt.f32.partialorder %v7122_v33, 0.0  ;;  %v7250_v44 = vmul.f32 0.01, %v7122_v33  ;;  %v5210_v61 = vadd.f32 %v5089_v29, %v4655_v40  ;;  %v5644_v25 = vpop.f32.mrf.mxu3  ;;  %v4069_v20 = vrot.slane %v4068_v0, 4 }
 0x3f6   :  { %v4536_v51 = vpop.f32.mrf.mxu1  ;;  %v4064_v13 = vsel %vm9654_vm2, %v4059_v30, %v11773_v37  ;;  %v6476_v29 = vshrl.u32 %v8821_v21, 16  ;;  %v6730_v0 = vunpack.c.l.b16 %v6464_v28 }
 0x3f7   :  { %v7314_v48 = vsel %vm7186_vm13, %v7122_v33, %v7250_v44  ;;  %v5765_v11 = vadd.f32 %v5644_v25, %v5210_v61  ;;  %v4656_v59 = vadd.f32 %v4536_v51, %v10428_v16  ;;  %v3476_v16 = vld [vmem:[%s12273_s1 + $0x124] sm:$0xf]  ;;  %v4074_v40 = vsel %vm9654_vm2, %v4069_v20, %v4073_v15  ;;  %v8822_v25 = vld [vmem:[%s12272_s3 + $0x13c] sm:$0xf] }
 0x3f8   :  { %v6936_v18 = vpop.f32.mrf.mxu0  ;;  %v9220_v56 = vpack.c.bf16 %v7314_v48, %v7313_v3  ;;  %v4085_v1 = vshll.u32 %v3476_v16, 16  ;;  %v4089_v33 = vshrl.u32 %v3476_v16, 16  ;;  %v6474_v61 = vsel %vm9654_vm2, %v6469_v55, %v6473_v52 }
 0x3f9   :  { %v7055_v58 = vadd.f32 %v6934_v45, %v5765_v11  ;;  %v4078_v51 = vrot.slane %v4076_v60, 4  ;;  %v6478_v11 = vrot.slane %v6476_v29, 4  ;;  %v6485_v41 = vshll.u32 %v8822_v25, 16  ;;  %v11849_v60 = vld [vmem:[%s12275_s5] ss:$0 sm:$0xff] }
 0x3fa   :  { %9328 = vst [vmem:[%s12276_s6 + $0x60] sm:$0xff] %v9220_v56   ;;  %v11820_v53 = vrot.slane %v4085_v1, 5  ;;  %v6489_v7 = vshrl.u32 %v8822_v25, 16  ;;  %v4330_v4 = vunpack.c.l.b16 %v4064_v13  ;;  %v4331_v32 = vunpack.c.l.b16 %v4074_v40  ;;  %v3479_v13 = vld [vmem:[%s12273_s1 + $0x130] sm:$0xf] }
 0x3fb   :  { %v7123_v8 = vadd.f32 %v11506_v27, %v7055_v58  ;;  %v6731_v26 = vunpack.c.l.b16 %v6474_v61  ;;  %v4082_v12 = vor.u32 %v4081_v22, %v4078_v51  ;;  %v6495_v15 = vshll.u32 %v8823_v57, 16  ;;  %v12369_v22 = vld [vmem:[#allocation30_spill] sm:$0xff] }
 0x3fc   :  { %v5091_v36 = vpop.f32.mrf.mxu2  ;;  %v4371_v2 = vpack.c.b16 %v4331_v32, %v4330_v4  ;;  %v4103_v40 = vshll.u32 %v3478_v10, 16  ;;  %v4109_v25 = vshll.u32 %v3479_v13, 16 }
 0x3fd   :  { %v5211_v54 = vadd.f32 %v5091_v36, %v4656_v59  ;;  %v5646_v24 = vpop.f32.mrf.mxu3  ;;  %v7251_v39 = vmul.f32 0.01, %v7123_v8  ;;  %vm7187_vm14 = vcmp.gt.f32.partialorder %v7123_v8, 0.0  ;;  %v11833_v36 = vrot.slane %v6485_v41, 5 }
 0x3fe   :  { %v4539_v45 = vpop.f32.mrf.mxu1  ;;  %v4083_v20 = vrot.slane %v4082_v12, 4 }
 0x3ff   :  { %v5766_v6 = vadd.f32 %v5646_v24, %v5211_v54  ;;  %v4657_v44 = vadd.f32 %v4539_v45, %v10453_v17  ;;  %v3477_v17 = vld [vmem:[%s12273_s1 + $0x128] sm:$0x1]  ;;  %v7315_v56 = vsel %vm7187_vm14, %v7123_v8, %v7251_v39  ;;  %v6491_v54 = vrot.slane %v6489_v7, 4  ;;  %v8824_v39 = vld [vmem:[%s12272_s3 + $0x144] sm:$0xf] }
 0x400   :  { %v6939_v63 = vpop.f32.mrf.mxu0  ;;  %v4095_v58 = vshll.u32 %v3477_v17, 16  ;;  %v4088_v29 = vsel %vm9654_vm2, %v4083_v20, %v11820_v53  ;;  %v6500_v17 = vshrl.u32 %v8824_v39, 16  ;;  %v6503_v7 = vshll.u32 %v8824_v39, 16 }
 0x401   :  { %v7056_v50 = vadd.f32 %v6936_v18, %v5766_v6  ;;  %4578 = vmatmul.bf16.gmra.mxu1 %v4370_v9  ;;  %5133 = vmatmul.bf16.gmra.mxu2 %v9091_v62  ;;  %v6481_v18 = vrot.slane %v6479_v34, 5  ;;  %v12368_v9 = vld [vmem:[#allocation29_spill] sm:$0xff]  ;;  %v9132_v6 = vld [vmem:[%s12271_s2 + $0xc8] sm:$0xff]  ;;  %v6492_v21 = vor.u32 %v6491_v54, %v11833_v36  ;;  %v6497_v34 = vrot.slane %v6495_v15, 5 }
 0x402   :  { %5688 = vmatmul.bf16.gmra.mxu3 %v9131_v42  ;;  %v9092_v42 = vld [vmem:[%s12272_s3 + $0x12c] sm:$0xff]  ;;  %v4097_v55 = vrot.slane %v4095_v58, 5  ;;  %v6502_v54 = vrot.slane %v6500_v17, 4 }
 0x403   :  { %6978 = vmatmul.bf16.gmra.mxu0 %v6770_v35  ;;  %v7124_v46 = vadd.f32 %v11506_v27, %v7056_v50  ;;  %v4091_v27 = vrot.slane %v4089_v33, 4  ;;  %v6482_v14 = vor.u32 %v6481_v18, %v6478_v11  ;;  %v6771_v35 = vpack.c.b16 %v6731_v26, %v6730_v0 }
 0x404   :  { %v5094_v37 = vpop.f32.mrf.mxu2  ;;  %v4100_v33 = vshrl.u32 %v3478_v10, 16  ;;  %v6493_v61 = vrot.slane %v6492_v21, 4  ;;  %v3481_v10 = vld [vmem:[%s12273_s1 + $0x138] sm:$0xf] }
 0x405   :  { %vm7188_vm15 = vcmp.gt.f32.partialorder %v7124_v46, 0.0  ;;  %v7252_v23 = vmul.f32 0.01, %v7124_v46  ;;  %v5212_v49 = vadd.f32 %v5094_v37, %v4657_v44  ;;  %v5649_v3 = vpop.f32.mrf.mxu3  ;;  %v4092_v59 = vor.u32 %v4091_v27, %v11820_v53  ;;  %v9093_v21 = vld [vmem:[%s12272_s3 + $0x138] sm:$0xff] }
 0x406   :  { %v4541_v48 = vpop.f32.mrf.mxu1  ;;  %v6483_v52 = vrot.slane %v6482_v14, 4  ;;  %v4102_v27 = vrot.slane %v4100_v33, 4  ;;  %v4332_v14 = vunpack.c.l.b16 %v4088_v29  ;;  %v4127_v39 = vshll.u32 %v3481_v10, 16 }
 0x407   :  { %v7316_v19 = vsel %vm7188_vm15, %v7124_v46, %v7252_v23  ;;  %v5767_v38 = vadd.f32 %v5649_v3, %v5212_v49  ;;  %v4658_v62 = vadd.f32 %v4541_v48, %v12368_v9  ;;  %v4113_v23 = vshrl.u32 %v3479_v13, 16  ;;  %v8825_v49 = vld [vmem:[%s12272_s3 + $0x148] sm:$0xf]  ;;  %v8827_v13 = vld [vmem:[%s12272_s3 + $0x150] sm:$0xf] }
 0x408   :  { %v6941_v43 = vpop.f32.mrf.mxu0  ;;  %v9225_v5 = vpack.c.bf16 %v7316_v19, %v7315_v56  ;;  %v6488_v44 = vsel %vm9654_vm2, %v6483_v52, %v11833_v36  ;;  %v4105_v48 = vrot.slane %v4103_v40, 5  ;;  %v6498_v19 = vsel %vm9654_vm2, %v6493_v61, %v6497_v34  ;;  %v9133_v40 = vld [vmem:[%s12271_s2 + $0xd0] sm:$0xff] }
 0x409   :  { %v7057_v24 = vadd.f32 %v6939_v63, %v5767_v38  ;;  %v4093_v63 = vrot.slane %v4092_v59, 4  ;;  %v11873_v38 = vrot.slane %v4109_v25, 5  ;;  %v4115_v12 = vrot.slane %v4113_v23, 4  ;;  %v3480_v59 = vld [vmem:[%s12273_s1 + $0x134] sm:$0x1] }
 0x40a   :  { %9329 = vst [vmem:[%s12276_s6 + $0x68] sm:$0xff] %v9225_v5   ;;  %v6513_v5 = vshrl.u32 %v8825_v49, 16  ;;  %v4106_v57 = vor.u32 %v4105_v48, %v4102_v27  ;;  %v6732_v9 = vunpack.c.l.b16 %v6488_v44  ;;  %v4119_v15 = vshll.u32 %v3480_v59, 16 }
 0x40b   :  { %v7125_v47 = vadd.f32 %v11849_v60, %v7057_v24  ;;  %v4098_v46 = vsel %vm9654_vm2, %v4093_v63, %v4097_v55  ;;  %v6505_v24 = vrot.slane %v6503_v7, 5  ;;  %v4116_v20 = vor.u32 %v4115_v12, %v11873_v38 }
 0x40c   :  { %v5096_v30 = vpop.f32.mrf.mxu2  ;;  %v4333_v36 = vunpack.c.l.b16 %v4098_v46  ;;  %v4124_v34 = vshrl.u32 %v3481_v10, 16  ;;  %v6527_v17 = vshll.u32 %v8827_v13, 16 }
 0x40d   :  { %v5213_v16 = vadd.f32 %v5096_v30, %v4658_v62  ;;  %v5651_v45 = vpop.f32.mrf.mxu3  ;;  %v7253_v37 = vmul.f32 0.01, %v7125_v47  ;;  %vm7189_vm0 = vcmp.gt.f32.partialorder %v7125_v47, 0.0  ;;  %v6733_v62 = vunpack.c.l.b16 %v6498_v19  ;;  %v8826_v30 = vld [vmem:[%s12272_s3 + $0x14c] sm:$0x1] }
 0x40e   :  { %v4544_v8 = vpop.f32.mrf.mxu1  ;;  %v4372_v52 = vpack.c.b16 %v4333_v36, %v4332_v14  ;;  %v4117_v25 = vrot.slane %v4116_v20, 4  ;;  %v6529_v14 = vrot.slane %v6527_v17, 5 }
 0x40f   :  { %v5768_v1 = vadd.f32 %v5651_v45, %v5213_v16  ;;  %v4659_v53 = vadd.f32 %v4544_v8, %v12369_v22  ;;  %v7317_v4 = vsel %vm7189_vm0, %v7125_v47, %v7253_v37  ;;  %v6515_v16 = vrot.slane %v6513_v5, 4 }
 0x410   :  { %v6944_v50 = vpop.f32.mrf.mxu0  ;;  %v6506_v47 = vor.u32 %v6505_v24, %v6502_v54  ;;  %v4121_v37 = vrot.slane %v4119_v15, 5 }
 0x411   :  { %v7058_v28 = vadd.f32 %v6941_v43, %v5768_v1  ;;  %4583 = vmatmul.bf16.gmra.mxu1 %v4371_v2  ;;  %5138 = vmatmul.bf16.gmra.mxu2 %v9092_v42  ;;  %v6509_v43 = vshll.u32 %v8825_v49, 16  ;;  %v12370_v42 = vld [vmem:[#allocation31_spill] sm:$0xff]  ;;  %v6519_v1 = vshll.u32 %v8826_v30, 16  ;;  %v6524_v49 = vshrl.u32 %v8827_v13, 16 }
 0x412   :  { %5693 = vmatmul.bf16.gmra.mxu3 %v9132_v6  ;;  %v11891_v6 = vrot.slane %v4106_v57, 4  ;;  %v6507_v27 = vrot.slane %v6506_v47, 4  ;;  %v3483_v57 = vld [vmem:[%s12273_s1 + $0x140] sm:$0x1]  ;;  %v4122_v54 = vsel %vm9654_vm2, %v4117_v25, %v4121_v37 }
 0x413   :  { %6983 = vmatmul.bf16.gmra.mxu0 %v6771_v35  ;;  %v7126_v51 = vadd.f32 %v11849_v60, %v7058_v28  ;;  %v11884_v2 = vrot.slane %v6509_v43, 5  ;;  %v6772_v28 = vpack.c.b16 %v6733_v62, %v6732_v9  ;;  %v6521_v48 = vrot.slane %v6519_v1, 5  ;;  %v12371_v43 = vld [vmem:[#allocation32_spill] sm:$0xff]  ;;  %v12372_v1 = vld [vmem:[#allocation33_spill] sm:$0xff] }
 0x414   :  { %v5099_v3 = vpop.f32.mrf.mxu2  ;;  %v4112_v22 = vsel %vm9654_vm2, %v11891_v6, %v11873_v38  ;;  %v4143_v10 = vshll.u32 %v3483_v57, 16  ;;  %v12373_v57 = vld [vmem:[#allocation34_spill] sm:$0xff] }
 0x415   :  { %vm7190_vm1 = vcmp.gt.f32.partialorder %v7126_v51, 0.0  ;;  %v7254_v11 = vmul.f32 0.01, %v7126_v51  ;;  %v5214_v18 = vadd.f32 %v5099_v3, %v4659_v53  ;;  %v5654_v41 = vpop.f32.mrf.mxu3  ;;  %v6516_v29 = vor.u32 %v6515_v16, %v11884_v2 }
 0x416   :  { %v4546_v56 = vpop.f32.mrf.mxu1  ;;  %v6512_v24 = vsel %vm9654_vm2, %v6507_v27, %v11884_v2  ;;  %v4334_v6 = vunpack.c.l.b16 %v4112_v22  ;;  %v4335_v2 = vunpack.c.l.b16 %v4122_v54 }
 0x417   :  { %v7318_v32 = vsel %vm7190_vm1, %v7126_v51, %v7254_v11  ;;  %v5769_v0 = vadd.f32 %v5654_v41, %v5214_v18  ;;  %v4660_v35 = vadd.f32 %v4546_v56, %v12370_v42  ;;  %v8828_v51 = vld [vmem:[%s12272_s3 + $0x154] sm:$0xf]  ;;  %v6517_v11 = vrot.slane %v6516_v29, 4 }
 0x418   :  { %v6946_v26 = vpop.f32.mrf.mxu0  ;;  %v9230_v58 = vpack.c.bf16 %v7318_v32, %v7317_v4  ;;  %v4126_v18 = vrot.slane %v4124_v34, 4  ;;  %v4129_v41 = vrot.slane %v4127_v39, 5  ;;  %v6533_v7 = vshll.u32 %v8828_v51, 16 }
 0x419   :  { %v7059_v45 = vadd.f32 %v6944_v50, %v5769_v0  ;;  %v3482_v50 = vld [vmem:[%s12273_s1 + $0x13c] sm:$0xf]  ;;  %v6537_v5 = vshrl.u32 %v8828_v51, 16  ;;  %v6522_v9 = vsel %vm9654_vm2, %v6517_v11, %v6521_v48  ;;  %v4145_v34 = vrot.slane %v4143_v10, 5  ;;  %v3485_v51 = vld [vmem:[%s12273_s1 + $0x148] sm:$0xf] }
 0x41a   :  { %9330 = vst [vmem:[%s12276_s6 + $0x70] sm:$0xff] %v9230_v58   ;;  %v4133_v53 = vshll.u32 %v3482_v50, 16  ;;  %v4137_v23 = vshrl.u32 %v3482_v50, 16  ;;  %v11928_v62 = vrot.slane %v6533_v7, 5  ;;  %v4130_v15 = vor.u32 %v4129_v41, %v4126_v18  ;;  %v8830_v11 = vld [vmem:[%s12272_s3 + $0x15c] sm:$0xf] }
 0x41b   :  { %v7127_v46 = vadd.f32 %v11849_v60, %v7059_v45  ;;  %v8831_v18 = vld [vmem:[%s12272_s3 + $0x160] sm:$0xf] }
 0x41c   :  { %v5101_v8 = vpop.f32.mrf.mxu2  ;;  %v11916_v32 = vrot.slane %v4133_v53, 5  ;;  %v4139_v0 = vrot.slane %v4137_v23, 4  ;;  %v4131_v29 = vrot.slane %v4130_v15, 4  ;;  %v9134_v53 = vld [vmem:[%s12271_s2 + $0xd8] sm:$0xff] }
 0x41d   :  { %v5215_v63 = vadd.f32 %v5101_v8, %v4660_v35  ;;  %v5656_v55 = vpop.f32.mrf.mxu3  ;;  %v7255_v56 = vmul.f32 0.01, %v7127_v46  ;;  %vm7191_vm3 = vcmp.gt.f32.partialorder %v7127_v46, 0.0  ;;  %v6539_v35 = vrot.slane %v6537_v5, 4  ;;  %v8829_v8 = vld [vmem:[%s12272_s3 + $0x158] sm:$0x1] }
 0x41e   :  { %v4549_v33 = vpop.f32.mrf.mxu1  ;;  %v4136_v41 = vsel %vm9654_vm2, %v4131_v29, %v11916_v32 }
 0x41f   :  { %v5770_v44 = vadd.f32 %v5656_v55, %v5215_v63  ;;  %v4661_v38 = vadd.f32 %v4549_v33, %v12371_v43  ;;  %v7319_v30 = vsel %vm7191_vm3, %v7127_v46, %v7255_v56  ;;  %v4140_v63 = vor.u32 %v4139_v0, %v11916_v32 }
 0x420   :  { %v6949_v61 = vpop.f32.mrf.mxu0  ;;  %v6540_v13 = vor.u32 %v6539_v35, %v11928_v62  ;;  %v6543_v33 = vshll.u32 %v8829_v8, 16  ;;  %v6548_v0 = vshrl.u32 %v8830_v11, 16  ;;  %v6561_v32 = vshrl.u32 %v8831_v18, 16 }
 0x421   :  { %v7060_v3 = vadd.f32 %v6946_v26, %v5770_v44  ;;  %4588 = vmatmul.bf16.gmra.mxu1 %v4372_v52  ;;  %5143 = vmatmul.bf16.gmra.mxu2 %v9093_v21  ;;  %v6526_v26 = vrot.slane %v6524_v49, 4  ;;  %v6734_v52 = vunpack.c.l.b16 %v6512_v24  ;;  %v6735_v21 = vunpack.c.l.b16 %v6522_v9 }
 0x422   :  { %5698 = vmatmul.bf16.gmra.mxu3 %v9133_v40  ;;  %v4373_v44 = vpack.c.b16 %v4335_v2, %v4334_v6  ;;  %v4141_v25 = vrot.slane %v4140_v63, 4  ;;  %v6541_v48 = vrot.slane %v6540_v13, 4  ;;  %v6545_v17 = vrot.slane %v6543_v33, 5 }
 0x423   :  { %6988 = vmatmul.bf16.gmra.mxu0 %v6772_v28  ;;  %v7128_v19 = vadd.f32 %v11849_v60, %v7060_v3  ;;  %v6530_v55 = vor.u32 %v6529_v14, %v6526_v26  ;;  %v9094_v28 = vld [vmem:[%s12272_s3 + $0x144] sm:$0xff]  ;;  %v6773_v23 = vpack.c.b16 %v6735_v21, %v6734_v52  ;;  %v6551_v26 = vshll.u32 %v8830_v11, 16 }
 0x424   :  { %v5104_v4 = vpop.f32.mrf.mxu2  ;;  %v6550_v15 = vrot.slane %v6548_v0, 4  ;;  %v6563_v6 = vrot.slane %v6561_v32, 4  ;;  %v8832_v21 = vld [vmem:[%s12272_s3 + $0x164] sm:$0x1]  ;;  %v8833_v0 = vld [vmem:[%s12272_s3 + $0x168] sm:$0xf] }
 0x425   :  { %vm7192_vm4 = vcmp.gt.f32.partialorder %v7128_v19, 0.0  ;;  %v7256_v12 = vmul.f32 0.01, %v7128_v19  ;;  %v5216_v58 = vadd.f32 %v5104_v4, %v4661_v38  ;;  %v5659_v59 = vpop.f32.mrf.mxu3  ;;  %v6531_v37 = vrot.slane %v6530_v55, 4 }
 0x426   :  { %v4551_v36 = vpop.f32.mrf.mxu1  ;;  %v4146_v38 = vsel %vm9654_vm2, %v4141_v25, %v4145_v34  ;;  %v4161_v4 = vshrl.u32 %v3485_v51, 16  ;;  %v6553_v10 = vrot.slane %v6551_v26, 5  ;;  %v12374_v25 = vld [vmem:[#allocation35_spill] sm:$0xff] }
 0x427   :  { %v7320_v16 = vsel %vm7192_vm4, %v7128_v19, %v7256_v12  ;;  %v5771_v45 = vadd.f32 %v5659_v59, %v5216_v58  ;;  %v4662_v50 = vadd.f32 %v4551_v36, %v12372_v1  ;;  %v4157_v19 = vshll.u32 %v3485_v51, 16 }
 0x428   :  { %v6951_v42 = vpop.f32.mrf.mxu0  ;;  %v9235_v20 = vpack.c.bf16 %v7320_v16, %v7319_v30  ;;  %v6536_v5 = vsel %vm9654_vm2, %v6531_v37, %v11928_v62  ;;  %v6557_v12 = vshll.u32 %v8831_v18, 16  ;;  %v6546_v36 = vsel %vm9654_vm2, %v6541_v48, %v6545_v17  ;;  %v9135_v18 = vld [vmem:[%s12271_s2 + $0xe0] sm:$0xff] }
 0x429   :  { %v7061_v47 = vadd.f32 %v6949_v61, %v5771_v45  ;;  %v3484_v61 = vld [vmem:[%s12273_s1 + $0x144] sm:$0xf]  ;;  %v11971_v62 = vrot.slane %v4157_v19, 5  ;;  %v4336_v1 = vunpack.c.l.b16 %v4136_v41  ;;  %v6736_v13 = vunpack.c.l.b16 %v6536_v5 }
 0x42a   :  { %9331 = vst [vmem:[%s12276_s6 + $0x78] sm:$0xff] %v9235_v20   ;;  %v4148_v7 = vshrl.u32 %v3484_v61, 16  ;;  %v4151_v56 = vshll.u32 %v3484_v61, 16  ;;  %v3486_v20 = vld [vmem:[%s12273_s1 + $0x14c] sm:$0x1]  ;;  %v11976_v8 = vrot.slane %v6557_v12, 5  ;;  %v6737_v33 = vunpack.c.l.b16 %v6546_v36 }
 0x42b   :  { %v7129_v49 = vadd.f32 %v11849_v60, %v7061_v47  ;;  %v6554_v34 = vor.u32 %v6553_v10, %v6550_v15 }
 0x42c   :  { %v5106_v40 = vpop.f32.mrf.mxu2  ;;  %v4150_v24 = vrot.slane %v4148_v7, 4  ;;  %v4153_v9 = vrot.slane %v4151_v56, 5 }
 0x42d   :  { %v5217_v39 = vadd.f32 %v5106_v40, %v4662_v50  ;;  %v5661_v46 = vpop.f32.mrf.mxu3  ;;  %v7257_v58 = vmul.f32 0.01, %v7129_v49  ;;  %vm7193_vm5 = vcmp.gt.f32.partialorder %v7129_v49, 0.0  ;;  %v4337_v50 = vunpack.c.l.b16 %v4146_v38 }
 0x42e   :  { %v4554_v22 = vpop.f32.mrf.mxu1  ;;  %v4154_v40 = vor.u32 %v4153_v9, %v4150_v24  ;;  %v6555_v7 = vrot.slane %v6554_v34, 4 }
 0x42f   :  { %v5772_v3 = vadd.f32 %v5661_v46, %v5217_v39  ;;  %v4663_v14 = vadd.f32 %v4554_v22, %v12373_v57  ;;  %v7321_v2 = vsel %vm7193_vm5, %v7129_v49, %v7257_v58  ;;  %v6564_v39 = vor.u32 %v6563_v6, %v11976_v8  ;;  %v3487_v22 = vld [vmem:[%s12273_s1 + $0x150] sm:$0xf] }
 0x430   :  { %v6954_v27 = vpop.f32.mrf.mxu0  ;;  %v6567_v46 = vshll.u32 %v8832_v21, 16  ;;  %v4374_v51 = vpack.c.b16 %v4337_v50, %v4336_v1  ;;  %v9095_v49 = vld [vmem:[%s12272_s3 + $0x150] sm:$0xff]  ;;  %v4155_v48 = vrot.slane %v4154_v40, 4  ;;  %v4175_v26 = vshll.u32 %v3487_v22, 16 }
 0x431   :  { %v7062_v43 = vadd.f32 %v6951_v42, %v5772_v3  ;;  %4593 = vmatmul.bf16.gmra.mxu1 %v4373_v44  ;;  %5148 = vmatmul.bf16.gmra.mxu2 %v9094_v28  ;;  %v4163_v42 = vrot.slane %v4161_v4, 4  ;;  %v4167_v28 = vshll.u32 %v3486_v20, 16  ;;  %v6774_v3 = vpack.c.b16 %v6737_v33, %v6736_v13 }
 0x432   :  { %5703 = vmatmul.bf16.gmra.mxu3 %v9134_v53  ;;  %v6565_v56 = vrot.slane %v6564_v39, 4  ;;  %v6569_v19 = vrot.slane %v6567_v46, 5  ;;  %v4172_v4 = vshrl.u32 %v3487_v22, 16 }
 0x433   :  { %6993 = vmatmul.bf16.gmra.mxu0 %v6773_v23  ;;  %v7130_v59 = vadd.f32 %v11849_v60, %v7062_v43  ;;  %v4164_v29 = vor.u32 %v4163_v42, %v11971_v62  ;;  %v4169_v17 = vrot.slane %v4167_v28, 5 }
 0x434   :  { %v5109_v54 = vpop.f32.mrf.mxu2  ;;  %v6570_v36 = vsel %vm9654_vm2, %v6565_v56, %v6569_v19  ;;  %v9096_v19 = vld [vmem:[%s12272_s3 + $0x15c] sm:$0xff] }
 0x435   :  { %vm7194_vm6 = vcmp.gt.f32.partialorder %v7130_v59, 0.0  ;;  %v7258_v30 = vmul.f32 0.01, %v7130_v59  ;;  %v5218_v16 = vadd.f32 %v5109_v54, %v4663_v14  ;;  %v5664_v45 = vpop.f32.mrf.mxu3  ;;  %v4165_v41 = vrot.slane %v4164_v29, 4 }
 0x436   :  { %v4556_v35 = vpop.f32.mrf.mxu1  ;;  %v6560_v14 = vsel %vm9654_vm2, %v6555_v7, %v11976_v8  ;;  %v6572_v54 = vshrl.u32 %v8833_v0, 16  ;;  %v6739_v34 = vunpack.c.l.b16 %v6570_v36 }
 0x437   :  { %v7322_v63 = vsel %vm7194_vm6, %v7130_v59, %v7258_v30  ;;  %v5773_v55 = vadd.f32 %v5664_v45, %v5218_v16  ;;  %v4664_v37 = vadd.f32 %v4556_v35, %v12374_v25  ;;  %v4160_v59 = vsel %vm9654_vm2, %v4155_v48, %v11971_v62  ;;  %v12375_v30 = vld [vmem:[#allocation36_spill] sm:$0xff]  ;;  %v8834_v62 = vld [vmem:[%s12272_s3 + $0x16c] sm:$0xf]  ;;  %v3491_v48 = vld [vmem:[%s12273_s1 + $0x160] sm:$0xf] }
 0x438   :  { %v6956_v52 = vpop.f32.mrf.mxu0  ;;  %v9240_v47 = vpack.c.bf16 %v7322_v63, %v7321_v2  ;;  %v4170_v57 = vsel %vm9654_vm2, %v4165_v41, %v4169_v17  ;;  %v4174_v45 = vrot.slane %v4172_v4, 4  ;;  %v4177_v35 = vrot.slane %v4175_v26, 5  ;;  %v8835_v25 = vld [vmem:[%s12272_s3 + $0x170] sm:$0x1]  ;;  %v8836_v4 = vld [vmem:[%s12272_s3 + $0x174] sm:$0xf] }
 0x439   :  { %v7063_v44 = vadd.f32 %v6954_v27, %v5773_v55  ;;  %v3488_v27 = vld [vmem:[%s12273_s1 + $0x154] sm:$0xf]  ;;  %v6575_v2 = vshll.u32 %v8833_v0, 16  ;;  %v4338_v55 = vunpack.c.l.b16 %v4160_v59  ;;  %v6581_v21 = vshll.u32 %v8834_v62, 16  ;;  %v9136_v26 = vld [vmem:[%s12271_s2 + $0xe8] sm:$0xff] }
 0x43a   :  { %9332 = vst [vmem:[%s12276_s6 + $0x80] sm:$0xff] %v9240_v47   ;;  %v4181_v12 = vshll.u32 %v3488_v27, 16  ;;  %v4185_v32 = vshrl.u32 %v3488_v27, 16  ;;  %v6585_v47 = vshrl.u32 %v8834_v62, 16  ;;  %v4339_v40 = vunpack.c.l.b16 %v4170_v57 }
 0x43b   :  { %v7131_v43 = vadd.f32 %v11849_v60, %v7063_v44  ;;  %v6738_v29 = vunpack.c.l.b16 %v6560_v14  ;;  %v4178_v39 = vor.u32 %v4177_v35, %v4174_v45  ;;  %v6591_v41 = vshll.u32 %v8835_v25, 16 }
 0x43c   :  { %v5111_v61 = vpop.f32.mrf.mxu2  ;;  %v12019_v20 = vrot.slane %v4181_v12, 5  ;;  %v4187_v15 = vrot.slane %v4185_v32, 4  ;;  %v6587_v22 = vrot.slane %v6585_v47, 4  ;;  %v4375_v27 = vpack.c.b16 %v4339_v40, %v4338_v55 }
 0x43d   :  { %v5219_v53 = vadd.f32 %v5111_v61, %v4664_v37  ;;  %v5666_v23 = vpop.f32.mrf.mxu3  ;;  %v7259_v24 = vmul.f32 0.01, %v7131_v43  ;;  %vm7195_vm7 = vcmp.gt.f32.partialorder %v7131_v43, 0.0  ;;  %v6574_v37 = vrot.slane %v6572_v54, 4 }
 0x43e   :  { %v4559_v11 = vpop.f32.mrf.mxu1  ;;  %v4188_v46 = vor.u32 %v4187_v15, %v12019_v20  ;;  %v6577_v61 = vrot.slane %v6575_v2, 5  ;;  %v4205_v59 = vshll.u32 %v3491_v48, 16  ;;  %v4209_v54 = vshrl.u32 %v3491_v48, 16 }
 0x43f   :  { %v5774_v38 = vadd.f32 %v5666_v23, %v5219_v53  ;;  %v4665_v16 = vadd.f32 %v4559_v11, %v12375_v30  ;;  %v7323_v1 = vsel %vm7195_vm7, %v7131_v43, %v7259_v24  ;;  %v12376_v23 = vld [vmem:[#allocation37_spill] sm:$0xff]  ;;  %v6775_v11 = vpack.c.b16 %v6739_v34, %v6738_v29 }
 0x440   :  { %v6959_v5 = vpop.f32.mrf.mxu0  ;;  %v4189_v43 = vrot.slane %v4188_v46, 4  ;;  %v6596_v30 = vshrl.u32 %v8836_v4, 16  ;;  %v6599_v35 = vshll.u32 %v8836_v4, 16 }
 0x441   :  { %v7064_v58 = vadd.f32 %v6956_v52, %v5774_v38  ;;  %4598 = vmatmul.bf16.gmra.mxu1 %v4374_v51  ;;  %5153 = vmatmul.bf16.gmra.mxu2 %v9095_v49  ;;  %v3489_v52 = vld [vmem:[%s12273_s1 + $0x158] sm:$0x1]  ;;  %v12031_v51 = vrot.slane %v6581_v21, 5 }
 0x442   :  { %5708 = vmatmul.bf16.gmra.mxu3 %v9135_v18  ;;  %v4191_v44 = vshll.u32 %v3489_v52, 16  ;;  %v4179_v18 = vrot.slane %v4178_v39, 4  ;;  %v4211_v52 = vrot.slane %v4209_v54, 4  ;;  %v6598_v47 = vrot.slane %v6596_v30, 4 }
 0x443   :  { %6998 = vmatmul.bf16.gmra.mxu0 %v6774_v3  ;;  %v7132_v9 = vadd.f32 %v11849_v60, %v7064_v58  ;;  %v3490_v3 = vld [vmem:[%s12273_s1 + $0x15c] sm:$0xf]  ;;  %v6588_v12 = vor.u32 %v6587_v22, %v12031_v51 }
 0x444   :  { %v5114_v42 = vpop.f32.mrf.mxu2  ;;  %v4193_v38 = vrot.slane %v4191_v44, 5  ;;  %v4196_v32 = vshrl.u32 %v3490_v3, 16  ;;  %v4199_v58 = vshll.u32 %v3490_v3, 16  ;;  %v4184_v24 = vsel %vm9654_vm2, %v4179_v18, %v12019_v20  ;;  %v3492_v44 = vld [vmem:[%s12273_s1 + $0x164] sm:$0x1] }
 0x445   :  { %vm7196_vm8 = vcmp.gt.f32.partialorder %v7132_v9, 0.0  ;;  %v7260_v10 = vmul.f32 0.01, %v7132_v9  ;;  %v5220_v8 = vadd.f32 %v5114_v42, %v4665_v16  ;;  %v5669_v6 = vpop.f32.mrf.mxu3  ;;  %v8837_v42 = vld [vmem:[%s12272_s3 + $0x178] sm:$0xf]  ;;  %v6589_v15 = vrot.slane %v6588_v12, 4 }
 0x446   :  { %v4561_v63 = vpop.f32.mrf.mxu1  ;;  %v4194_v45 = vsel %vm9654_vm2, %v4189_v43, %v4193_v38  ;;  %v12059_v20 = vrot.slane %v4205_v59, 5  ;;  %v4340_v34 = vunpack.c.l.b16 %v4184_v24  ;;  %v3493_v24 = vld [vmem:[%s12273_s1 + $0x168] sm:$0xf] }
 0x447   :  { %v7324_v50 = vsel %vm7196_vm8, %v7132_v9, %v7260_v10  ;;  %v5775_v13 = vadd.f32 %v5669_v6, %v5220_v8  ;;  %v4666_v49 = vadd.f32 %v4561_v63, %v12376_v23  ;;  %v6593_v9 = vrot.slane %v6591_v41, 5  ;;  %v12377_v63 = vld [vmem:[#allocation8_spill] sm:$0xff] }
 0x448   :  { %v6961_v33 = vpop.f32.mrf.mxu0  ;;  %v9245_v28 = vpack.c.bf16 %v7324_v50, %v7323_v1  ;;  %v4198_v10 = vrot.slane %v4196_v32, 4  ;;  %v4201_v8 = vrot.slane %v4199_v58, 5  ;;  %v6605_v1 = vshll.u32 %v8837_v42, 16  ;;  %v9097_v32 = vld [vmem:[%s12272_s3 + $0x168] sm:$0xff] }
 0x449   :  { %v7065_v53 = vadd.f32 %v6959_v5, %v5775_v13  ;;  %v6578_v5 = vor.u32 %v6577_v61, %v6574_v37  ;;  %v6609_v50 = vshrl.u32 %v8837_v42, 16  ;;  %v4341_v39 = vunpack.c.l.b16 %v4194_v45  ;;  %v3494_v45 = vld [vmem:[%s12273_s1 + $0x16c] sm:$0xf] }
 0x44a   :  { %9333 = vst [vmem:[%s12276_s6 + $0x88] sm:$0xff] %v9245_v28   ;;  %v6601_v28 = vrot.slane %v6599_v35, 5  ;;  %v12071_v3 = vrot.slane %v6605_v1, 5 }
 0x44b   :  { %v7133_v57 = vadd.f32 %v11849_v60, %v7065_v53  ;;  %v6579_v62 = vrot.slane %v6578_v5, 4  ;;  %v6594_v53 = vsel %vm9654_vm2, %v6589_v15, %v6593_v9  ;;  %v6611_v48 = vrot.slane %v6609_v50, 4  ;;  %v12379_v50 = vld [vmem:[#allocation12_spill] sm:$0xff] }
 0x44c   :  { %v5116_v17 = vpop.f32.mrf.mxu2  ;;  %v6741_v41 = vunpack.c.l.b16 %v6594_v53  ;;  %v4376_v38 = vpack.c.b16 %v4341_v39, %v4340_v34 }
 0x44d   :  { %v5221_v7 = vadd.f32 %v5116_v17, %v4666_v49  ;;  %v5671_v56 = vpop.f32.mrf.mxu3  ;;  %v7261_v6 = vmul.f32 0.01, %v7133_v57  ;;  %vm7197_vm9 = vcmp.gt.f32.partialorder %v7133_v57, 0.0  ;;  %v6584_v46 = vsel %vm9654_vm2, %v6579_v62, %v12031_v51  ;;  %v8838_v51 = vld [vmem:[%s12272_s3 + $0x17c] sm:$0x1] }
 0x44e   :  { %v4564_v0 = vpop.f32.mrf.mxu1  ;;  %v4202_v49 = vor.u32 %v4201_v8, %v4198_v10  ;;  %v4212_v17 = vor.u32 %v4211_v52, %v12059_v20  ;;  %v6740_v18 = vunpack.c.l.b16 %v6584_v46  ;;  %v6612_v4 = vor.u32 %v6611_v48, %v12071_v3  ;;  %v8839_v62 = vld [vmem:[%s12272_s3 + $0x180] sm:$0xf] }
 0x44f   :  { %v5776_v14 = vadd.f32 %v5671_v56, %v5221_v7  ;;  %v4667_v55 = vadd.f32 %v4564_v0, %v12377_v63  ;;  %v7325_v25 = vsel %vm7197_vm9, %v7133_v57, %v7261_v6  ;;  %v12378_v56 = vld [vmem:[#allocation10_spill] sm:$0xff]  ;;  %v6615_v0 = vshll.u32 %v8838_v51, 16 }
 0x450   :  { %v6964_v36 = vpop.f32.mrf.mxu0  ;;  %v4203_v5 = vrot.slane %v4202_v49, 4  ;;  %v4213_v58 = vrot.slane %v4212_v17, 4  ;;  %v6776_v54 = vpack.c.b16 %v6741_v41, %v6740_v18  ;;  %v6613_v35 = vrot.slane %v6612_v4, 4  ;;  %v8840_v63 = vld [vmem:[%s12272_s3 + $0x184] sm:$0xf] }
 0x451   :  { %v7066_v16 = vadd.f32 %v6961_v33, %v5776_v14  ;;  %4603 = vmatmul.bf16.gmra.mxu1 %v4375_v27  ;;  %5158 = vmatmul.bf16.gmra.mxu2 %v9096_v19  ;;  %v4215_v27 = vshll.u32 %v3492_v44, 16  ;;  %v6617_v15 = vrot.slane %v6615_v0, 5  ;;  %v4233_v52 = vshrl.u32 %v3494_v45, 16 }
 0x452   :  { %5713 = vmatmul.bf16.gmra.mxu3 %v9136_v26  ;;  %v4208_v42 = vsel %vm9654_vm2, %v4203_v5, %v12059_v20  ;;  %v4223_v20 = vshll.u32 %v3493_v24, 16  ;;  %v6633_v34 = vshrl.u32 %v8840_v63, 16 }
 0x453   :  { %7003 = vmatmul.bf16.gmra.mxu0 %v6775_v11  ;;  %v7134_v2 = vadd.f32 %v11849_v60, %v7066_v16  ;;  %v6602_v11 = vor.u32 %v6601_v28, %v6598_v47  ;;  %v4217_v59 = vrot.slane %v4215_v27, 5  ;;  %v6618_v28 = vsel %vm9654_vm2, %v6613_v35, %v6617_v15  ;;  %v3495_v27 = vld [vmem:[%s12273_s1 + $0x170] sm:$0x1] }
 0x454   :  { %v5119_v21 = vpop.f32.mrf.mxu2  ;;  %v4235_v53 = vrot.slane %v4233_v52, 4  ;;  %v6635_v41 = vrot.slane %v6633_v34, 4  ;;  %v4239_v0 = vshll.u32 %v3495_v27, 16 }
 0x455   :  { %vm7198_vm10 = vcmp.gt.f32.partialorder %v7134_v2, 0.0  ;;  %v7262_v13 = vmul.f32 0.01, %v7134_v2  ;;  %v5222_v33 = vadd.f32 %v5119_v21, %v4667_v55  ;;  %v5674_v40 = vpop.f32.mrf.mxu3  ;;  %v6603_v57 = vrot.slane %v6602_v11, 4 }
 0x456   :  { %v4566_v29 = vpop.f32.mrf.mxu1  ;;  %v4218_v8 = vsel %vm9654_vm2, %v4213_v58, %v4217_v59  ;;  %v4229_v55 = vshll.u32 %v3494_v45, 16  ;;  %v6620_v21 = vshrl.u32 %v8839_v62, 16  ;;  %v9138_v45 = vld [vmem:[%s12271_s2 + $0xf8] sm:$0xff]  ;;  %v4241_v35 = vrot.slane %v4239_v0, 5 }
 0x457   :  { %v7326_v37 = vsel %vm7198_vm10, %v7134_v2, %v7262_v13  ;;  %v5777_v61 = vadd.f32 %v5674_v40, %v5222_v33  ;;  %v4668_v19 = vadd.f32 %v4566_v29, %v12378_v56  ;;  %v6608_v6 = vsel %vm9654_vm2, %v6603_v57, %v12071_v3 }
 0x458   :  { %v6966_v22 = vpop.f32.mrf.mxu0  ;;  %v9250_v23 = vpack.c.bf16 %v7326_v37, %v7325_v25  ;;  %v4220_v2 = vshrl.u32 %v3493_v24, 16  ;;  %v6623_v33 = vshll.u32 %v8839_v62, 16  ;;  %v6629_v29 = vshll.u32 %v8840_v63, 16 }
 0x459   :  { %v7067_v7 = vadd.f32 %v6964_v36, %v5777_v61  ;;  %v9137_v36 = vld [vmem:[%s12271_s2 + $0xf0] sm:$0xff]  ;;  %v4225_v61 = vrot.slane %v4223_v20, 5  ;;  %v4343_v56 = vunpack.c.l.b16 %v4218_v8 }
 0x45a   :  { %9334 = vst [vmem:[%s12276_s6 + $0x90] sm:$0xff] %v9250_v23   ;;  %v4222_v25 = vrot.slane %v4220_v2, 4  ;;  %v6622_v23 = vrot.slane %v6620_v21, 4  ;;  %v6625_v51 = vrot.slane %v6623_v33, 5  ;;  %v12118_v18 = vrot.slane %v6629_v29, 5 }
 0x45b   :  { %v7135_v9 = vadd.f32 %v11849_v60, %v7067_v7  ;;  %v4342_v7 = vunpack.c.l.b16 %v4208_v42  ;;  %v8843_v29 = vld [vmem:[%s12272_s3 + $0x190] sm:$0xf] }
 0x45c   :  { %v5121_v43 = vpop.f32.mrf.mxu2  ;;  %v4226_v5 = vor.u32 %v4225_v61, %v4222_v25  ;;  %v6626_v58 = vor.u32 %v6625_v51, %v6622_v23  ;;  %v6636_v57 = vor.u32 %v6635_v41, %v12118_v18 }
 0x45d   :  { %v5223_v26 = vadd.f32 %v5121_v43, %v4668_v19  ;;  %v5676_v12 = vpop.f32.mrf.mxu3  ;;  %v7263_v47 = vmul.f32 0.01, %v7135_v9  ;;  %vm7199_vm11 = vcmp.gt.f32.partialorder %v7135_v9, 0.0  ;;  %v6742_v19 = vunpack.c.l.b16 %v6608_v6  ;;  %v8841_v43 = vld [vmem:[%s12272_s3 + $0x188] sm:$0x1] }
 0x45e   :  { %v4569_v14 = vpop.f32.mrf.mxu1  ;;  %v4377_v24 = vpack.c.b16 %v4343_v56, %v4342_v7  ;;  %v4227_v62 = vrot.slane %v4226_v5, 4  ;;  %v6627_v6 = vrot.slane %v6626_v58, 4  ;;  %v6637_v2 = vrot.slane %v6636_v57, 4  ;;  %v12382_v58 = vld [vmem:[#allocation18_spill] sm:$0xff]  ;;  %v8844_v57 = vld [vmem:[%s12272_s3 + $0x194] sm:$0x1] }
 0x45f   :  { %v5778_v30 = vadd.f32 %v5676_v12, %v5223_v26  ;;  %v4669_v13 = vadd.f32 %v4569_v14, %v12379_v50  ;;  %v7327_v49 = vsel %vm7199_vm11, %v7135_v9, %v7263_v47  ;;  %v12380_v12 = vld [vmem:[#allocation14_spill] sm:$0xff]  ;;  %v6639_v14 = vshll.u32 %v8841_v43, 16  ;;  %v9098_v9 = vld [vmem:[%s12272_s3 + $0x174] sm:$0xff]  ;;  %v3498_v43 = vld [vmem:[%s12273_s1 + $0x17c] sm:$0x1] }
 0x460   :  { %v6969_v16 = vpop.f32.mrf.mxu0  ;;  %v3497_v47 = vld [vmem:[%s12273_s1 + $0x178] sm:$0xf] }
 0x461   :  { %v7068_v10 = vadd.f32 %v6966_v22, %v5778_v30  ;;  %4608 = vmatmul.bf16.gmra.mxu1 %v4376_v38  ;;  %5163 = vmatmul.bf16.gmra.mxu2 %v9097_v32  ;;  %v12113_v22 = vrot.slane %v4229_v55, 5  ;;  %v6743_v38 = vunpack.c.l.b16 %v6618_v28  ;;  %v6641_v63 = vrot.slane %v6639_v14, 5  ;;  %v3496_v55 = vld [vmem:[%s12273_s1 + $0x174] sm:$0xf]  ;;  %v8842_v28 = vld [vmem:[%s12272_s3 + $0x18c] sm:$0xf] }
 0x462   :  { %5718 = vmatmul.bf16.gmra.mxu3 %v9137_v36  ;;  %v4253_v61 = vshll.u32 %v3497_v47, 16  ;;  %v6644_v23 = vshrl.u32 %v8842_v28, 16 }
 0x463   :  { %7008 = vmatmul.bf16.gmra.mxu0 %v6776_v54  ;;  %v7136_v1 = vadd.f32 %v11849_v60, %v7068_v10  ;;  %v4236_v4 = vor.u32 %v4235_v53, %v12113_v22  ;;  %v4232_v52 = vsel %vm9654_vm2, %v4227_v62, %v12113_v22  ;;  %v4257_v53 = vshrl.u32 %v3497_v47, 16 }
 0x464   :  { %v5124_v40 = vpop.f32.mrf.mxu2  ;;  %v4344_v41 = vunpack.c.l.b16 %v4232_v52  ;;  %v4263_v62 = vshll.u32 %v3498_v43, 16 }
 0x465   :  { %vm7200_vm12 = vcmp.gt.f32.partialorder %v7136_v1, 0.0  ;;  %v7264_v39 = vmul.f32 0.01, %v7136_v1  ;;  %v5224_v46 = vadd.f32 %v5124_v40, %v4669_v13  ;;  %v5679_v44 = vpop.f32.mrf.mxu3  ;;  %v4237_v42 = vrot.slane %v4236_v4, 4  ;;  %v12381_v13 = vld [vmem:[#allocation16_spill] sm:$0xff] }
 0x466   :  { %v4571_v37 = vpop.f32.mrf.mxu1  ;;  %v6632_v40 = vsel %vm9654_vm2, %v6627_v6, %v12118_v18  ;;  %v4255_v4 = vrot.slane %v4253_v61, 5  ;;  %v4259_v0 = vrot.slane %v4257_v53, 4  ;;  %v6663_v6 = vshll.u32 %v8844_v57, 16 }
 0x467   :  { %v7328_v3 = vsel %vm7200_vm12, %v7136_v1, %v7264_v39  ;;  %v5779_v48 = vadd.f32 %v5679_v44, %v5224_v46  ;;  %v4670_v32 = vadd.f32 %v4571_v37, %v12380_v12  ;;  %v4242_v21 = vsel %vm9654_vm2, %v4237_v42, %v4241_v35  ;;  %v9139_v35 = vld [vmem:[%s12271_s2 + $0x100] sm:$0xff] }
 0x468   :  { %v6971_v17 = vpop.f32.mrf.mxu0  ;;  %v9255_v11 = vpack.c.bf16 %v7328_v3, %v7327_v49  ;;  %v6642_v39 = vsel %vm9654_vm2, %v6637_v2, %v6641_v63  ;;  %v4247_v46 = vshll.u32 %v3496_v55, 16  ;;  %v6647_v49 = vshll.u32 %v8842_v28, 16  ;;  %v12179_v2 = vld [vmem:[%s12275_s5] ss:$0 sm:$0xff] }
 0x469   :  { %v7069_v26 = vadd.f32 %v6969_v16, %v5779_v48  ;;  %v6777_v16 = vpack.c.b16 %v6743_v38, %v6742_v19  ;;  %v6653_v3 = vshll.u32 %v8843_v29, 16  ;;  %v4345_v7 = vunpack.c.l.b16 %v4242_v21 }
 0x46a   :  { %9335 = vst [vmem:[%s12276_s6 + $0x98] sm:$0xff] %v9255_v11   ;;  %v6657_v11 = vshrl.u32 %v8843_v29, 16  ;;  %v6744_v56 = vunpack.c.l.b16 %v6632_v40  ;;  %v6745_v19 = vunpack.c.l.b16 %v6642_v39  ;;  %v4249_v5 = vrot.slane %v4247_v46, 5  ;;  %v12383_v29 = vld [vmem:[#allocation20_spill] sm:$0xff] }
 0x46b   :  { %v7137_v15 = vadd.f32 %v11849_v60, %v7069_v26  ;;  %v6646_v26 = vrot.slane %v6644_v23, 4  ;;  %v6649_v12 = vrot.slane %v6647_v49, 5  ;;  %v6655_v14 = vrot.slane %v6653_v3, 5 }
 0x46c   :  { %v5126_v59 = vpop.f32.mrf.mxu2  ;;  %v4265_v47 = vrot.slane %v4263_v62, 5 }
 0x46d   :  { %v5225_v36 = vadd.f32 %v5126_v59, %v4670_v32  ;;  %v5681_v54 = vpop.f32.mrf.mxu3  ;;  %v7265_v1 = vmul.f32 0.01, %v7137_v15  ;;  %vm7201_vm13 = vcmp.gt.f32.partialorder %v7137_v15, 0.0 }
 0x46e   :  { %v4574_v30 = vpop.f32.mrf.mxu1 }
 0x46f   :  { %v5780_v10 = vadd.f32 %v5681_v54, %v5225_v36  ;;  %v4671_v33 = vadd.f32 %v4574_v30, %v12381_v13  ;;  %v7329_v48 = vsel %vm7201_vm13, %v7137_v15, %v7265_v1  ;;  %v6659_v36 = vrot.slane %v6657_v11, 4 }
 0x470   :  { %v6974_v8 = vpop.f32.mrf.mxu0  ;;  %v4378_v30 = vpack.c.b16 %v4345_v7, %v4344_v41 }
 0x471   :  { %v7070_v20 = vadd.f32 %v6971_v17, %v5780_v10  ;;  %4613 = vmatmul.bf16.gmra.mxu1 %v4377_v24  ;;  %5168 = vmatmul.bf16.gmra.mxu2 %v9098_v9  ;;  %v4260_v10 = vor.u32 %v4259_v0, %v4255_v4  ;;  %v6660_v52 = vor.u32 %v6659_v36, %v6655_v14 }
 0x472   :  { %5723 = vmatmul.bf16.gmra.mxu3 %v9138_v45  ;;  %v9099_v45 = vld [vmem:[%s12272_s3 + $0x180] sm:$0xff] }
 0x473   :  { %7013 = vmatmul.bf16.gmra.mxu0 %v6777_v16  ;;  %v7138_v50 = vadd.f32 %v11849_v60, %v7070_v20  ;;  %v4244_v60 = vshrl.u32 %v3496_v55, 16  ;;  %v6778_v16 = vpack.c.b16 %v6745_v19, %v6744_v56  ;;  %v6661_v39 = vrot.slane %v6660_v52, 4  ;;  %v12384_v56 = vld [vmem:[#allocation22_spill] sm:$0xff] }
 0x474   :  { %v5129_v34 = vpop.f32.mrf.mxu2 }
 0x475   :  { %vm7202_vm14 = vcmp.gt.f32.partialorder %v7138_v50, 0.0  ;;  %v7266_v44 = vmul.f32 0.01, %v7138_v50  ;;  %v5226_v25 = vadd.f32 %v5129_v34, %v4671_v33  ;;  %v5684_v37 = vpop.f32.mrf.mxu3  ;;  %v4246_v38 = vrot.slane %v4244_v60, 4 }
 0x476   :  { %v4576_v22 = vpop.f32.mrf.mxu1  ;;  %v6665_v33 = vrot.slane %v6663_v6, 5 }
 0x477   :  { %v7330_v17 = vsel %vm7202_vm14, %v7138_v50, %v7266_v44  ;;  %v5781_v27 = vadd.f32 %v5684_v37, %v5226_v25  ;;  %v4672_v59 = vadd.f32 %v4576_v22, %v12382_v58  ;;  %v4250_v15 = vor.u32 %v4249_v5, %v4246_v38 }
 0x478   :  { %v6976_v51 = vpop.f32.mrf.mxu0  ;;  %v9260_v18 = vpack.c.bf16 %v7330_v17, %v7329_v48  ;;  %v4261_v50 = vrot.slane %v4260_v10, 4  ;;  %v6666_v17 = vsel %vm9654_vm2, %v6661_v39, %v6665_v33 }
 0x479   :  { %v7071_v32 = vadd.f32 %v6974_v8, %v5781_v27  ;;  %v6650_v8 = vor.u32 %v6649_v12, %v6646_v26  ;;  %v4251_v1 = vrot.slane %v4250_v15, 4  ;;  %v6747_v41 = vunpack.c.l.b16 %v6666_v17  ;;  %v9140_v26 = vld [vmem:[%s12271_s2 + $0x108] sm:$0xff] }
 0x47a   :  { %9336 = vst [vmem:[%s12276_s6 + $0xa0] sm:$0xff] %v9260_v18   ;;  %v4266_v22 = vsel %vm9654_vm2, %v4261_v50, %v4265_v47 }
 0x47b   :  { %v7139_v63 = vadd.f32 %v12179_v2, %v7071_v32  ;;  %v6651_v13 = vrot.slane %v6650_v8, 4  ;;  %v4256_v61 = vsel %vm9654_vm2, %v4251_v1, %v4255_v4  ;;  %v4347_v11 = vunpack.c.l.b16 %v4266_v22 }
 0x47c   :  { %v5131_v54 = vpop.f32.mrf.mxu2 }
 0x47d   :  { %v5227_v24 = vadd.f32 %v5131_v54, %v4672_v59  ;;  %v5686_v9 = vpop.f32.mrf.mxu3  ;;  %v7267_v40 = vmul.f32 0.01, %v7139_v63  ;;  %vm7203_vm15 = vcmp.gt.f32.partialorder %v7139_v63, 0.0  ;;  %v6656_v53 = vsel %vm9654_vm2, %v6651_v13, %v6655_v14  ;;  %v12385_v54 = vld [vmem:[#allocation24_spill] sm:$0xff] }
 0x47e   :  { %v4579_v42 = vpop.f32.mrf.mxu1  ;;  %v6746_v18 = vunpack.c.l.b16 %v6656_v53 }
 0x47f   :  { %v5782_v20 = vadd.f32 %v5686_v9, %v5227_v24  ;;  %v4673_v34 = vadd.f32 %v4579_v42, %v12383_v29  ;;  %v7331_v23 = vsel %vm7203_vm15, %v7139_v63, %v7267_v40  ;;  %v12386_v63 = vld [vmem:[#allocation26_spill] sm:$0xff] }
 0x480   :  { %v6979_v55 = vpop.f32.mrf.mxu0  ;;  %v6779_v12 = vpack.c.b16 %v6747_v41, %v6746_v18  ;;  %v12387_v29 = vld [vmem:[#allocation2_spill] sm:$0xff] }
 0x481   :  { %v7072_v21 = vadd.f32 %v6976_v51, %v5782_v20  ;;  %4618 = vmatmul.bf16.gmra.mxu1 %v4378_v30  ;;  %5173 = vmatmul.bf16.gmra.mxu2 %v9099_v45  ;;  %v4346_v51 = vunpack.c.l.b16 %v4256_v61 }
 0x482   :  { %5728 = vmatmul.bf16.gmra.mxu3 %v9139_v35 }
 0x483   :  { %7018 = vmatmul.bf16.gmra.mxu0 %v6778_v16  ;;  %v7140_v28 = vadd.f32 %v12179_v2, %v7072_v21  ;;  %v4379_v4 = vpack.c.b16 %v4347_v11, %v4346_v51 }
 0x484   :  { %v5134_v60 = vpop.f32.mrf.mxu2 }
 0x485   :  { %vm7204_vm0 = vcmp.gt.f32.partialorder %v7140_v28, 0.0  ;;  %v7268_v46 = vmul.f32 0.01, %v7140_v28  ;;  %v5228_v44 = vadd.f32 %v5134_v60, %v4673_v34  ;;  %v5689_v25 = vpop.f32.mrf.mxu3 }
 0x486   :  { %v4581_v37 = vpop.f32.mrf.mxu1 }
 0x487   :  { %v7332_v49 = vsel %vm7204_vm0, %v7140_v28, %v7268_v46  ;;  %v5783_v3 = vadd.f32 %v5689_v25, %v5228_v44  ;;  %v4674_v19 = vadd.f32 %v4581_v37, %v12384_v56 }
 0x488   :  { %v6981_v48 = vpop.f32.mrf.mxu0  ;;  %v9265_v27 = vpack.c.bf16 %v7332_v49, %v7331_v23 }
 0x489   :  { %v7073_v7 = vadd.f32 %v6979_v55, %v5783_v3  ;;  %v12388_v3 = vld [vmem:[#allocation3_spill] sm:$0xff] }
 0x48a   :  { %9337 = vst [vmem:[%s12276_s6 + $0xa8] sm:$0xff] %v9265_v27  }
 0x48b   :  { %v7141_v32 = vadd.f32 %v12179_v2, %v7073_v7 }
 0x48c   :  { %v5136_v43 = vpop.f32.mrf.mxu2 }
 0x48d   :  { %v5229_v38 = vadd.f32 %v5136_v43, %v4674_v19  ;;  %v5691_v5 = vpop.f32.mrf.mxu3  ;;  %v7269_v14 = vmul.f32 0.01, %v7141_v32  ;;  %vm7205_vm2 = vcmp.gt.f32.partialorder %v7141_v32, 0.0 }
 0x48e   :  { %v4584_v0 = vpop.f32.mrf.mxu1 }
 0x48f   :  { %v5784_v58 = vadd.f32 %v5691_v5, %v5229_v38  ;;  %v4675_v24 = vadd.f32 %v4584_v0, %v12385_v54  ;;  %v7333_v42 = vsel %vm7205_vm2, %v7141_v32, %v7269_v14  ;;  %v12389_v38 = vld [vmem:[#allocation4_spill] sm:$0xff]  ;;  %v12390_v54 = vld [vmem:[#allocation5_spill] sm:$0xff] }
 0x490   :  { %v6984_v59 = vpop.f32.mrf.mxu0 }
 0x491   :  { %v7074_v57 = vadd.f32 %v6981_v48, %v5784_v58  ;;  %4623 = vmatmul.bf16.gmra.mxu1 %v4379_v4  ;;  %5178 = vmatmul.bf16.gmra.mxu2 %v9100_v31 }
 0x492   :  { %5733 = vmatmul.bf16.gmra.mxu3 %v9140_v26 }
 0x493   :  { %7023 = vmatmul.bf16.gmra.mxu0 %v6779_v12  ;;  %v7142_v36 = vadd.f32 %v12179_v2, %v7074_v57 }
 0x494   :  { %v5139_v9 = vpop.f32.mrf.mxu2 }
 0x495   :  { %vm7206_vm1 = vcmp.gt.f32.partialorder %v7142_v36, 0.0  ;;  %v7270_v30 = vmul.f32 0.01, %v7142_v36  ;;  %v5230_v45 = vadd.f32 %v5139_v9, %v4675_v24  ;;  %v5694_v16 = vpop.f32.mrf.mxu3 }
 0x496   :  { %v4586_v62 = vpop.f32.mrf.mxu1 }
 0x497   :  { %v7334_v35 = vsel %vm7206_vm1, %v7142_v36, %v7270_v30  ;;  %v5785_v15 = vadd.f32 %v5694_v16, %v5230_v45  ;;  %v4676_v20 = vadd.f32 %v4586_v62, %v12386_v63 }
 0x498   :  { %v6986_v10 = vpop.f32.mrf.mxu0  ;;  %v9270_v8 = vpack.c.bf16 %v7334_v35, %v7333_v42 }
 0x499   :  { %v7075_v6 = vadd.f32 %v6984_v59, %v5785_v15 }
 0x49a   :  { %9338 = vst [vmem:[%s12276_s6 + $0xb0] sm:$0xff] %v9270_v8  }
 0x49b   :  { %v7143_v1 = vadd.f32 %v12179_v2, %v7075_v6  ;;  %v12391_v6 = vld [vmem:[#allocation6_spill] sm:$0xff] }
 0x49c   :  { %v5141_v55 = vpop.f32.mrf.mxu2 }
 0x49d   :  { %v5231_v52 = vadd.f32 %v5141_v55, %v4676_v20  ;;  %v5696_v21 = vpop.f32.mrf.mxu3  ;;  %v7271_v40 = vmul.f32 0.01, %v7143_v1  ;;  %vm7207_vm3 = vcmp.gt.f32.partialorder %v7143_v1, 0.0 }
 0x49e   :  { %v4589_v47 = vpop.f32.mrf.mxu1 }
 0x49f   :  { %v5786_v50 = vadd.f32 %v5696_v21, %v5231_v52  ;;  %v4677_v34 = vadd.f32 %v4589_v47, %v12387_v29  ;;  %v7335_v37 = vsel %vm7207_vm3, %v7143_v1, %v7271_v40  ;;  %v12392_v29 = vld [vmem:[#allocation7_spill] sm:$0xff] }
 0x4a0   :  { %v6989_v13 = vpop.f32.mrf.mxu0 }
 0x4a1   :  { %v7076_v33 = vadd.f32 %v6986_v10, %v5786_v50 }
 0x4a3   :  { %v7144_v28 = vadd.f32 %v12179_v2, %v7076_v33 }
 0x4a4   :  { %v5144_v39 = vpop.f32.mrf.mxu2 }
 0x4a5   :  { %vm7208_vm4 = vcmp.gt.f32.partialorder %v7144_v28, 0.0  ;;  %v7272_v60 = vmul.f32 0.01, %v7144_v28  ;;  %v5232_v46 = vadd.f32 %v5144_v39, %v4677_v34  ;;  %v5699_v44 = vpop.f32.mrf.mxu3 }
 0x4a6   :  { %v4591_v25 = vpop.f32.mrf.mxu1 }
 0x4a7   :  { %v7336_v61 = vsel %vm7208_vm4, %v7144_v28, %v7272_v60  ;;  %v5787_v22 = vadd.f32 %v5699_v44, %v5232_v46  ;;  %v4678_v48 = vadd.f32 %v4591_v25, %v12388_v3 }
 0x4a8   :  { %v6991_v53 = vpop.f32.mrf.mxu0  ;;  %v9275_v23 = vpack.c.bf16 %v7336_v61, %v7335_v37 }
 0x4a9   :  { %v7077_v49 = vadd.f32 %v6989_v13, %v5787_v22 }
 0x4aa   :  { %9339 = vst [vmem:[%s12276_s6 + $0xb8] sm:$0xff] %v9275_v23  }
 0x4ab   :  { %v7145_v18 = vadd.f32 %v12179_v2, %v7077_v49  ;;  %v12393_v49 = vld [vmem:[#allocation9_spill] sm:$0xff] }
 0x4ac   :  { %v5146_v17 = vpop.f32.mrf.mxu2 }
 0x4ad   :  { %v5233_v27 = vadd.f32 %v5146_v17, %v4678_v48  ;;  %v5701_v51 = vpop.f32.mrf.mxu3  ;;  %v7273_v19 = vmul.f32 0.01, %v7145_v18  ;;  %vm7209_vm5 = vcmp.gt.f32.partialorder %v7145_v18, 0.0 }
 0x4ae   :  { %v4594_v11 = vpop.f32.mrf.mxu1 }
 0x4af   :  { %v5788_v41 = vadd.f32 %v5701_v51, %v5233_v27  ;;  %v4679_v5 = vadd.f32 %v4594_v11, %v12389_v38  ;;  %v7337_v32 = vsel %vm7209_vm5, %v7145_v18, %v7273_v19  ;;  %v12394_v38 = vld [vmem:[#allocation11_spill] sm:$0xff] }
 0x4b0   :  { %v6994_v7 = vpop.f32.mrf.mxu0 }
 0x4b1   :  { %v7078_v56 = vadd.f32 %v6991_v53, %v5788_v41 }
 0x4b3   :  { %v7146_v43 = vadd.f32 %v12179_v2, %v7078_v56 }
 0x4b4   :  { %v5149_v4 = vpop.f32.mrf.mxu2 }
 0x4b5   :  { %vm7210_vm6 = vcmp.gt.f32.partialorder %v7146_v43, 0.0  ;;  %v7274_v31 = vmul.f32 0.01, %v7146_v43  ;;  %v5234_v0 = vadd.f32 %v5149_v4, %v4679_v5  ;;  %v5704_v26 = vpop.f32.mrf.mxu3 }
 0x4b6   :  { %v4596_v12 = vpop.f32.mrf.mxu1 }
 0x4b7   :  { %v7338_v58 = vsel %vm7210_vm6, %v7146_v43, %v7274_v31  ;;  %v5789_v59 = vadd.f32 %v5704_v26, %v5234_v0  ;;  %v4680_v24 = vadd.f32 %v4596_v12, %v12390_v54 }
 0x4b8   :  { %v6996_v57 = vpop.f32.mrf.mxu0  ;;  %v9280_v14 = vpack.c.bf16 %v7338_v58, %v7337_v32 }
 0x4b9   :  { %v7079_v36 = vadd.f32 %v6994_v7, %v5789_v59 }
 0x4ba   :  { %9340 = vst [vmem:[%s12276_s6 + $0xc0] sm:$0xff] %v9280_v14  }
 0x4bb   :  { %v7147_v62 = vadd.f32 %v12179_v2, %v7079_v36  ;;  %v12395_v36 = vld [vmem:[#allocation13_spill] sm:$0xff] }
 0x4bc   :  { %v5151_v9 = vpop.f32.mrf.mxu2 }
 0x4bd   :  { %v5235_v30 = vadd.f32 %v5151_v9, %v4680_v24  ;;  %v5706_v45 = vpop.f32.mrf.mxu3  ;;  %v7275_v10 = vmul.f32 0.01, %v7147_v62  ;;  %vm7211_vm7 = vcmp.gt.f32.partialorder %v7147_v62, 0.0 }
 0x4be   :  { %v4599_v16 = vpop.f32.mrf.mxu1 }
 0x4bf   :  { %v5790_v42 = vadd.f32 %v5706_v45, %v5235_v30  ;;  %v4681_v63 = vadd.f32 %v4599_v16, %v12391_v6  ;;  %v7339_v1 = vsel %vm7211_vm7, %v7147_v62, %v7275_v10  ;;  %v12396_v6 = vld [vmem:[#allocation15_spill] sm:$0xff] }
 0x4c0   :  { %v6999_v35 = vpop.f32.mrf.mxu0 }
 0x4c1   :  { %v7080_v15 = vadd.f32 %v6996_v57, %v5790_v42 }
 0x4c3   :  { %v7148_v8 = vadd.f32 %v12179_v2, %v7080_v15 }
 0x4c4   :  { %v5154_v20 = vpop.f32.mrf.mxu2 }
 0x4c5   :  { %vm7212_vm8 = vcmp.gt.f32.partialorder %v7148_v8, 0.0  ;;  %v7276_v55 = vmul.f32 0.01, %v7148_v8  ;;  %v5236_v52 = vadd.f32 %v5154_v20, %v4681_v63  ;;  %v5709_v21 = vpop.f32.mrf.mxu3 }
 0x4c6   :  { %v4601_v47 = vpop.f32.mrf.mxu1 }
 0x4c7   :  { %v7340_v50 = vsel %vm7212_vm8, %v7148_v8, %v7276_v55  ;;  %v5791_v13 = vadd.f32 %v5709_v21, %v5236_v52  ;;  %v4682_v34 = vadd.f32 %v4601_v47, %v12392_v29 }
 0x4c8   :  { %v7001_v33 = vpop.f32.mrf.mxu0  ;;  %v9285_v40 = vpack.c.bf16 %v7340_v50, %v7339_v1 }
 0x4c9   :  { %v7081_v28 = vadd.f32 %v6999_v35, %v5791_v13 }
 0x4ca   :  { %9341 = vst [vmem:[%s12276_s6 + $0xc8] sm:$0xff] %v9285_v40  }
 0x4cb   :  { %v7149_v25 = vadd.f32 %v12179_v2, %v7081_v28  ;;  %v12397_v28 = vld [vmem:[#allocation17_spill] sm:$0xff] }
 0x4cc   :  { %v5156_v39 = vpop.f32.mrf.mxu2 }
 0x4cd   :  { %v5237_v60 = vadd.f32 %v5156_v39, %v4682_v34  ;;  %v5711_v46 = vpop.f32.mrf.mxu3  ;;  %v7277_v53 = vmul.f32 0.01, %v7149_v25  ;;  %vm7213_vm9 = vcmp.gt.f32.partialorder %v7149_v25, 0.0 }
 0x4ce   :  { %v4604_v44 = vpop.f32.mrf.mxu1 }
 0x4cf   :  { %v5792_v37 = vadd.f32 %v5711_v46, %v5237_v60  ;;  %v4683_v3 = vadd.f32 %v4604_v44, %v12393_v49  ;;  %v7341_v18 = vsel %vm7213_vm9, %v7149_v25, %v7277_v53  ;;  %v12398_v49 = vld [vmem:[#allocation19_spill] sm:$0xff] }
 0x4d0   :  { %v7004_v61 = vpop.f32.mrf.mxu0 }
 0x4d1   :  { %v7082_v22 = vadd.f32 %v7001_v33, %v5792_v37 }
 0x4d3   :  { %v7150_v23 = vadd.f32 %v12179_v2, %v7082_v22 }
 0x4d4   :  { %v5159_v48 = vpop.f32.mrf.mxu2 }
 0x4d5   :  { %vm7214_vm10 = vcmp.gt.f32.partialorder %v7150_v23, 0.0  ;;  %v7278_v17 = vmul.f32 0.01, %v7150_v23  ;;  %v5238_v27 = vadd.f32 %v5159_v48, %v4683_v3  ;;  %v5714_v51 = vpop.f32.mrf.mxu3 }
 0x4d6   :  { %v4606_v11 = vpop.f32.mrf.mxu1 }
 0x4d7   :  { %v7342_v41 = vsel %vm7214_vm10, %v7150_v23, %v7278_v17  ;;  %v5793_v7 = vadd.f32 %v5714_v51, %v5238_v27  ;;  %v4684_v5 = vadd.f32 %v4606_v11, %v12394_v38 }
 0x4d8   :  { %v7006_v56 = vpop.f32.mrf.mxu0  ;;  %v9290_v19 = vpack.c.bf16 %v7342_v41, %v7341_v18 }
 0x4d9   :  { %v7083_v43 = vadd.f32 %v7004_v61, %v5793_v7 }
 0x4da   :  { %9342 = vst [vmem:[%s12276_s6 + $0xd0] sm:$0xff] %v9290_v19  }
 0x4db   :  { %v7151_v12 = vadd.f32 %v12179_v2, %v7083_v43  ;;  %v12399_v43 = vld [vmem:[#allocation21_spill] sm:$0xff] }
 0x4dc   :  { %v5161_v4 = vpop.f32.mrf.mxu2 }
 0x4dd   :  { %v5239_v31 = vadd.f32 %v5161_v4, %v4684_v5  ;;  %v5716_v0 = vpop.f32.mrf.mxu3  ;;  %v7279_v57 = vmul.f32 0.01, %v7151_v12  ;;  %vm7215_vm11 = vcmp.gt.f32.partialorder %v7151_v12, 0.0 }
 0x4de   :  { %v4609_v26 = vpop.f32.mrf.mxu1 }
 0x4df   :  { %v5794_v32 = vadd.f32 %v5716_v0, %v5239_v31  ;;  %v4685_v54 = vadd.f32 %v4609_v26, %v12395_v36  ;;  %v7343_v62 = vsel %vm7215_vm11, %v7151_v12, %v7279_v57 }
 0x4e0   :  { %v7009_v58 = vpop.f32.mrf.mxu0 }
 0x4e1   :  { %v7084_v59 = vadd.f32 %v7006_v56, %v5794_v32 }
 0x4e3   :  { %v7152_v14 = vadd.f32 %v12179_v2, %v7084_v59 }
 0x4e4   :  { %v5164_v24 = vpop.f32.mrf.mxu2 }
 0x4e5   :  { %vm7216_vm12 = vcmp.gt.f32.partialorder %v7152_v14, 0.0  ;;  %v7280_v9 = vmul.f32 0.01, %v7152_v14  ;;  %v5240_v30 = vadd.f32 %v5164_v24, %v4685_v54  ;;  %v5719_v45 = vpop.f32.mrf.mxu3 }
 0x4e6   :  { %v4611_v16 = vpop.f32.mrf.mxu1 }
 0x4e7   :  { %v7344_v42 = vsel %vm7216_vm12, %v7152_v14, %v7280_v9  ;;  %v5795_v35 = vadd.f32 %v5719_v45, %v5240_v30  ;;  %v4686_v63 = vadd.f32 %v4611_v16, %v12396_v6  ;;  %v12400_v14 = vld [vmem:[#allocation23_spill] sm:$0xff] }
 0x4e8   :  { %v7011_v15 = vpop.f32.mrf.mxu0  ;;  %v9295_v10 = vpack.c.bf16 %v7344_v42, %v7343_v62 }
 0x4e9   :  { %v7085_v8 = vadd.f32 %v7009_v58, %v5795_v35 }
 0x4ea   :  { %9343 = vst [vmem:[%s12276_s6 + $0xd8] sm:$0xff] %v9295_v10   ;;  %v12401_v10 = vld [vmem:[#allocation25_spill] sm:$0xff] }
 0x4eb   :  { %v7153_v47 = vadd.f32 %v12179_v2, %v7085_v8 }
 0x4ec   :  { %v5166_v20 = vpop.f32.mrf.mxu2 }
 0x4ed   :  { %v5241_v55 = vadd.f32 %v5166_v20, %v4686_v63  ;;  %v5721_v52 = vpop.f32.mrf.mxu3  ;;  %v7281_v33 = vmul.f32 0.01, %v7153_v47  ;;  %vm7217_vm13 = vcmp.gt.f32.partialorder %v7153_v47, 0.0 }
 0x4ee   :  { %v4614_v21 = vpop.f32.mrf.mxu1 }
 0x4ef   :  { %v5796_v1 = vadd.f32 %v5721_v52, %v5241_v55  ;;  %v4687_v29 = vadd.f32 %v4614_v21, %v12397_v28  ;;  %v7345_v25 = vsel %vm7217_vm13, %v7153_v47, %v7281_v33 }
 0x4f0   :  { %v7014_v50 = vpop.f32.mrf.mxu0 }
 0x4f1   :  { %v7086_v13 = vadd.f32 %v7011_v15, %v5796_v1 }
 0x4f3   :  { %v7154_v40 = vadd.f32 %v12179_v2, %v7086_v13 }
 0x4f4   :  { %v5169_v34 = vpop.f32.mrf.mxu2 }
 0x4f5   :  { %vm7218_vm14 = vcmp.gt.f32.partialorder %v7154_v40, 0.0  ;;  %v7282_v39 = vmul.f32 0.01, %v7154_v40  ;;  %v5242_v60 = vadd.f32 %v5169_v34, %v4687_v29  ;;  %v5724_v46 = vpop.f32.mrf.mxu3 }
 0x4f6   :  { %v4616_v44 = vpop.f32.mrf.mxu1 }
 0x4f7   :  { %v7346_v37 = vsel %vm7218_vm14, %v7154_v40, %v7282_v39  ;;  %v5797_v61 = vadd.f32 %v5724_v46, %v5242_v60  ;;  %v4688_v3 = vadd.f32 %v4616_v44, %v12398_v49  ;;  %v12402_v40 = vld [vmem:[#allocation27_spill] sm:$0xff] }
 0x4f8   :  { %v9300_v22 = vpack.c.bf16 %v7346_v37, %v7345_v25  ;;  %v7016_v53 = vpop.f32.mrf.mxu0 }
 0x4f9   :  { %v7087_v23 = vadd.f32 %v7014_v50, %v5797_v61 }
 0x4fa   :  { %9344 = vst [vmem:[%s12276_s6 + $0xe0] sm:$0xff] %v9300_v22  }
 0x4fb   :  { %v7155_v11 = vadd.f32 %v12179_v2, %v7087_v23 }
 0x4fc   :  { %v5171_v48 = vpop.f32.mrf.mxu2 }
 0x4fd   :  { %v5243_v17 = vadd.f32 %v5171_v48, %v4688_v3  ;;  %v5726_v27 = vpop.f32.mrf.mxu3  ;;  %v7283_v56 = vmul.f32 0.01, %v7155_v11  ;;  %vm7219_vm15 = vcmp.gt.f32.partialorder %v7155_v11, 0.0 }
 0x4fe   :  { %v4619_v51 = vpop.f32.mrf.mxu1 }
 0x4ff   :  { %v5798_v18 = vadd.f32 %v5726_v27, %v5243_v17  ;;  %v4689_v38 = vadd.f32 %v4619_v51, %v12399_v43  ;;  %v7347_v12 = vsel %vm7219_vm15, %v7155_v11, %v7283_v56 }
 0x500   :  { %v7019_v7 = vpop.f32.mrf.mxu0 }
 0x501   :  { %v7088_v41 = vadd.f32 %v7016_v53, %v5798_v18 }
 0x503   :  { %v7156_v19 = vadd.f32 %v12179_v2, %v7088_v41 }
 0x504   :  { %v5174_v5 = vpop.f32.mrf.mxu2 }
 0x505   :  { %vm7220_vm0 = vcmp.gt.f32.partialorder %v7156_v19, 0.0  ;;  %v7284_v4 = vmul.f32 0.01, %v7156_v19  ;;  %v5244_v31 = vadd.f32 %v5174_v5, %v4689_v38  ;;  %v5729_v0 = vpop.f32.mrf.mxu3 }
 0x506   :  { %v4621_v26 = vpop.f32.mrf.mxu1 }
 0x507   :  { %v7348_v32 = vsel %vm7220_vm0, %v7156_v19, %v7284_v4  ;;  %v5799_v58 = vadd.f32 %v5729_v0, %v5244_v31  ;;  %v4690_v36 = vadd.f32 %v4621_v26, %v12400_v14 }
 0x508   :  { %v9305_v59 = vpack.c.bf16 %v7348_v32, %v7347_v12  ;;  %v7021_v54 = vpop.f32.mrf.mxu0 }
 0x509   :  { %v7089_v57 = vadd.f32 %v7019_v7, %v5799_v58 }
 0x50a   :  { %9345 = vst [vmem:[%s12276_s6 + $0xe8] sm:$0xff] %v9305_v59  }
 0x50b   :  { %v7157_v16 = vadd.f32 %v12179_v2, %v7089_v57 }
 0x50c   :  { %v5176_v24 = vpop.f32.mrf.mxu2 }
 0x50d   :  { %v5245_v9 = vadd.f32 %v5176_v24, %v4690_v36  ;;  %v5731_v30 = vpop.f32.mrf.mxu3  ;;  %v7285_v35 = vmul.f32 0.01, %v7157_v16  ;;  %vm7221_vm2 = vcmp.gt.f32.partialorder %v7157_v16, 0.0 }
 0x50e   :  { %v4624_v45 = vpop.f32.mrf.mxu1 }
 0x50f   :  { %v5800_v62 = vadd.f32 %v5731_v30, %v5245_v9  ;;  %v4691_v8 = vadd.f32 %v4624_v45, %v12401_v10  ;;  %v7349_v21 = vsel %vm7221_vm2, %v7157_v16, %v7285_v35 }
 0x510   :  { %v7024_v52 = vpop.f32.mrf.mxu0 }
 0x511   :  { %v7090_v42 = vadd.f32 %v7021_v54, %v5800_v62 }
 0x513   :  { %v7158_v15 = vadd.f32 %v12179_v2, %v7090_v42 }
 0x514   :  { %v5179_v6 = vpop.f32.mrf.mxu2 }
 0x515   :  { %vm7222_vm1 = vcmp.gt.f32.partialorder %v7158_v15, 0.0  ;;  %v7286_v63 = vmul.f32 0.01, %v7158_v15  ;;  %v5246_v20 = vadd.f32 %v5179_v6, %v4691_v8  ;;  %v5734_v55 = vpop.f32.mrf.mxu3 }
 0x516   :  { %v4626_v13 = vpop.f32.mrf.mxu1 }
 0x517   :  { %v7350_v47 = vsel %vm7222_vm1, %v7158_v15, %v7286_v63  ;;  %v5801_v1 = vadd.f32 %v5734_v55, %v5246_v20  ;;  %v4692_v28 = vadd.f32 %v4626_v13, %v12402_v40 }
 0x518   :  { %v9310_v50 = vpack.c.bf16 %v7350_v47, %v7349_v21  ;;  %v7026_v44 = vpop.f32.mrf.mxu0 }
 0x519   :  { %v7091_v33 = vadd.f32 %v7024_v52, %v5801_v1 }
 0x51a   :  { %9346 = vst [vmem:[%s12276_s6 + $0xf0] sm:$0xff] %v9310_v50  }
 0x51b   :  { %v7159_v60 = vadd.f32 %v12179_v2, %v7091_v33 }
 0x51c   :  { %v5181_v29 = vpop.f32.mrf.mxu2 }
 0x51d   :  { %v5247_v34 = vadd.f32 %v5181_v29, %v4692_v28  ;;  %v5736_v39 = vpop.f32.mrf.mxu3  ;;  %v7287_v37 = vmul.f32 0.01, %v7159_v60  ;;  %vm7223_vm3 = vcmp.gt.f32.partialorder %v7159_v60, 0.0 }
 0x51f   :  { %v5802_v46 = vadd.f32 %v5736_v39, %v5247_v34  ;;  %v7351_v53 = vsel %vm7223_vm3, %v7159_v60, %v7287_v37 }
 0x521   :  { %v7092_v25 = vadd.f32 %v7026_v44, %v5802_v46 }
 0x523   :  { %v7160_v61 = vadd.f32 %v12179_v2, %v7092_v25 }
 0x525   :  { %vm7224_vm4 = vcmp.gt.f32.partialorder %v7160_v61, 0.0  ;;  %v7288_v22 = vmul.f32 0.01, %v7160_v61 }
 0x527   :  { %v7352_v23 = vsel %vm7224_vm4, %v7160_v61, %v7288_v22 }
 0x528   :  { %v9315_v49 = vpack.c.bf16 %v7352_v23, %v7351_v53 }
 0x52a   :  { %9347 = vst [vmem:[%s12276_s6 + $0xf8] sm:$0xff] %v9315_v49  }

</bundles_post_ra>
